<compile_context>
chip_gen: v5e
topology: v5e:2x2
jax: 0.10.0
libtpu: 0.0.40
codegen_flags: <defaults>
</compile_context>

<pallas_src>
import functools

import jax
import jax.numpy as jnp
from jax.experimental import pallas as pl
from jax.experimental.pallas import tpu as pltpu

LANE = 128


def _round_up(x, m):
    return (x + m - 1) // m * m


def _pick_tk(K, cap=2048):
    """Largest multiple-of-128 divisor of K that is <= cap (K is a 128-multiple)."""
    cap = min(K, cap)
    tk = cap - cap % LANE
    while tk >= LANE:
        if K % tk == 0:
            return tk
        tk -= LANE
    return LANE


# ---------------------------------------------------------------------------
# Fused matmul + bias + LeakyReLU + residual kernels (the conv hot path)
# ---------------------------------------------------------------------------
def _make_fused_kernel_single_k(slope, has_residual):
    """Whole K in one tile: 2-D grid, direct store, no scratch accumulator."""
    if has_residual:
        def kernel(x_ref, w_ref, b_ref, r_ref, o_ref):
            out = jnp.dot(x_ref[...], w_ref[...],
                          preferred_element_type=jnp.float32)
            out = out + b_ref[...]
            if slope is not None:
                out = jnp.where(out >= 0, out, slope * out)
            out = out + r_ref[...].astype(jnp.float32)
            o_ref[...] = out.astype(o_ref.dtype)
    else:
        def kernel(x_ref, w_ref, b_ref, o_ref):
            out = jnp.dot(x_ref[...], w_ref[...],
                          preferred_element_type=jnp.float32)
            out = out + b_ref[...]
            if slope is not None:
                out = jnp.where(out >= 0, out, slope * out)
            o_ref[...] = out.astype(o_ref.dtype)
    return kernel


def _make_fused_kernel_multi_k(slope, has_residual):
    """K-reduction grid axis with f32 VMEM accumulator (pl.when init/finalize)."""
    if has_residual:
        def kernel(x_ref, w_ref, b_ref, r_ref, o_ref, acc_ref):
            k = pl.program_id(2)

            @pl.when(k == 0)
            def _():
                acc_ref[...] = jnp.zeros_like(acc_ref)

            acc_ref[...] += jnp.dot(x_ref[...], w_ref[...],
                                    preferred_element_type=jnp.float32)

            @pl.when(k == pl.num_programs(2) - 1)
            def _():
                out = acc_ref[...] + b_ref[...]
                if slope is not None:
                    out = jnp.where(out >= 0, out, slope * out)
                out = out + r_ref[...].astype(jnp.float32)
                o_ref[...] = out.astype(o_ref.dtype)
    else:
        def kernel(x_ref, w_ref, b_ref, o_ref, acc_ref):
            k = pl.program_id(2)

            @pl.when(k == 0)
            def _():
                acc_ref[...] = jnp.zeros_like(acc_ref)

            acc_ref[...] += jnp.dot(x_ref[...], w_ref[...],
                                    preferred_element_type=jnp.float32)

            @pl.when(k == pl.num_programs(2) - 1)
            def _():
                out = acc_ref[...] + b_ref[...]
                if slope is not None:
                    out = jnp.where(out >= 0, out, slope * out)
                o_ref[...] = out.astype(o_ref.dtype)
    return kernel


def fused_matmul_bias_act(x2d, w2d, b2d, *, slope=None, residual=None):
    """out = leaky_relu(x2d @ w2d + b) [+ residual], Pallas fused matmul.

    x2d:      (M, K)        bf16, K multiple of 128
    w2d:      (K, Cout_pad) bf16 (pre-packed, channel-padded)
    b2d:      (1, Cout_pad) f32
    residual: (M, Cout_pad) bf16 or None
    returns   (M, Cout_pad) bf16
    """
    M, K = x2d.shape
    K2, Cout = w2d.shape
    assert K == K2 and K % LANE == 0 and Cout % LANE == 0

    tm = min(512, _round_up(M, 8))
    tn = 256 if Cout % 256 == 0 else 128
    tk = _pick_tk(K)
    n_k = K // tk

    M_pad = _round_up(M, tm)
    if M_pad != M:
        x2d = jnp.pad(x2d, ((0, M_pad - M), (0, 0)))
        if residual is not None:
            residual = jnp.pad(residual, ((0, M_pad - M), (0, 0)))

    has_res = residual is not None

    if n_k == 1:
        # Fast path: no reduction axis, no scratch, direct lane-dense store.
        grid = (M_pad // tm, Cout // tn)
        in_specs = [
            pl.BlockSpec((tm, K), lambda i, j: (i, 0)),   # activations / patches
            pl.BlockSpec((K, tn), lambda i, j: (0, j)),   # packed weights
            pl.BlockSpec((1, tn), lambda i, j: (0, j)),   # bias
        ]
        args = [x2d, w2d, b2d]
        if has_res:
            in_specs.append(pl.BlockSpec((tm, tn), lambda i, j: (i, j)))
            args.append(residual)
        out = pl.pallas_call(
            _make_fused_kernel_single_k(slope, has_res),
            out_shape=jax.ShapeDtypeStruct((M_pad, Cout), jnp.bfloat16),
            grid=grid,
            in_specs=in_specs,
            out_specs=pl.BlockSpec((tm, tn), lambda i, j: (i, j)),
            compiler_params=pltpu.CompilerParams(
                dimension_semantics=("parallel", "parallel")),
        )(*args)
    else:
        # Generic path: tiled K reduction with f32 accumulator.
        grid = (M_pad // tm, Cout // tn, n_k)
        in_specs = [
            pl.BlockSpec((tm, tk), lambda i, j, k: (i, k)),
            pl.BlockSpec((tk, tn), lambda i, j, k: (k, j)),
            pl.BlockSpec((1, tn), lambda i, j, k: (0, j)),
        ]
        args = [x2d, w2d, b2d]
        if has_res:
            in_specs.append(pl.BlockSpec((tm, tn), lambda i, j, k: (i, j)))
            args.append(residual)
        out = pl.pallas_call(
            _make_fused_kernel_multi_k(slope, has_res),
            out_shape=jax.ShapeDtypeStruct((M_pad, Cout), jnp.bfloat16),
            grid=grid,
            in_specs=in_specs,
            out_specs=pl.BlockSpec((tm, tn), lambda i, j, k: (i, j)),
            scratch_shapes=[pltpu.VMEM((tm, tn), jnp.float32)],
            compiler_params=pltpu.CompilerParams(
                dimension_semantics=("parallel", "parallel", "arbitrary")),
        )(*args)

    return out[:M] if M_pad != M else out


# ---------------------------------------------------------------------------
# Conv wrappers (im2col / subsample glue in plain JAX, fused matmul in Pallas)
# ---------------------------------------------------------------------------
def _extract_3x3_patches(x, stride):
    """x: (N,H,W,C) -> patches (N,Ho,Wo,9*C), K ordered as (kh, kw, cin)."""
    N, H, W, C = x.shape
    xp = jnp.pad(x, ((0, 0), (1, 1), (1, 1), (0, 0)))
    Ho = (H + 2 - 3) // stride + 1
    Wo = (W + 2 - 3) // stride + 1
    cols = [xp[:, dy:dy + stride * (Ho - 1) + 1:stride,
                  dx:dx + stride * (Wo - 1) + 1:stride, :]
            for dy in range(3) for dx in range(3)]
    # TODO(synk): in-kernel tap accumulation instead of materializing 9xC here.
    return jnp.concatenate(cols, axis=-1), Ho, Wo


def conv3x3_nhwc(x, layer, *, stride=1, slope=None, residual2d=None):
    """PyTorch conv3x3 (padding=1); layer has pre-packed (K, Cout_pad) weights."""
    N, H, W, C = x.shape
    Cout = layer["w"].shape[1]
    patches, Ho, Wo = _extract_3x3_patches(x, stride)
    x2d = patches.reshape(N * Ho * Wo, 9 * C)
    out2d = fused_matmul_bias_act(x2d, layer["w"], layer["b"],
                                  slope=slope, residual=residual2d)
    return out2d.reshape(N, Ho, Wo, Cout)


def conv1x1_nhwc(x, layer, *, stride=1, slope=None, residual2d=None):
    """PyTorch conv1x1; layer has pre-packed (Cin_pad, Cout_pad) weights."""
    xs = x[:, ::stride, ::stride, :] if stride > 1 else x
    N, Ho, Wo, C = xs.shape
    Cout = layer["w"].shape[1]
    x2d = xs.reshape(N * Ho * Wo, C)
    out2d = fused_matmul_bias_act(x2d, layer["w"], layer["b"],
                                  slope=slope, residual=residual2d)
    return out2d.reshape(N, Ho, Wo, Cout)


# ---------------------------------------------------------------------------
# Encoder blocks
# ---------------------------------------------------------------------------
def residual_block_with_stride_fwd(x, p, stride=2):
    # identity = conv1x1(x, stride); out = lrelu_0.1(conv2(lrelu_0.01(conv1(x)))) + identity
    identity = conv1x1_nhwc(x, p["down"], stride=stride)
    N, Ho, Wo, Cp = identity.shape
    h = conv3x3_nhwc(x, p["conv1"], stride=stride, slope=0.01)
    h = conv3x3_nhwc(h, p["conv2"], stride=1, slope=0.1,
                     residual2d=identity.reshape(N * Ho * Wo, Cp))
    return h


def residual_block_fwd(x, p):
    # in_ch == out_ch -> no adaptor; out = lrelu(conv2(lrelu(conv1(x)))) + x
    N, H, W, Cp = x.shape
    h = conv3x3_nhwc(x, p["conv1"], stride=1, slope=0.01)
    h = conv3x3_nhwc(h, p["conv2"], stride=1, slope=0.01,
                     residual2d=x.reshape(N * H * W, Cp))
    return h


def encoder_fwd_nchw(x_nchw, packed, *, channel):
    x = jnp.transpose(x_nchw, (0, 2, 3, 1))                 # NCHW -> NHWC
    cin = x.shape[-1]
    cin_pad = _round_up(cin, LANE)
    # Pad channels to the lane width once; padded lanes stay exactly zero
    # through every layer (zero weights / zero bias / lrelu(0)=0 / zero resid).
    x = jnp.pad(x, ((0, 0), (0, 0), (0, 0), (0, cin_pad - cin))).astype(jnp.bfloat16)

    x = residual_block_with_stride_fwd(x, packed["rbs1"])
    x = residual_block_fwd(x, packed["rb1"])
    x = residual_block_with_stride_fwd(x, packed["rbs2"])
    x = residual_block_fwd(x, packed["rb2"])
    x = residual_block_with_stride_fwd(x, packed["rbs3"])
    x = residual_block_fwd(x, packed["rb3"])
    x = conv3x3_nhwc(x, packed["final"], stride=2, slope=None)

    x = x[..., :channel].astype(jnp.float32)                # drop padded lanes
    return jnp.transpose(x, (0, 3, 1, 2))                   # NHWC -> NCHW


# ---------------------------------------------------------------------------
# One-time weight packing: PyTorch (Cout,Cin,kh,kw) -> channel-padded bf16
# (kh*kw*Cin_pad, Cout_pad) K-major matrices + (1, Cout_pad) f32 bias tiles.
# ---------------------------------------------------------------------------
def _pack_conv(p):
    w, b = p["w"], p["b"]
    cout, cin, kh, kw = w.shape
    cin_pad = _round_up(cin, LANE)
    cout_pad = _round_up(cout, LANE)
    wt = jnp.transpose(w, (2, 3, 1, 0))                      # (kh, kw, cin, cout)
    wt = jnp.pad(wt, ((0, 0), (0, 0), (0, cin_pad - cin), (0, cout_pad - cout)))
    w2d = wt.reshape(kh * kw * cin_pad, cout_pad).astype(jnp.bfloat16)
    b2d = jnp.pad(b, (0, cout_pad - cout)).reshape(1, cout_pad).astype(jnp.float32)
    return {"w": w2d, "b": b2d}


def pack_encoder_params(params):
    packed = {}
    for name, v in params.items():
        if "w" in v:                                         # plain conv ("final")
            packed[name] = _pack_conv(v)
        else:                                                # block of convs
            packed[name] = {k: _pack_conv(layer) for k, layer in v.items()}
    return packed


# ---------------------------------------------------------------------------
# Deterministic parameter init (PyTorch weight layout: (Cout, Cin, kh, kw))
# ---------------------------------------------------------------------------
def init_encoder_params(key, input_channel, channel):
    keys = iter(jax.random.split(key, 64))

    def conv(cout, cin, k):
        kw_, kb = jax.random.split(next(keys))
        fan_in = cin * k * k
        w = jax.random.normal(kw_, (cout, cin, k, k), jnp.float32) / jnp.sqrt(fan_in)
        b = 0.01 * jax.random.normal(kb, (cout,), jnp.float32)
        return {"w": w, "b": b}

    return {
        "rbs1": {"conv1": conv(channel, input_channel, 3),
                 "conv2": conv(channel, channel, 3),
                 "down": conv(channel, input_channel, 1)},
        "rb1": {"conv1": conv(channel, channel, 3),
                "conv2": conv(channel, channel, 3)},
        "rbs2": {"conv1": conv(channel, channel, 3),
                 "conv2": conv(channel, channel, 3),
                 "down": conv(channel, channel, 1)},
        "rb2": {"conv1": conv(channel, channel, 3),
                "conv2": conv(channel, channel, 3)},
        "rbs3": {"conv1": conv(channel, channel, 3),
                 "conv2": conv(channel, channel, 3),
                 "down": conv(channel, channel, 1)},
        "rb3": {"conv1": conv(channel, channel, 3),
                "conv2": conv(channel, channel, 3)},
        "final": conv(channel, channel, 3),
    }


# ---------------------------------------------------------------------------
# Pure-JAX (lax.conv, f32) reference, NCHW — correctness check only
# ---------------------------------------------------------------------------
def _ref_conv2d(x, w, b, stride, padding):
    out = jax.lax.conv_general_dilated(
        x, w, window_strides=(stride, stride),
        padding=[(padding, padding), (padding, padding)],
        dimension_numbers=("NCHW", "OIHW", "NCHW"),
        precision=jax.lax.Precision.HIGHEST)
    return out + b[None, :, None, None]


def _lrelu(x, s):
    return jnp.where(x >= 0, x, s * x)


def _ref_rbs(x, p, stride=2):
    identity = _ref_conv2d(x, p["down"]["w"], p["down"]["b"], stride, 0)
    h = _lrelu(_ref_conv2d(x, p["conv1"]["w"], p["conv1"]["b"], stride, 1), 0.01)
    h = _lrelu(_ref_conv2d(h, p["conv2"]["w"], p["conv2"]["b"], 1, 1), 0.1)
    return h + identity


def _ref_rb(x, p):
    h = _lrelu(_ref_conv2d(x, p["conv1"]["w"], p["conv1"]["b"], 1, 1), 0.01)
    h = _lrelu(_ref_conv2d(h, p["conv2"]["w"], p["conv2"]["b"], 1, 1), 0.01)
    return h + x


def ref_encoder(x, params):
    x = _ref_rbs(x, params["rbs1"])
    x = _ref_rb(x, params["rb1"])
    x = _ref_rbs(x, params["rbs2"])
    x = _ref_rb(x, params["rb2"])
    x = _ref_rbs(x, params["rbs3"])
    x = _ref_rb(x, params["rb3"])
    x = _ref_conv2d(x, params["final"]["w"], params["final"]["b"], 2, 1)
    return x


# ---------------------------------------------------------------------------
if __name__ == "__main__":
    key = jax.random.PRNGKey(0)
    kx, kp = jax.random.split(key)

    input_channel, channel = 3, 32
    N, H, W = 2, 16, 16                          # 16 / 2^4 = 1 spatial output
    x = jax.random.normal(kx, (N, input_channel, H, W), jnp.float32)   # NCHW input
    params = init_encoder_params(kp, input_channel, channel)

    packed = pack_encoder_params(params)         # weights packed once, not per fwd
    fwd = jax.jit(functools.partial(encoder_fwd_nchw, channel=channel))

    out = jax.block_until_ready(fwd(x, packed))
    assert out.shape == (N, channel, H // 16, W // 16), out.shape

    ref = jax.block_until_ready(ref_encoder(x, params))
    max_err = float(jnp.max(jnp.abs(out - ref)))
    scale = float(jnp.max(jnp.abs(ref)))
    # bf16 matmul inputs + bf16 inter-layer activations vs f32 reference.
    assert max_err <= 0.05 * scale + 0.1, f"max abs err {max_err} (ref scale {scale})"

    print("KERNEL_OK")
</pallas_src>

<mosaic_0001>
module attributes {stable_mosaic.version = 11 : i64} {
  func.func @kernel(%arg0: i32, %arg1: i32, %arg2: memref<128x128xbf16, #tpu.memory_space<vmem>>, %arg3: memref<128x128xbf16, #tpu.memory_space<vmem>>, %arg4: memref<1x128xf32, #tpu.memory_space<vmem>>, %arg5: memref<128x128xbf16, #tpu.memory_space<vmem>>) attributes {dimension_semantics = [#tpu.dimension_semantics<parallel>, #tpu.dimension_semantics<parallel>], iteration_bounds = array<i64: 1, 1>, scalar_prefetch = 0 : i64, scratch_operands = 0 : i64, tpu.core_type = #tpu.core_type<tc>, window_params = [{transform_indices = @transform_0, window_bounds = array<i64: 128, 128>}, {transform_indices = @transform_1, window_bounds = array<i64: 128, 128>}, {transform_indices = @transform_2, window_bounds = array<i64: 1, 128>}, {transform_indices = @transform_3, window_bounds = array<i64: 128, 128>}]} {
    %c0 = arith.constant 0 : index
    %c0_0 = arith.constant 0 : index
    %0 = vector.load %arg2[%c0, %c0_0] : memref<128x128xbf16, #tpu.memory_space<vmem>>, vector<128x128xbf16>
    %c0_1 = arith.constant 0 : index
    %c0_2 = arith.constant 0 : index
    %1 = vector.load %arg3[%c0_1, %c0_2] : memref<128x128xbf16, #tpu.memory_space<vmem>>, vector<128x128xbf16>
    %cst = arith.constant dense<0.000000e+00> : vector<128x128xf32>
    %2 = tpu.matmul %0, %1, %cst {dimension_numbers = #tpu.dot_dimension_numbers<[1], [0], [0], [1], [0, 0, 1, 1], [], []>} : vector<128x128xbf16>, vector<128x128xbf16>, vector<128x128xf32> -> vector<128x128xf32>
    %c0_3 = arith.constant 0 : index
    %c0_4 = arith.constant 0 : index
    %3 = vector.load %arg4[%c0_3, %c0_4] : memref<1x128xf32, #tpu.memory_space<vmem>>, vector<1x128xf32>
    %4 = vector.broadcast %3 : vector<1x128xf32> to vector<128x128xf32>
    %5 = arith.addf %2, %4 : vector<128x128xf32>
    %6 = arith.truncf %5 : vector<128x128xf32> to vector<128x128xbf16>
    %c0_5 = arith.constant 0 : index
    %c0_6 = arith.constant 0 : index
    %7 = vector.load %arg5[%c0_5, %c0_6] : memref<128x128xbf16, #tpu.memory_space<vmem>>, vector<128x128xbf16>
    tpu.vector_store %arg5[%c0_5, %c0_6], %6 {strides = array<i32>} : memref<128x128xbf16, #tpu.memory_space<vmem>>, vector<128x128xbf16>,
    return
  }
  func.func @transform_0(%arg0: i32, %arg1: i32) -> (i32, i32) {
    %c0_i32 = arith.constant 0 : i32
    %c0_i32_0 = arith.constant 0 : i32
    return %arg0, %c0_i32 : i32, i32
  }
  func.func @transform_1(%arg0: i32, %arg1: i32) -> (i32, i32) {
    %c0_i32 = arith.constant 0 : i32
    %c0_i32_0 = arith.constant 0 : i32
    return %c0_i32, %arg1 : i32, i32
  }
  func.func @transform_2(%arg0: i32, %arg1: i32) -> (i32, i32) {
    %c0_i32 = arith.constant 0 : i32
    %c0_i32_0 = arith.constant 0 : i32
    return %c0_i32, %arg1 : i32, i32
  }
  func.func @transform_3(%arg0: i32, %arg1: i32) -> (i32, i32) {
    %c0_i32 = arith.constant 0 : i32
    return %arg0, %arg1 : i32, i32
  }
}

module attributes {stable_mosaic.version = 11 : i64} {
  func.func @kernel(%arg0: i32, %arg1: i32, %arg2: memref<128x1152xbf16, #tpu.memory_space<vmem>>, %arg3: memref<1152x128xbf16, #tpu.memory_space<vmem>>, %arg4: memref<1x128xf32, #tpu.memory_space<vmem>>, %arg5: memref<128x128xbf16, #tpu.memory_space<vmem>>) attributes {dimension_semantics = [#tpu.dimension_semantics<parallel>, #tpu.dimension_semantics<parallel>], iteration_bounds = array<i64: 1, 1>, scalar_prefetch = 0 : i64, scratch_operands = 0 : i64, tpu.core_type = #tpu.core_type<tc>, window_params = [{transform_indices = @transform_0, window_bounds = array<i64: 128, 1152>}, {transform_indices = @transform_1, window_bounds = array<i64: 1152, 128>}, {transform_indices = @transform_2, window_bounds = array<i64: 1, 128>}, {transform_indices = @transform_3, window_bounds = array<i64: 128, 128>}]} {
    %c0 = arith.constant 0 : index
    %c0_0 = arith.constant 0 : index
    %0 = vector.load %arg2[%c0, %c0_0] : memref<128x1152xbf16, #tpu.memory_space<vmem>>, vector<128x1152xbf16>
    %c0_1 = arith.constant 0 : index
    %c0_2 = arith.constant 0 : index
    %1 = vector.load %arg3[%c0_1, %c0_2] : memref<1152x128xbf16, #tpu.memory_space<vmem>>, vector<1152x128xbf16>
    %cst = arith.constant dense<0.000000e+00> : vector<128x128xf32>
    %2 = tpu.matmul %0, %1, %cst {dimension_numbers = #tpu.dot_dimension_numbers<[1], [0], [0], [1], [0, 0, 1, 1], [], []>} : vector<128x1152xbf16>, vector<1152x128xbf16>, vector<128x128xf32> -> vector<128x128xf32>
    %c0_3 = arith.constant 0 : index
    %c0_4 = arith.constant 0 : index
    %3 = vector.load %arg4[%c0_3, %c0_4] : memref<1x128xf32, #tpu.memory_space<vmem>>, vector<1x128xf32>
    %4 = vector.broadcast %3 : vector<1x128xf32> to vector<128x128xf32>
    %5 = arith.addf %2, %4 : vector<128x128xf32>
    %cst_5 = arith.constant 0.000000e+00 : f32
    %6 = vector.broadcast %cst_5 : f32 to vector<128x128xf32>
    %7 = arith.cmpf oge, %5, %6 : vector<128x128xf32>
    %cst_6 = arith.constant 0.00999999977 : f32
    %8 = vector.broadcast %cst_6 : f32 to vector<128x128xf32>
    %9 = arith.mulf %8, %5 : vector<128x128xf32>
    %10 = arith.select %7, %5, %9 : vector<128x128xi1>, vector<128x128xf32>
    %11 = arith.truncf %10 : vector<128x128xf32> to vector<128x128xbf16>
    %c0_7 = arith.constant 0 : index
    %c0_8 = arith.constant 0 : index
    %12 = vector.load %arg5[%c0_7, %c0_8] : memref<128x128xbf16, #tpu.memory_space<vmem>>, vector<128x128xbf16>
    tpu.vector_store %arg5[%c0_7, %c0_8], %11 {strides = array<i32>} : memref<128x128xbf16, #tpu.memory_space<vmem>>, vector<128x128xbf16>,
    return
  }
  func.func @transform_0(%arg0: i32, %arg1: i32) -> (i32, i32) {
    %c0_i32 = arith.constant 0 : i32
    %c0_i32_0 = arith.constant 0 : i32
    return %arg0, %c0_i32 : i32, i32
  }
  func.func @transform_1(%arg0: i32, %arg1: i32) -> (i32, i32) {
    %c0_i32 = arith.constant 0 : i32
    %c0_i32_0 = arith.constant 0 : i32
    return %c0_i32, %arg1 : i32, i32
  }
  func.func @transform_2(%arg0: i32, %arg1: i32) -> (i32, i32) {
    %c0_i32 = arith.constant 0 : i32
    %c0_i32_0 = arith.constant 0 : i32
    return %c0_i32, %arg1 : i32, i32
  }
  func.func @transform_3(%arg0: i32, %arg1: i32) -> (i32, i32) {
    %c0_i32 = arith.constant 0 : i32
    return %arg0, %arg1 : i32, i32
  }
}

module attributes {stable_mosaic.version = 11 : i64} {
  func.func @kernel(%arg0: i32, %arg1: i32, %arg2: memref<128x1152xbf16, #tpu.memory_space<vmem>>, %arg3: memref<1152x128xbf16, #tpu.memory_space<vmem>>, %arg4: memref<1x128xf32, #tpu.memory_space<vmem>>, %arg5: memref<128x128xbf16, #tpu.memory_space<vmem>>, %arg6: memref<128x128xbf16, #tpu.memory_space<vmem>>) attributes {dimension_semantics = [#tpu.dimension_semantics<parallel>, #tpu.dimension_semantics<parallel>], iteration_bounds = array<i64: 1, 1>, scalar_prefetch = 0 : i64, scratch_operands = 0 : i64, tpu.core_type = #tpu.core_type<tc>, window_params = [{transform_indices = @transform_0, window_bounds = array<i64: 128, 1152>}, {transform_indices = @transform_1, window_bounds = array<i64: 1152, 128>}, {transform_indices = @transform_2, window_bounds = array<i64: 1, 128>}, {transform_indices = @transform_3, window_bounds = array<i64: 128, 128>}, {transform_indices = @transform_4, window_bounds = array<i64: 128, 128>}]} {
    %c0 = arith.constant 0 : index
    %c0_0 = arith.constant 0 : index
    %0 = vector.load %arg2[%c0, %c0_0] : memref<128x1152xbf16, #tpu.memory_space<vmem>>, vector<128x1152xbf16>
    %c0_1 = arith.constant 0 : index
    %c0_2 = arith.constant 0 : index
    %1 = vector.load %arg3[%c0_1, %c0_2] : memref<1152x128xbf16, #tpu.memory_space<vmem>>, vector<1152x128xbf16>
    %cst = arith.constant dense<0.000000e+00> : vector<128x128xf32>
    %2 = tpu.matmul %0, %1, %cst {dimension_numbers = #tpu.dot_dimension_numbers<[1], [0], [0], [1], [0, 0, 1, 1], [], []>} : vector<128x1152xbf16>, vector<1152x128xbf16>, vector<128x128xf32> -> vector<128x128xf32>
    %c0_3 = arith.constant 0 : index
    %c0_4 = arith.constant 0 : index
    %3 = vector.load %arg4[%c0_3, %c0_4] : memref<1x128xf32, #tpu.memory_space<vmem>>, vector<1x128xf32>
    %4 = vector.broadcast %3 : vector<1x128xf32> to vector<128x128xf32>
    %5 = arith.addf %2, %4 : vector<128x128xf32>
    %cst_5 = arith.constant 0.000000e+00 : f32
    %6 = vector.broadcast %cst_5 : f32 to vector<128x128xf32>
    %7 = arith.cmpf oge, %5, %6 : vector<128x128xf32>
    %cst_6 = arith.constant 1.000000e-01 : f32
    %8 = vector.broadcast %cst_6 : f32 to vector<128x128xf32>
    %9 = arith.mulf %8, %5 : vector<128x128xf32>
    %10 = arith.select %7, %5, %9 : vector<128x128xi1>, vector<128x128xf32>
    %c0_7 = arith.constant 0 : index
    %c0_8 = arith.constant 0 : index
    %11 = vector.load %arg5[%c0_7, %c0_8] : memref<128x128xbf16, #tpu.memory_space<vmem>>, vector<128x128xbf16>
    %12 = arith.extf %11 : vector<128x128xbf16> to vector<128x128xf32>
    %13 = arith.addf %10, %12 : vector<128x128xf32>
    %14 = arith.truncf %13 : vector<128x128xf32> to vector<128x128xbf16>
    %c0_9 = arith.constant 0 : index
    %c0_10 = arith.constant 0 : index
    %15 = vector.load %arg6[%c0_9, %c0_10] : memref<128x128xbf16, #tpu.memory_space<vmem>>, vector<128x128xbf16>
    tpu.vector_store %arg6[%c0_9, %c0_10], %14 {strides = array<i32>} : memref<128x128xbf16, #tpu.memory_space<vmem>>, vector<128x128xbf16>,
    return
  }
  func.func @transform_0(%arg0: i32, %arg1: i32) -> (i32, i32) {
    %c0_i32 = arith.constant 0 : i32
    %c0_i32_0 = arith.constant 0 : i32
    return %arg0, %c0_i32 : i32, i32
  }
  func.func @transform_1(%arg0: i32, %arg1: i32) -> (i32, i32) {
    %c0_i32 = arith.constant 0 : i32
    %c0_i32_0 = arith.constant 0 : i32
    return %c0_i32, %arg1 : i32, i32
  }
  func.func @transform_2(%arg0: i32, %arg1: i32) -> (i32, i32) {
    %c0_i32 = arith.constant 0 : i32
    %c0_i32_0 = arith.constant 0 : i32
    return %c0_i32, %arg1 : i32, i32
  }
  func.func @transform_3(%arg0: i32, %arg1: i32) -> (i32, i32) {
    %c0_i32 = arith.constant 0 : i32
    return %arg0, %arg1 : i32, i32
  }
  func.func @transform_4(%arg0: i32, %arg1: i32) -> (i32, i32) {
    %c0_i32 = arith.constant 0 : i32
    return %arg0, %arg1 : i32, i32
  }
}

module attributes {stable_mosaic.version = 11 : i64} {
  func.func @kernel(%arg0: i32, %arg1: i32, %arg2: memref<128x1152xbf16, #tpu.memory_space<vmem>>, %arg3: memref<1152x128xbf16, #tpu.memory_space<vmem>>, %arg4: memref<1x128xf32, #tpu.memory_space<vmem>>, %arg5: memref<128x128xbf16, #tpu.memory_space<vmem>>, %arg6: memref<128x128xbf16, #tpu.memory_space<vmem>>) attributes {dimension_semantics = [#tpu.dimension_semantics<parallel>, #tpu.dimension_semantics<parallel>], iteration_bounds = array<i64: 1, 1>, scalar_prefetch = 0 : i64, scratch_operands = 0 : i64, tpu.core_type = #tpu.core_type<tc>, window_params = [{transform_indices = @transform_0, window_bounds = array<i64: 128, 1152>}, {transform_indices = @transform_1, window_bounds = array<i64: 1152, 128>}, {transform_indices = @transform_2, window_bounds = array<i64: 1, 128>}, {transform_indices = @transform_3, window_bounds = array<i64: 128, 128>}, {transform_indices = @transform_4, window_bounds = array<i64: 128, 128>}]} {
    %c0 = arith.constant 0 : index
    %c0_0 = arith.constant 0 : index
    %0 = vector.load %arg2[%c0, %c0_0] : memref<128x1152xbf16, #tpu.memory_space<vmem>>, vector<128x1152xbf16>
    %c0_1 = arith.constant 0 : index
    %c0_2 = arith.constant 0 : index
    %1 = vector.load %arg3[%c0_1, %c0_2] : memref<1152x128xbf16, #tpu.memory_space<vmem>>, vector<1152x128xbf16>
    %cst = arith.constant dense<0.000000e+00> : vector<128x128xf32>
    %2 = tpu.matmul %0, %1, %cst {dimension_numbers = #tpu.dot_dimension_numbers<[1], [0], [0], [1], [0, 0, 1, 1], [], []>} : vector<128x1152xbf16>, vector<1152x128xbf16>, vector<128x128xf32> -> vector<128x128xf32>
    %c0_3 = arith.constant 0 : index
    %c0_4 = arith.constant 0 : index
    %3 = vector.load %arg4[%c0_3, %c0_4] : memref<1x128xf32, #tpu.memory_space<vmem>>, vector<1x128xf32>
    %4 = vector.broadcast %3 : vector<1x128xf32> to vector<128x128xf32>
    %5 = arith.addf %2, %4 : vector<128x128xf32>
    %cst_5 = arith.constant 0.000000e+00 : f32
    %6 = vector.broadcast %cst_5 : f32 to vector<128x128xf32>
    %7 = arith.cmpf oge, %5, %6 : vector<128x128xf32>
    %cst_6 = arith.constant 0.00999999977 : f32
    %8 = vector.broadcast %cst_6 : f32 to vector<128x128xf32>
    %9 = arith.mulf %8, %5 : vector<128x128xf32>
    %10 = arith.select %7, %5, %9 : vector<128x128xi1>, vector<128x128xf32>
    %c0_7 = arith.constant 0 : index
    %c0_8 = arith.constant 0 : index
    %11 = vector.load %arg5[%c0_7, %c0_8] : memref<128x128xbf16, #tpu.memory_space<vmem>>, vector<128x128xbf16>
    %12 = arith.extf %11 : vector<128x128xbf16> to vector<128x128xf32>
    %13 = arith.addf %10, %12 : vector<128x128xf32>
    %14 = arith.truncf %13 : vector<128x128xf32> to vector<128x128xbf16>
    %c0_9 = arith.constant 0 : index
    %c0_10 = arith.constant 0 : index
    %15 = vector.load %arg6[%c0_9, %c0_10] : memref<128x128xbf16, #tpu.memory_space<vmem>>, vector<128x128xbf16>
    tpu.vector_store %arg6[%c0_9, %c0_10], %14 {strides = array<i32>} : memref<128x128xbf16, #tpu.memory_space<vmem>>, vector<128x128xbf16>,
    return
  }
  func.func @transform_0(%arg0: i32, %arg1: i32) -> (i32, i32) {
    %c0_i32 = arith.constant 0 : i32
    %c0_i32_0 = arith.constant 0 : i32
    return %arg0, %c0_i32 : i32, i32
  }
  func.func @transform_1(%arg0: i32, %arg1: i32) -> (i32, i32) {
    %c0_i32 = arith.constant 0 : i32
    %c0_i32_0 = arith.constant 0 : i32
    return %c0_i32, %arg1 : i32, i32
  }
  func.func @transform_2(%arg0: i32, %arg1: i32) -> (i32, i32) {
    %c0_i32 = arith.constant 0 : i32
    %c0_i32_0 = arith.constant 0 : i32
    return %c0_i32, %arg1 : i32, i32
  }
  func.func @transform_3(%arg0: i32, %arg1: i32) -> (i32, i32) {
    %c0_i32 = arith.constant 0 : i32
    return %arg0, %arg1 : i32, i32
  }
  func.func @transform_4(%arg0: i32, %arg1: i32) -> (i32, i32) {
    %c0_i32 = arith.constant 0 : i32
    return %arg0, %arg1 : i32, i32
  }
}

module attributes {stable_mosaic.version = 11 : i64} {
  func.func @kernel(%arg0: i32, %arg1: i32, %arg2: memref<32x128xbf16, #tpu.memory_space<vmem>>, %arg3: memref<128x128xbf16, #tpu.memory_space<vmem>>, %arg4: memref<1x128xf32, #tpu.memory_space<vmem>>, %arg5: memref<32x128xbf16, #tpu.memory_space<vmem>>) attributes {dimension_semantics = [#tpu.dimension_semantics<parallel>, #tpu.dimension_semantics<parallel>], iteration_bounds = array<i64: 1, 1>, scalar_prefetch = 0 : i64, scratch_operands = 0 : i64, tpu.core_type = #tpu.core_type<tc>, window_params = [{transform_indices = @transform_0, window_bounds = array<i64: 32, 128>}, {transform_indices = @transform_1, window_bounds = array<i64: 128, 128>}, {transform_indices = @transform_2, window_bounds = array<i64: 1, 128>}, {transform_indices = @transform_3, window_bounds = array<i64: 32, 128>}]} {
    %c0 = arith.constant 0 : index
    %c0_0 = arith.constant 0 : index
    %0 = vector.load %arg2[%c0, %c0_0] : memref<32x128xbf16, #tpu.memory_space<vmem>>, vector<32x128xbf16>
    %c0_1 = arith.constant 0 : index
    %c0_2 = arith.constant 0 : index
    %1 = vector.load %arg3[%c0_1, %c0_2] : memref<128x128xbf16, #tpu.memory_space<vmem>>, vector<128x128xbf16>
    %cst = arith.constant dense<0.000000e+00> : vector<32x128xf32>
    %2 = tpu.matmul %0, %1, %cst {dimension_numbers = #tpu.dot_dimension_numbers<[1], [0], [0], [1], [0, 0, 1, 1], [], []>} : vector<32x128xbf16>, vector<128x128xbf16>, vector<32x128xf32> -> vector<32x128xf32>
    %c0_3 = arith.constant 0 : index
    %c0_4 = arith.constant 0 : index
    %3 = vector.load %arg4[%c0_3, %c0_4] : memref<1x128xf32, #tpu.memory_space<vmem>>, vector<1x128xf32>
    %4 = vector.broadcast %3 : vector<1x128xf32> to vector<32x128xf32>
    %5 = arith.addf %2, %4 : vector<32x128xf32>
    %6 = arith.truncf %5 : vector<32x128xf32> to vector<32x128xbf16>
    %c0_5 = arith.constant 0 : index
    %c0_6 = arith.constant 0 : index
    %7 = vector.load %arg5[%c0_5, %c0_6] : memref<32x128xbf16, #tpu.memory_space<vmem>>, vector<32x128xbf16>
    tpu.vector_store %arg5[%c0_5, %c0_6], %6 {strides = array<i32>} : memref<32x128xbf16, #tpu.memory_space<vmem>>, vector<32x128xbf16>,
    return
  }
  func.func @transform_0(%arg0: i32, %arg1: i32) -> (i32, i32) {
    %c0_i32 = arith.constant 0 : i32
    %c0_i32_0 = arith.constant 0 : i32
    return %arg0, %c0_i32 : i32, i32
  }
  func.func @transform_1(%arg0: i32, %arg1: i32) -> (i32, i32) {
    %c0_i32 = arith.constant 0 : i32
    %c0_i32_0 = arith.constant 0 : i32
    return %c0_i32, %arg1 : i32, i32
  }
  func.func @transform_2(%arg0: i32, %arg1: i32) -> (i32, i32) {
    %c0_i32 = arith.constant 0 : i32
    %c0_i32_0 = arith.constant 0 : i32
    return %c0_i32, %arg1 : i32, i32
  }
  func.func @transform_3(%arg0: i32, %arg1: i32) -> (i32, i32) {
    %c0_i32 = arith.constant 0 : i32
    return %arg0, %arg1 : i32, i32
  }
}

module attributes {stable_mosaic.version = 11 : i64} {
  func.func @kernel(%arg0: i32, %arg1: i32, %arg2: memref<32x1152xbf16, #tpu.memory_space<vmem>>, %arg3: memref<1152x128xbf16, #tpu.memory_space<vmem>>, %arg4: memref<1x128xf32, #tpu.memory_space<vmem>>, %arg5: memref<32x128xbf16, #tpu.memory_space<vmem>>) attributes {dimension_semantics = [#tpu.dimension_semantics<parallel>, #tpu.dimension_semantics<parallel>], iteration_bounds = array<i64: 1, 1>, scalar_prefetch = 0 : i64, scratch_operands = 0 : i64, tpu.core_type = #tpu.core_type<tc>, window_params = [{transform_indices = @transform_0, window_bounds = array<i64: 32, 1152>}, {transform_indices = @transform_1, window_bounds = array<i64: 1152, 128>}, {transform_indices = @transform_2, window_bounds = array<i64: 1, 128>}, {transform_indices = @transform_3, window_bounds = array<i64: 32, 128>}]} {
    %c0 = arith.constant 0 : index
    %c0_0 = arith.constant 0 : index
    %0 = vector.load %arg2[%c0, %c0_0] : memref<32x1152xbf16, #tpu.memory_space<vmem>>, vector<32x1152xbf16>
    %c0_1 = arith.constant 0 : index
    %c0_2 = arith.constant 0 : index
    %1 = vector.load %arg3[%c0_1, %c0_2] : memref<1152x128xbf16, #tpu.memory_space<vmem>>, vector<1152x128xbf16>
    %cst = arith.constant dense<0.000000e+00> : vector<32x128xf32>
    %2 = tpu.matmul %0, %1, %cst {dimension_numbers = #tpu.dot_dimension_numbers<[1], [0], [0], [1], [0, 0, 1, 1], [], []>} : vector<32x1152xbf16>, vector<1152x128xbf16>, vector<32x128xf32> -> vector<32x128xf32>
    %c0_3 = arith.constant 0 : index
    %c0_4 = arith.constant 0 : index
    %3 = vector.load %arg4[%c0_3, %c0_4] : memref<1x128xf32, #tpu.memory_space<vmem>>, vector<1x128xf32>
    %4 = vector.broadcast %3 : vector<1x128xf32> to vector<32x128xf32>
    %5 = arith.addf %2, %4 : vector<32x128xf32>
    %cst_5 = arith.constant 0.000000e+00 : f32
    %6 = vector.broadcast %cst_5 : f32 to vector<32x128xf32>
    %7 = arith.cmpf oge, %5, %6 : vector<32x128xf32>
    %cst_6 = arith.constant 0.00999999977 : f32
    %8 = vector.broadcast %cst_6 : f32 to vector<32x128xf32>
    %9 = arith.mulf %8, %5 : vector<32x128xf32>
    %10 = arith.select %7, %5, %9 : vector<32x128xi1>, vector<32x128xf32>
    %11 = arith.truncf %10 : vector<32x128xf32> to vector<32x128xbf16>
    %c0_7 = arith.constant 0 : index
    %c0_8 = arith.constant 0 : index
    %12 = vector.load %arg5[%c0_7, %c0_8] : memref<32x128xbf16, #tpu.memory_space<vmem>>, vector<32x128xbf16>
    tpu.vector_store %arg5[%c0_7, %c0_8], %11 {strides = array<i32>} : memref<32x128xbf16, #tpu.memory_space<vmem>>, vector<32x128xbf16>,
    return
  }
  func.func @transform_0(%arg0: i32, %arg1: i32) -> (i32, i32) {
    %c0_i32 = arith.constant 0 : i32
    %c0_i32_0 = arith.constant 0 : i32
    return %arg0, %c0_i32 : i32, i32
  }
  func.func @transform_1(%arg0: i32, %arg1: i32) -> (i32, i32) {
    %c0_i32 = arith.constant 0 : i32
    %c0_i32_0 = arith.constant 0 : i32
    return %c0_i32, %arg1 : i32, i32
  }
  func.func @transform_2(%arg0: i32, %arg1: i32) -> (i32, i32) {
    %c0_i32 = arith.constant 0 : i32
    %c0_i32_0 = arith.constant 0 : i32
    return %c0_i32, %arg1 : i32, i32
  }
  func.func @transform_3(%arg0: i32, %arg1: i32) -> (i32, i32) {
    %c0_i32 = arith.constant 0 : i32
    return %arg0, %arg1 : i32, i32
  }
}

module attributes {stable_mosaic.version = 11 : i64} {
  func.func @kernel(%arg0: i32, %arg1: i32, %arg2: memref<32x1152xbf16, #tpu.memory_space<vmem>>, %arg3: memref<1152x128xbf16, #tpu.memory_space<vmem>>, %arg4: memref<1x128xf32, #tpu.memory_space<vmem>>, %arg5: memref<32x128xbf16, #tpu.memory_space<vmem>>, %arg6: memref<32x128xbf16, #tpu.memory_space<vmem>>) attributes {dimension_semantics = [#tpu.dimension_semantics<parallel>, #tpu.dimension_semantics<parallel>], iteration_bounds = array<i64: 1, 1>, scalar_prefetch = 0 : i64, scratch_operands = 0 : i64, tpu.core_type = #tpu.core_type<tc>, window_params = [{transform_indices = @transform_0, window_bounds = array<i64: 32, 1152>}, {transform_indices = @transform_1, window_bounds = array<i64: 1152, 128>}, {transform_indices = @transform_2, window_bounds = array<i64: 1, 128>}, {transform_indices = @transform_3, window_bounds = array<i64: 32, 128>}, {transform_indices = @transform_4, window_bounds = array<i64: 32, 128>}]} {
    %c0 = arith.constant 0 : index
    %c0_0 = arith.constant 0 : index
    %0 = vector.load %arg2[%c0, %c0_0] : memref<32x1152xbf16, #tpu.memory_space<vmem>>, vector<32x1152xbf16>
    %c0_1 = arith.constant 0 : index
    %c0_2 = arith.constant 0 : index
    %1 = vector.load %arg3[%c0_1, %c0_2] : memref<1152x128xbf16, #tpu.memory_space<vmem>>, vector<1152x128xbf16>
    %cst = arith.constant dense<0.000000e+00> : vector<32x128xf32>
    %2 = tpu.matmul %0, %1, %cst {dimension_numbers = #tpu.dot_dimension_numbers<[1], [0], [0], [1], [0, 0, 1, 1], [], []>} : vector<32x1152xbf16>, vector<1152x128xbf16>, vector<32x128xf32> -> vector<32x128xf32>
    %c0_3 = arith.constant 0 : index
    %c0_4 = arith.constant 0 : index
    %3 = vector.load %arg4[%c0_3, %c0_4] : memref<1x128xf32, #tpu.memory_space<vmem>>, vector<1x128xf32>
    %4 = vector.broadcast %3 : vector<1x128xf32> to vector<32x128xf32>
    %5 = arith.addf %2, %4 : vector<32x128xf32>
    %cst_5 = arith.constant 0.000000e+00 : f32
    %6 = vector.broadcast %cst_5 : f32 to vector<32x128xf32>
    %7 = arith.cmpf oge, %5, %6 : vector<32x128xf32>
    %cst_6 = arith.constant 1.000000e-01 : f32
    %8 = vector.broadcast %cst_6 : f32 to vector<32x128xf32>
    %9 = arith.mulf %8, %5 : vector<32x128xf32>
    %10 = arith.select %7, %5, %9 : vector<32x128xi1>, vector<32x128xf32>
    %c0_7 = arith.constant 0 : index
    %c0_8 = arith.constant 0 : index
    %11 = vector.load %arg5[%c0_7, %c0_8] : memref<32x128xbf16, #tpu.memory_space<vmem>>, vector<32x128xbf16>
    %12 = arith.extf %11 : vector<32x128xbf16> to vector<32x128xf32>
    %13 = arith.addf %10, %12 : vector<32x128xf32>
    %14 = arith.truncf %13 : vector<32x128xf32> to vector<32x128xbf16>
    %c0_9 = arith.constant 0 : index
    %c0_10 = arith.constant 0 : index
    %15 = vector.load %arg6[%c0_9, %c0_10] : memref<32x128xbf16, #tpu.memory_space<vmem>>, vector<32x128xbf16>
    tpu.vector_store %arg6[%c0_9, %c0_10], %14 {strides = array<i32>} : memref<32x128xbf16, #tpu.memory_space<vmem>>, vector<32x128xbf16>,
    return
  }
  func.func @transform_0(%arg0: i32, %arg1: i32) -> (i32, i32) {
    %c0_i32 = arith.constant 0 : i32
    %c0_i32_0 = arith.constant 0 : i32
    return %arg0, %c0_i32 : i32, i32
  }
  func.func @transform_1(%arg0: i32, %arg1: i32) -> (i32, i32) {
    %c0_i32 = arith.constant 0 : i32
    %c0_i32_0 = arith.constant 0 : i32
    return %c0_i32, %arg1 : i32, i32
  }
  func.func @transform_2(%arg0: i32, %arg1: i32) -> (i32, i32) {
    %c0_i32 = arith.constant 0 : i32
    %c0_i32_0 = arith.constant 0 : i32
    return %c0_i32, %arg1 : i32, i32
  }
  func.func @transform_3(%arg0: i32, %arg1: i32) -> (i32, i32) {
    %c0_i32 = arith.constant 0 : i32
    return %arg0, %arg1 : i32, i32
  }
  func.func @transform_4(%arg0: i32, %arg1: i32) -> (i32, i32) {
    %c0_i32 = arith.constant 0 : i32
    return %arg0, %arg1 : i32, i32
  }
}

module attributes {stable_mosaic.version = 11 : i64} {
  func.func @kernel(%arg0: i32, %arg1: i32, %arg2: memref<32x1152xbf16, #tpu.memory_space<vmem>>, %arg3: memref<1152x128xbf16, #tpu.memory_space<vmem>>, %arg4: memref<1x128xf32, #tpu.memory_space<vmem>>, %arg5: memref<32x128xbf16, #tpu.memory_space<vmem>>, %arg6: memref<32x128xbf16, #tpu.memory_space<vmem>>) attributes {dimension_semantics = [#tpu.dimension_semantics<parallel>, #tpu.dimension_semantics<parallel>], iteration_bounds = array<i64: 1, 1>, scalar_prefetch = 0 : i64, scratch_operands = 0 : i64, tpu.core_type = #tpu.core_type<tc>, window_params = [{transform_indices = @transform_0, window_bounds = array<i64: 32, 1152>}, {transform_indices = @transform_1, window_bounds = array<i64: 1152, 128>}, {transform_indices = @transform_2, window_bounds = array<i64: 1, 128>}, {transform_indices = @transform_3, window_bounds = array<i64: 32, 128>}, {transform_indices = @transform_4, window_bounds = array<i64: 32, 128>}]} {
    %c0 = arith.constant 0 : index
    %c0_0 = arith.constant 0 : index
    %0 = vector.load %arg2[%c0, %c0_0] : memref<32x1152xbf16, #tpu.memory_space<vmem>>, vector<32x1152xbf16>
    %c0_1 = arith.constant 0 : index
    %c0_2 = arith.constant 0 : index
    %1 = vector.load %arg3[%c0_1, %c0_2] : memref<1152x128xbf16, #tpu.memory_space<vmem>>, vector<1152x128xbf16>
    %cst = arith.constant dense<0.000000e+00> : vector<32x128xf32>
    %2 = tpu.matmul %0, %1, %cst {dimension_numbers = #tpu.dot_dimension_numbers<[1], [0], [0], [1], [0, 0, 1, 1], [], []>} : vector<32x1152xbf16>, vector<1152x128xbf16>, vector<32x128xf32> -> vector<32x128xf32>
    %c0_3 = arith.constant 0 : index
    %c0_4 = arith.constant 0 : index
    %3 = vector.load %arg4[%c0_3, %c0_4] : memref<1x128xf32, #tpu.memory_space<vmem>>, vector<1x128xf32>
    %4 = vector.broadcast %3 : vector<1x128xf32> to vector<32x128xf32>
    %5 = arith.addf %2, %4 : vector<32x128xf32>
    %cst_5 = arith.constant 0.000000e+00 : f32
    %6 = vector.broadcast %cst_5 : f32 to vector<32x128xf32>
    %7 = arith.cmpf oge, %5, %6 : vector<32x128xf32>
    %cst_6 = arith.constant 0.00999999977 : f32
    %8 = vector.broadcast %cst_6 : f32 to vector<32x128xf32>
    %9 = arith.mulf %8, %5 : vector<32x128xf32>
    %10 = arith.select %7, %5, %9 : vector<32x128xi1>, vector<32x128xf32>
    %c0_7 = arith.constant 0 : index
    %c0_8 = arith.constant 0 : index
    %11 = vector.load %arg5[%c0_7, %c0_8] : memref<32x128xbf16, #tpu.memory_space<vmem>>, vector<32x128xbf16>
    %12 = arith.extf %11 : vector<32x128xbf16> to vector<32x128xf32>
    %13 = arith.addf %10, %12 : vector<32x128xf32>
    %14 = arith.truncf %13 : vector<32x128xf32> to vector<32x128xbf16>
    %c0_9 = arith.constant 0 : index
    %c0_10 = arith.constant 0 : index
    %15 = vector.load %arg6[%c0_9, %c0_10] : memref<32x128xbf16, #tpu.memory_space<vmem>>, vector<32x128xbf16>
    tpu.vector_store %arg6[%c0_9, %c0_10], %14 {strides = array<i32>} : memref<32x128xbf16, #tpu.memory_space<vmem>>, vector<32x128xbf16>,
    return
  }
  func.func @transform_0(%arg0: i32, %arg1: i32) -> (i32, i32) {
    %c0_i32 = arith.constant 0 : i32
    %c0_i32_0 = arith.constant 0 : i32
    return %arg0, %c0_i32 : i32, i32
  }
  func.func @transform_1(%arg0: i32, %arg1: i32) -> (i32, i32) {
    %c0_i32 = arith.constant 0 : i32
    %c0_i32_0 = arith.constant 0 : i32
    return %c0_i32, %arg1 : i32, i32
  }
  func.func @transform_2(%arg0: i32, %arg1: i32) -> (i32, i32) {
    %c0_i32 = arith.constant 0 : i32
    %c0_i32_0 = arith.constant 0 : i32
    return %c0_i32, %arg1 : i32, i32
  }
  func.func @transform_3(%arg0: i32, %arg1: i32) -> (i32, i32) {
    %c0_i32 = arith.constant 0 : i32
    return %arg0, %arg1 : i32, i32
  }
  func.func @transform_4(%arg0: i32, %arg1: i32) -> (i32, i32) {
    %c0_i32 = arith.constant 0 : i32
    return %arg0, %arg1 : i32, i32
  }
}

module attributes {stable_mosaic.version = 11 : i64} {
  func.func @kernel(%arg0: i32, %arg1: i32, %arg2: memref<8x128xbf16, #tpu.memory_space<vmem>>, %arg3: memref<128x128xbf16, #tpu.memory_space<vmem>>, %arg4: memref<1x128xf32, #tpu.memory_space<vmem>>, %arg5: memref<8x128xbf16, #tpu.memory_space<vmem>>) attributes {dimension_semantics = [#tpu.dimension_semantics<parallel>, #tpu.dimension_semantics<parallel>], iteration_bounds = array<i64: 1, 1>, scalar_prefetch = 0 : i64, scratch_operands = 0 : i64, tpu.core_type = #tpu.core_type<tc>, window_params = [{transform_indices = @transform_0, window_bounds = array<i64: 8, 128>}, {transform_indices = @transform_1, window_bounds = array<i64: 128, 128>}, {transform_indices = @transform_2, window_bounds = array<i64: 1, 128>}, {transform_indices = @transform_3, window_bounds = array<i64: 8, 128>}]} {
    %c0 = arith.constant 0 : index
    %c0_0 = arith.constant 0 : index
    %0 = vector.load %arg2[%c0, %c0_0] : memref<8x128xbf16, #tpu.memory_space<vmem>>, vector<8x128xbf16>
    %c0_1 = arith.constant 0 : index
    %c0_2 = arith.constant 0 : index
    %1 = vector.load %arg3[%c0_1, %c0_2] : memref<128x128xbf16, #tpu.memory_space<vmem>>, vector<128x128xbf16>
    %cst = arith.constant dense<0.000000e+00> : vector<8x128xf32>
    %2 = tpu.matmul %0, %1, %cst {dimension_numbers = #tpu.dot_dimension_numbers<[1], [0], [0], [1], [0, 0, 1, 1], [], []>} : vector<8x128xbf16>, vector<128x128xbf16>, vector<8x128xf32> -> vector<8x128xf32>
    %c0_3 = arith.constant 0 : index
    %c0_4 = arith.constant 0 : index
    %3 = vector.load %arg4[%c0_3, %c0_4] : memref<1x128xf32, #tpu.memory_space<vmem>>, vector<1x128xf32>
    %4 = vector.broadcast %3 : vector<1x128xf32> to vector<8x128xf32>
    %5 = arith.addf %2, %4 : vector<8x128xf32>
    %6 = arith.truncf %5 : vector<8x128xf32> to vector<8x128xbf16>
    %c0_5 = arith.constant 0 : index
    %c0_6 = arith.constant 0 : index
    %7 = vector.load %arg5[%c0_5, %c0_6] : memref<8x128xbf16, #tpu.memory_space<vmem>>, vector<8x128xbf16>
    tpu.vector_store %arg5[%c0_5, %c0_6], %6 {strides = array<i32>} : memref<8x128xbf16, #tpu.memory_space<vmem>>, vector<8x128xbf16>,
    return
  }
  func.func @transform_0(%arg0: i32, %arg1: i32) -> (i32, i32) {
    %c0_i32 = arith.constant 0 : i32
    %c0_i32_0 = arith.constant 0 : i32
    return %arg0, %c0_i32 : i32, i32
  }
  func.func @transform_1(%arg0: i32, %arg1: i32) -> (i32, i32) {
    %c0_i32 = arith.constant 0 : i32
    %c0_i32_0 = arith.constant 0 : i32
    return %c0_i32, %arg1 : i32, i32
  }
  func.func @transform_2(%arg0: i32, %arg1: i32) -> (i32, i32) {
    %c0_i32 = arith.constant 0 : i32
    %c0_i32_0 = arith.constant 0 : i32
    return %c0_i32, %arg1 : i32, i32
  }
  func.func @transform_3(%arg0: i32, %arg1: i32) -> (i32, i32) {
    %c0_i32 = arith.constant 0 : i32
    return %arg0, %arg1 : i32, i32
  }
}

module attributes {stable_mosaic.version = 11 : i64} {
  func.func @kernel(%arg0: i32, %arg1: i32, %arg2: memref<8x1152xbf16, #tpu.memory_space<vmem>>, %arg3: memref<1152x128xbf16, #tpu.memory_space<vmem>>, %arg4: memref<1x128xf32, #tpu.memory_space<vmem>>, %arg5: memref<8x128xbf16, #tpu.memory_space<vmem>>) attributes {dimension_semantics = [#tpu.dimension_semantics<parallel>, #tpu.dimension_semantics<parallel>], iteration_bounds = array<i64: 1, 1>, scalar_prefetch = 0 : i64, scratch_operands = 0 : i64, tpu.core_type = #tpu.core_type<tc>, window_params = [{transform_indices = @transform_0, window_bounds = array<i64: 8, 1152>}, {transform_indices = @transform_1, window_bounds = array<i64: 1152, 128>}, {transform_indices = @transform_2, window_bounds = array<i64: 1, 128>}, {transform_indices = @transform_3, window_bounds = array<i64: 8, 128>}]} {
    %c0 = arith.constant 0 : index
    %c0_0 = arith.constant 0 : index
    %0 = vector.load %arg2[%c0, %c0_0] : memref<8x1152xbf16, #tpu.memory_space<vmem>>, vector<8x1152xbf16>
    %c0_1 = arith.constant 0 : index
    %c0_2 = arith.constant 0 : index
    %1 = vector.load %arg3[%c0_1, %c0_2] : memref<1152x128xbf16, #tpu.memory_space<vmem>>, vector<1152x128xbf16>
    %cst = arith.constant dense<0.000000e+00> : vector<8x128xf32>
    %2 = tpu.matmul %0, %1, %cst {dimension_numbers = #tpu.dot_dimension_numbers<[1], [0], [0], [1], [0, 0, 1, 1], [], []>} : vector<8x1152xbf16>, vector<1152x128xbf16>, vector<8x128xf32> -> vector<8x128xf32>
    %c0_3 = arith.constant 0 : index
    %c0_4 = arith.constant 0 : index
    %3 = vector.load %arg4[%c0_3, %c0_4] : memref<1x128xf32, #tpu.memory_space<vmem>>, vector<1x128xf32>
    %4 = vector.broadcast %3 : vector<1x128xf32> to vector<8x128xf32>
    %5 = arith.addf %2, %4 : vector<8x128xf32>
    %cst_5 = arith.constant 0.000000e+00 : f32
    %6 = vector.broadcast %cst_5 : f32 to vector<8x128xf32>
    %7 = arith.cmpf oge, %5, %6 : vector<8x128xf32>
    %cst_6 = arith.constant 0.00999999977 : f32
    %8 = vector.broadcast %cst_6 : f32 to vector<8x128xf32>
    %9 = arith.mulf %8, %5 : vector<8x128xf32>
    %10 = arith.select %7, %5, %9 : vector<8x128xi1>, vector<8x128xf32>
    %11 = arith.truncf %10 : vector<8x128xf32> to vector<8x128xbf16>
    %c0_7 = arith.constant 0 : index
    %c0_8 = arith.constant 0 : index
    %12 = vector.load %arg5[%c0_7, %c0_8] : memref<8x128xbf16, #tpu.memory_space<vmem>>, vector<8x128xbf16>
    tpu.vector_store %arg5[%c0_7, %c0_8], %11 {strides = array<i32>} : memref<8x128xbf16, #tpu.memory_space<vmem>>, vector<8x128xbf16>,
    return
  }
  func.func @transform_0(%arg0: i32, %arg1: i32) -> (i32, i32) {
    %c0_i32 = arith.constant 0 : i32
    %c0_i32_0 = arith.constant 0 : i32
    return %arg0, %c0_i32 : i32, i32
  }
  func.func @transform_1(%arg0: i32, %arg1: i32) -> (i32, i32) {
    %c0_i32 = arith.constant 0 : i32
    %c0_i32_0 = arith.constant 0 : i32
    return %c0_i32, %arg1 : i32, i32
  }
  func.func @transform_2(%arg0: i32, %arg1: i32) -> (i32, i32) {
    %c0_i32 = arith.constant 0 : i32
    %c0_i32_0 = arith.constant 0 : i32
    return %c0_i32, %arg1 : i32, i32
  }
  func.func @transform_3(%arg0: i32, %arg1: i32) -> (i32, i32) {
    %c0_i32 = arith.constant 0 : i32
    return %arg0, %arg1 : i32, i32
  }
}

module attributes {stable_mosaic.version = 11 : i64} {
  func.func @kernel(%arg0: i32, %arg1: i32, %arg2: memref<8x1152xbf16, #tpu.memory_space<vmem>>, %arg3: memref<1152x128xbf16, #tpu.memory_space<vmem>>, %arg4: memref<1x128xf32, #tpu.memory_space<vmem>>, %arg5: memref<8x128xbf16, #tpu.memory_space<vmem>>, %arg6: memref<8x128xbf16, #tpu.memory_space<vmem>>) attributes {dimension_semantics = [#tpu.dimension_semantics<parallel>, #tpu.dimension_semantics<parallel>], iteration_bounds = array<i64: 1, 1>, scalar_prefetch = 0 : i64, scratch_operands = 0 : i64, tpu.core_type = #tpu.core_type<tc>, window_params = [{transform_indices = @transform_0, window_bounds = array<i64: 8, 1152>}, {transform_indices = @transform_1, window_bounds = array<i64: 1152, 128>}, {transform_indices = @transform_2, window_bounds = array<i64: 1, 128>}, {transform_indices = @transform_3, window_bounds = array<i64: 8, 128>}, {transform_indices = @transform_4, window_bounds = array<i64: 8, 128>}]} {
    %c0 = arith.constant 0 : index
    %c0_0 = arith.constant 0 : index
    %0 = vector.load %arg2[%c0, %c0_0] : memref<8x1152xbf16, #tpu.memory_space<vmem>>, vector<8x1152xbf16>
    %c0_1 = arith.constant 0 : index
    %c0_2 = arith.constant 0 : index
    %1 = vector.load %arg3[%c0_1, %c0_2] : memref<1152x128xbf16, #tpu.memory_space<vmem>>, vector<1152x128xbf16>
    %cst = arith.constant dense<0.000000e+00> : vector<8x128xf32>
    %2 = tpu.matmul %0, %1, %cst {dimension_numbers = #tpu.dot_dimension_numbers<[1], [0], [0], [1], [0, 0, 1, 1], [], []>} : vector<8x1152xbf16>, vector<1152x128xbf16>, vector<8x128xf32> -> vector<8x128xf32>
    %c0_3 = arith.constant 0 : index
    %c0_4 = arith.constant 0 : index
    %3 = vector.load %arg4[%c0_3, %c0_4] : memref<1x128xf32, #tpu.memory_space<vmem>>, vector<1x128xf32>
    %4 = vector.broadcast %3 : vector<1x128xf32> to vector<8x128xf32>
    %5 = arith.addf %2, %4 : vector<8x128xf32>
    %cst_5 = arith.constant 0.000000e+00 : f32
    %6 = vector.broadcast %cst_5 : f32 to vector<8x128xf32>
    %7 = arith.cmpf oge, %5, %6 : vector<8x128xf32>
    %cst_6 = arith.constant 1.000000e-01 : f32
    %8 = vector.broadcast %cst_6 : f32 to vector<8x128xf32>
    %9 = arith.mulf %8, %5 : vector<8x128xf32>
    %10 = arith.select %7, %5, %9 : vector<8x128xi1>, vector<8x128xf32>
    %c0_7 = arith.constant 0 : index
    %c0_8 = arith.constant 0 : index
    %11 = vector.load %arg5[%c0_7, %c0_8] : memref<8x128xbf16, #tpu.memory_space<vmem>>, vector<8x128xbf16>
    %12 = arith.extf %11 : vector<8x128xbf16> to vector<8x128xf32>
    %13 = arith.addf %10, %12 : vector<8x128xf32>
    %14 = arith.truncf %13 : vector<8x128xf32> to vector<8x128xbf16>
    %c0_9 = arith.constant 0 : index
    %c0_10 = arith.constant 0 : index
    %15 = vector.load %arg6[%c0_9, %c0_10] : memref<8x128xbf16, #tpu.memory_space<vmem>>, vector<8x128xbf16>
    tpu.vector_store %arg6[%c0_9, %c0_10], %14 {strides = array<i32>} : memref<8x128xbf16, #tpu.memory_space<vmem>>, vector<8x128xbf16>,
    return
  }
  func.func @transform_0(%arg0: i32, %arg1: i32) -> (i32, i32) {
    %c0_i32 = arith.constant 0 : i32
    %c0_i32_0 = arith.constant 0 : i32
    return %arg0, %c0_i32 : i32, i32
  }
  func.func @transform_1(%arg0: i32, %arg1: i32) -> (i32, i32) {
    %c0_i32 = arith.constant 0 : i32
    %c0_i32_0 = arith.constant 0 : i32
    return %c0_i32, %arg1 : i32, i32
  }
  func.func @transform_2(%arg0: i32, %arg1: i32) -> (i32, i32) {
    %c0_i32 = arith.constant 0 : i32
    %c0_i32_0 = arith.constant 0 : i32
    return %c0_i32, %arg1 : i32, i32
  }
  func.func @transform_3(%arg0: i32, %arg1: i32) -> (i32, i32) {
    %c0_i32 = arith.constant 0 : i32
    return %arg0, %arg1 : i32, i32
  }
  func.func @transform_4(%arg0: i32, %arg1: i32) -> (i32, i32) {
    %c0_i32 = arith.constant 0 : i32
    return %arg0, %arg1 : i32, i32
  }
}

module attributes {stable_mosaic.version = 11 : i64} {
  func.func @kernel(%arg0: i32, %arg1: i32, %arg2: memref<8x1152xbf16, #tpu.memory_space<vmem>>, %arg3: memref<1152x128xbf16, #tpu.memory_space<vmem>>, %arg4: memref<1x128xf32, #tpu.memory_space<vmem>>, %arg5: memref<8x128xbf16, #tpu.memory_space<vmem>>, %arg6: memref<8x128xbf16, #tpu.memory_space<vmem>>) attributes {dimension_semantics = [#tpu.dimension_semantics<parallel>, #tpu.dimension_semantics<parallel>], iteration_bounds = array<i64: 1, 1>, scalar_prefetch = 0 : i64, scratch_operands = 0 : i64, tpu.core_type = #tpu.core_type<tc>, window_params = [{transform_indices = @transform_0, window_bounds = array<i64: 8, 1152>}, {transform_indices = @transform_1, window_bounds = array<i64: 1152, 128>}, {transform_indices = @transform_2, window_bounds = array<i64: 1, 128>}, {transform_indices = @transform_3, window_bounds = array<i64: 8, 128>}, {transform_indices = @transform_4, window_bounds = array<i64: 8, 128>}]} {
    %c0 = arith.constant 0 : index
    %c0_0 = arith.constant 0 : index
    %0 = vector.load %arg2[%c0, %c0_0] : memref<8x1152xbf16, #tpu.memory_space<vmem>>, vector<8x1152xbf16>
    %c0_1 = arith.constant 0 : index
    %c0_2 = arith.constant 0 : index
    %1 = vector.load %arg3[%c0_1, %c0_2] : memref<1152x128xbf16, #tpu.memory_space<vmem>>, vector<1152x128xbf16>
    %cst = arith.constant dense<0.000000e+00> : vector<8x128xf32>
    %2 = tpu.matmul %0, %1, %cst {dimension_numbers = #tpu.dot_dimension_numbers<[1], [0], [0], [1], [0, 0, 1, 1], [], []>} : vector<8x1152xbf16>, vector<1152x128xbf16>, vector<8x128xf32> -> vector<8x128xf32>
    %c0_3 = arith.constant 0 : index
    %c0_4 = arith.constant 0 : index
    %3 = vector.load %arg4[%c0_3, %c0_4] : memref<1x128xf32, #tpu.memory_space<vmem>>, vector<1x128xf32>
    %4 = vector.broadcast %3 : vector<1x128xf32> to vector<8x128xf32>
    %5 = arith.addf %2, %4 : vector<8x128xf32>
    %cst_5 = arith.constant 0.000000e+00 : f32
    %6 = vector.broadcast %cst_5 : f32 to vector<8x128xf32>
    %7 = arith.cmpf oge, %5, %6 : vector<8x128xf32>
    %cst_6 = arith.constant 0.00999999977 : f32
    %8 = vector.broadcast %cst_6 : f32 to vector<8x128xf32>
    %9 = arith.mulf %8, %5 : vector<8x128xf32>
    %10 = arith.select %7, %5, %9 : vector<8x128xi1>, vector<8x128xf32>
    %c0_7 = arith.constant 0 : index
    %c0_8 = arith.constant 0 : index
    %11 = vector.load %arg5[%c0_7, %c0_8] : memref<8x128xbf16, #tpu.memory_space<vmem>>, vector<8x128xbf16>
    %12 = arith.extf %11 : vector<8x128xbf16> to vector<8x128xf32>
    %13 = arith.addf %10, %12 : vector<8x128xf32>
    %14 = arith.truncf %13 : vector<8x128xf32> to vector<8x128xbf16>
    %c0_9 = arith.constant 0 : index
    %c0_10 = arith.constant 0 : index
    %15 = vector.load %arg6[%c0_9, %c0_10] : memref<8x128xbf16, #tpu.memory_space<vmem>>, vector<8x128xbf16>
    tpu.vector_store %arg6[%c0_9, %c0_10], %14 {strides = array<i32>} : memref<8x128xbf16, #tpu.memory_space<vmem>>, vector<8x128xbf16>,
    return
  }
  func.func @transform_0(%arg0: i32, %arg1: i32) -> (i32, i32) {
    %c0_i32 = arith.constant 0 : i32
    %c0_i32_0 = arith.constant 0 : i32
    return %arg0, %c0_i32 : i32, i32
  }
  func.func @transform_1(%arg0: i32, %arg1: i32) -> (i32, i32) {
    %c0_i32 = arith.constant 0 : i32
    %c0_i32_0 = arith.constant 0 : i32
    return %c0_i32, %arg1 : i32, i32
  }
  func.func @transform_2(%arg0: i32, %arg1: i32) -> (i32, i32) {
    %c0_i32 = arith.constant 0 : i32
    %c0_i32_0 = arith.constant 0 : i32
    return %c0_i32, %arg1 : i32, i32
  }
  func.func @transform_3(%arg0: i32, %arg1: i32) -> (i32, i32) {
    %c0_i32 = arith.constant 0 : i32
    return %arg0, %arg1 : i32, i32
  }
  func.func @transform_4(%arg0: i32, %arg1: i32) -> (i32, i32) {
    %c0_i32 = arith.constant 0 : i32
    return %arg0, %arg1 : i32, i32
  }
}

module attributes {stable_mosaic.version = 11 : i64} {
  func.func @kernel(%arg0: i32, %arg1: i32, %arg2: memref<8x1152xbf16, #tpu.memory_space<vmem>>, %arg3: memref<1152x128xbf16, #tpu.memory_space<vmem>>, %arg4: memref<1x128xf32, #tpu.memory_space<vmem>>, %arg5: memref<8x128xbf16, #tpu.memory_space<vmem>>) attributes {dimension_semantics = [#tpu.dimension_semantics<parallel>, #tpu.dimension_semantics<parallel>], iteration_bounds = array<i64: 1, 1>, scalar_prefetch = 0 : i64, scratch_operands = 0 : i64, tpu.core_type = #tpu.core_type<tc>, window_params = [{transform_indices = @transform_0, window_bounds = array<i64: 8, 1152>}, {transform_indices = @transform_1, window_bounds = array<i64: 1152, 128>}, {transform_indices = @transform_2, window_bounds = array<i64: 1, 128>}, {transform_indices = @transform_3, window_bounds = array<i64: 8, 128>}]} {
    %c0 = arith.constant 0 : index
    %c0_0 = arith.constant 0 : index
    %0 = vector.load %arg2[%c0, %c0_0] : memref<8x1152xbf16, #tpu.memory_space<vmem>>, vector<8x1152xbf16>
    %c0_1 = arith.constant 0 : index
    %c0_2 = arith.constant 0 : index
    %1 = vector.load %arg3[%c0_1, %c0_2] : memref<1152x128xbf16, #tpu.memory_space<vmem>>, vector<1152x128xbf16>
    %cst = arith.constant dense<0.000000e+00> : vector<8x128xf32>
    %2 = tpu.matmul %0, %1, %cst {dimension_numbers = #tpu.dot_dimension_numbers<[1], [0], [0], [1], [0, 0, 1, 1], [], []>} : vector<8x1152xbf16>, vector<1152x128xbf16>, vector<8x128xf32> -> vector<8x128xf32>
    %c0_3 = arith.constant 0 : index
    %c0_4 = arith.constant 0 : index
    %3 = vector.load %arg4[%c0_3, %c0_4] : memref<1x128xf32, #tpu.memory_space<vmem>>, vector<1x128xf32>
    %4 = vector.broadcast %3 : vector<1x128xf32> to vector<8x128xf32>
    %5 = arith.addf %2, %4 : vector<8x128xf32>
    %6 = arith.truncf %5 : vector<8x128xf32> to vector<8x128xbf16>
    %c0_5 = arith.constant 0 : index
    %c0_6 = arith.constant 0 : index
    %7 = vector.load %arg5[%c0_5, %c0_6] : memref<8x128xbf16, #tpu.memory_space<vmem>>, vector<8x128xbf16>
    tpu.vector_store %arg5[%c0_5, %c0_6], %6 {strides = array<i32>} : memref<8x128xbf16, #tpu.memory_space<vmem>>, vector<8x128xbf16>,
    return
  }
  func.func @transform_0(%arg0: i32, %arg1: i32) -> (i32, i32) {
    %c0_i32 = arith.constant 0 : i32
    %c0_i32_0 = arith.constant 0 : i32
    return %arg0, %c0_i32 : i32, i32
  }
  func.func @transform_1(%arg0: i32, %arg1: i32) -> (i32, i32) {
    %c0_i32 = arith.constant 0 : i32
    %c0_i32_0 = arith.constant 0 : i32
    return %c0_i32, %arg1 : i32, i32
  }
  func.func @transform_2(%arg0: i32, %arg1: i32) -> (i32, i32) {
    %c0_i32 = arith.constant 0 : i32
    %c0_i32_0 = arith.constant 0 : i32
    return %c0_i32, %arg1 : i32, i32
  }
  func.func @transform_3(%arg0: i32, %arg1: i32) -> (i32, i32) {
    %c0_i32 = arith.constant 0 : i32
    return %arg0, %arg1 : i32, i32
  }
}

</mosaic_0001>

<bundles_post_ra>
// kernel: encoder_fwd_nchw.16
= control target key start
LH: loop header
LB: loop body
LE: loop exit
PB: predicated region body
PF: predicated region fallthrough
CT: control target
= control target key end

     0   :  { %s478_s1 = inlined_call_operand.vmem [shape: bf16[128,128], index: 1, kind: input, shape index: {}]   ;;  %s479_s2 = inlined_call_operand.vmem [shape: f32[1,128], index: 2, kind: input, shape index: {}]   ;;  %s480_s0 = inlined_call_operand.vmem [shape: bf16[128,128], index: 0, kind: input, shape index: {}]   ;;  %s481_s3 = inlined_call_operand.vmem [shape: bf16[128,128], index: 3, kind: output, shape index: {}]  }
   0x1   :  { %v310_v0 = vld [vmem:[%s478_s1 + $0x38] sm:$0xff]  ;;  %v309_v1 = vld [vmem:[%s478_s1 + $0x30] sm:$0xff]  ;;  %v308_v2 = vld [vmem:[%s478_s1 + $0x28] sm:$0xff] }
   0x2   :  { %146 = vmatpush.bf16.msra.mxu0 %v310_v0  ;;  %358 = vmatpush.bf16.msra.mxu1 %v310_v0  ;;  %v307_v3 = vld [vmem:[%s478_s1 + $0x20] sm:$0xff]  ;;  %v306_v4 = vld [vmem:[%s478_s1 + $0x18] sm:$0xff]  ;;  %v305_v5 = vld [vmem:[%s478_s1 + $0x10] sm:$0xff] }
   0x3   :  { %359 = vmatpush.bf16.msra.mxu2 %v310_v0  ;;  %360 = vmatpush.bf16.msra.mxu3 %v310_v0  ;;  %v304_v6 = vld [vmem:[%s478_s1 + $0x8] sm:$0xff]  ;;  %v303_v7 = vld [vmem:[%s478_s1] sm:$0xff]  ;;  %v297_v9 = vld [vmem:[%s480_s0 + $0x10] sm:$0xff] }
   0x4   :  { %v295_v8 = vld [vmem:[%s480_s0] sm:$0xff]  ;;  %v301_v11 = vld [vmem:[%s480_s0 + $0x30] sm:$0xff]  ;;  %v296_v12 = vld [vmem:[%s480_s0 + $0x8] sm:$0xff] }
   0x5   :  { %v299_v10 = vld [vmem:[%s480_s0 + $0x20] sm:$0xff]  ;;  %v298_v13 = vld [vmem:[%s480_s0 + $0x18] sm:$0xff]  ;;  %v300_v14 = vld [vmem:[%s480_s0 + $0x28] sm:$0xff] }
   0x6   :  { %147 = vmatpush.bf16.msra.mxu0 %v309_v1  ;;  %361 = vmatpush.bf16.msra.mxu1 %v309_v1  ;;  %v302_v15 = vld [vmem:[%s480_s0 + $0x38] sm:$0xff]  ;;  %v382_v18 = vld [vmem:[%s479_s2] ss:$0 sm:$0xff] }
   0x7   :  { %362 = vmatpush.bf16.msra.mxu2 %v309_v1  ;;  %363 = vmatpush.bf16.msra.mxu3 %v309_v1 }
   0xa   :  { %148 = vmatpush.bf16.msra.mxu0 %v308_v2  ;;  %364 = vmatpush.bf16.msra.mxu1 %v308_v2 }
   0xb   :  { %365 = vmatpush.bf16.msra.mxu2 %v308_v2  ;;  %366 = vmatpush.bf16.msra.mxu3 %v308_v2 }
   0xe   :  { %149 = vmatpush.bf16.msra.mxu0 %v307_v3  ;;  %367 = vmatpush.bf16.msra.mxu1 %v307_v3 }
   0xf   :  { %368 = vmatpush.bf16.msra.mxu2 %v307_v3  ;;  %369 = vmatpush.bf16.msra.mxu3 %v307_v3 }
  0x12   :  { %150 = vmatpush.bf16.msra.mxu0 %v306_v4  ;;  %370 = vmatpush.bf16.msra.mxu1 %v306_v4 }
  0x13   :  { %371 = vmatpush.bf16.msra.mxu2 %v306_v4  ;;  %372 = vmatpush.bf16.msra.mxu3 %v306_v4 }
  0x16   :  { %151 = vmatpush.bf16.msra.mxu0 %v305_v5  ;;  %373 = vmatpush.bf16.msra.mxu1 %v305_v5 }
  0x17   :  { %374 = vmatpush.bf16.msra.mxu2 %v305_v5  ;;  %375 = vmatpush.bf16.msra.mxu3 %v305_v5 }
  0x1a   :  { %152 = vmatpush.bf16.msra.mxu0 %v304_v6  ;;  %376 = vmatpush.bf16.msra.mxu1 %v304_v6 }
  0x1b   :  { %377 = vmatpush.bf16.msra.mxu2 %v304_v6  ;;  %378 = vmatpush.bf16.msra.mxu3 %v304_v6 }
  0x1e   :  { %153 = vmatpush.bf16.msra.mxu0 %v303_v7  ;;  %379 = vmatpush.bf16.msra.mxu1 %v303_v7 }
  0x1f   :  { %380 = vmatpush.bf16.msra.mxu2 %v303_v7  ;;  %381 = vmatpush.bf16.msra.mxu3 %v303_v7 }
  0x21   :  { %154 = vmatmul.bf16.vlgmr.msra.gmra.mxu0 %v295_v8  ;;  %164 = vmatmul.bf16.vlgmr.msra.gmra.mxu1 %v297_v9 }
  0x22   :  { %174 = vmatmul.bf16.vlgmr.msra.gmra.mxu2 %v299_v10  ;;  %184 = vmatmul.bf16.vlgmr.msra.gmra.mxu3 %v301_v11 }
  0x31   :  { %159 = vmatmul.bf16.gmra.mxu0 %v296_v12  ;;  %169 = vmatmul.bf16.gmra.mxu1 %v298_v13 }
  0x32   :  { %179 = vmatmul.bf16.gmra.mxu2 %v300_v14  ;;  %189 = vmatmul.bf16.gmra.mxu3 %v302_v15 }
  0x9e   :  { %v155_v16 = vpop.f32.mrf.mxu0  ;;  %v165_v17 = vpop.f32.mrf.mxu1 }
  0x9f   :  { %v156_v23 = vadd.f32 %v382_v18, %v155_v16  ;;  %v166_v24 = vadd.f32 %v382_v18, %v165_v17 }
  0xa5   :  { %v175_v19 = vpop.f32.mrf.mxu2  ;;  %v185_v20 = vpop.f32.mrf.mxu3 }
  0xa6   :  { %v157_v21 = vpop.f32.mrf.mxu0  ;;  %v167_v22 = vpop.f32.mrf.mxu1  ;;  %v176_v31 = vadd.f32 %v382_v18, %v175_v19  ;;  %v186_v32 = vadd.f32 %v382_v18, %v185_v20 }
  0xa7   :  { %v158_v25 = vadd.f32 %v382_v18, %v157_v21  ;;  %v168_v26 = vadd.f32 %v382_v18, %v167_v22 }
  0xa9   :  { %v314_v27 = vpack.c.bf16 %v158_v25, %v156_v23  ;;  %v324_v28 = vpack.c.bf16 %v168_v26, %v166_v24 }
  0xab   :  { %315 = vst [vmem:[%s481_s3] sm:$0xff] %v314_v27  }
  0xac   :  { %352 = vst [vmem:[%s481_s3 + $0x10] sm:$0xff] %v324_v28  }
  0xad   :  { %v177_v29 = vpop.f32.mrf.mxu2  ;;  %v187_v30 = vpop.f32.mrf.mxu3 }
  0xae   :  { %v178_v33 = vadd.f32 %v382_v18, %v177_v29  ;;  %v188_v34 = vadd.f32 %v382_v18, %v187_v30  ;;  %v160_v35 = vpop.f32.mrf.mxu0  ;;  %v170_v36 = vpop.f32.mrf.mxu1 }
  0xaf   :  { %v161_v43 = vadd.f32 %v382_v18, %v160_v35  ;;  %v171_v44 = vadd.f32 %v382_v18, %v170_v36 }
  0xb0   :  { %v334_v37 = vpack.c.bf16 %v178_v33, %v176_v31  ;;  %v344_v38 = vpack.c.bf16 %v188_v34, %v186_v32 }
  0xb2   :  { %354 = vst [vmem:[%s481_s3 + $0x20] sm:$0xff] %v334_v37  }
  0xb3   :  { %356 = vst [vmem:[%s481_s3 + $0x30] sm:$0xff] %v344_v38  }
  0xb5   :  { %v180_v39 = vpop.f32.mrf.mxu2  ;;  %v190_v40 = vpop.f32.mrf.mxu3 }
  0xb6   :  { %v162_v41 = vpop.f32.mrf.mxu0  ;;  %v172_v42 = vpop.f32.mrf.mxu1  ;;  %v181_v51 = vadd.f32 %v382_v18, %v180_v39  ;;  %v191_v52 = vadd.f32 %v382_v18, %v190_v40 }
  0xb7   :  { %v163_v45 = vadd.f32 %v382_v18, %v162_v41  ;;  %v173_v46 = vadd.f32 %v382_v18, %v172_v42 }
  0xb9   :  { %v319_v47 = vpack.c.bf16 %v163_v45, %v161_v43  ;;  %v329_v48 = vpack.c.bf16 %v173_v46, %v171_v44 }
  0xbb   :  { %351 = vst [vmem:[%s481_s3 + $0x8] sm:$0xff] %v319_v47  }
  0xbc   :  { %353 = vst [vmem:[%s481_s3 + $0x18] sm:$0xff] %v329_v48  }
  0xbd   :  { %v182_v49 = vpop.f32.mrf.mxu2  ;;  %v192_v50 = vpop.f32.mrf.mxu3 }
  0xbe   :  { %v183_v53 = vadd.f32 %v382_v18, %v182_v49  ;;  %v193_v54 = vadd.f32 %v382_v18, %v192_v50 }
  0xc0   :  { %v339_v55 = vpack.c.bf16 %v183_v53, %v181_v51  ;;  %v349_v56 = vpack.c.bf16 %v193_v54, %v191_v52 }
  0xc2   :  { %355 = vst [vmem:[%s481_s3 + $0x28] sm:$0xff] %v339_v55  }
  0xc3   :  { %357 = vst [vmem:[%s481_s3 + $0x38] sm:$0xff] %v349_v56  }

// kernel: encoder_fwd_nchw.17
= control target key start
LH: loop header
LB: loop body
LE: loop exit
PB: predicated region body
PF: predicated region fallthrough
CT: control target
= control target key end

     0   :  { %s3156_s1 = inlined_call_operand.vmem [shape: bf16[1152,128], index: 1, kind: input, shape index: {}]   ;;  %s3157_s2 = inlined_call_operand.vmem [shape: f32[1,128], index: 2, kind: input, shape index: {}]   ;;  %s3158_s0 = inlined_call_operand.vmem [shape: bf16[128,1152], index: 0, kind: input, shape index: {}]   ;;  %s3159_s3 = inlined_call_operand.vmem [shape: bf16[128,128], index: 3, kind: output, shape index: {}]  }
   0x1   :  { %v2222_v0 = vld [vmem:[%s3156_s1 + $0x38] sm:$0xff]  ;;  %v2221_v1 = vld [vmem:[%s3156_s1 + $0x30] sm:$0xff]  ;;  %v2220_v2 = vld [vmem:[%s3156_s1 + $0x28] sm:$0xff] }
   0x2   :  { %2334 = vmatpush.bf16.msra.mxu1 %v2222_v0  ;;  %2335 = vmatpush.bf16.msra.mxu2 %v2222_v0  ;;  %v2219_v3 = vld [vmem:[%s3156_s1 + $0x20] sm:$0xff]  ;;  %v2218_v4 = vld [vmem:[%s3156_s1 + $0x18] sm:$0xff]  ;;  %v2217_v5 = vld [vmem:[%s3156_s1 + $0x10] sm:$0xff] }
   0x3   :  { %2336 = vmatpush.bf16.msra.mxu3 %v2222_v0  ;;  %1042 = vmatpush.bf16.msra.mxu0 %v2222_v0  ;;  %v2216_v6 = vld [vmem:[%s3156_s1 + $0x8] sm:$0xff]  ;;  %v2215_v7 = vld [vmem:[%s3156_s1] sm:$0xff]  ;;  %v1641_v8 = vld [vmem:[%s3158_s0 + $0x90] sm:$0xf] }
   0x4   :  { %v2165_v9 = vld [vmem:[%s3158_s0 + $0xb0] sm:$0xf0]  ;;  %v1713_v10 = vld [vmem:[%s3158_s0 + $0x120] sm:$0xf]  ;;  %v2183_v11 = vld [vmem:[%s3158_s0 + $0x140] sm:$0xf0] }
   0x5   :  { %v1785_v12 = vld [vmem:[%s3158_s0 + $0x1b0] sm:$0xf]  ;;  %v2201_v13 = vld [vmem:[%s3158_s0 + $0x1d0] sm:$0xf0]  ;;  %v1569_v14 = vld [vmem:[%s3158_s0] sm:$0xf]  ;;  %v1642_v18 = vor.u32 %v2165_v9, %v1641_v8  ;;  %v1714_v19 = vor.u32 %v2183_v11, %v1713_v10 }
   0x6   :  { %2337 = vmatpush.bf16.msra.mxu1 %v2221_v1  ;;  %2338 = vmatpush.bf16.msra.mxu2 %v2221_v1  ;;  %v2147_v15 = vld [vmem:[%s3158_s0 + $0x20] sm:$0xf0]  ;;  %v2238_v16 = vld [vmem:[%s3156_s1 + $0xb8] sm:$0xff]  ;;  %v1786_v20 = vor.u32 %v2201_v13, %v1785_v12  ;;  %v2237_v24 = vld [vmem:[%s3156_s1 + $0xb0] sm:$0xff] }
   0x7   :  { %2339 = vmatpush.bf16.msra.mxu3 %v2221_v1  ;;  %1043 = vmatpush.bf16.msra.mxu0 %v2221_v1  ;;  %v2230_v17 = vld [vmem:[%s3156_s1 + $0x78] sm:$0xff]  ;;  %v1570_v21 = vor.u32 %v2147_v15, %v1569_v14  ;;  %v2229_v25 = vld [vmem:[%s3156_s1 + $0x70] sm:$0xff]  ;;  %v2236_v28 = vld [vmem:[%s3156_s1 + $0xa8] sm:$0xff] }
   0x8   :  { %v2246_v22 = vld [vmem:[%s3156_s1 + $0xf8] sm:$0xff]  ;;  %v2245_v26 = vld [vmem:[%s3156_s1 + $0xf0] sm:$0xff]  ;;  %v2228_v29 = vld [vmem:[%s3156_s1 + $0x68] sm:$0xff] }
   0x9   :  { %v2254_v23 = vld [vmem:[%s3156_s1 + $0x138] sm:$0xff]  ;;  %v2253_v27 = vld [vmem:[%s3156_s1 + $0x130] sm:$0xff]  ;;  %v2244_v30 = vld [vmem:[%s3156_s1 + $0xe8] sm:$0xff] }
   0xa   :  { %2340 = vmatpush.bf16.msra.mxu1 %v2220_v2  ;;  %2341 = vmatpush.bf16.msra.mxu2 %v2220_v2  ;;  %v2252_v31 = vld [vmem:[%s3156_s1 + $0x128] sm:$0xff]  ;;  %v2235_v32 = vld [vmem:[%s3156_s1 + $0xa0] sm:$0xff]  ;;  %v1677_v36 = vld [vmem:[%s3158_s0 + $0xd8] sm:$0xf] }
   0xb   :  { %2342 = vmatpush.bf16.msra.mxu3 %v2220_v2  ;;  %1044 = vmatpush.bf16.msra.mxu0 %v2220_v2  ;;  %v2227_v33 = vld [vmem:[%s3156_s1 + $0x60] sm:$0xff]  ;;  %v2174_v37 = vld [vmem:[%s3158_s0 + $0xf8] sm:$0xf0]  ;;  %v1749_v38 = vld [vmem:[%s3158_s0 + $0x168] sm:$0xf] }
   0xc   :  { %v2243_v34 = vld [vmem:[%s3156_s1 + $0xe0] sm:$0xff]  ;;  %v2192_v39 = vld [vmem:[%s3158_s0 + $0x188] sm:$0xf0]  ;;  %v1821_v40 = vld [vmem:[%s3158_s0 + $0x1f8] sm:$0xf]  ;;  %v1678_v46 = vor.u32 %v2174_v37, %v1677_v36 }
   0xd   :  { %v2251_v35 = vld [vmem:[%s3156_s1 + $0x120] sm:$0xff]  ;;  %v2210_v41 = vld [vmem:[%s3158_s0 + $0x218] sm:$0xf0]  ;;  %v1605_v42 = vld [vmem:[%s3158_s0 + $0x48] sm:$0xf]  ;;  %v1750_v47 = vor.u32 %v2192_v39, %v1749_v38 }
   0xe   :  { %2343 = vmatpush.bf16.msra.mxu1 %v2219_v3  ;;  %2344 = vmatpush.bf16.msra.mxu2 %v2219_v3  ;;  %v2156_v43 = vld [vmem:[%s3158_s0 + $0x68] sm:$0xf0]  ;;  %v2234_v44 = vld [vmem:[%s3156_s1 + $0x98] sm:$0xff]  ;;  %v1822_v48 = vor.u32 %v2210_v41, %v1821_v40  ;;  %v2233_v52 = vld [vmem:[%s3156_s1 + $0x90] sm:$0xff] }
   0xf   :  { %2345 = vmatpush.bf16.msra.mxu3 %v2219_v3  ;;  %1045 = vmatpush.bf16.msra.mxu0 %v2219_v3  ;;  %v2226_v45 = vld [vmem:[%s3156_s1 + $0x58] sm:$0xff]  ;;  %v1606_v49 = vor.u32 %v2156_v43, %v1605_v42  ;;  %v2225_v53 = vld [vmem:[%s3156_s1 + $0x50] sm:$0xff]  ;;  %v2232_v56 = vld [vmem:[%s3156_s1 + $0x88] sm:$0xff] }
  0x10   :  { %v2242_v50 = vld [vmem:[%s3156_s1 + $0xd8] sm:$0xff]  ;;  %v2241_v54 = vld [vmem:[%s3156_s1 + $0xd0] sm:$0xff]  ;;  %v2224_v57 = vld [vmem:[%s3156_s1 + $0x48] sm:$0xff] }
  0x11   :  { %v2250_v51 = vld [vmem:[%s3156_s1 + $0x118] sm:$0xff]  ;;  %v2249_v55 = vld [vmem:[%s3156_s1 + $0x110] sm:$0xff]  ;;  %v2240_v58 = vld [vmem:[%s3156_s1 + $0xc8] sm:$0xff] }
  0x12   :  { %2346 = vmatpush.bf16.msra.mxu1 %v2218_v4  ;;  %2347 = vmatpush.bf16.msra.mxu2 %v2218_v4  ;;  %v2248_v59 = vld [vmem:[%s3156_s1 + $0x108] sm:$0xff]  ;;  %v2231_v60 = vld [vmem:[%s3156_s1 + $0x80] sm:$0xff]  ;;  %v2270_v2 = vld [vmem:[%s3156_s1 + $0x1b8] sm:$0xff] }
  0x13   :  { %2348 = vmatpush.bf16.msra.mxu3 %v2218_v4  ;;  %1046 = vmatpush.bf16.msra.mxu0 %v2218_v4  ;;  %v2223_v61 = vld [vmem:[%s3156_s1 + $0x40] sm:$0xff]  ;;  %v1571_v1 = vld [vmem:[%s3158_s0 + $0x24] sm:$0xf0]  ;;  %v2262_v3 = vld [vmem:[%s3156_s1 + $0x178] sm:$0xff] }
  0x14   :  { %v2143_v62 = vld [vmem:[%s3158_s0 + $0x4] sm:$0xf]  ;;  %v1577_v4 = vld [vmem:[%s3158_s0 + $0x8] sm:$0xf]  ;;  %v1585_v8 = vld [vmem:[%s3158_s0 + $0x10] sm:$0xf] }
  0x15   :  { %v2239_v63 = vld [vmem:[%s3156_s1 + $0xc0] sm:$0xff]  ;;  %v2149_v9 = vld [vmem:[%s3158_s0 + $0x30] sm:$0xf0]  ;;  %v2278_v10 = vld [vmem:[%s3156_s1 + $0x1f8] sm:$0xff]  ;;  %v1574_v12 = vor.u32 %v2143_v62, %v1571_v1 }
  0x16   :  { %2349 = vmatpush.bf16.msra.mxu1 %v2217_v5  ;;  %2350 = vmatpush.bf16.msra.mxu2 %v2217_v5  ;;  %v2247_v0 = vld [vmem:[%s3156_s1 + $0x100] sm:$0xff]  ;;  %v2286_v11 = vld [vmem:[%s3156_s1 + $0x238] sm:$0xff]  ;;  %v1586_v15 = vor.u32 %v2149_v9, %v1585_v8  ;;  %v2161_v40 = vld [vmem:[%s3158_s0 + $0x94] sm:$0xf] }
  0x17   :  { %2351 = vmatpush.bf16.msra.mxu3 %v2217_v5  ;;  %1047 = vmatpush.bf16.msra.mxu0 %v2217_v5  ;;  %v2148_v5 = vld [vmem:[%s3158_s0 + $0x28] sm:$0xf0]  ;;  %v2267_v36 = vld [vmem:[%s3156_s1 + $0x1a0] sm:$0xff]  ;;  %v1643_v41 = vld [vmem:[%s3158_s0 + $0xb4] sm:$0xf0] }
  0x18   :  { %v1578_v13 = vor.u32 %v2148_v5, %v1577_v4  ;;  %v2275_v37 = vld [vmem:[%s3156_s1 + $0x1e0] sm:$0xff]  ;;  %v1649_v42 = vld [vmem:[%s3158_s0 + $0x98] sm:$0xf]  ;;  %v2166_v43 = vld [vmem:[%s3158_s0 + $0xb8] sm:$0xf0] }
  0x19   :  { %v2259_v38 = vld [vmem:[%s3156_s1 + $0x160] sm:$0xff]  ;;  %v1693_v62 = vld [vmem:[%s3158_s0 + $0xe8] sm:$0xf]  ;;  %v2265_v4 = vld [vmem:[%s3156_s1 + $0x190] sm:$0xff] }
  0x1a   :  { %2352 = vmatpush.bf16.msra.mxu1 %v2216_v6  ;;  %2353 = vmatpush.bf16.msra.mxu2 %v2216_v6  ;;  %v2283_v39 = vld [vmem:[%s3156_s1 + $0x220] sm:$0xff]  ;;  %v2273_v5 = vld [vmem:[%s3156_s1 + $0x1d0] sm:$0xff]  ;;  %v1715_v9 = vld [vmem:[%s3158_s0 + $0x144] sm:$0xf0] }
  0x1b   :  { %2354 = vmatpush.bf16.msra.mxu3 %v2216_v6  ;;  %1048 = vmatpush.bf16.msra.mxu0 %v2216_v6  ;;  %v2144_v6 = vld [vmem:[%s3158_s0 + $0xc] sm:$0xf]  ;;  %v2179_v8 = vld [vmem:[%s3158_s0 + $0x124] sm:$0xf] }
  0x1e   :  { %2355 = vmatpush.bf16.msra.mxu1 %v2215_v7  ;;  %2356 = vmatpush.bf16.msra.mxu2 %v2215_v7 }
  0x1f   :  { %2357 = vmatpush.bf16.msra.mxu3 %v2215_v7  ;;  %1049 = vmatpush.bf16.msra.mxu0 %v2215_v7  ;;  %v1579_v7 = vld [vmem:[%s3158_s0 + $0x2c] sm:$0xf0] }
  0x20   :  { %v1582_v14 = vor.u32 %v2144_v6, %v1579_v7  ;;  %v2257_v6 = vld [vmem:[%s3156_s1 + $0x150] sm:$0xff] }
  0x21   :  { %1060 = vmatmul.bf16.vlgmr.msra.gmra.mxu1 %v1642_v18  ;;  %1070 = vmatmul.bf16.vlgmr.msra.gmra.mxu2 %v1714_v19  ;;  %v2277_v18 = vld [vmem:[%s3156_s1 + $0x1f0] sm:$0xff] }
  0x22   :  { %1140 = vmatpush.bf16.msrb.mxu2 %v2238_v16  ;;  %1091 = vmatpush.bf16.msrb.mxu1 %v2230_v17  ;;  %v2269_v16 = vld [vmem:[%s3156_s1 + $0x1b0] sm:$0xff] }
  0x23   :  { %1080 = vmatmul.bf16.vlgmr.msra.gmra.mxu3 %v1786_v20  ;;  %1050 = vmatmul.bf16.vlgmr.msra.gmra.mxu0 %v1570_v21  ;;  %v2261_v17 = vld [vmem:[%s3156_s1 + $0x170] sm:$0xff]  ;;  %v2268_v20 = vld [vmem:[%s3156_s1 + $0x1a8] sm:$0xff] }
  0x24   :  { %1189 = vmatpush.bf16.msrb.mxu3 %v2246_v22  ;;  %1238 = vmatpush.bf16.msrb.mxu0 %v2254_v23  ;;  %v2285_v19 = vld [vmem:[%s3156_s1 + $0x230] sm:$0xff]  ;;  %v2260_v21 = vld [vmem:[%s3156_s1 + $0x168] sm:$0xff] }
  0x25   :  { %v2276_v22 = vld [vmem:[%s3156_s1 + $0x1e8] sm:$0xff]  ;;  %v2281_v7 = vld [vmem:[%s3156_s1 + $0x210] sm:$0xff] }
  0x26   :  { %1141 = vmatpush.bf16.msrb.mxu2 %v2237_v24  ;;  %1092 = vmatpush.bf16.msrb.mxu1 %v2229_v25  ;;  %v2284_v23 = vld [vmem:[%s3156_s1 + $0x228] sm:$0xff]  ;;  %v1607_v25 = vld [vmem:[%s3158_s0 + $0x6c] sm:$0xf0] }
  0x27   :  { %v2152_v24 = vld [vmem:[%s3158_s0 + $0x4c] sm:$0xf] }
  0x28   :  { %1190 = vmatpush.bf16.msrb.mxu3 %v2245_v26  ;;  %1239 = vmatpush.bf16.msrb.mxu0 %v2253_v27  ;;  %v1613_v26 = vld [vmem:[%s3158_s0 + $0x50] sm:$0xf]  ;;  %v2157_v27 = vld [vmem:[%s3158_s0 + $0x70] sm:$0xf0] }
  0x2a   :  { %1142 = vmatpush.bf16.msrb.mxu2 %v2236_v28  ;;  %1093 = vmatpush.bf16.msrb.mxu1 %v2228_v29  ;;  %v2153_v28 = vld [vmem:[%s3158_s0 + $0x54] sm:$0xf]  ;;  %v1615_v29 = vld [vmem:[%s3158_s0 + $0x74] sm:$0xf0] }
  0x2c   :  { %1191 = vmatpush.bf16.msrb.mxu3 %v2244_v30  ;;  %1240 = vmatpush.bf16.msrb.mxu0 %v2252_v31  ;;  %v1621_v30 = vld [vmem:[%s3158_s0 + $0x58] sm:$0xf]  ;;  %v2158_v31 = vld [vmem:[%s3158_s0 + $0x78] sm:$0xf0] }
  0x2e   :  { %1143 = vmatpush.bf16.msrb.mxu2 %v2235_v32  ;;  %1094 = vmatpush.bf16.msrb.mxu1 %v2227_v33  ;;  %v1610_v32 = vor.u32 %v2152_v24, %v1607_v25  ;;  %v1614_v33 = vor.u32 %v2157_v27, %v1613_v26  ;;  %v2188_v24 = vld [vmem:[%s3158_s0 + $0x16c] sm:$0xf]  ;;  %v1751_v25 = vld [vmem:[%s3158_s0 + $0x18c] sm:$0xf0]  ;;  %v2193_v27 = vld [vmem:[%s3158_s0 + $0x190] sm:$0xf0] }
  0x2f   :  { %v1757_v26 = vld [vmem:[%s3158_s0 + $0x170] sm:$0xf] }
  0x30   :  { %1192 = vmatpush.bf16.msrb.mxu3 %v2243_v34  ;;  %1241 = vmatpush.bf16.msrb.mxu0 %v2251_v35  ;;  %v1618_v34 = vor.u32 %v2153_v28, %v1615_v29  ;;  %v1622_v35 = vor.u32 %v2158_v31, %v1621_v30  ;;  %v2189_v28 = vld [vmem:[%s3158_s0 + $0x174] sm:$0xf]  ;;  %v1759_v29 = vld [vmem:[%s3158_s0 + $0x194] sm:$0xf0]  ;;  %v2194_v31 = vld [vmem:[%s3158_s0 + $0x198] sm:$0xf0] }
  0x31   :  { %1065 = vmatmul.bf16.gmra.mxu1 %v1678_v46  ;;  %1075 = vmatmul.bf16.gmra.mxu2 %v1750_v47  ;;  %v1657_v46 = vld [vmem:[%s3158_s0 + $0xa0] sm:$0xf]  ;;  %v2167_v47 = vld [vmem:[%s3158_s0 + $0xc0] sm:$0xf0]  ;;  %v1765_v30 = vld [vmem:[%s3158_s0 + $0x178] sm:$0xf] }
  0x32   :  { %1144 = vmatpush.bf16.msrb.mxu2 %v2234_v44  ;;  %1095 = vmatpush.bf16.msrb.mxu1 %v2226_v45  ;;  %v2162_v44 = vld [vmem:[%s3158_s0 + $0x9c] sm:$0xf]  ;;  %v1651_v45 = vld [vmem:[%s3158_s0 + $0xbc] sm:$0xf0] }
  0x33   :  { %1085 = vmatmul.bf16.gmra.mxu3 %v1822_v48  ;;  %1055 = vmatmul.bf16.gmra.mxu0 %v1606_v49  ;;  %v1646_v48 = vor.u32 %v2161_v40, %v1643_v41  ;;  %v1650_v49 = vor.u32 %v2166_v43, %v1649_v42  ;;  %v2197_v40 = vld [vmem:[%s3158_s0 + $0x1b4] sm:$0xf]  ;;  %v1787_v41 = vld [vmem:[%s3158_s0 + $0x1d4] sm:$0xf0]  ;;  %v2202_v43 = vld [vmem:[%s3158_s0 + $0x1d8] sm:$0xf0] }
  0x34   :  { %1193 = vmatpush.bf16.msrb.mxu3 %v2242_v50  ;;  %1242 = vmatpush.bf16.msrb.mxu0 %v2250_v51  ;;  %v1654_v50 = vor.u32 %v2162_v44, %v1651_v45  ;;  %v1658_v51 = vor.u32 %v2167_v47, %v1657_v46  ;;  %v1793_v42 = vld [vmem:[%s3158_s0 + $0x1b8] sm:$0xf]  ;;  %v2198_v44 = vld [vmem:[%s3158_s0 + $0x1bc] sm:$0xf]  ;;  %v1795_v45 = vld [vmem:[%s3158_s0 + $0x1dc] sm:$0xf0] }
  0x35   :  { %v1801_v46 = vld [vmem:[%s3158_s0 + $0x1c0] sm:$0xf]  ;;  %v2203_v47 = vld [vmem:[%s3158_s0 + $0x1e0] sm:$0xf0] }
  0x36   :  { %1145 = vmatpush.bf16.msrb.mxu2 %v2233_v52  ;;  %1096 = vmatpush.bf16.msrb.mxu1 %v2225_v53  ;;  %v2266_v52 = vld [vmem:[%s3156_s1 + $0x198] sm:$0xff] }
  0x37   :  { %v2274_v53 = vld [vmem:[%s3156_s1 + $0x1d8] sm:$0xff] }
  0x38   :  { %1194 = vmatpush.bf16.msrb.mxu3 %v2241_v54  ;;  %1243 = vmatpush.bf16.msrb.mxu0 %v2249_v55  ;;  %v2258_v54 = vld [vmem:[%s3156_s1 + $0x158] sm:$0xff] }
  0x39   :  { %v2282_v55 = vld [vmem:[%s3156_s1 + $0x218] sm:$0xff] }
  0x3a   :  { %1146 = vmatpush.bf16.msrb.mxu2 %v2232_v56  ;;  %1097 = vmatpush.bf16.msrb.mxu1 %v2224_v57  ;;  %v2170_v56 = vld [vmem:[%s3158_s0 + $0xdc] sm:$0xf]  ;;  %v1679_v57 = vld [vmem:[%s3158_s0 + $0xfc] sm:$0xf0] }
  0x3c   :  { %1195 = vmatpush.bf16.msrb.mxu3 %v2240_v58  ;;  %1244 = vmatpush.bf16.msrb.mxu0 %v2248_v59  ;;  %v1685_v58 = vld [vmem:[%s3158_s0 + $0xe0] sm:$0xf]  ;;  %v2175_v59 = vld [vmem:[%s3158_s0 + $0x100] sm:$0xf0] }
  0x3d   :  { %v1686_v1 = vor.u32 %v2175_v59, %v1685_v58 }
  0x3e   :  { %1147 = vmatpush.bf16.msrb.mxu2 %v2231_v60  ;;  %1098 = vmatpush.bf16.msrb.mxu1 %v2223_v61  ;;  %v2171_v60 = vld [vmem:[%s3158_s0 + $0xe4] sm:$0xf]  ;;  %v1687_v61 = vld [vmem:[%s3158_s0 + $0x104] sm:$0xf0] }
  0x40   :  { %1196 = vmatpush.bf16.msrb.mxu3 %v2239_v63  ;;  %1245 = vmatpush.bf16.msrb.mxu0 %v2247_v0  ;;  %v2176_v63 = vld [vmem:[%s3158_s0 + $0x108] sm:$0xf0]  ;;  %v1682_v0 = vor.u32 %v2170_v56, %v1679_v57 }
  0x41   :  { %1099 = vmatmul.bf16.vlgmr.msrb.gmra.mxu1 %v1574_v12  ;;  %1148 = vmatmul.bf16.vlgmr.msrb.gmra.mxu2 %v1578_v13  ;;  %v2180_v12 = vld [vmem:[%s3158_s0 + $0x12c] sm:$0xf]  ;;  %v1723_v13 = vld [vmem:[%s3158_s0 + $0x14c] sm:$0xf0] }
  0x42   :  { %1336 = vmatpush.bf16.msra.mxu2 %v2270_v2  ;;  %1287 = vmatpush.bf16.msra.mxu1 %v2262_v3  ;;  %v1690_v2 = vor.u32 %v2171_v60, %v1687_v61  ;;  %v1694_v3 = vor.u32 %v2176_v63, %v1693_v62  ;;  %v2206_v61 = vld [vmem:[%s3158_s0 + $0x1fc] sm:$0xf]  ;;  %v1823_v62 = vld [vmem:[%s3158_s0 + $0x21c] sm:$0xf0] }
  0x43   :  { %1197 = vmatmul.bf16.vlgmr.msrb.gmra.mxu3 %v1582_v14  ;;  %1246 = vmatmul.bf16.vlgmr.msrb.gmra.mxu0 %v1586_v15  ;;  %v1729_v14 = vld [vmem:[%s3158_s0 + $0x130] sm:$0xf]  ;;  %v2185_v15 = vld [vmem:[%s3158_s0 + $0x150] sm:$0xf0]  ;;  %v1829_v63 = vld [vmem:[%s3158_s0 + $0x200] sm:$0xf] }
  0x44   :  { %1385 = vmatpush.bf16.msra.mxu3 %v2278_v10  ;;  %1434 = vmatpush.bf16.msra.mxu0 %v2286_v11  ;;  %v1721_v10 = vld [vmem:[%s3158_s0 + $0x128] sm:$0xf]  ;;  %v2184_v11 = vld [vmem:[%s3158_s0 + $0x148] sm:$0xf0] }
  0x46   :  { %1337 = vmatpush.bf16.msra.mxu2 %v2269_v16  ;;  %1288 = vmatpush.bf16.msra.mxu1 %v2261_v17  ;;  %v1718_v16 = vor.u32 %v2179_v8, %v1715_v9  ;;  %v1722_v17 = vor.u32 %v2184_v11, %v1721_v10  ;;  %v1826_v8 = vor.u32 %v2206_v61, %v1823_v62  ;;  %v1637_v61 = vld [vmem:[%s3158_s0 + $0x68] sm:$0xf]  ;;  %v2160_v62 = vld [vmem:[%s3158_s0 + $0x88] sm:$0xf0] }
  0x48   :  { %1386 = vmatpush.bf16.msra.mxu3 %v2277_v18  ;;  %1435 = vmatpush.bf16.msra.mxu0 %v2285_v19  ;;  %v1726_v18 = vor.u32 %v2180_v12, %v1723_v13  ;;  %v1730_v19 = vor.u32 %v2185_v15, %v1729_v14 }
  0x4a   :  { %1338 = vmatpush.bf16.msra.mxu2 %v2268_v20  ;;  %1289 = vmatpush.bf16.msra.mxu1 %v2260_v21  ;;  %v2264_v20 = vld [vmem:[%s3156_s1 + $0x188] sm:$0xff] }
  0x4b   :  { %v2272_v21 = vld [vmem:[%s3156_s1 + $0x1c8] sm:$0xff] }
  0x4c   :  { %1387 = vmatpush.bf16.msra.mxu3 %v2276_v22  ;;  %1436 = vmatpush.bf16.msra.mxu0 %v2284_v23  ;;  %v2256_v22 = vld [vmem:[%s3156_s1 + $0x148] sm:$0xff] }
  0x4d   :  { %v2280_v23 = vld [vmem:[%s3156_s1 + $0x208] sm:$0xff] }
  0x4e   :  { %1339 = vmatpush.bf16.msra.mxu2 %v2267_v36  ;;  %1290 = vmatpush.bf16.msra.mxu1 %v2259_v38  ;;  %v2263_v36 = vld [vmem:[%s3156_s1 + $0x180] sm:$0xff] }
  0x4f   :  { %v2255_v38 = vld [vmem:[%s3156_s1 + $0x140] sm:$0xff] }
  0x50   :  { %1388 = vmatpush.bf16.msra.mxu3 %v2275_v37  ;;  %1437 = vmatpush.bf16.msra.mxu0 %v2283_v39  ;;  %v2271_v37 = vld [vmem:[%s3156_s1 + $0x1c0] sm:$0xff] }
  0x51   :  { %1104 = vmatmul.bf16.gmra.mxu1 %v1610_v32  ;;  %1153 = vmatmul.bf16.gmra.mxu2 %v1614_v33  ;;  %v1754_v32 = vor.u32 %v2188_v24, %v1751_v25  ;;  %v1758_v33 = vor.u32 %v2193_v27, %v1757_v26  ;;  %v2279_v39 = vld [vmem:[%s3156_s1 + $0x200] sm:$0xff]  ;;  %v2150_v24 = vld [vmem:[%s3158_s0 + $0x38] sm:$0xf0] }
  0x52   :  { %1340 = vmatpush.bf16.msra.mxu2 %v2266_v52  ;;  %1291 = vmatpush.bf16.msra.mxu1 %v2258_v54  ;;  %v1802_v52 = vor.u32 %v2203_v47, %v1801_v46  ;;  %v2816_v54 = vld [vmem:[%s3157_s2] ss:$0 sm:$0xff]  ;;  %v2146_v25 = vld [vmem:[%s3158_s0 + $0x1c] sm:$0xf] }
  0x53   :  { %1202 = vmatmul.bf16.gmra.mxu3 %v1618_v34  ;;  %1251 = vmatmul.bf16.gmra.mxu0 %v1622_v35  ;;  %v1762_v34 = vor.u32 %v2189_v28, %v1759_v29  ;;  %v1766_v35 = vor.u32 %v2194_v31, %v1765_v30  ;;  %v1595_v26 = vld [vmem:[%s3158_s0 + $0x3c] sm:$0xf0]  ;;  %v2151_v28 = vld [vmem:[%s3158_s0 + $0x40] sm:$0xf0] }
  0x54   :  { %1389 = vmatpush.bf16.msra.mxu3 %v2274_v53  ;;  %1438 = vmatpush.bf16.msra.mxu0 %v2282_v55  ;;  %v1601_v27 = vld [vmem:[%s3158_s0 + $0x20] sm:$0xf] }
  0x56   :  { %1341 = vmatpush.bf16.msra.mxu2 %v2265_v4  ;;  %1292 = vmatpush.bf16.msra.mxu1 %v2257_v6  ;;  %v2212_v4 = vld [vmem:[%s3158_s0 + $0x228] sm:$0xf0] }
  0x58   :  { %1390 = vmatpush.bf16.msra.mxu3 %v2273_v5  ;;  %1439 = vmatpush.bf16.msra.mxu0 %v2281_v7 }
  0x5a   :  { %1342 = vmatpush.bf16.msra.mxu2 %v2264_v20  ;;  %1293 = vmatpush.bf16.msra.mxu1 %v2256_v22  ;;  %v1587_v22 = vld [vmem:[%s3158_s0 + $0x34] sm:$0xf0] }
  0x5c   :  { %1391 = vmatpush.bf16.msra.mxu3 %v2272_v21  ;;  %1440 = vmatpush.bf16.msra.mxu0 %v2280_v23  ;;  %v2145_v21 = vld [vmem:[%s3158_s0 + $0x14] sm:$0xf]  ;;  %v1593_v23 = vld [vmem:[%s3158_s0 + $0x18] sm:$0xf] }
  0x5e   :  { %1343 = vmatpush.bf16.msra.mxu2 %v2263_v36  ;;  %1294 = vmatpush.bf16.msra.mxu1 %v2255_v38  ;;  %v1602_v38 = vor.u32 %v2151_v28, %v1601_v27  ;;  %v2163_v27 = vld [vmem:[%s3158_s0 + $0xa4] sm:$0xf]  ;;  %v1659_v28 = vld [vmem:[%s3158_s0 + $0xc4] sm:$0xf0] }
  0x60   :  { %1392 = vmatpush.bf16.msra.mxu3 %v2271_v37  ;;  %1441 = vmatpush.bf16.msra.mxu0 %v2279_v39  ;;  %v1598_v37 = vor.u32 %v2146_v25, %v1595_v26 }
  0x61   :  { %1109 = vmatmul.bf16.gmra.mxu1 %v1646_v48  ;;  %1158 = vmatmul.bf16.gmra.mxu2 %v1650_v49  ;;  %v1790_v48 = vor.u32 %v2197_v40, %v1787_v41  ;;  %v1794_v49 = vor.u32 %v2202_v43, %v1793_v42 }
  0x63   :  { %1207 = vmatmul.bf16.gmra.mxu3 %v1654_v50  ;;  %1256 = vmatmul.bf16.gmra.mxu0 %v1658_v51  ;;  %v1798_v51 = vor.u32 %v2198_v44, %v1795_v45 }
  0x71   :  { %1114 = vmatmul.bf16.gmra.mxu1 %v1682_v0  ;;  %1163 = vmatmul.bf16.gmra.mxu2 %v1686_v1  ;;  %v2211_v0 = vld [vmem:[%s3158_s0 + $0x220] sm:$0xf0] }
  0x72   :  { %v2207_v1 = vld [vmem:[%s3158_s0 + $0x204] sm:$0xf]  ;;  %v1830_v9 = vor.u32 %v2211_v0, %v1829_v63 }
  0x73   :  { %1212 = vmatmul.bf16.gmra.mxu3 %v1690_v2  ;;  %1261 = vmatmul.bf16.gmra.mxu0 %v1694_v3  ;;  %v1831_v2 = vld [vmem:[%s3158_s0 + $0x224] sm:$0xf0] }
  0x74   :  { %v1837_v3 = vld [vmem:[%s3158_s0 + $0x208] sm:$0xf]  ;;  %v1834_v12 = vor.u32 %v2207_v1, %v1831_v2 }
  0x75   :  { %v1838_v13 = vor.u32 %v2212_v4, %v1837_v3 }
  0x81   :  { %1119 = vmatmul.bf16.gmra.mxu1 %v1718_v16  ;;  %1168 = vmatmul.bf16.gmra.mxu2 %v1722_v17 }
  0x83   :  { %1217 = vmatmul.bf16.gmra.mxu3 %v1726_v18  ;;  %1266 = vmatmul.bf16.gmra.mxu0 %v1730_v19 }
  0x91   :  { %1124 = vmatmul.bf16.gmra.mxu1 %v1754_v32  ;;  %1173 = vmatmul.bf16.gmra.mxu2 %v1758_v33  ;;  %v1590_v33 = vor.u32 %v2145_v21, %v1587_v22 }
  0x93   :  { %1222 = vmatmul.bf16.gmra.mxu3 %v1762_v34  ;;  %1271 = vmatmul.bf16.gmra.mxu0 %v1766_v35  ;;  %v1594_v34 = vor.u32 %v2150_v24, %v1593_v23 }
  0x9e   :  { %v2811_v50 = vpop.f32.mrf.mxu1 }
  0xa0   :  { %v1051_v53 = vpop.f32.mrf.mxu0 }
  0xa1   :  { %1129 = vmatmul.bf16.gmra.mxu1 %v1790_v48  ;;  %1178 = vmatmul.bf16.gmra.mxu2 %v1794_v49  ;;  %v1052_v30 = vadd.f32 %v2816_v54, %v1051_v53  ;;  %v2154_v49 = vld [vmem:[%s3158_s0 + $0x5c] sm:$0xf]  ;;  %v1629_v53 = vld [vmem:[%s3158_s0 + $0x60] sm:$0xf] }
  0xa3   :  { %1227 = vmatmul.bf16.gmra.mxu3 %v1798_v51  ;;  %1276 = vmatmul.bf16.gmra.mxu0 %v1802_v52  ;;  %v1623_v51 = vld [vmem:[%s3158_s0 + $0x7c] sm:$0xf0] }
  0xa4   :  { %v1071_v55 = vpop.f32.mrf.mxu2  ;;  %v1626_v3 = vor.u32 %v2154_v49, %v1623_v51 }
  0xa5   :  { %v2819_v56 = vadd.f32 %v2816_v54, %v1071_v55  ;;  %v2159_v55 = vld [vmem:[%s3158_s0 + $0x80] sm:$0xf0] }
  0xa6   :  { %v1081_v57 = vpop.f32.mrf.mxu3  ;;  %v2824_v59 = vpop.f32.mrf.mxu1  ;;  %v1630_v4 = vor.u32 %v2159_v55, %v1629_v53 }
  0xa7   :  { %v2822_v58 = vadd.f32 %v2816_v54, %v1081_v57  ;;  %v2155_v57 = vld [vmem:[%s3158_s0 + $0x64] sm:$0xf] }
  0xa8   :  { %v1053_v60 = vpop.f32.mrf.mxu0 }
  0xa9   :  { %v1054_v42 = vadd.f32 %v2816_v54, %v1053_v60  ;;  %v1631_v60 = vld [vmem:[%s3158_s0 + $0x84] sm:$0xf0] }
  0xac   :  { %v1073_v5 = vpop.f32.mrf.mxu2 }
  0xad   :  { %v2851_v6 = vadd.f32 %v2816_v54, %v1073_v5 }
  0xae   :  { %v1083_v7 = vpop.f32.mrf.mxu3  ;;  %v2856_v11 = vpop.f32.mrf.mxu1 }
  0xaf   :  { %v2854_v10 = vadd.f32 %v2816_v54, %v1083_v7  ;;  %v1634_v7 = vor.u32 %v2155_v57, %v1631_v60 }
  0xb0   :  { %v1056_v14 = vpop.f32.mrf.mxu0 }
  0xb1   :  { %1134 = vmatmul.bf16.gmra.mxu1 %v1826_v8  ;;  %1183 = vmatmul.bf16.gmra.mxu2 %v1830_v9  ;;  %v1057_v0 = vadd.f32 %v2816_v54, %v1056_v14  ;;  %v1638_v8 = vor.u32 %v2160_v62, %v1637_v61 }
  0xb3   :  { %1232 = vmatmul.bf16.gmra.mxu3 %v1834_v12  ;;  %1281 = vmatmul.bf16.gmra.mxu0 %v1838_v13 }
  0xb4   :  { %v1076_v15 = vpop.f32.mrf.mxu2 }
  0xb5   :  { %v2859_v16 = vadd.f32 %v2816_v54, %v1076_v15 }
  0xb6   :  { %v1086_v17 = vpop.f32.mrf.mxu3  ;;  %v2864_v19 = vpop.f32.mrf.mxu1 }
  0xb7   :  { %v2862_v18 = vadd.f32 %v2816_v54, %v1086_v17 }
  0xb8   :  { %v1058_v20 = vpop.f32.mrf.mxu0 }
  0xb9   :  { %v1059_v21 = vadd.f32 %v2816_v54, %v1058_v20  ;;  %v1665_v20 = vld [vmem:[%s3158_s0 + $0xa8] sm:$0xf] }
  0xbc   :  { %v1078_v29 = vpop.f32.mrf.mxu2 }
  0xbd   :  { %v2892_v31 = vadd.f32 %v2816_v54, %v1078_v29 }
  0xbe   :  { %v1088_v32 = vpop.f32.mrf.mxu3  ;;  %v1100_v36 = vpop.f32.mrf.mxu1 }
  0xbf   :  { %v2895_v35 = vadd.f32 %v2816_v54, %v1088_v32  ;;  %v1101_v39 = vadd.f32 %v1100_v36, %v1052_v30  ;;  %v2168_v30 = vld [vmem:[%s3158_s0 + $0xc8] sm:$0xf0]  ;;  %v2169_v36 = vld [vmem:[%s3158_s0 + $0xd0] sm:$0xf0] }
  0xc0   :  { %v1247_v40 = vpop.f32.mrf.mxu0  ;;  %v2164_v32 = vld [vmem:[%s3158_s0 + $0xac] sm:$0xf] }
  0xc1   :  { %1295 = vmatmul.bf16.vlgmr.msra.gmra.mxu1 %v1590_v33  ;;  %1344 = vmatmul.bf16.vlgmr.msra.gmra.mxu2 %v1594_v34  ;;  %v1667_v33 = vld [vmem:[%s3158_s0 + $0xcc] sm:$0xf0] }
  0xc2   :  { %v1673_v34 = vld [vmem:[%s3158_s0 + $0xb0] sm:$0xf] }
  0xc3   :  { %1393 = vmatmul.bf16.vlgmr.msra.gmra.mxu3 %v1598_v37  ;;  %1442 = vmatmul.bf16.vlgmr.msra.gmra.mxu0 %v1602_v38  ;;  %v1062_v38 = vadd.f32 %v2816_v54, %v2811_v50  ;;  %v1064_v50 = vadd.f32 %v2816_v54, %v2824_v59  ;;  %v1701_v59 = vld [vmem:[%s3158_s0 + $0xf0] sm:$0xf] }
  0xc4   :  { %v1149_v41 = vpop.f32.mrf.mxu2 }
  0xc5   :  { %v1150_v43 = vadd.f32 %v1149_v41, %v1101_v39  ;;  %v1662_v41 = vor.u32 %v2163_v27, %v1659_v28 }
  0xc6   :  { %v1198_v44 = vpop.f32.mrf.mxu3  ;;  %v1102_v45 = vpop.f32.mrf.mxu1 }
  0xc7   :  { %v1199_v46 = vadd.f32 %v1198_v44, %v1150_v43  ;;  %v1103_v47 = vadd.f32 %v1102_v45, %v1054_v42  ;;  %v1666_v42 = vor.u32 %v2168_v30, %v1665_v20  ;;  %v1670_v44 = vor.u32 %v2164_v32, %v1667_v33 }
  0xc8   :  { %v1249_v48 = vpop.f32.mrf.mxu0  ;;  %v1674_v45 = vor.u32 %v2169_v36, %v1673_v34 }
  0xc9   :  { %v2904_v52 = vadd.f32 %v1247_v40, %v1199_v46 }
  0xcc   :  { %v1151_v63 = vpop.f32.mrf.mxu2 }
  0xcd   :  { %v1152_v1 = vadd.f32 %v1151_v63, %v1103_v47  ;;  %v2172_v63 = vld [vmem:[%s3158_s0 + $0xec] sm:$0xf] }
  0xce   :  { %v1200_v2 = vpop.f32.mrf.mxu3  ;;  %v1105_v5 = vpop.f32.mrf.mxu1 }
  0xcf   :  { %v1201_v9 = vadd.f32 %v1200_v2, %v1152_v1  ;;  %v1106_v12 = vadd.f32 %v1105_v5, %v1057_v0  ;;  %v1695_v0 = vld [vmem:[%s3158_s0 + $0x10c] sm:$0xf0]  ;;  %v2177_v2 = vld [vmem:[%s3158_s0 + $0x110] sm:$0xf0]  ;;  %v1709_v5 = vld [vmem:[%s3158_s0 + $0xf8] sm:$0xf] }
  0xd0   :  { %v1252_v13 = vpop.f32.mrf.mxu0 }
  0xd1   :  { %1300 = vmatmul.bf16.gmra.mxu1 %v1626_v3  ;;  %1349 = vmatmul.bf16.gmra.mxu2 %v1630_v4  ;;  %v2925_v15 = vadd.f32 %v1249_v48, %v1201_v9  ;;  %v2173_v3 = vld [vmem:[%s3158_s0 + $0xf4] sm:$0xf]  ;;  %v1703_v4 = vld [vmem:[%s3158_s0 + $0x114] sm:$0xf0]  ;;  %v1067_v9 = vadd.f32 %v2816_v54, %v2856_v11  ;;  %v1069_v11 = vadd.f32 %v2816_v54, %v2864_v19  ;;  %v2186_v19 = vld [vmem:[%s3158_s0 + $0x158] sm:$0xf0] }
  0xd2   :  { %v1737_v54 = vld [vmem:[%s3158_s0 + $0x138] sm:$0xf] }
  0xd3   :  { %1398 = vmatmul.bf16.gmra.mxu3 %v1634_v7  ;;  %1447 = vmatmul.bf16.gmra.mxu0 %v1638_v8  ;;  %v2178_v7 = vld [vmem:[%s3158_s0 + $0x118] sm:$0xf0] }
  0xd4   :  { %v1154_v17 = vpop.f32.mrf.mxu2 }
  0xd5   :  { %v1155_v14 = vadd.f32 %v1154_v17, %v1106_v12  ;;  %v1698_v17 = vor.u32 %v2172_v63, %v1695_v0 }
  0xd6   :  { %v1203_v22 = vpop.f32.mrf.mxu3  ;;  %v1107_v23 = vpop.f32.mrf.mxu1 }
  0xd7   :  { %v1204_v24 = vadd.f32 %v1203_v22, %v1155_v14  ;;  %v1108_v25 = vadd.f32 %v1107_v23, %v1059_v21  ;;  %v1702_v21 = vor.u32 %v2177_v2, %v1701_v59  ;;  %v1706_v22 = vor.u32 %v2173_v3, %v1703_v4 }
  0xd8   :  { %v1254_v26 = vpop.f32.mrf.mxu0  ;;  %v1710_v23 = vor.u32 %v2178_v7, %v1709_v5  ;;  %v2190_v5 = vld [vmem:[%s3158_s0 + $0x17c] sm:$0xf] }
  0xd9   :  { %v2934_v29 = vadd.f32 %v1252_v13, %v1204_v24 }
  0xdc   :  { %v1156_v37 = vpop.f32.mrf.mxu2 }
  0xdd   :  { %v1157_v39 = vadd.f32 %v1156_v37, %v1108_v25  ;;  %v2181_v37 = vld [vmem:[%s3158_s0 + $0x134] sm:$0xf] }
  0xde   :  { %v1205_v40 = vpop.f32.mrf.mxu3  ;;  %v1110_v43 = vpop.f32.mrf.mxu1 }
  0xdf   :  { %v1206_v46 = vadd.f32 %v1205_v40, %v1157_v39  ;;  %v1111_v47 = vadd.f32 %v1110_v43, %v1062_v38  ;;  %v1731_v38 = vld [vmem:[%s3158_s0 + $0x154] sm:$0xf0]  ;;  %v2182_v40 = vld [vmem:[%s3158_s0 + $0x13c] sm:$0xf]  ;;  %v2187_v43 = vld [vmem:[%s3158_s0 + $0x160] sm:$0xf0] }
  0xe0   :  { %v1257_v48 = vpop.f32.mrf.mxu0 }
  0xe1   :  { %1305 = vmatmul.bf16.gmra.mxu1 %v1662_v41  ;;  %1354 = vmatmul.bf16.gmra.mxu2 %v1666_v42  ;;  %v2956_v49 = vadd.f32 %v1254_v26, %v1206_v46  ;;  %v1739_v41 = vld [vmem:[%s3158_s0 + $0x15c] sm:$0xf0] }
  0xe2   :  { %v1745_v42 = vld [vmem:[%s3158_s0 + $0x140] sm:$0xf] }
  0xe3   :  { %1403 = vmatmul.bf16.gmra.mxu3 %v1670_v44  ;;  %1452 = vmatmul.bf16.gmra.mxu0 %v1674_v45 }
  0xe4   :  { %v1159_v51 = vpop.f32.mrf.mxu2 }
  0xe5   :  { %v1160_v53 = vadd.f32 %v1159_v51, %v1111_v47  ;;  %v1734_v47 = vor.u32 %v2181_v37, %v1731_v38 }
  0xe6   :  { %v1208_v55 = vpop.f32.mrf.mxu3  ;;  %v1112_v57 = vpop.f32.mrf.mxu1 }
  0xe7   :  { %v1209_v60 = vadd.f32 %v1208_v55, %v1160_v53  ;;  %v1113_v61 = vadd.f32 %v1112_v57, %v1064_v50  ;;  %v1742_v50 = vor.u32 %v2182_v40, %v1739_v41  ;;  %v1746_v53 = vor.u32 %v2187_v43, %v1745_v42  ;;  %v2199_v40 = vld [vmem:[%s3158_s0 + $0x1c4] sm:$0xf]  ;;  %v1809_v42 = vld [vmem:[%s3158_s0 + $0x1c8] sm:$0xf]  ;;  %v2204_v43 = vld [vmem:[%s3158_s0 + $0x1e8] sm:$0xf0] }
  0xe8   :  { %v1259_v62 = vpop.f32.mrf.mxu0 }
  0xe9   :  { %v2966_v1 = vadd.f32 %v1257_v48, %v1209_v60  ;;  %v1738_v48 = vor.u32 %v2186_v19, %v1737_v54 }
  0xec   :  { %v1161_v8 = vpop.f32.mrf.mxu2 }
  0xed   :  { %v1162_v12 = vadd.f32 %v1161_v8, %v1113_v61  ;;  %v1773_v8 = vld [vmem:[%s3158_s0 + $0x180] sm:$0xf] }
  0xee   :  { %v1210_v13 = vpop.f32.mrf.mxu3  ;;  %v1115_v14 = vpop.f32.mrf.mxu1 }
  0xef   :  { %v1211_v24 = vadd.f32 %v1210_v13, %v1162_v12  ;;  %v1116_v25 = vadd.f32 %v1115_v14, %v1067_v9  ;;  %v2195_v9 = vld [vmem:[%s3158_s0 + $0x1a0] sm:$0xf0]  ;;  %v1775_v12 = vld [vmem:[%s3158_s0 + $0x1a4] sm:$0xf0] }
  0xf0   :  { %v1262_v26 = vpop.f32.mrf.mxu0  ;;  %v1781_v13 = vld [vmem:[%s3158_s0 + $0x188] sm:$0xf] }
  0xf1   :  { %1310 = vmatmul.bf16.gmra.mxu1 %v1698_v17  ;;  %1359 = vmatmul.bf16.gmra.mxu2 %v1702_v21  ;;  %v2988_v27 = vadd.f32 %v1259_v62, %v1211_v24  ;;  %v2196_v17 = vld [vmem:[%s3158_s0 + $0x1a8] sm:$0xf0]  ;;  %v1774_v24 = vor.u32 %v2195_v9, %v1773_v8 }
  0xf3   :  { %1408 = vmatmul.bf16.gmra.mxu3 %v1706_v22  ;;  %1457 = vmatmul.bf16.gmra.mxu0 %v1710_v23 }
  0xf4   :  { %v1164_v28 = vpop.f32.mrf.mxu2 }
  0xf5   :  { %v1165_v20 = vadd.f32 %v1164_v28, %v1116_v25  ;;  %v1782_v28 = vor.u32 %v2196_v17, %v1781_v13  ;;  %v1845_v13 = vld [vmem:[%s3158_s0 + $0x210] sm:$0xf]  ;;  %v2213_v17 = vld [vmem:[%s3158_s0 + $0x230] sm:$0xf0] }
  0xf6   :  { %v1213_v30 = vpop.f32.mrf.mxu3  ;;  %v1117_v32 = vpop.f32.mrf.mxu1 }
  0xf7   :  { %v1214_v33 = vadd.f32 %v1213_v30, %v1165_v20  ;;  %v1118_v34 = vadd.f32 %v1117_v32, %v1069_v11 }
  0xf8   :  { %v1264_v36 = vpop.f32.mrf.mxu0 }
  0xf9   :  { %v2998_v39 = vadd.f32 %v1262_v26, %v1214_v33 }
  0xfc   :  { %v1166_v44 = vpop.f32.mrf.mxu2 }
  0xfd   :  { %v1167_v45 = vadd.f32 %v1166_v44, %v1118_v34  ;;  %v1811_v44 = vld [vmem:[%s3158_s0 + $0x1ec] sm:$0xf0] }
  0xfe   :  { %v1215_v46 = vpop.f32.mrf.mxu3  ;;  %v1120_v51 = vpop.f32.mrf.mxu1 }
  0xff   :  { %v1216_v55 = vadd.f32 %v1215_v46, %v1167_v45  ;;  %v1121_v57 = vadd.f32 %v1120_v51, %v2819_v56  ;;  %v1767_v56 = vld [vmem:[%s3158_s0 + $0x19c] sm:$0xf0]  ;;  %v1817_v45 = vld [vmem:[%s3158_s0 + $0x1d0] sm:$0xf]  ;;  %v2205_v46 = vld [vmem:[%s3158_s0 + $0x1f0] sm:$0xf0] }
 0x100   :  { %v1267_v60 = vpop.f32.mrf.mxu0  ;;  %v1770_v23 = vor.u32 %v2190_v5, %v1767_v56 }
 0x101   :  { %1315 = vmatmul.bf16.gmra.mxu1 %v1734_v47  ;;  %1364 = vmatmul.bf16.gmra.mxu2 %v1738_v48  ;;  %v3019_v61 = vadd.f32 %v1264_v36, %v1216_v55 }
 0x103   :  { %1413 = vmatmul.bf16.gmra.mxu3 %v1742_v50  ;;  %1462 = vmatmul.bf16.gmra.mxu0 %v1746_v53  ;;  %v1810_v53 = vor.u32 %v2204_v43, %v1809_v42 }
 0x104   :  { %v1169_v62 = vpop.f32.mrf.mxu2 }
 0x105   :  { %v1170_v63 = vadd.f32 %v1169_v62, %v1121_v57 }
 0x106   :  { %v1218_v0 = vpop.f32.mrf.mxu3  ;;  %v1122_v59 = vpop.f32.mrf.mxu1 }
 0x107   :  { %v1219_v2 = vadd.f32 %v1218_v0, %v1170_v63  ;;  %v1123_v3 = vadd.f32 %v1122_v59, %v2851_v6  ;;  %v2191_v6 = vld [vmem:[%s3158_s0 + $0x184] sm:$0xf] }
 0x108   :  { %v1269_v4 = vpop.f32.mrf.mxu0  ;;  %v1778_v26 = vor.u32 %v2191_v6, %v1775_v12  ;;  %v2208_v6 = vld [vmem:[%s3158_s0 + $0x20c] sm:$0xf] }
 0x109   :  { %v3028_v7 = vadd.f32 %v1267_v60, %v1219_v2  ;;  %v1818_v60 = vor.u32 %v2205_v46, %v1817_v45 }
 0x10c   :  { %v1171_v21 = vpop.f32.mrf.mxu2 }
 0x10d   :  { %v1172_v14 = vadd.f32 %v1171_v21, %v1123_v3  ;;  %v1847_v21 = vld [vmem:[%s3158_s0 + $0x234] sm:$0xf0] }
 0x10e   :  { %v1220_v22 = vpop.f32.mrf.mxu3  ;;  %v1125_v25 = vpop.f32.mrf.mxu1 }
 0x10f   :  { %v1221_v11 = vadd.f32 %v1220_v22, %v1172_v14  ;;  %v1126_v20 = vadd.f32 %v1125_v25, %v2859_v16  ;;  %v1803_v16 = vld [vmem:[%s3158_s0 + $0x1e4] sm:$0xf0]  ;;  %v1853_v14 = vld [vmem:[%s3158_s0 + $0x218] sm:$0xf]  ;;  %v2214_v22 = vld [vmem:[%s3158_s0 + $0x238] sm:$0xf0] }
 0x110   :  { %v1272_v30 = vpop.f32.mrf.mxu0  ;;  %v1806_v50 = vor.u32 %v2199_v40, %v1803_v16 }
 0x111   :  { %1320 = vmatmul.bf16.gmra.mxu1 %v1770_v23  ;;  %1369 = vmatmul.bf16.gmra.mxu2 %v1774_v24  ;;  %v3049_v32 = vadd.f32 %v1269_v4, %v1221_v11 }
 0x113   :  { %1418 = vmatmul.bf16.gmra.mxu3 %v1778_v26  ;;  %1467 = vmatmul.bf16.gmra.mxu0 %v1782_v28  ;;  %v1846_v28 = vor.u32 %v2213_v17, %v1845_v13 }
 0x114   :  { %v1174_v33 = vpop.f32.mrf.mxu2 }
 0x115   :  { %v1175_v34 = vadd.f32 %v1174_v33, %v1126_v20 }
 0x116   :  { %v1223_v36 = vpop.f32.mrf.mxu3  ;;  %v1127_v37 = vpop.f32.mrf.mxu1 }
 0x117   :  { %v1224_v38 = vadd.f32 %v1223_v36, %v1175_v34  ;;  %v1128_v54 = vadd.f32 %v1127_v37, %v2892_v31  ;;  %v2200_v31 = vld [vmem:[%s3158_s0 + $0x1cc] sm:$0xf] }
 0x118   :  { %v1274_v19 = vpop.f32.mrf.mxu0  ;;  %v1814_v57 = vor.u32 %v2200_v31, %v1811_v44 }
 0x119   :  { %v3058_v41 = vadd.f32 %v1272_v30, %v1224_v38  ;;  %v1854_v30 = vor.u32 %v2214_v22, %v1853_v14 }
 0x11c   :  { %v1176_v47 = vpop.f32.mrf.mxu2 }
 0x11d   :  { %v1177_v48 = vadd.f32 %v1176_v47, %v1128_v54 }
 0x11e   :  { %v1225_v51 = vpop.f32.mrf.mxu3  ;;  %v1130_v55 = vpop.f32.mrf.mxu1 }
 0x11f   :  { %v1226_v62 = vadd.f32 %v1225_v51, %v1177_v48  ;;  %v1131_v63 = vadd.f32 %v1130_v55, %v2822_v58  ;;  %v1839_v58 = vld [vmem:[%s3158_s0 + $0x22c] sm:$0xf0] }
 0x120   :  { %v1277_v0 = vpop.f32.mrf.mxu0  ;;  %v1842_v26 = vor.u32 %v2208_v6, %v1839_v58 }
 0x121   :  { %1325 = vmatmul.bf16.gmra.mxu1 %v1806_v50  ;;  %1374 = vmatmul.bf16.gmra.mxu2 %v1810_v53  ;;  %v3079_v59 = vadd.f32 %v1274_v19, %v1226_v62 }
 0x123   :  { %1423 = vmatmul.bf16.gmra.mxu3 %v1814_v57  ;;  %1472 = vmatmul.bf16.gmra.mxu0 %v1818_v60 }
 0x124   :  { %v1179_v2 = vpop.f32.mrf.mxu2 }
 0x125   :  { %v1180_v3 = vadd.f32 %v1179_v2, %v1131_v63 }
 0x126   :  { %v1228_v4 = vpop.f32.mrf.mxu3  ;;  %v1132_v5 = vpop.f32.mrf.mxu1 }
 0x127   :  { %v1229_v56 = vadd.f32 %v1228_v4, %v1180_v3  ;;  %v1133_v8 = vadd.f32 %v1132_v5, %v2854_v10  ;;  %v2209_v10 = vld [vmem:[%s3158_s0 + $0x214] sm:$0xf] }
 0x128   :  { %v1279_v9 = vpop.f32.mrf.mxu0  ;;  %v1850_v20 = vor.u32 %v2209_v10, %v1847_v21 }
 0x129   :  { %v3088_v12 = vadd.f32 %v1277_v0, %v1229_v56 }
 0x12c   :  { %v1181_v23 = vpop.f32.mrf.mxu2 }
 0x12d   :  { %v1182_v24 = vadd.f32 %v1181_v23, %v1133_v8 }
 0x12e   :  { %v1230_v25 = vpop.f32.mrf.mxu3  ;;  %v1135_v11 = vpop.f32.mrf.mxu1 }
 0x12f   :  { %v1231_v33 = vadd.f32 %v1230_v25, %v1182_v24  ;;  %v1136_v34 = vadd.f32 %v1135_v11, %v2862_v18 }
 0x130   :  { %v1282_v36 = vpop.f32.mrf.mxu0 }
 0x131   :  { %1330 = vmatmul.bf16.gmra.mxu1 %v1842_v26  ;;  %1379 = vmatmul.bf16.gmra.mxu2 %v1846_v28  ;;  %v3109_v37 = vadd.f32 %v1279_v9, %v1231_v33 }
 0x133   :  { %1428 = vmatmul.bf16.gmra.mxu3 %v1850_v20  ;;  %1477 = vmatmul.bf16.gmra.mxu0 %v1854_v30 }
 0x134   :  { %v1184_v38 = vpop.f32.mrf.mxu2 }
 0x135   :  { %v1185_v54 = vadd.f32 %v1184_v38, %v1136_v34 }
 0x136   :  { %v1233_v19 = vpop.f32.mrf.mxu3  ;;  %v1137_v40 = vpop.f32.mrf.mxu1 }
 0x137   :  { %v1234_v16 = vadd.f32 %v1233_v19, %v1185_v54  ;;  %v1138_v42 = vadd.f32 %v1137_v40, %v2895_v35 }
 0x138   :  { %v1284_v43 = vpop.f32.mrf.mxu0 }
 0x139   :  { %v3112_v31 = vadd.f32 %v1282_v36, %v1234_v16 }
 0x13c   :  { %v1186_v44 = vpop.f32.mrf.mxu2 }
 0x13d   :  { %v1187_v45 = vadd.f32 %v1186_v44, %v1138_v42 }
 0x13e   :  { %v1235_v18 = vpop.f32.mrf.mxu3  ;;  %v1296_v46 = vpop.f32.mrf.mxu1 }
 0x13f   :  { %v1236_v47 = vadd.f32 %v1235_v18, %v1187_v45  ;;  %v1297_v50 = vadd.f32 %v1296_v46, %v2904_v52 }
 0x140   :  { %v1443_v48 = vpop.f32.mrf.mxu0 }
 0x141   :  { %v3114_v51 = vadd.f32 %v1284_v43, %v1236_v47 }
 0x144   :  { %v1345_v53 = vpop.f32.mrf.mxu2 }
 0x145   :  { %v1346_v55 = vadd.f32 %v1345_v53, %v1297_v50 }
 0x146   :  { %v1394_v57 = vpop.f32.mrf.mxu3  ;;  %v1298_v60 = vpop.f32.mrf.mxu1 }
 0x147   :  { %v1395_v63 = vadd.f32 %v1394_v57, %v1346_v55  ;;  %v1299_v35 = vadd.f32 %v1298_v60, %v2925_v15 }
 0x148   :  { %v1445_v62 = vpop.f32.mrf.mxu0 }
 0x149   :  { %v1444_v2 = vadd.f32 %v1443_v48, %v1395_v63 }
 0x14b   :  { %v1499_v9 = vmul.f32 0.01, %v1444_v2  ;;  %vm1483_vm0 = vcmp.ge.f32.partialorder %v1444_v2, 0.0 }
 0x14c   :  { %v1347_v0 = vpop.f32.mrf.mxu2 }
 0x14d   :  { %v1348_v3 = vadd.f32 %v1347_v0, %v1299_v35  ;;  %v1515_v17 = vsel %vm1483_vm0, %v1444_v2, %v1499_v9 }
 0x14e   :  { %v1396_v4 = vpop.f32.mrf.mxu3  ;;  %v1301_v5 = vpop.f32.mrf.mxu1 }
 0x14f   :  { %v1397_v56 = vadd.f32 %v1396_v4, %v1348_v3  ;;  %v1302_v58 = vadd.f32 %v1301_v5, %v2934_v29 }
 0x150   :  { %v1448_v8 = vpop.f32.mrf.mxu0 }
 0x151   :  { %v1446_v6 = vadd.f32 %v1445_v62, %v1397_v56 }
 0x153   :  { %vm1484_vm1 = vcmp.ge.f32.partialorder %v1446_v6, 0.0  ;;  %v1500_v52 = vmul.f32 0.01, %v1446_v6 }
 0x154   :  { %v1350_v13 = vpop.f32.mrf.mxu2 }
 0x155   :  { %v1516_v10 = vsel %vm1484_vm1, %v1446_v6, %v1500_v52  ;;  %v1351_v21 = vadd.f32 %v1350_v13, %v1302_v58 }
 0x156   :  { %v1399_v14 = vpop.f32.mrf.mxu3  ;;  %v2290_v15 = vpack.c.bf16 %v1516_v10, %v1515_v17  ;;  %v1303_v22 = vpop.f32.mrf.mxu1 }
 0x157   :  { %v1400_v24 = vadd.f32 %v1399_v14, %v1351_v21  ;;  %v1304_v25 = vadd.f32 %v1303_v22, %v2956_v49 }
 0x158   :  { %v1450_v23 = vpop.f32.mrf.mxu0  ;;  %2291 = vst [vmem:[%s3159_s3] sm:$0xff] %v2290_v15  }
 0x159   :  { %v1449_v28 = vadd.f32 %v1448_v8, %v1400_v24 }
 0x15b   :  { %v1501_v34 = vmul.f32 0.01, %v1449_v28  ;;  %vm1485_vm2 = vcmp.ge.f32.partialorder %v1449_v28, 0.0 }
 0x15c   :  { %v1352_v26 = vpop.f32.mrf.mxu2 }
 0x15d   :  { %v1353_v11 = vadd.f32 %v1352_v26, %v1304_v25  ;;  %v1517_v40 = vsel %vm1485_vm2, %v1449_v28, %v1501_v34 }
 0x15e   :  { %v1401_v20 = vpop.f32.mrf.mxu3  ;;  %v1306_v29 = vpop.f32.mrf.mxu1 }
 0x15f   :  { %v1402_v30 = vadd.f32 %v1401_v20, %v1353_v11  ;;  %v1307_v54 = vadd.f32 %v1306_v29, %v2966_v1 }
 0x160   :  { %v1453_v33 = vpop.f32.mrf.mxu0 }
 0x161   :  { %v1451_v36 = vadd.f32 %v1450_v23, %v1402_v30 }
 0x163   :  { %vm1486_vm3 = vcmp.ge.f32.partialorder %v1451_v36, 0.0  ;;  %v1502_v38 = vmul.f32 0.01, %v1451_v36 }
 0x164   :  { %v1355_v19 = vpop.f32.mrf.mxu2 }
 0x165   :  { %v1518_v16 = vsel %vm1486_vm3, %v1451_v36, %v1502_v38  ;;  %v1356_v42 = vadd.f32 %v1355_v19, %v1307_v54 }
 0x166   :  { %v1404_v43 = vpop.f32.mrf.mxu3  ;;  %v2295_v49 = vpack.c.bf16 %v1518_v16, %v1517_v40  ;;  %v1308_v44 = vpop.f32.mrf.mxu1 }
 0x167   :  { %v1405_v18 = vadd.f32 %v1404_v43, %v1356_v42  ;;  %v1309_v46 = vadd.f32 %v1308_v44, %v2988_v27 }
 0x168   :  { %v1455_v45 = vpop.f32.mrf.mxu0  ;;  %2327 = vst [vmem:[%s3159_s3 + $0x8] sm:$0xff] %v2295_v49  }
 0x169   :  { %v1454_v48 = vadd.f32 %v1453_v33, %v1405_v18 }
 0x16b   :  { %v1503_v60 = vmul.f32 0.01, %v1454_v48  ;;  %vm1487_vm4 = vcmp.ge.f32.partialorder %v1454_v48, 0.0 }
 0x16c   :  { %v1357_v47 = vpop.f32.mrf.mxu2 }
 0x16d   :  { %v1358_v50 = vadd.f32 %v1357_v47, %v1309_v46  ;;  %v1519_v2 = vsel %vm1487_vm4, %v1454_v48, %v1503_v60 }
 0x16e   :  { %v1406_v53 = vpop.f32.mrf.mxu3  ;;  %v1311_v1 = vpop.f32.mrf.mxu1 }
 0x16f   :  { %v1407_v55 = vadd.f32 %v1406_v53, %v1358_v50  ;;  %v1312_v35 = vadd.f32 %v1311_v1, %v2998_v39 }
 0x170   :  { %v1458_v57 = vpop.f32.mrf.mxu0 }
 0x171   :  { %v1456_v62 = vadd.f32 %v1455_v45, %v1407_v55 }
 0x173   :  { %vm1488_vm5 = vcmp.ge.f32.partialorder %v1456_v62, 0.0  ;;  %v1504_v63 = vmul.f32 0.01, %v1456_v62 }
 0x174   :  { %v1360_v0 = vpop.f32.mrf.mxu2 }
 0x175   :  { %v1520_v3 = vsel %vm1488_vm5, %v1456_v62, %v1504_v63  ;;  %v1361_v4 = vadd.f32 %v1360_v0, %v1312_v35 }
 0x176   :  { %v1409_v5 = vpop.f32.mrf.mxu3  ;;  %v2300_v27 = vpack.c.bf16 %v1520_v3, %v1519_v2  ;;  %v1313_v56 = vpop.f32.mrf.mxu1 }
 0x177   :  { %v1410_v9 = vadd.f32 %v1409_v5, %v1361_v4  ;;  %v1314_v6 = vadd.f32 %v1313_v56, %v3019_v61 }
 0x178   :  { %v1460_v8 = vpop.f32.mrf.mxu0  ;;  %2328 = vst [vmem:[%s3159_s3 + $0x10] sm:$0xff] %v2300_v27  }
 0x179   :  { %v1459_v58 = vadd.f32 %v1458_v57, %v1410_v9 }
 0x17b   :  { %v1505_v14 = vmul.f32 0.01, %v1459_v58  ;;  %vm1489_vm6 = vcmp.ge.f32.partialorder %v1459_v58, 0.0 }
 0x17c   :  { %v1362_v52 = vpop.f32.mrf.mxu2 }
 0x17d   :  { %v1363_v13 = vadd.f32 %v1362_v52, %v1314_v6  ;;  %v1521_v25 = vsel %vm1489_vm6, %v1459_v58, %v1505_v14 }
 0x17e   :  { %v1411_v17 = vpop.f32.mrf.mxu3  ;;  %v1316_v39 = vpop.f32.mrf.mxu1 }
 0x17f   :  { %v1412_v10 = vadd.f32 %v1411_v17, %v1363_v13  ;;  %v1317_v23 = vadd.f32 %v1316_v39, %v3028_v7 }
 0x180   :  { %v1463_v21 = vpop.f32.mrf.mxu0 }
 0x181   :  { %v1461_v15 = vadd.f32 %v1460_v8, %v1412_v10 }
 0x183   :  { %vm1490_vm7 = vcmp.ge.f32.partialorder %v1461_v15, 0.0  ;;  %v1506_v22 = vmul.f32 0.01, %v1461_v15 }
 0x184   :  { %v1365_v24 = vpop.f32.mrf.mxu2 }
 0x185   :  { %v1522_v26 = vsel %vm1490_vm7, %v1461_v15, %v1506_v22  ;;  %v1366_v28 = vadd.f32 %v1365_v24, %v1317_v23 }
 0x186   :  { %v1414_v11 = vpop.f32.mrf.mxu3  ;;  %v2305_v61 = vpack.c.bf16 %v1522_v26, %v1521_v25  ;;  %v1318_v20 = vpop.f32.mrf.mxu1 }
 0x187   :  { %v1415_v30 = vadd.f32 %v1414_v11, %v1366_v28  ;;  %v1319_v33 = vadd.f32 %v1318_v20, %v3049_v32 }
 0x188   :  { %v1465_v29 = vpop.f32.mrf.mxu0  ;;  %2329 = vst [vmem:[%s3159_s3 + $0x18] sm:$0xff] %v2305_v61  }
 0x189   :  { %v1464_v36 = vadd.f32 %v1463_v21, %v1415_v30 }
 0x18b   :  { %v1507_v16 = vmul.f32 0.01, %v1464_v36  ;;  %vm1491_vm8 = vcmp.ge.f32.partialorder %v1464_v36, 0.0 }
 0x18c   :  { %v1367_v34 = vpop.f32.mrf.mxu2 }
 0x18d   :  { %v1368_v38 = vadd.f32 %v1367_v34, %v1319_v33  ;;  %v1523_v45 = vsel %vm1491_vm8, %v1464_v36, %v1507_v16 }
 0x18e   :  { %v1416_v54 = vpop.f32.mrf.mxu3  ;;  %v1321_v7 = vpop.f32.mrf.mxu1 }
 0x18f   :  { %v1417_v19 = vadd.f32 %v1416_v54, %v1368_v38  ;;  %v1322_v49 = vadd.f32 %v1321_v7, %v3058_v41 }
 0x190   :  { %v1468_v40 = vpop.f32.mrf.mxu0 }
 0x191   :  { %v1466_v42 = vadd.f32 %v1465_v29, %v1417_v19 }
 0x193   :  { %vm1492_vm9 = vcmp.ge.f32.partialorder %v1466_v42, 0.0  ;;  %v1508_v43 = vmul.f32 0.01, %v1466_v42 }
 0x194   :  { %v1370_v44 = vpop.f32.mrf.mxu2 }
 0x195   :  { %v1524_v18 = vsel %vm1492_vm9, %v1466_v42, %v1508_v43  ;;  %v1371_v46 = vadd.f32 %v1370_v44, %v1322_v49 }
 0x196   :  { %v1419_v47 = vpop.f32.mrf.mxu3  ;;  %v2310_v32 = vpack.c.bf16 %v1524_v18, %v1523_v45  ;;  %v1323_v48 = vpop.f32.mrf.mxu1 }
 0x197   :  { %v1420_v53 = vadd.f32 %v1419_v47, %v1371_v46  ;;  %v1324_v1 = vadd.f32 %v1323_v48, %v3079_v59 }
 0x198   :  { %2330 = vst [vmem:[%s3159_s3 + $0x20] sm:$0xff] %v2310_v32   ;;  %v1470_v50 = vpop.f32.mrf.mxu0 }
 0x199   :  { %v1469_v57 = vadd.f32 %v1468_v40, %v1420_v53 }
 0x19b   :  { %v1509_v35 = vmul.f32 0.01, %v1469_v57  ;;  %vm1493_vm10 = vcmp.ge.f32.partialorder %v1469_v57, 0.0 }
 0x19c   :  { %v1372_v55 = vpop.f32.mrf.mxu2 }
 0x19d   :  { %v1373_v60 = vadd.f32 %v1372_v55, %v1324_v1  ;;  %v1525_v27 = vsel %vm1493_vm10, %v1469_v57, %v1509_v35 }
 0x19e   :  { %v1421_v62 = vpop.f32.mrf.mxu3  ;;  %v1326_v41 = vpop.f32.mrf.mxu1 }
 0x19f   :  { %v1422_v63 = vadd.f32 %v1421_v62, %v1373_v60  ;;  %v1327_v4 = vadd.f32 %v1326_v41, %v3088_v12 }
 0x1a0   :  { %v1473_v2 = vpop.f32.mrf.mxu0 }
 0x1a1   :  { %v1471_v0 = vadd.f32 %v1470_v50, %v1422_v63 }
 0x1a3   :  { %vm1494_vm11 = vcmp.ge.f32.partialorder %v1471_v0, 0.0  ;;  %v1510_v3 = vmul.f32 0.01, %v1471_v0 }
 0x1a4   :  { %v1375_v5 = vpop.f32.mrf.mxu2 }
 0x1a5   :  { %v1526_v56 = vsel %vm1494_vm11, %v1471_v0, %v1510_v3  ;;  %v1376_v8 = vadd.f32 %v1375_v5, %v1327_v4 }
 0x1a6   :  { %v1424_v9 = vpop.f32.mrf.mxu3  ;;  %v2315_v59 = vpack.c.bf16 %v1526_v56, %v1525_v27  ;;  %v1328_v6 = vpop.f32.mrf.mxu1 }
 0x1a7   :  { %v1425_v52 = vadd.f32 %v1424_v9, %v1376_v8  ;;  %v1329_v58 = vadd.f32 %v1328_v6, %v3109_v37 }
 0x1a8   :  { %2331 = vst [vmem:[%s3159_s3 + $0x28] sm:$0xff] %v2315_v59   ;;  %v1475_v13 = vpop.f32.mrf.mxu0 }
 0x1a9   :  { %v1474_v39 = vadd.f32 %v1473_v2, %v1425_v52 }
 0x1ab   :  { %v1511_v15 = vmul.f32 0.01, %v1474_v39  ;;  %vm1495_vm12 = vcmp.ge.f32.partialorder %v1474_v39, 0.0 }
 0x1ac   :  { %v1377_v17 = vpop.f32.mrf.mxu2 }
 0x1ad   :  { %v1378_v10 = vadd.f32 %v1377_v17, %v1329_v58  ;;  %v1527_v26 = vsel %vm1495_vm12, %v1474_v39, %v1511_v15 }
 0x1ae   :  { %v1426_v21 = vpop.f32.mrf.mxu3  ;;  %v1331_v12 = vpop.f32.mrf.mxu1 }
 0x1af   :  { %v1427_v14 = vadd.f32 %v1426_v21, %v1378_v10  ;;  %v1332_v24 = vadd.f32 %v1331_v12, %v3112_v31 }
 0x1b0   :  { %v1478_v20 = vpop.f32.mrf.mxu0 }
 0x1b1   :  { %v1476_v22 = vadd.f32 %v1475_v13, %v1427_v14 }
 0x1b3   :  { %vm1496_vm13 = vcmp.ge.f32.partialorder %v1476_v22, 0.0  ;;  %v1512_v23 = vmul.f32 0.01, %v1476_v22 }
 0x1b4   :  { %v1380_v25 = vpop.f32.mrf.mxu2 }
 0x1b5   :  { %v1528_v28 = vsel %vm1496_vm13, %v1476_v22, %v1512_v23  ;;  %v1381_v11 = vadd.f32 %v1380_v25, %v1332_v24 }
 0x1b6   :  { %v1429_v61 = vpop.f32.mrf.mxu3  ;;  %v2320_v37 = vpack.c.bf16 %v1528_v28, %v1527_v26  ;;  %v1333_v29 = vpop.f32.mrf.mxu1 }
 0x1b7   :  { %v1430_v30 = vadd.f32 %v1429_v61, %v1381_v11  ;;  %v1334_v33 = vadd.f32 %v1333_v29, %v3114_v51 }
 0x1b8   :  { %2332 = vst [vmem:[%s3159_s3 + $0x30] sm:$0xff] %v2320_v37   ;;  %v1480_v7 = vpop.f32.mrf.mxu0 }
 0x1b9   :  { %v1479_v36 = vadd.f32 %v1478_v20, %v1430_v30 }
 0x1bb   :  { %v1513_v19 = vmul.f32 0.01, %v1479_v36  ;;  %vm1497_vm14 = vcmp.ge.f32.partialorder %v1479_v36, 0.0 }
 0x1bc   :  { %v1382_v34 = vpop.f32.mrf.mxu2 }
 0x1bd   :  { %v1383_v38 = vadd.f32 %v1382_v34, %v1334_v33  ;;  %v1529_v42 = vsel %vm1497_vm14, %v1479_v36, %v1513_v19 }
 0x1be   :  { %v1431_v54 = vpop.f32.mrf.mxu3 }
 0x1bf   :  { %v1432_v31 = vadd.f32 %v1431_v54, %v1383_v38 }
 0x1c1   :  { %v1481_v40 = vadd.f32 %v1480_v7, %v1432_v31 }
 0x1c3   :  { %vm1498_vm15 = vcmp.ge.f32.partialorder %v1481_v40, 0.0  ;;  %v1514_v16 = vmul.f32 0.01, %v1481_v40 }
 0x1c5   :  { %v1530_v43 = vsel %vm1498_vm15, %v1481_v40, %v1514_v16 }
 0x1c6   :  { %v2325_v49 = vpack.c.bf16 %v1530_v43, %v1529_v42 }
 0x1c8   :  { %2333 = vst [vmem:[%s3159_s3 + $0x38] sm:$0xff] %v2325_v49  }

// kernel: encoder_fwd_nchw.18
= control target key start
LH: loop header
LB: loop body
LE: loop exit
PB: predicated region body
PF: predicated region fallthrough
CT: control target
= control target key end

     0   :  { %s3275_s1 = inlined_call_operand.vmem [shape: bf16[1152,128], index: 1, kind: input, shape index: {}]   ;;  %s3276_s2 = inlined_call_operand.vmem [shape: f32[1,128], index: 2, kind: input, shape index: {}]   ;;  %s3277_s0 = inlined_call_operand.vmem [shape: bf16[128,1152], index: 0, kind: input, shape index: {}]   ;;  %s3278_s3 = inlined_call_operand.vmem [shape: bf16[128,128], index: 3, kind: input, shape index: {}]   ;;  %s3279_s4 = inlined_call_operand.vmem [shape: bf16[128,128], index: 4, kind: output, shape index: {}]  }
   0x1   :  { %v2273_v0 = vld [vmem:[%s3275_s1 + $0x38] sm:$0xff]  ;;  %v2272_v1 = vld [vmem:[%s3275_s1 + $0x30] sm:$0xff]  ;;  %v2271_v2 = vld [vmem:[%s3275_s1 + $0x28] sm:$0xff] }
   0x2   :  { %2424 = vmatpush.bf16.msra.mxu1 %v2273_v0  ;;  %2425 = vmatpush.bf16.msra.mxu2 %v2273_v0  ;;  %v2270_v3 = vld [vmem:[%s3275_s1 + $0x20] sm:$0xff]  ;;  %v2269_v4 = vld [vmem:[%s3275_s1 + $0x18] sm:$0xff]  ;;  %v2268_v5 = vld [vmem:[%s3275_s1 + $0x10] sm:$0xff] }
   0x3   :  { %2426 = vmatpush.bf16.msra.mxu3 %v2273_v0  ;;  %1045 = vmatpush.bf16.msra.mxu0 %v2273_v0  ;;  %v2267_v6 = vld [vmem:[%s3275_s1 + $0x8] sm:$0xff]  ;;  %v2266_v7 = vld [vmem:[%s3275_s1] sm:$0xff]  ;;  %v1692_v8 = vld [vmem:[%s3277_s0 + $0x90] sm:$0xf] }
   0x4   :  { %v2216_v9 = vld [vmem:[%s3277_s0 + $0xb0] sm:$0xf0]  ;;  %v1764_v10 = vld [vmem:[%s3277_s0 + $0x120] sm:$0xf]  ;;  %v2234_v11 = vld [vmem:[%s3277_s0 + $0x140] sm:$0xf0] }
   0x5   :  { %v1836_v12 = vld [vmem:[%s3277_s0 + $0x1b0] sm:$0xf]  ;;  %v2252_v13 = vld [vmem:[%s3277_s0 + $0x1d0] sm:$0xf0]  ;;  %v1620_v14 = vld [vmem:[%s3277_s0] sm:$0xf]  ;;  %v1693_v18 = vor.u32 %v2216_v9, %v1692_v8  ;;  %v1765_v19 = vor.u32 %v2234_v11, %v1764_v10 }
   0x6   :  { %2427 = vmatpush.bf16.msra.mxu1 %v2272_v1  ;;  %2428 = vmatpush.bf16.msra.mxu2 %v2272_v1  ;;  %v2198_v15 = vld [vmem:[%s3277_s0 + $0x20] sm:$0xf0]  ;;  %v2289_v16 = vld [vmem:[%s3275_s1 + $0xb8] sm:$0xff]  ;;  %v1837_v20 = vor.u32 %v2252_v13, %v1836_v12  ;;  %v2288_v24 = vld [vmem:[%s3275_s1 + $0xb0] sm:$0xff] }
   0x7   :  { %2429 = vmatpush.bf16.msra.mxu3 %v2272_v1  ;;  %1046 = vmatpush.bf16.msra.mxu0 %v2272_v1  ;;  %v2281_v17 = vld [vmem:[%s3275_s1 + $0x78] sm:$0xff]  ;;  %v1621_v21 = vor.u32 %v2198_v15, %v1620_v14  ;;  %v2280_v25 = vld [vmem:[%s3275_s1 + $0x70] sm:$0xff]  ;;  %v2287_v28 = vld [vmem:[%s3275_s1 + $0xa8] sm:$0xff] }
   0x8   :  { %v2297_v22 = vld [vmem:[%s3275_s1 + $0xf8] sm:$0xff]  ;;  %v2296_v26 = vld [vmem:[%s3275_s1 + $0xf0] sm:$0xff]  ;;  %v2279_v29 = vld [vmem:[%s3275_s1 + $0x68] sm:$0xff] }
   0x9   :  { %v2305_v23 = vld [vmem:[%s3275_s1 + $0x138] sm:$0xff]  ;;  %v2304_v27 = vld [vmem:[%s3275_s1 + $0x130] sm:$0xff]  ;;  %v2295_v30 = vld [vmem:[%s3275_s1 + $0xe8] sm:$0xff] }
   0xa   :  { %2430 = vmatpush.bf16.msra.mxu1 %v2271_v2  ;;  %2431 = vmatpush.bf16.msra.mxu2 %v2271_v2  ;;  %v2303_v31 = vld [vmem:[%s3275_s1 + $0x128] sm:$0xff]  ;;  %v2286_v32 = vld [vmem:[%s3275_s1 + $0xa0] sm:$0xff]  ;;  %v1728_v36 = vld [vmem:[%s3277_s0 + $0xd8] sm:$0xf] }
   0xb   :  { %2432 = vmatpush.bf16.msra.mxu3 %v2271_v2  ;;  %1047 = vmatpush.bf16.msra.mxu0 %v2271_v2  ;;  %v2278_v33 = vld [vmem:[%s3275_s1 + $0x60] sm:$0xff]  ;;  %v2225_v37 = vld [vmem:[%s3277_s0 + $0xf8] sm:$0xf0]  ;;  %v1800_v38 = vld [vmem:[%s3277_s0 + $0x168] sm:$0xf] }
   0xc   :  { %v2294_v34 = vld [vmem:[%s3275_s1 + $0xe0] sm:$0xff]  ;;  %v2243_v39 = vld [vmem:[%s3277_s0 + $0x188] sm:$0xf0]  ;;  %v1872_v40 = vld [vmem:[%s3277_s0 + $0x1f8] sm:$0xf]  ;;  %v1729_v46 = vor.u32 %v2225_v37, %v1728_v36 }
   0xd   :  { %v2302_v35 = vld [vmem:[%s3275_s1 + $0x120] sm:$0xff]  ;;  %v2261_v41 = vld [vmem:[%s3277_s0 + $0x218] sm:$0xf0]  ;;  %v1656_v42 = vld [vmem:[%s3277_s0 + $0x48] sm:$0xf]  ;;  %v1801_v47 = vor.u32 %v2243_v39, %v1800_v38 }
   0xe   :  { %2433 = vmatpush.bf16.msra.mxu1 %v2270_v3  ;;  %2434 = vmatpush.bf16.msra.mxu2 %v2270_v3  ;;  %v2207_v43 = vld [vmem:[%s3277_s0 + $0x68] sm:$0xf0]  ;;  %v2285_v44 = vld [vmem:[%s3275_s1 + $0x98] sm:$0xff]  ;;  %v1873_v48 = vor.u32 %v2261_v41, %v1872_v40  ;;  %v2284_v52 = vld [vmem:[%s3275_s1 + $0x90] sm:$0xff] }
   0xf   :  { %2435 = vmatpush.bf16.msra.mxu3 %v2270_v3  ;;  %1048 = vmatpush.bf16.msra.mxu0 %v2270_v3  ;;  %v2277_v45 = vld [vmem:[%s3275_s1 + $0x58] sm:$0xff]  ;;  %v1657_v49 = vor.u32 %v2207_v43, %v1656_v42  ;;  %v2276_v53 = vld [vmem:[%s3275_s1 + $0x50] sm:$0xff]  ;;  %v2283_v56 = vld [vmem:[%s3275_s1 + $0x88] sm:$0xff] }
  0x10   :  { %v2293_v50 = vld [vmem:[%s3275_s1 + $0xd8] sm:$0xff]  ;;  %v2292_v54 = vld [vmem:[%s3275_s1 + $0xd0] sm:$0xff]  ;;  %v2275_v57 = vld [vmem:[%s3275_s1 + $0x48] sm:$0xff] }
  0x11   :  { %v2301_v51 = vld [vmem:[%s3275_s1 + $0x118] sm:$0xff]  ;;  %v2300_v55 = vld [vmem:[%s3275_s1 + $0x110] sm:$0xff]  ;;  %v2291_v58 = vld [vmem:[%s3275_s1 + $0xc8] sm:$0xff] }
  0x12   :  { %2436 = vmatpush.bf16.msra.mxu1 %v2269_v4  ;;  %2437 = vmatpush.bf16.msra.mxu2 %v2269_v4  ;;  %v2299_v59 = vld [vmem:[%s3275_s1 + $0x108] sm:$0xff]  ;;  %v2282_v60 = vld [vmem:[%s3275_s1 + $0x80] sm:$0xff]  ;;  %v2321_v2 = vld [vmem:[%s3275_s1 + $0x1b8] sm:$0xff] }
  0x13   :  { %2438 = vmatpush.bf16.msra.mxu3 %v2269_v4  ;;  %1049 = vmatpush.bf16.msra.mxu0 %v2269_v4  ;;  %v2274_v61 = vld [vmem:[%s3275_s1 + $0x40] sm:$0xff]  ;;  %v1622_v1 = vld [vmem:[%s3277_s0 + $0x24] sm:$0xf0]  ;;  %v2313_v3 = vld [vmem:[%s3275_s1 + $0x178] sm:$0xff] }
  0x14   :  { %v2194_v62 = vld [vmem:[%s3277_s0 + $0x4] sm:$0xf]  ;;  %v1628_v4 = vld [vmem:[%s3277_s0 + $0x8] sm:$0xf]  ;;  %v1636_v8 = vld [vmem:[%s3277_s0 + $0x10] sm:$0xf] }
  0x15   :  { %v2290_v63 = vld [vmem:[%s3275_s1 + $0xc0] sm:$0xff]  ;;  %v2200_v9 = vld [vmem:[%s3277_s0 + $0x30] sm:$0xf0]  ;;  %v2329_v10 = vld [vmem:[%s3275_s1 + $0x1f8] sm:$0xff]  ;;  %v1625_v12 = vor.u32 %v2194_v62, %v1622_v1 }
  0x16   :  { %2439 = vmatpush.bf16.msra.mxu1 %v2268_v5  ;;  %2440 = vmatpush.bf16.msra.mxu2 %v2268_v5  ;;  %v2298_v0 = vld [vmem:[%s3275_s1 + $0x100] sm:$0xff]  ;;  %v2337_v11 = vld [vmem:[%s3275_s1 + $0x238] sm:$0xff]  ;;  %v1637_v15 = vor.u32 %v2200_v9, %v1636_v8  ;;  %v2212_v40 = vld [vmem:[%s3277_s0 + $0x94] sm:$0xf] }
  0x17   :  { %2441 = vmatpush.bf16.msra.mxu3 %v2268_v5  ;;  %1050 = vmatpush.bf16.msra.mxu0 %v2268_v5  ;;  %v2199_v5 = vld [vmem:[%s3277_s0 + $0x28] sm:$0xf0]  ;;  %v2318_v36 = vld [vmem:[%s3275_s1 + $0x1a0] sm:$0xff]  ;;  %v1694_v41 = vld [vmem:[%s3277_s0 + $0xb4] sm:$0xf0] }
  0x18   :  { %v1629_v13 = vor.u32 %v2199_v5, %v1628_v4  ;;  %v2326_v37 = vld [vmem:[%s3275_s1 + $0x1e0] sm:$0xff]  ;;  %v1700_v42 = vld [vmem:[%s3277_s0 + $0x98] sm:$0xf]  ;;  %v2217_v43 = vld [vmem:[%s3277_s0 + $0xb8] sm:$0xf0] }
  0x19   :  { %v2310_v38 = vld [vmem:[%s3275_s1 + $0x160] sm:$0xff]  ;;  %v1744_v62 = vld [vmem:[%s3277_s0 + $0xe8] sm:$0xf]  ;;  %v2316_v4 = vld [vmem:[%s3275_s1 + $0x190] sm:$0xff] }
  0x1a   :  { %2442 = vmatpush.bf16.msra.mxu1 %v2267_v6  ;;  %2443 = vmatpush.bf16.msra.mxu2 %v2267_v6  ;;  %v2334_v39 = vld [vmem:[%s3275_s1 + $0x220] sm:$0xff]  ;;  %v2324_v5 = vld [vmem:[%s3275_s1 + $0x1d0] sm:$0xff]  ;;  %v1766_v9 = vld [vmem:[%s3277_s0 + $0x144] sm:$0xf0] }
  0x1b   :  { %2444 = vmatpush.bf16.msra.mxu3 %v2267_v6  ;;  %1051 = vmatpush.bf16.msra.mxu0 %v2267_v6  ;;  %v2195_v6 = vld [vmem:[%s3277_s0 + $0xc] sm:$0xf]  ;;  %v2230_v8 = vld [vmem:[%s3277_s0 + $0x124] sm:$0xf] }
  0x1e   :  { %2445 = vmatpush.bf16.msra.mxu1 %v2266_v7  ;;  %2446 = vmatpush.bf16.msra.mxu2 %v2266_v7 }
  0x1f   :  { %2447 = vmatpush.bf16.msra.mxu3 %v2266_v7  ;;  %1052 = vmatpush.bf16.msra.mxu0 %v2266_v7  ;;  %v1630_v7 = vld [vmem:[%s3277_s0 + $0x2c] sm:$0xf0] }
  0x20   :  { %v1633_v14 = vor.u32 %v2195_v6, %v1630_v7  ;;  %v2308_v6 = vld [vmem:[%s3275_s1 + $0x150] sm:$0xff] }
  0x21   :  { %1063 = vmatmul.bf16.vlgmr.msra.gmra.mxu1 %v1693_v18  ;;  %1073 = vmatmul.bf16.vlgmr.msra.gmra.mxu2 %v1765_v19  ;;  %v2328_v18 = vld [vmem:[%s3275_s1 + $0x1f0] sm:$0xff] }
  0x22   :  { %1143 = vmatpush.bf16.msrb.mxu2 %v2289_v16  ;;  %1094 = vmatpush.bf16.msrb.mxu1 %v2281_v17  ;;  %v2320_v16 = vld [vmem:[%s3275_s1 + $0x1b0] sm:$0xff] }
  0x23   :  { %1083 = vmatmul.bf16.vlgmr.msra.gmra.mxu3 %v1837_v20  ;;  %1053 = vmatmul.bf16.vlgmr.msra.gmra.mxu0 %v1621_v21  ;;  %v2312_v17 = vld [vmem:[%s3275_s1 + $0x170] sm:$0xff]  ;;  %v2319_v20 = vld [vmem:[%s3275_s1 + $0x1a8] sm:$0xff] }
  0x24   :  { %1192 = vmatpush.bf16.msrb.mxu3 %v2297_v22  ;;  %1241 = vmatpush.bf16.msrb.mxu0 %v2305_v23  ;;  %v2336_v19 = vld [vmem:[%s3275_s1 + $0x230] sm:$0xff]  ;;  %v2311_v21 = vld [vmem:[%s3275_s1 + $0x168] sm:$0xff] }
  0x25   :  { %v2327_v22 = vld [vmem:[%s3275_s1 + $0x1e8] sm:$0xff]  ;;  %v2332_v7 = vld [vmem:[%s3275_s1 + $0x210] sm:$0xff] }
  0x26   :  { %1144 = vmatpush.bf16.msrb.mxu2 %v2288_v24  ;;  %1095 = vmatpush.bf16.msrb.mxu1 %v2280_v25  ;;  %v2335_v23 = vld [vmem:[%s3275_s1 + $0x228] sm:$0xff]  ;;  %v1658_v25 = vld [vmem:[%s3277_s0 + $0x6c] sm:$0xf0] }
  0x27   :  { %v2203_v24 = vld [vmem:[%s3277_s0 + $0x4c] sm:$0xf] }
  0x28   :  { %1193 = vmatpush.bf16.msrb.mxu3 %v2296_v26  ;;  %1242 = vmatpush.bf16.msrb.mxu0 %v2304_v27  ;;  %v1664_v26 = vld [vmem:[%s3277_s0 + $0x50] sm:$0xf]  ;;  %v2208_v27 = vld [vmem:[%s3277_s0 + $0x70] sm:$0xf0] }
  0x2a   :  { %1145 = vmatpush.bf16.msrb.mxu2 %v2287_v28  ;;  %1096 = vmatpush.bf16.msrb.mxu1 %v2279_v29  ;;  %v2204_v28 = vld [vmem:[%s3277_s0 + $0x54] sm:$0xf]  ;;  %v1666_v29 = vld [vmem:[%s3277_s0 + $0x74] sm:$0xf0] }
  0x2c   :  { %1194 = vmatpush.bf16.msrb.mxu3 %v2295_v30  ;;  %1243 = vmatpush.bf16.msrb.mxu0 %v2303_v31  ;;  %v1672_v30 = vld [vmem:[%s3277_s0 + $0x58] sm:$0xf]  ;;  %v2209_v31 = vld [vmem:[%s3277_s0 + $0x78] sm:$0xf0] }
  0x2e   :  { %1146 = vmatpush.bf16.msrb.mxu2 %v2286_v32  ;;  %1097 = vmatpush.bf16.msrb.mxu1 %v2278_v33  ;;  %v1661_v32 = vor.u32 %v2203_v24, %v1658_v25  ;;  %v1665_v33 = vor.u32 %v2208_v27, %v1664_v26  ;;  %v2239_v24 = vld [vmem:[%s3277_s0 + $0x16c] sm:$0xf]  ;;  %v1802_v25 = vld [vmem:[%s3277_s0 + $0x18c] sm:$0xf0]  ;;  %v2244_v27 = vld [vmem:[%s3277_s0 + $0x190] sm:$0xf0] }
  0x2f   :  { %v1808_v26 = vld [vmem:[%s3277_s0 + $0x170] sm:$0xf] }
  0x30   :  { %1195 = vmatpush.bf16.msrb.mxu3 %v2294_v34  ;;  %1244 = vmatpush.bf16.msrb.mxu0 %v2302_v35  ;;  %v1669_v34 = vor.u32 %v2204_v28, %v1666_v29  ;;  %v1673_v35 = vor.u32 %v2209_v31, %v1672_v30  ;;  %v2240_v28 = vld [vmem:[%s3277_s0 + $0x174] sm:$0xf]  ;;  %v1810_v29 = vld [vmem:[%s3277_s0 + $0x194] sm:$0xf0]  ;;  %v2245_v31 = vld [vmem:[%s3277_s0 + $0x198] sm:$0xf0] }
  0x31   :  { %1068 = vmatmul.bf16.gmra.mxu1 %v1729_v46  ;;  %1078 = vmatmul.bf16.gmra.mxu2 %v1801_v47  ;;  %v1708_v46 = vld [vmem:[%s3277_s0 + $0xa0] sm:$0xf]  ;;  %v2218_v47 = vld [vmem:[%s3277_s0 + $0xc0] sm:$0xf0]  ;;  %v1816_v30 = vld [vmem:[%s3277_s0 + $0x178] sm:$0xf] }
  0x32   :  { %1147 = vmatpush.bf16.msrb.mxu2 %v2285_v44  ;;  %1098 = vmatpush.bf16.msrb.mxu1 %v2277_v45  ;;  %v2213_v44 = vld [vmem:[%s3277_s0 + $0x9c] sm:$0xf]  ;;  %v1702_v45 = vld [vmem:[%s3277_s0 + $0xbc] sm:$0xf0] }
  0x33   :  { %1088 = vmatmul.bf16.gmra.mxu3 %v1873_v48  ;;  %1058 = vmatmul.bf16.gmra.mxu0 %v1657_v49  ;;  %v1697_v48 = vor.u32 %v2212_v40, %v1694_v41  ;;  %v1701_v49 = vor.u32 %v2217_v43, %v1700_v42  ;;  %v2248_v40 = vld [vmem:[%s3277_s0 + $0x1b4] sm:$0xf]  ;;  %v1838_v41 = vld [vmem:[%s3277_s0 + $0x1d4] sm:$0xf0]  ;;  %v2253_v43 = vld [vmem:[%s3277_s0 + $0x1d8] sm:$0xf0] }
  0x34   :  { %1196 = vmatpush.bf16.msrb.mxu3 %v2293_v50  ;;  %1245 = vmatpush.bf16.msrb.mxu0 %v2301_v51  ;;  %v1705_v50 = vor.u32 %v2213_v44, %v1702_v45  ;;  %v1709_v51 = vor.u32 %v2218_v47, %v1708_v46  ;;  %v1844_v42 = vld [vmem:[%s3277_s0 + $0x1b8] sm:$0xf]  ;;  %v2249_v44 = vld [vmem:[%s3277_s0 + $0x1bc] sm:$0xf]  ;;  %v1846_v45 = vld [vmem:[%s3277_s0 + $0x1dc] sm:$0xf0] }
  0x35   :  { %v1852_v46 = vld [vmem:[%s3277_s0 + $0x1c0] sm:$0xf]  ;;  %v2254_v47 = vld [vmem:[%s3277_s0 + $0x1e0] sm:$0xf0] }
  0x36   :  { %1148 = vmatpush.bf16.msrb.mxu2 %v2284_v52  ;;  %1099 = vmatpush.bf16.msrb.mxu1 %v2276_v53  ;;  %v2317_v52 = vld [vmem:[%s3275_s1 + $0x198] sm:$0xff] }
  0x37   :  { %v2325_v53 = vld [vmem:[%s3275_s1 + $0x1d8] sm:$0xff] }
  0x38   :  { %1197 = vmatpush.bf16.msrb.mxu3 %v2292_v54  ;;  %1246 = vmatpush.bf16.msrb.mxu0 %v2300_v55  ;;  %v2309_v54 = vld [vmem:[%s3275_s1 + $0x158] sm:$0xff] }
  0x39   :  { %v2333_v55 = vld [vmem:[%s3275_s1 + $0x218] sm:$0xff] }
  0x3a   :  { %1149 = vmatpush.bf16.msrb.mxu2 %v2283_v56  ;;  %1100 = vmatpush.bf16.msrb.mxu1 %v2275_v57  ;;  %v2221_v56 = vld [vmem:[%s3277_s0 + $0xdc] sm:$0xf]  ;;  %v1730_v57 = vld [vmem:[%s3277_s0 + $0xfc] sm:$0xf0] }
  0x3c   :  { %1198 = vmatpush.bf16.msrb.mxu3 %v2291_v58  ;;  %1247 = vmatpush.bf16.msrb.mxu0 %v2299_v59  ;;  %v1736_v58 = vld [vmem:[%s3277_s0 + $0xe0] sm:$0xf]  ;;  %v2226_v59 = vld [vmem:[%s3277_s0 + $0x100] sm:$0xf0] }
  0x3d   :  { %v1737_v1 = vor.u32 %v2226_v59, %v1736_v58 }
  0x3e   :  { %1150 = vmatpush.bf16.msrb.mxu2 %v2282_v60  ;;  %1101 = vmatpush.bf16.msrb.mxu1 %v2274_v61  ;;  %v2222_v60 = vld [vmem:[%s3277_s0 + $0xe4] sm:$0xf]  ;;  %v1738_v61 = vld [vmem:[%s3277_s0 + $0x104] sm:$0xf0] }
  0x40   :  { %1199 = vmatpush.bf16.msrb.mxu3 %v2290_v63  ;;  %1248 = vmatpush.bf16.msrb.mxu0 %v2298_v0  ;;  %v2227_v63 = vld [vmem:[%s3277_s0 + $0x108] sm:$0xf0]  ;;  %v1733_v0 = vor.u32 %v2221_v56, %v1730_v57 }
  0x41   :  { %1102 = vmatmul.bf16.vlgmr.msrb.gmra.mxu1 %v1625_v12  ;;  %1151 = vmatmul.bf16.vlgmr.msrb.gmra.mxu2 %v1629_v13  ;;  %v2231_v12 = vld [vmem:[%s3277_s0 + $0x12c] sm:$0xf]  ;;  %v1774_v13 = vld [vmem:[%s3277_s0 + $0x14c] sm:$0xf0] }
  0x42   :  { %1339 = vmatpush.bf16.msra.mxu2 %v2321_v2  ;;  %1290 = vmatpush.bf16.msra.mxu1 %v2313_v3  ;;  %v1741_v2 = vor.u32 %v2222_v60, %v1738_v61  ;;  %v1745_v3 = vor.u32 %v2227_v63, %v1744_v62  ;;  %v2257_v61 = vld [vmem:[%s3277_s0 + $0x1fc] sm:$0xf]  ;;  %v1874_v62 = vld [vmem:[%s3277_s0 + $0x21c] sm:$0xf0] }
  0x43   :  { %1200 = vmatmul.bf16.vlgmr.msrb.gmra.mxu3 %v1633_v14  ;;  %1249 = vmatmul.bf16.vlgmr.msrb.gmra.mxu0 %v1637_v15  ;;  %v1780_v14 = vld [vmem:[%s3277_s0 + $0x130] sm:$0xf]  ;;  %v2236_v15 = vld [vmem:[%s3277_s0 + $0x150] sm:$0xf0]  ;;  %v1880_v63 = vld [vmem:[%s3277_s0 + $0x200] sm:$0xf] }
  0x44   :  { %1388 = vmatpush.bf16.msra.mxu3 %v2329_v10  ;;  %1437 = vmatpush.bf16.msra.mxu0 %v2337_v11  ;;  %v1772_v10 = vld [vmem:[%s3277_s0 + $0x128] sm:$0xf]  ;;  %v2235_v11 = vld [vmem:[%s3277_s0 + $0x148] sm:$0xf0] }
  0x46   :  { %1340 = vmatpush.bf16.msra.mxu2 %v2320_v16  ;;  %1291 = vmatpush.bf16.msra.mxu1 %v2312_v17  ;;  %v1769_v16 = vor.u32 %v2230_v8, %v1766_v9  ;;  %v1773_v17 = vor.u32 %v2235_v11, %v1772_v10  ;;  %v1877_v8 = vor.u32 %v2257_v61, %v1874_v62  ;;  %v1688_v61 = vld [vmem:[%s3277_s0 + $0x68] sm:$0xf]  ;;  %v2211_v62 = vld [vmem:[%s3277_s0 + $0x88] sm:$0xf0] }
  0x48   :  { %1389 = vmatpush.bf16.msra.mxu3 %v2328_v18  ;;  %1438 = vmatpush.bf16.msra.mxu0 %v2336_v19  ;;  %v1777_v18 = vor.u32 %v2231_v12, %v1774_v13  ;;  %v1781_v19 = vor.u32 %v2236_v15, %v1780_v14 }
  0x4a   :  { %1341 = vmatpush.bf16.msra.mxu2 %v2319_v20  ;;  %1292 = vmatpush.bf16.msra.mxu1 %v2311_v21  ;;  %v2315_v20 = vld [vmem:[%s3275_s1 + $0x188] sm:$0xff] }
  0x4b   :  { %v2323_v21 = vld [vmem:[%s3275_s1 + $0x1c8] sm:$0xff] }
  0x4c   :  { %1390 = vmatpush.bf16.msra.mxu3 %v2327_v22  ;;  %1439 = vmatpush.bf16.msra.mxu0 %v2335_v23  ;;  %v2307_v22 = vld [vmem:[%s3275_s1 + $0x148] sm:$0xff] }
  0x4d   :  { %v2331_v23 = vld [vmem:[%s3275_s1 + $0x208] sm:$0xff] }
  0x4e   :  { %1342 = vmatpush.bf16.msra.mxu2 %v2318_v36  ;;  %1293 = vmatpush.bf16.msra.mxu1 %v2310_v38  ;;  %v2314_v36 = vld [vmem:[%s3275_s1 + $0x180] sm:$0xff] }
  0x4f   :  { %v2306_v38 = vld [vmem:[%s3275_s1 + $0x140] sm:$0xff] }
  0x50   :  { %1391 = vmatpush.bf16.msra.mxu3 %v2326_v37  ;;  %1440 = vmatpush.bf16.msra.mxu0 %v2334_v39  ;;  %v2322_v37 = vld [vmem:[%s3275_s1 + $0x1c0] sm:$0xff] }
  0x51   :  { %1107 = vmatmul.bf16.gmra.mxu1 %v1661_v32  ;;  %1156 = vmatmul.bf16.gmra.mxu2 %v1665_v33  ;;  %v1805_v32 = vor.u32 %v2239_v24, %v1802_v25  ;;  %v1809_v33 = vor.u32 %v2244_v27, %v1808_v26  ;;  %v2330_v39 = vld [vmem:[%s3275_s1 + $0x200] sm:$0xff]  ;;  %v2201_v24 = vld [vmem:[%s3277_s0 + $0x38] sm:$0xf0] }
  0x52   :  { %1343 = vmatpush.bf16.msra.mxu2 %v2317_v52  ;;  %1294 = vmatpush.bf16.msra.mxu1 %v2309_v54  ;;  %v1853_v52 = vor.u32 %v2254_v47, %v1852_v46  ;;  %v2911_v54 = vld [vmem:[%s3276_s2] ss:$0 sm:$0xff]  ;;  %v2197_v25 = vld [vmem:[%s3277_s0 + $0x1c] sm:$0xf] }
  0x53   :  { %1205 = vmatmul.bf16.gmra.mxu3 %v1669_v34  ;;  %1254 = vmatmul.bf16.gmra.mxu0 %v1673_v35  ;;  %v1813_v34 = vor.u32 %v2240_v28, %v1810_v29  ;;  %v1817_v35 = vor.u32 %v2245_v31, %v1816_v30  ;;  %v1646_v26 = vld [vmem:[%s3277_s0 + $0x3c] sm:$0xf0]  ;;  %v2202_v28 = vld [vmem:[%s3277_s0 + $0x40] sm:$0xf0] }
  0x54   :  { %1392 = vmatpush.bf16.msra.mxu3 %v2325_v53  ;;  %1441 = vmatpush.bf16.msra.mxu0 %v2333_v55  ;;  %v1652_v27 = vld [vmem:[%s3277_s0 + $0x20] sm:$0xf] }
  0x56   :  { %1344 = vmatpush.bf16.msra.mxu2 %v2316_v4  ;;  %1295 = vmatpush.bf16.msra.mxu1 %v2308_v6  ;;  %v2263_v4 = vld [vmem:[%s3277_s0 + $0x228] sm:$0xf0] }
  0x58   :  { %1393 = vmatpush.bf16.msra.mxu3 %v2324_v5  ;;  %1442 = vmatpush.bf16.msra.mxu0 %v2332_v7 }
  0x5a   :  { %1345 = vmatpush.bf16.msra.mxu2 %v2315_v20  ;;  %1296 = vmatpush.bf16.msra.mxu1 %v2307_v22  ;;  %v1638_v22 = vld [vmem:[%s3277_s0 + $0x34] sm:$0xf0] }
  0x5c   :  { %1394 = vmatpush.bf16.msra.mxu3 %v2323_v21  ;;  %1443 = vmatpush.bf16.msra.mxu0 %v2331_v23  ;;  %v2196_v21 = vld [vmem:[%s3277_s0 + $0x14] sm:$0xf]  ;;  %v1644_v23 = vld [vmem:[%s3277_s0 + $0x18] sm:$0xf] }
  0x5e   :  { %1346 = vmatpush.bf16.msra.mxu2 %v2314_v36  ;;  %1297 = vmatpush.bf16.msra.mxu1 %v2306_v38  ;;  %v1653_v38 = vor.u32 %v2202_v28, %v1652_v27  ;;  %v2214_v27 = vld [vmem:[%s3277_s0 + $0xa4] sm:$0xf]  ;;  %v1710_v28 = vld [vmem:[%s3277_s0 + $0xc4] sm:$0xf0] }
  0x60   :  { %1395 = vmatpush.bf16.msra.mxu3 %v2322_v37  ;;  %1444 = vmatpush.bf16.msra.mxu0 %v2330_v39  ;;  %v1649_v37 = vor.u32 %v2197_v25, %v1646_v26 }
  0x61   :  { %1112 = vmatmul.bf16.gmra.mxu1 %v1697_v48  ;;  %1161 = vmatmul.bf16.gmra.mxu2 %v1701_v49  ;;  %v1841_v48 = vor.u32 %v2248_v40, %v1838_v41  ;;  %v1845_v49 = vor.u32 %v2253_v43, %v1844_v42 }
  0x63   :  { %1210 = vmatmul.bf16.gmra.mxu3 %v1705_v50  ;;  %1259 = vmatmul.bf16.gmra.mxu0 %v1709_v51  ;;  %v1849_v51 = vor.u32 %v2249_v44, %v1846_v45 }
  0x71   :  { %1117 = vmatmul.bf16.gmra.mxu1 %v1733_v0  ;;  %1166 = vmatmul.bf16.gmra.mxu2 %v1737_v1  ;;  %v2262_v0 = vld [vmem:[%s3277_s0 + $0x220] sm:$0xf0] }
  0x72   :  { %v2258_v1 = vld [vmem:[%s3277_s0 + $0x204] sm:$0xf]  ;;  %v1881_v9 = vor.u32 %v2262_v0, %v1880_v63 }
  0x73   :  { %1215 = vmatmul.bf16.gmra.mxu3 %v1741_v2  ;;  %1264 = vmatmul.bf16.gmra.mxu0 %v1745_v3  ;;  %v1882_v2 = vld [vmem:[%s3277_s0 + $0x224] sm:$0xf0] }
  0x74   :  { %v1888_v3 = vld [vmem:[%s3277_s0 + $0x208] sm:$0xf]  ;;  %v1885_v12 = vor.u32 %v2258_v1, %v1882_v2 }
  0x75   :  { %v1889_v13 = vor.u32 %v2263_v4, %v1888_v3 }
  0x81   :  { %1122 = vmatmul.bf16.gmra.mxu1 %v1769_v16  ;;  %1171 = vmatmul.bf16.gmra.mxu2 %v1773_v17 }
  0x83   :  { %1220 = vmatmul.bf16.gmra.mxu3 %v1777_v18  ;;  %1269 = vmatmul.bf16.gmra.mxu0 %v1781_v19 }
  0x91   :  { %1127 = vmatmul.bf16.gmra.mxu1 %v1805_v32  ;;  %1176 = vmatmul.bf16.gmra.mxu2 %v1809_v33  ;;  %v1641_v33 = vor.u32 %v2196_v21, %v1638_v22 }
  0x93   :  { %1225 = vmatmul.bf16.gmra.mxu3 %v1813_v34  ;;  %1274 = vmatmul.bf16.gmra.mxu0 %v1817_v35  ;;  %v1645_v34 = vor.u32 %v2201_v24, %v1644_v23 }
  0x9e   :  { %v2906_v50 = vpop.f32.mrf.mxu1 }
  0xa0   :  { %v1054_v53 = vpop.f32.mrf.mxu0 }
  0xa1   :  { %1132 = vmatmul.bf16.gmra.mxu1 %v1841_v48  ;;  %1181 = vmatmul.bf16.gmra.mxu2 %v1845_v49  ;;  %v1055_v30 = vadd.f32 %v2911_v54, %v1054_v53  ;;  %v2205_v49 = vld [vmem:[%s3277_s0 + $0x5c] sm:$0xf]  ;;  %v1680_v53 = vld [vmem:[%s3277_s0 + $0x60] sm:$0xf] }
  0xa3   :  { %1230 = vmatmul.bf16.gmra.mxu3 %v1849_v51  ;;  %1279 = vmatmul.bf16.gmra.mxu0 %v1853_v52  ;;  %v1674_v51 = vld [vmem:[%s3277_s0 + $0x7c] sm:$0xf0] }
  0xa4   :  { %v1074_v55 = vpop.f32.mrf.mxu2  ;;  %v1677_v3 = vor.u32 %v2205_v49, %v1674_v51 }
  0xa5   :  { %v2914_v56 = vadd.f32 %v2911_v54, %v1074_v55  ;;  %v2210_v55 = vld [vmem:[%s3277_s0 + $0x80] sm:$0xf0] }
  0xa6   :  { %v1084_v57 = vpop.f32.mrf.mxu3  ;;  %v2919_v59 = vpop.f32.mrf.mxu1  ;;  %v1681_v4 = vor.u32 %v2210_v55, %v1680_v53 }
  0xa7   :  { %v2917_v58 = vadd.f32 %v2911_v54, %v1084_v57  ;;  %v2206_v57 = vld [vmem:[%s3277_s0 + $0x64] sm:$0xf] }
  0xa8   :  { %v1056_v60 = vpop.f32.mrf.mxu0 }
  0xa9   :  { %v1057_v42 = vadd.f32 %v2911_v54, %v1056_v60  ;;  %v1682_v60 = vld [vmem:[%s3277_s0 + $0x84] sm:$0xf0] }
  0xac   :  { %v1076_v5 = vpop.f32.mrf.mxu2 }
  0xad   :  { %v2946_v6 = vadd.f32 %v2911_v54, %v1076_v5 }
  0xae   :  { %v1086_v7 = vpop.f32.mrf.mxu3  ;;  %v2951_v11 = vpop.f32.mrf.mxu1 }
  0xaf   :  { %v2949_v10 = vadd.f32 %v2911_v54, %v1086_v7  ;;  %v1685_v7 = vor.u32 %v2206_v57, %v1682_v60 }
  0xb0   :  { %v1059_v14 = vpop.f32.mrf.mxu0 }
  0xb1   :  { %1137 = vmatmul.bf16.gmra.mxu1 %v1877_v8  ;;  %1186 = vmatmul.bf16.gmra.mxu2 %v1881_v9  ;;  %v1060_v0 = vadd.f32 %v2911_v54, %v1059_v14  ;;  %v1689_v8 = vor.u32 %v2211_v62, %v1688_v61 }
  0xb3   :  { %1235 = vmatmul.bf16.gmra.mxu3 %v1885_v12  ;;  %1284 = vmatmul.bf16.gmra.mxu0 %v1889_v13 }
  0xb4   :  { %v1079_v15 = vpop.f32.mrf.mxu2 }
  0xb5   :  { %v2954_v16 = vadd.f32 %v2911_v54, %v1079_v15 }
  0xb6   :  { %v1089_v17 = vpop.f32.mrf.mxu3  ;;  %v2959_v19 = vpop.f32.mrf.mxu1 }
  0xb7   :  { %v2957_v18 = vadd.f32 %v2911_v54, %v1089_v17 }
  0xb8   :  { %v1061_v20 = vpop.f32.mrf.mxu0 }
  0xb9   :  { %v1062_v21 = vadd.f32 %v2911_v54, %v1061_v20  ;;  %v1716_v20 = vld [vmem:[%s3277_s0 + $0xa8] sm:$0xf] }
  0xbc   :  { %v1081_v29 = vpop.f32.mrf.mxu2 }
  0xbd   :  { %v2987_v31 = vadd.f32 %v2911_v54, %v1081_v29 }
  0xbe   :  { %v1091_v32 = vpop.f32.mrf.mxu3  ;;  %v1103_v36 = vpop.f32.mrf.mxu1 }
  0xbf   :  { %v2990_v35 = vadd.f32 %v2911_v54, %v1091_v32  ;;  %v1104_v39 = vadd.f32 %v1103_v36, %v1055_v30  ;;  %v2219_v30 = vld [vmem:[%s3277_s0 + $0xc8] sm:$0xf0]  ;;  %v2220_v36 = vld [vmem:[%s3277_s0 + $0xd0] sm:$0xf0] }
  0xc0   :  { %v1250_v40 = vpop.f32.mrf.mxu0  ;;  %v2215_v32 = vld [vmem:[%s3277_s0 + $0xac] sm:$0xf] }
  0xc1   :  { %1298 = vmatmul.bf16.vlgmr.msra.gmra.mxu1 %v1641_v33  ;;  %1347 = vmatmul.bf16.vlgmr.msra.gmra.mxu2 %v1645_v34  ;;  %v1718_v33 = vld [vmem:[%s3277_s0 + $0xcc] sm:$0xf0] }
  0xc2   :  { %v1724_v34 = vld [vmem:[%s3277_s0 + $0xb0] sm:$0xf] }
  0xc3   :  { %1396 = vmatmul.bf16.vlgmr.msra.gmra.mxu3 %v1649_v37  ;;  %1445 = vmatmul.bf16.vlgmr.msra.gmra.mxu0 %v1653_v38  ;;  %v1065_v38 = vadd.f32 %v2911_v54, %v2906_v50  ;;  %v1067_v50 = vadd.f32 %v2911_v54, %v2919_v59  ;;  %v1752_v59 = vld [vmem:[%s3277_s0 + $0xf0] sm:$0xf] }
  0xc4   :  { %v1152_v41 = vpop.f32.mrf.mxu2 }
  0xc5   :  { %v1153_v43 = vadd.f32 %v1152_v41, %v1104_v39  ;;  %v1713_v41 = vor.u32 %v2214_v27, %v1710_v28 }
  0xc6   :  { %v1201_v44 = vpop.f32.mrf.mxu3  ;;  %v1105_v45 = vpop.f32.mrf.mxu1 }
  0xc7   :  { %v1202_v46 = vadd.f32 %v1201_v44, %v1153_v43  ;;  %v1106_v47 = vadd.f32 %v1105_v45, %v1057_v42  ;;  %v1717_v42 = vor.u32 %v2219_v30, %v1716_v20  ;;  %v1721_v44 = vor.u32 %v2215_v32, %v1718_v33 }
  0xc8   :  { %v1252_v48 = vpop.f32.mrf.mxu0  ;;  %v1725_v45 = vor.u32 %v2220_v36, %v1724_v34 }
  0xc9   :  { %v2999_v52 = vadd.f32 %v1250_v40, %v1202_v46 }
  0xcc   :  { %v1154_v63 = vpop.f32.mrf.mxu2 }
  0xcd   :  { %v1155_v1 = vadd.f32 %v1154_v63, %v1106_v47  ;;  %v2223_v63 = vld [vmem:[%s3277_s0 + $0xec] sm:$0xf] }
  0xce   :  { %v1203_v2 = vpop.f32.mrf.mxu3  ;;  %v1108_v5 = vpop.f32.mrf.mxu1 }
  0xcf   :  { %v1204_v9 = vadd.f32 %v1203_v2, %v1155_v1  ;;  %v1109_v12 = vadd.f32 %v1108_v5, %v1060_v0  ;;  %v1746_v0 = vld [vmem:[%s3277_s0 + $0x10c] sm:$0xf0]  ;;  %v2228_v2 = vld [vmem:[%s3277_s0 + $0x110] sm:$0xf0]  ;;  %v1760_v5 = vld [vmem:[%s3277_s0 + $0xf8] sm:$0xf] }
  0xd0   :  { %v1255_v13 = vpop.f32.mrf.mxu0 }
  0xd1   :  { %1303 = vmatmul.bf16.gmra.mxu1 %v1677_v3  ;;  %1352 = vmatmul.bf16.gmra.mxu2 %v1681_v4  ;;  %v3020_v15 = vadd.f32 %v1252_v48, %v1204_v9  ;;  %v2224_v3 = vld [vmem:[%s3277_s0 + $0xf4] sm:$0xf]  ;;  %v1754_v4 = vld [vmem:[%s3277_s0 + $0x114] sm:$0xf0]  ;;  %v1070_v9 = vadd.f32 %v2911_v54, %v2951_v11  ;;  %v1072_v11 = vadd.f32 %v2911_v54, %v2959_v19  ;;  %v2237_v19 = vld [vmem:[%s3277_s0 + $0x158] sm:$0xf0] }
  0xd2   :  { %v1788_v54 = vld [vmem:[%s3277_s0 + $0x138] sm:$0xf] }
  0xd3   :  { %1401 = vmatmul.bf16.gmra.mxu3 %v1685_v7  ;;  %1450 = vmatmul.bf16.gmra.mxu0 %v1689_v8  ;;  %v2229_v7 = vld [vmem:[%s3277_s0 + $0x118] sm:$0xf0] }
  0xd4   :  { %v1157_v17 = vpop.f32.mrf.mxu2 }
  0xd5   :  { %v1158_v14 = vadd.f32 %v1157_v17, %v1109_v12  ;;  %v1749_v17 = vor.u32 %v2223_v63, %v1746_v0 }
  0xd6   :  { %v1206_v22 = vpop.f32.mrf.mxu3  ;;  %v1110_v23 = vpop.f32.mrf.mxu1 }
  0xd7   :  { %v1207_v24 = vadd.f32 %v1206_v22, %v1158_v14  ;;  %v1111_v25 = vadd.f32 %v1110_v23, %v1062_v21  ;;  %v1753_v21 = vor.u32 %v2228_v2, %v1752_v59  ;;  %v1757_v22 = vor.u32 %v2224_v3, %v1754_v4 }
  0xd8   :  { %v1257_v26 = vpop.f32.mrf.mxu0  ;;  %v1761_v23 = vor.u32 %v2229_v7, %v1760_v5  ;;  %v2241_v5 = vld [vmem:[%s3277_s0 + $0x17c] sm:$0xf] }
  0xd9   :  { %v3029_v29 = vadd.f32 %v1255_v13, %v1207_v24 }
  0xdc   :  { %v1159_v37 = vpop.f32.mrf.mxu2 }
  0xdd   :  { %v1160_v39 = vadd.f32 %v1159_v37, %v1111_v25  ;;  %v2232_v37 = vld [vmem:[%s3277_s0 + $0x134] sm:$0xf] }
  0xde   :  { %v1208_v40 = vpop.f32.mrf.mxu3  ;;  %v1113_v43 = vpop.f32.mrf.mxu1 }
  0xdf   :  { %v1209_v46 = vadd.f32 %v1208_v40, %v1160_v39  ;;  %v1114_v47 = vadd.f32 %v1113_v43, %v1065_v38  ;;  %v1782_v38 = vld [vmem:[%s3277_s0 + $0x154] sm:$0xf0]  ;;  %v2233_v40 = vld [vmem:[%s3277_s0 + $0x13c] sm:$0xf]  ;;  %v2238_v43 = vld [vmem:[%s3277_s0 + $0x160] sm:$0xf0] }
  0xe0   :  { %v1260_v48 = vpop.f32.mrf.mxu0 }
  0xe1   :  { %1308 = vmatmul.bf16.gmra.mxu1 %v1713_v41  ;;  %1357 = vmatmul.bf16.gmra.mxu2 %v1717_v42  ;;  %v3051_v49 = vadd.f32 %v1257_v26, %v1209_v46  ;;  %v1790_v41 = vld [vmem:[%s3277_s0 + $0x15c] sm:$0xf0] }
  0xe2   :  { %v1796_v42 = vld [vmem:[%s3277_s0 + $0x140] sm:$0xf] }
  0xe3   :  { %1406 = vmatmul.bf16.gmra.mxu3 %v1721_v44  ;;  %1455 = vmatmul.bf16.gmra.mxu0 %v1725_v45 }
  0xe4   :  { %v1162_v51 = vpop.f32.mrf.mxu2 }
  0xe5   :  { %v1163_v53 = vadd.f32 %v1162_v51, %v1114_v47  ;;  %v1785_v47 = vor.u32 %v2232_v37, %v1782_v38 }
  0xe6   :  { %v1211_v55 = vpop.f32.mrf.mxu3  ;;  %v1115_v57 = vpop.f32.mrf.mxu1 }
  0xe7   :  { %v1212_v60 = vadd.f32 %v1211_v55, %v1163_v53  ;;  %v1116_v61 = vadd.f32 %v1115_v57, %v1067_v50  ;;  %v1793_v50 = vor.u32 %v2233_v40, %v1790_v41  ;;  %v1797_v53 = vor.u32 %v2238_v43, %v1796_v42  ;;  %v2250_v40 = vld [vmem:[%s3277_s0 + $0x1c4] sm:$0xf]  ;;  %v1860_v42 = vld [vmem:[%s3277_s0 + $0x1c8] sm:$0xf]  ;;  %v2255_v43 = vld [vmem:[%s3277_s0 + $0x1e8] sm:$0xf0] }
  0xe8   :  { %v1262_v62 = vpop.f32.mrf.mxu0 }
  0xe9   :  { %v3061_v1 = vadd.f32 %v1260_v48, %v1212_v60  ;;  %v1789_v48 = vor.u32 %v2237_v19, %v1788_v54 }
  0xec   :  { %v1164_v8 = vpop.f32.mrf.mxu2 }
  0xed   :  { %v1165_v12 = vadd.f32 %v1164_v8, %v1116_v61  ;;  %v1824_v8 = vld [vmem:[%s3277_s0 + $0x180] sm:$0xf] }
  0xee   :  { %v1213_v13 = vpop.f32.mrf.mxu3  ;;  %v1118_v14 = vpop.f32.mrf.mxu1 }
  0xef   :  { %v1214_v24 = vadd.f32 %v1213_v13, %v1165_v12  ;;  %v1119_v25 = vadd.f32 %v1118_v14, %v1070_v9  ;;  %v2246_v9 = vld [vmem:[%s3277_s0 + $0x1a0] sm:$0xf0]  ;;  %v1826_v12 = vld [vmem:[%s3277_s0 + $0x1a4] sm:$0xf0] }
  0xf0   :  { %v1265_v26 = vpop.f32.mrf.mxu0  ;;  %v1832_v13 = vld [vmem:[%s3277_s0 + $0x188] sm:$0xf] }
  0xf1   :  { %1313 = vmatmul.bf16.gmra.mxu1 %v1749_v17  ;;  %1362 = vmatmul.bf16.gmra.mxu2 %v1753_v21  ;;  %v3083_v27 = vadd.f32 %v1262_v62, %v1214_v24  ;;  %v2247_v17 = vld [vmem:[%s3277_s0 + $0x1a8] sm:$0xf0]  ;;  %v1825_v24 = vor.u32 %v2246_v9, %v1824_v8 }
  0xf3   :  { %1411 = vmatmul.bf16.gmra.mxu3 %v1757_v22  ;;  %1460 = vmatmul.bf16.gmra.mxu0 %v1761_v23 }
  0xf4   :  { %v1167_v28 = vpop.f32.mrf.mxu2 }
  0xf5   :  { %v1168_v20 = vadd.f32 %v1167_v28, %v1119_v25  ;;  %v1833_v28 = vor.u32 %v2247_v17, %v1832_v13  ;;  %v1896_v13 = vld [vmem:[%s3277_s0 + $0x210] sm:$0xf]  ;;  %v2264_v17 = vld [vmem:[%s3277_s0 + $0x230] sm:$0xf0] }
  0xf6   :  { %v1216_v30 = vpop.f32.mrf.mxu3  ;;  %v1120_v32 = vpop.f32.mrf.mxu1 }
  0xf7   :  { %v1217_v33 = vadd.f32 %v1216_v30, %v1168_v20  ;;  %v1121_v34 = vadd.f32 %v1120_v32, %v1072_v11 }
  0xf8   :  { %v1267_v36 = vpop.f32.mrf.mxu0 }
  0xf9   :  { %v3093_v39 = vadd.f32 %v1265_v26, %v1217_v33 }
  0xfc   :  { %v1169_v44 = vpop.f32.mrf.mxu2 }
  0xfd   :  { %v1170_v45 = vadd.f32 %v1169_v44, %v1121_v34  ;;  %v1862_v44 = vld [vmem:[%s3277_s0 + $0x1ec] sm:$0xf0] }
  0xfe   :  { %v1218_v46 = vpop.f32.mrf.mxu3  ;;  %v1123_v51 = vpop.f32.mrf.mxu1 }
  0xff   :  { %v1219_v55 = vadd.f32 %v1218_v46, %v1170_v45  ;;  %v1124_v57 = vadd.f32 %v1123_v51, %v2914_v56  ;;  %v1818_v56 = vld [vmem:[%s3277_s0 + $0x19c] sm:$0xf0]  ;;  %v1868_v45 = vld [vmem:[%s3277_s0 + $0x1d0] sm:$0xf]  ;;  %v2256_v46 = vld [vmem:[%s3277_s0 + $0x1f0] sm:$0xf0] }
 0x100   :  { %v1270_v60 = vpop.f32.mrf.mxu0  ;;  %v1821_v23 = vor.u32 %v2241_v5, %v1818_v56 }
 0x101   :  { %1318 = vmatmul.bf16.gmra.mxu1 %v1785_v47  ;;  %1367 = vmatmul.bf16.gmra.mxu2 %v1789_v48  ;;  %v3114_v61 = vadd.f32 %v1267_v36, %v1219_v55 }
 0x103   :  { %1416 = vmatmul.bf16.gmra.mxu3 %v1793_v50  ;;  %1465 = vmatmul.bf16.gmra.mxu0 %v1797_v53  ;;  %v1861_v53 = vor.u32 %v2255_v43, %v1860_v42 }
 0x104   :  { %v1172_v62 = vpop.f32.mrf.mxu2 }
 0x105   :  { %v1173_v63 = vadd.f32 %v1172_v62, %v1124_v57 }
 0x106   :  { %v1221_v0 = vpop.f32.mrf.mxu3  ;;  %v1125_v59 = vpop.f32.mrf.mxu1 }
 0x107   :  { %v1222_v2 = vadd.f32 %v1221_v0, %v1173_v63  ;;  %v1126_v3 = vadd.f32 %v1125_v59, %v2946_v6  ;;  %v2242_v6 = vld [vmem:[%s3277_s0 + $0x184] sm:$0xf] }
 0x108   :  { %v1272_v4 = vpop.f32.mrf.mxu0  ;;  %v1829_v26 = vor.u32 %v2242_v6, %v1826_v12  ;;  %v2259_v6 = vld [vmem:[%s3277_s0 + $0x20c] sm:$0xf] }
 0x109   :  { %v3123_v7 = vadd.f32 %v1270_v60, %v1222_v2  ;;  %v1869_v60 = vor.u32 %v2256_v46, %v1868_v45 }
 0x10c   :  { %v1174_v21 = vpop.f32.mrf.mxu2 }
 0x10d   :  { %v1175_v14 = vadd.f32 %v1174_v21, %v1126_v3  ;;  %v1898_v21 = vld [vmem:[%s3277_s0 + $0x234] sm:$0xf0] }
 0x10e   :  { %v1223_v22 = vpop.f32.mrf.mxu3  ;;  %v1128_v25 = vpop.f32.mrf.mxu1 }
 0x10f   :  { %v1224_v11 = vadd.f32 %v1223_v22, %v1175_v14  ;;  %v1129_v20 = vadd.f32 %v1128_v25, %v2954_v16  ;;  %v1854_v16 = vld [vmem:[%s3277_s0 + $0x1e4] sm:$0xf0]  ;;  %v1904_v14 = vld [vmem:[%s3277_s0 + $0x218] sm:$0xf]  ;;  %v2265_v22 = vld [vmem:[%s3277_s0 + $0x238] sm:$0xf0] }
 0x110   :  { %v1275_v30 = vpop.f32.mrf.mxu0  ;;  %v1857_v50 = vor.u32 %v2250_v40, %v1854_v16 }
 0x111   :  { %1323 = vmatmul.bf16.gmra.mxu1 %v1821_v23  ;;  %1372 = vmatmul.bf16.gmra.mxu2 %v1825_v24  ;;  %v3144_v32 = vadd.f32 %v1272_v4, %v1224_v11 }
 0x113   :  { %1421 = vmatmul.bf16.gmra.mxu3 %v1829_v26  ;;  %1470 = vmatmul.bf16.gmra.mxu0 %v1833_v28  ;;  %v1897_v28 = vor.u32 %v2264_v17, %v1896_v13 }
 0x114   :  { %v1177_v33 = vpop.f32.mrf.mxu2 }
 0x115   :  { %v1178_v34 = vadd.f32 %v1177_v33, %v1129_v20 }
 0x116   :  { %v1226_v36 = vpop.f32.mrf.mxu3  ;;  %v1130_v37 = vpop.f32.mrf.mxu1 }
 0x117   :  { %v1227_v38 = vadd.f32 %v1226_v36, %v1178_v34  ;;  %v1131_v54 = vadd.f32 %v1130_v37, %v2987_v31  ;;  %v2251_v31 = vld [vmem:[%s3277_s0 + $0x1cc] sm:$0xf] }
 0x118   :  { %v1277_v19 = vpop.f32.mrf.mxu0  ;;  %v1865_v57 = vor.u32 %v2251_v31, %v1862_v44 }
 0x119   :  { %v3153_v41 = vadd.f32 %v1275_v30, %v1227_v38  ;;  %v1905_v30 = vor.u32 %v2265_v22, %v1904_v14 }
 0x11c   :  { %v1179_v47 = vpop.f32.mrf.mxu2 }
 0x11d   :  { %v1180_v48 = vadd.f32 %v1179_v47, %v1131_v54 }
 0x11e   :  { %v1228_v51 = vpop.f32.mrf.mxu3  ;;  %v1133_v55 = vpop.f32.mrf.mxu1 }
 0x11f   :  { %v1229_v62 = vadd.f32 %v1228_v51, %v1180_v48  ;;  %v1134_v63 = vadd.f32 %v1133_v55, %v2917_v58  ;;  %v1890_v58 = vld [vmem:[%s3277_s0 + $0x22c] sm:$0xf0] }
 0x120   :  { %v1280_v0 = vpop.f32.mrf.mxu0  ;;  %v1893_v26 = vor.u32 %v2259_v6, %v1890_v58 }
 0x121   :  { %1328 = vmatmul.bf16.gmra.mxu1 %v1857_v50  ;;  %1377 = vmatmul.bf16.gmra.mxu2 %v1861_v53  ;;  %v3174_v59 = vadd.f32 %v1277_v19, %v1229_v62 }
 0x123   :  { %1426 = vmatmul.bf16.gmra.mxu3 %v1865_v57  ;;  %1475 = vmatmul.bf16.gmra.mxu0 %v1869_v60 }
 0x124   :  { %v1182_v2 = vpop.f32.mrf.mxu2 }
 0x125   :  { %v1183_v3 = vadd.f32 %v1182_v2, %v1134_v63 }
 0x126   :  { %v1231_v4 = vpop.f32.mrf.mxu3  ;;  %v1135_v5 = vpop.f32.mrf.mxu1 }
 0x127   :  { %v1232_v56 = vadd.f32 %v1231_v4, %v1183_v3  ;;  %v1136_v8 = vadd.f32 %v1135_v5, %v2949_v10  ;;  %v2260_v10 = vld [vmem:[%s3277_s0 + $0x214] sm:$0xf] }
 0x128   :  { %v1282_v9 = vpop.f32.mrf.mxu0  ;;  %v1901_v20 = vor.u32 %v2260_v10, %v1898_v21 }
 0x129   :  { %v3183_v12 = vadd.f32 %v1280_v0, %v1232_v56 }
 0x12c   :  { %v1184_v23 = vpop.f32.mrf.mxu2 }
 0x12d   :  { %v1185_v24 = vadd.f32 %v1184_v23, %v1136_v8  ;;  %v2339_v8 = vld [vmem:[%s3278_s3] sm:$0xff]  }
 0x12e   :  { %v1233_v25 = vpop.f32.mrf.mxu3  ;;  %v1138_v11 = vpop.f32.mrf.mxu1  ;;  %v2340_v58 = vunpack.c.l.bf16 %v2339_v8  ;;  %v2341_v13 = vunpack.c.h.bf16 %v2339_v8 }
 0x12f   :  { %v1234_v33 = vadd.f32 %v1233_v25, %v1185_v24  ;;  %v1139_v34 = vadd.f32 %v1138_v11, %v2957_v18 }
 0x130   :  { %v1285_v36 = vpop.f32.mrf.mxu0 }
 0x131   :  { %1333 = vmatmul.bf16.gmra.mxu1 %v1893_v26  ;;  %1382 = vmatmul.bf16.gmra.mxu2 %v1897_v28  ;;  %v3204_v37 = vadd.f32 %v1282_v9, %v1234_v33 }
 0x133   :  { %1431 = vmatmul.bf16.gmra.mxu3 %v1901_v20  ;;  %1480 = vmatmul.bf16.gmra.mxu0 %v1905_v30 }
 0x134   :  { %v1187_v38 = vpop.f32.mrf.mxu2 }
 0x135   :  { %v1188_v54 = vadd.f32 %v1187_v38, %v1139_v34 }
 0x136   :  { %v1236_v19 = vpop.f32.mrf.mxu3  ;;  %v1140_v40 = vpop.f32.mrf.mxu1 }
 0x137   :  { %v1237_v16 = vadd.f32 %v1236_v19, %v1188_v54  ;;  %v1141_v42 = vadd.f32 %v1140_v40, %v2990_v35  ;;  %v2410_v19 = vld [vmem:[%s3278_s3 + $0x8] sm:$0xff]  }
 0x138   :  { %v1287_v43 = vpop.f32.mrf.mxu0 }
 0x139   :  { %v3207_v31 = vadd.f32 %v1285_v36, %v1237_v16 }
 0x13c   :  { %v1189_v44 = vpop.f32.mrf.mxu2 }
 0x13d   :  { %v1190_v45 = vadd.f32 %v1189_v44, %v1141_v42  ;;  %v2345_v44 = vunpack.c.h.bf16 %v2410_v19 }
 0x13e   :  { %v1238_v18 = vpop.f32.mrf.mxu3  ;;  %v1299_v46 = vpop.f32.mrf.mxu1 }
 0x13f   :  { %v1239_v47 = vadd.f32 %v1238_v18, %v1190_v45  ;;  %v1300_v50 = vadd.f32 %v1299_v46, %v2999_v52 }
 0x140   :  { %v1446_v48 = vpop.f32.mrf.mxu0 }
 0x141   :  { %v3209_v51 = vadd.f32 %v1287_v43, %v1239_v47  ;;  %v2344_v43 = vunpack.c.l.bf16 %v2410_v19 }
 0x144   :  { %v1348_v53 = vpop.f32.mrf.mxu2 }
 0x145   :  { %v1349_v55 = vadd.f32 %v1348_v53, %v1300_v50 }
 0x146   :  { %v1397_v57 = vpop.f32.mrf.mxu3  ;;  %v1301_v60 = vpop.f32.mrf.mxu1 }
 0x147   :  { %v1398_v62 = vadd.f32 %v1397_v57, %v1349_v55  ;;  %v1302_v0 = vadd.f32 %v1301_v60, %v3020_v15 }
 0x148   :  { %v1448_v63 = vpop.f32.mrf.mxu0 }
 0x149   :  { %v1447_v35 = vadd.f32 %v1446_v48, %v1398_v62 }
 0x14b   :  { %v1502_v56 = vmul.f32 0.1, %v1447_v35  ;;  %vm1486_vm0 = vcmp.ge.f32.partialorder %v1447_v35, 0.0 }
 0x14c   :  { %v1350_v2 = vpop.f32.mrf.mxu2 }
 0x14d   :  { %v1351_v3 = vadd.f32 %v1350_v2, %v1302_v0  ;;  %v1518_v17 = vsel %vm1486_vm0, %v1447_v35, %v1502_v56  ;;  %v2411_v56 = vld [vmem:[%s3278_s3 + $0x10] sm:$0xff]  }
 0x14e   :  { %v1399_v4 = vpop.f32.mrf.mxu3  ;;  %v1304_v5 = vpop.f32.mrf.mxu1  ;;  %v1566_v24 = vadd.f32 %v2340_v58, %v1518_v17  ;;  %v2349_v58 = vunpack.c.h.bf16 %v2411_v56 }
 0x14f   :  { %v1400_v9 = vadd.f32 %v1399_v4, %v1351_v3  ;;  %v1305_v15 = vadd.f32 %v1304_v5, %v3029_v29 }
 0x150   :  { %v1451_v52 = vpop.f32.mrf.mxu0 }
 0x151   :  { %v1449_v6 = vadd.f32 %v1448_v63, %v1400_v9 }
 0x153   :  { %vm1487_vm1 = vcmp.ge.f32.partialorder %v1449_v6, 0.0  ;;  %v1503_v10 = vmul.f32 0.1, %v1449_v6 }
 0x154   :  { %v1353_v21 = vpop.f32.mrf.mxu2 }
 0x155   :  { %v1519_v14 = vsel %vm1487_vm1, %v1449_v6, %v1503_v10  ;;  %v1354_v22 = vadd.f32 %v1353_v21, %v1305_v15  ;;  %v2348_v6 = vunpack.c.l.bf16 %v2411_v56 }
 0x156   :  { %v1402_v23 = vpop.f32.mrf.mxu3  ;;  %v1567_v25 = vadd.f32 %v2341_v13, %v1519_v14  ;;  %v1306_v26 = vpop.f32.mrf.mxu1 }
 0x157   :  { %v1403_v28 = vadd.f32 %v1402_v23, %v1354_v22  ;;  %v1307_v33 = vadd.f32 %v1306_v26, %v3051_v49 }
 0x158   :  { %v1453_v11 = vpop.f32.mrf.mxu0  ;;  %v2373_v20 = vpack.c.bf16 %v1567_v25, %v1566_v24 }
 0x159   :  { %v1452_v30 = vadd.f32 %v1451_v52, %v1403_v28 }
 0x15a   :  { %2374 = vst [vmem:[%s3279_s4] sm:$0xff] %v2373_v20  }
 0x15b   :  { %v1504_v54 = vmul.f32 0.1, %v1452_v30  ;;  %vm1488_vm2 = vcmp.ge.f32.partialorder %v1452_v30, 0.0 }
 0x15c   :  { %v1355_v34 = vpop.f32.mrf.mxu2 }
 0x15d   :  { %v1356_v36 = vadd.f32 %v1355_v34, %v1307_v33  ;;  %v1520_v45 = vsel %vm1488_vm2, %v1452_v30, %v1504_v54 }
 0x15e   :  { %v1404_v29 = vpop.f32.mrf.mxu3  ;;  %v1309_v38 = vpop.f32.mrf.mxu1  ;;  %v1568_v53 = vadd.f32 %v2344_v43, %v1520_v45 }
 0x15f   :  { %v1405_v40 = vadd.f32 %v1404_v29, %v1356_v36  ;;  %v1310_v49 = vadd.f32 %v1309_v38, %v3061_v1  ;;  %v2412_v29 = vld [vmem:[%s3278_s3 + $0x18] sm:$0xff]  }
 0x160   :  { %v1456_v16 = vpop.f32.mrf.mxu0 }
 0x161   :  { %v1454_v42 = vadd.f32 %v1453_v11, %v1405_v40  ;;  %v2352_v40 = vunpack.c.l.bf16 %v2412_v29 }
 0x163   :  { %vm1489_vm3 = vcmp.ge.f32.partialorder %v1454_v42, 0.0  ;;  %v1505_v18 = vmul.f32 0.1, %v1454_v42 }
 0x164   :  { %v1358_v46 = vpop.f32.mrf.mxu2 }
 0x165   :  { %v1521_v47 = vsel %vm1489_vm3, %v1454_v42, %v1505_v18  ;;  %v1359_v48 = vadd.f32 %v1358_v46, %v1310_v49 }
 0x166   :  { %v1407_v50 = vpop.f32.mrf.mxu3  ;;  %v1569_v55 = vadd.f32 %v2345_v44, %v1521_v47  ;;  %v1311_v57 = vpop.f32.mrf.mxu1 }
 0x167   :  { %v1408_v60 = vadd.f32 %v1407_v50, %v1359_v48  ;;  %v1312_v0 = vadd.f32 %v1311_v57, %v3083_v27 }
 0x168   :  { %v1458_v62 = vpop.f32.mrf.mxu0  ;;  %v2378_v63 = vpack.c.bf16 %v1569_v55, %v1568_v53 }
 0x169   :  { %v1457_v35 = vadd.f32 %v1456_v16, %v1408_v60  ;;  %v2353_v16 = vunpack.c.h.bf16 %v2412_v29 }
 0x16a   :  { %2417 = vst [vmem:[%s3279_s4 + $0x8] sm:$0xff] %v2378_v63  }
 0x16b   :  { %v1506_v5 = vmul.f32 0.1, %v1457_v35  ;;  %vm1490_vm4 = vcmp.ge.f32.partialorder %v1457_v35, 0.0 }
 0x16c   :  { %v1360_v2 = vpop.f32.mrf.mxu2 }
 0x16d   :  { %v1361_v3 = vadd.f32 %v1360_v2, %v1312_v0  ;;  %v1522_v13 = vsel %vm1490_vm4, %v1457_v35, %v1506_v5  ;;  %v2413_v2 = vld [vmem:[%s3278_s3 + $0x20] sm:$0xff]  }
 0x16e   :  { %v1409_v1 = vpop.f32.mrf.mxu3  ;;  %v1314_v4 = vpop.f32.mrf.mxu1  ;;  %v1570_v22 = vadd.f32 %v2348_v6, %v1522_v13  ;;  %v2356_v5 = vunpack.c.l.bf16 %v2413_v2  ;;  %v2357_v56 = vunpack.c.h.bf16 %v2413_v2 }
 0x16f   :  { %v1410_v8 = vadd.f32 %v1409_v1, %v1361_v3  ;;  %v1315_v27 = vadd.f32 %v1314_v4, %v3093_v39 }
 0x170   :  { %v1461_v9 = vpop.f32.mrf.mxu0 }
 0x171   :  { %v1459_v52 = vadd.f32 %v1458_v62, %v1410_v8 }
 0x173   :  { %vm1491_vm5 = vcmp.ge.f32.partialorder %v1459_v52, 0.0  ;;  %v1507_v17 = vmul.f32 0.1, %v1459_v52 }
 0x174   :  { %v1363_v10 = vpop.f32.mrf.mxu2 }
 0x175   :  { %v1523_v15 = vsel %vm1491_vm5, %v1459_v52, %v1507_v17  ;;  %v1364_v21 = vadd.f32 %v1363_v10, %v1315_v27 }
 0x176   :  { %v1412_v14 = vpop.f32.mrf.mxu3  ;;  %v1571_v23 = vadd.f32 %v2349_v58, %v1523_v15  ;;  %v1316_v24 = vpop.f32.mrf.mxu1 }
 0x177   :  { %v1413_v25 = vadd.f32 %v1412_v14, %v1364_v21  ;;  %v1317_v20 = vadd.f32 %v1316_v24, %v3114_v61 }
 0x178   :  { %v1463_v26 = vpop.f32.mrf.mxu0  ;;  %v2383_v28 = vpack.c.bf16 %v1571_v23, %v1570_v22 }
 0x179   :  { %v1462_v11 = vadd.f32 %v1461_v9, %v1413_v25 }
 0x17a   :  { %2418 = vst [vmem:[%s3279_s4 + $0x10] sm:$0xff] %v2383_v28  }
 0x17b   :  { %v1508_v36 = vmul.f32 0.1, %v1462_v11  ;;  %vm1492_vm6 = vcmp.ge.f32.partialorder %v1462_v11, 0.0 }
 0x17c   :  { %v1365_v30 = vpop.f32.mrf.mxu2 }
 0x17d   :  { %v1366_v33 = vadd.f32 %v1365_v30, %v1317_v20  ;;  %v1524_v42 = vsel %vm1492_vm6, %v1462_v11, %v1508_v36  ;;  %v2414_v11 = vld [vmem:[%s3278_s3 + $0x28] sm:$0xff]  }
 0x17e   :  { %v1414_v39 = vpop.f32.mrf.mxu3  ;;  %v1319_v34 = vpop.f32.mrf.mxu1  ;;  %v1572_v46 = vadd.f32 %v2352_v40, %v1524_v42 }
 0x17f   :  { %v1415_v38 = vadd.f32 %v1414_v39, %v1366_v33  ;;  %v1320_v61 = vadd.f32 %v1319_v34, %v3123_v7  ;;  %v2360_v33 = vunpack.c.l.bf16 %v2414_v11  ;;  %v2361_v39 = vunpack.c.h.bf16 %v2414_v11 }
 0x180   :  { %v1466_v54 = vpop.f32.mrf.mxu0 }
 0x181   :  { %v1464_v19 = vadd.f32 %v1463_v26, %v1415_v38 }
 0x183   :  { %vm1493_vm7 = vcmp.ge.f32.partialorder %v1464_v19, 0.0  ;;  %v1509_v43 = vmul.f32 0.1, %v1464_v19 }
 0x184   :  { %v1368_v44 = vpop.f32.mrf.mxu2 }
 0x185   :  { %v1525_v45 = vsel %vm1493_vm7, %v1464_v19, %v1509_v43  ;;  %v1369_v18 = vadd.f32 %v1368_v44, %v1320_v61 }
 0x186   :  { %v1417_v49 = vpop.f32.mrf.mxu3  ;;  %v1573_v47 = vadd.f32 %v2353_v16, %v1525_v45  ;;  %v1321_v48 = vpop.f32.mrf.mxu1 }
 0x187   :  { %v1418_v50 = vadd.f32 %v1417_v49, %v1369_v18  ;;  %v1322_v60 = vadd.f32 %v1321_v48, %v3144_v32 }
 0x188   :  { %v1468_v53 = vpop.f32.mrf.mxu0  ;;  %v2388_v55 = vpack.c.bf16 %v1573_v47, %v1572_v46 }
 0x189   :  { %v1467_v57 = vadd.f32 %v1466_v54, %v1418_v50 }
 0x18a   :  { %2419 = vst [vmem:[%s3279_s4 + $0x18] sm:$0xff] %v2388_v55  }
 0x18b   :  { %v1510_v0 = vmul.f32 0.1, %v1467_v57  ;;  %vm1494_vm8 = vcmp.ge.f32.partialorder %v1467_v57, 0.0 }
 0x18c   :  { %v1370_v62 = vpop.f32.mrf.mxu2 }
 0x18d   :  { %v1371_v63 = vadd.f32 %v1370_v62, %v1322_v60  ;;  %v1526_v8 = vsel %vm1494_vm8, %v1467_v57, %v1510_v0 }
 0x18e   :  { %v1419_v7 = vpop.f32.mrf.mxu3  ;;  %v1324_v35 = vpop.f32.mrf.mxu1  ;;  %v1574_v17 = vadd.f32 %v2356_v5, %v1526_v8 }
 0x18f   :  { %v1420_v3 = vadd.f32 %v1419_v7, %v1371_v63  ;;  %v1325_v32 = vadd.f32 %v1324_v35, %v3153_v41 }
 0x190   :  { %v1471_v1 = vpop.f32.mrf.mxu0 }
 0x191   :  { %v1469_v4 = vadd.f32 %v1468_v53, %v1420_v3  ;;  %v2415_v53 = vld [vmem:[%s3278_s3 + $0x30] sm:$0xff]  }
 0x192   :  { %v2364_v60 = vunpack.c.l.bf16 %v2415_v53  ;;  %v2365_v62 = vunpack.c.h.bf16 %v2415_v53 }
 0x193   :  { %vm1495_vm9 = vcmp.ge.f32.partialorder %v1469_v4, 0.0  ;;  %v1511_v9 = vmul.f32 0.1, %v1469_v4 }
 0x194   :  { %v1373_v52 = vpop.f32.mrf.mxu2 }
 0x195   :  { %v1527_v6 = vsel %vm1495_vm9, %v1469_v4, %v1511_v9  ;;  %v1374_v58 = vadd.f32 %v1373_v52, %v1325_v32 }
 0x196   :  { %v1422_v13 = vpop.f32.mrf.mxu3  ;;  %v1575_v27 = vadd.f32 %v2357_v56, %v1527_v6  ;;  %v1326_v10 = vpop.f32.mrf.mxu1 }
 0x197   :  { %v1423_v15 = vadd.f32 %v1422_v13, %v1374_v58  ;;  %v1327_v23 = vadd.f32 %v1326_v10, %v3174_v59 }
 0x198   :  { %v2393_v21 = vpack.c.bf16 %v1575_v27, %v1574_v17  ;;  %v1473_v14 = vpop.f32.mrf.mxu0  ;;  %v2416_v17 = vld [vmem:[%s3278_s3 + $0x38] sm:$0xff]  }
 0x199   :  { %v1472_v22 = vadd.f32 %v1471_v1, %v1423_v15 }
 0x19a   :  { %2420 = vst [vmem:[%s3279_s4 + $0x20] sm:$0xff] %v2393_v21   ;;  %v2368_v21 = vunpack.c.l.bf16 %v2416_v17 }
 0x19b   :  { %v1512_v28 = vmul.f32 0.1, %v1472_v22  ;;  %vm1496_vm10 = vcmp.ge.f32.partialorder %v1472_v22, 0.0 }
 0x19c   :  { %v1375_v24 = vpop.f32.mrf.mxu2 }
 0x19d   :  { %v1376_v25 = vadd.f32 %v1375_v24, %v1327_v23  ;;  %v1528_v36 = vsel %vm1496_vm10, %v1472_v22, %v1512_v28 }
 0x19e   :  { %v1424_v41 = vpop.f32.mrf.mxu3  ;;  %v1329_v26 = vpop.f32.mrf.mxu1  ;;  %v1576_v16 = vadd.f32 %v2360_v33, %v1528_v36 }
 0x19f   :  { %v1425_v20 = vadd.f32 %v1424_v41, %v1376_v25  ;;  %v1330_v59 = vadd.f32 %v1329_v26, %v3183_v12 }
 0x1a0   :  { %v1476_v34 = vpop.f32.mrf.mxu0 }
 0x1a1   :  { %v1474_v30 = vadd.f32 %v1473_v14, %v1425_v20  ;;  %v2369_v14 = vunpack.c.h.bf16 %v2416_v17 }
 0x1a3   :  { %vm1497_vm11 = vcmp.ge.f32.partialorder %v1474_v30, 0.0  ;;  %v1513_v29 = vmul.f32 0.1, %v1474_v30 }
 0x1a4   :  { %v1378_v38 = vpop.f32.mrf.mxu2 }
 0x1a5   :  { %v1529_v54 = vsel %vm1497_vm11, %v1474_v30, %v1513_v29  ;;  %v1379_v19 = vadd.f32 %v1378_v38, %v1330_v59 }
 0x1a6   :  { %v1427_v40 = vpop.f32.mrf.mxu3  ;;  %v1577_v42 = vadd.f32 %v2361_v39, %v1529_v54  ;;  %v1331_v43 = vpop.f32.mrf.mxu1 }
 0x1a7   :  { %v1428_v61 = vadd.f32 %v1427_v40, %v1379_v19  ;;  %v1332_v18 = vadd.f32 %v1331_v43, %v3204_v37 }
 0x1a8   :  { %v2398_v44 = vpack.c.bf16 %v1577_v42, %v1576_v16  ;;  %v1478_v49 = vpop.f32.mrf.mxu0 }
 0x1a9   :  { %v1477_v45 = vadd.f32 %v1476_v34, %v1428_v61 }
 0x1aa   :  { %2421 = vst [vmem:[%s3279_s4 + $0x28] sm:$0xff] %v2398_v44  }
 0x1ab   :  { %v1514_v50 = vmul.f32 0.1, %v1477_v45  ;;  %vm1498_vm12 = vcmp.ge.f32.partialorder %v1477_v45, 0.0 }
 0x1ac   :  { %v1380_v46 = vpop.f32.mrf.mxu2 }
 0x1ad   :  { %v1381_v47 = vadd.f32 %v1380_v46, %v1332_v18  ;;  %v1530_v63 = vsel %vm1498_vm12, %v1477_v45, %v1514_v50 }
 0x1ae   :  { %v1429_v12 = vpop.f32.mrf.mxu3  ;;  %v1334_v48 = vpop.f32.mrf.mxu1  ;;  %v1578_v1 = vadd.f32 %v2364_v60, %v1530_v63 }
 0x1af   :  { %v1430_v55 = vadd.f32 %v1429_v12, %v1381_v47  ;;  %v1335_v37 = vadd.f32 %v1334_v48, %v3207_v31 }
 0x1b0   :  { %v1481_v5 = vpop.f32.mrf.mxu0 }
 0x1b1   :  { %v1479_v57 = vadd.f32 %v1478_v49, %v1430_v55 }
 0x1b3   :  { %vm1499_vm13 = vcmp.ge.f32.partialorder %v1479_v57, 0.0  ;;  %v1515_v7 = vmul.f32 0.1, %v1479_v57 }
 0x1b4   :  { %v1383_v35 = vpop.f32.mrf.mxu2 }
 0x1b5   :  { %v1531_v0 = vsel %vm1499_vm13, %v1479_v57, %v1515_v7  ;;  %v1384_v2 = vadd.f32 %v1383_v35, %v1335_v37 }
 0x1b6   :  { %v1432_v3 = vpop.f32.mrf.mxu3  ;;  %v1579_v4 = vadd.f32 %v2365_v62, %v1531_v0  ;;  %v1336_v9 = vpop.f32.mrf.mxu1 }
 0x1b7   :  { %v1433_v56 = vadd.f32 %v1432_v3, %v1384_v2  ;;  %v1337_v52 = vadd.f32 %v1336_v9, %v3209_v51 }
 0x1b8   :  { %v2403_v8 = vpack.c.bf16 %v1579_v4, %v1578_v1  ;;  %v1483_v10 = vpop.f32.mrf.mxu0 }
 0x1b9   :  { %v1482_v32 = vadd.f32 %v1481_v5, %v1433_v56 }
 0x1ba   :  { %2422 = vst [vmem:[%s3279_s4 + $0x30] sm:$0xff] %v2403_v8  }
 0x1bb   :  { %v1516_v13 = vmul.f32 0.1, %v1482_v32  ;;  %vm1500_vm14 = vcmp.ge.f32.partialorder %v1482_v32, 0.0 }
 0x1bc   :  { %v1385_v6 = vpop.f32.mrf.mxu2 }
 0x1bd   :  { %v1386_v58 = vadd.f32 %v1385_v6, %v1337_v52  ;;  %v1532_v22 = vsel %vm1500_vm14, %v1482_v32, %v1516_v13 }
 0x1be   :  { %v1434_v31 = vpop.f32.mrf.mxu3  ;;  %v1580_v25 = vadd.f32 %v2368_v21, %v1532_v22 }
 0x1bf   :  { %v1435_v27 = vadd.f32 %v1434_v31, %v1386_v58 }
 0x1c1   :  { %v1484_v15 = vadd.f32 %v1483_v10, %v1435_v27 }
 0x1c3   :  { %vm1501_vm15 = vcmp.ge.f32.partialorder %v1484_v15, 0.0  ;;  %v1517_v23 = vmul.f32 0.1, %v1484_v15 }
 0x1c5   :  { %v1533_v24 = vsel %vm1501_vm15, %v1484_v15, %v1517_v23 }
 0x1c6   :  { %v1581_v51 = vadd.f32 %v2369_v14, %v1533_v24 }
 0x1c8   :  { %v2408_v41 = vpack.c.bf16 %v1581_v51, %v1580_v25 }
 0x1ca   :  { %2423 = vst [vmem:[%s3279_s4 + $0x38] sm:$0xff] %v2408_v41  }

// kernel: encoder_fwd_nchw.20
= control target key start
LH: loop header
LB: loop body
LE: loop exit
PB: predicated region body
PF: predicated region fallthrough
CT: control target
= control target key end

     0   :  { %s3275_s1 = inlined_call_operand.vmem [shape: bf16[1152,128], index: 1, kind: input, shape index: {}]   ;;  %s3276_s2 = inlined_call_operand.vmem [shape: f32[1,128], index: 2, kind: input, shape index: {}]   ;;  %s3277_s0 = inlined_call_operand.vmem [shape: bf16[128,1152], index: 0, kind: input, shape index: {}]   ;;  %s3278_s3 = inlined_call_operand.vmem [shape: bf16[128,128], index: 3, kind: input, shape index: {}]   ;;  %s3279_s4 = inlined_call_operand.vmem [shape: bf16[128,128], index: 4, kind: output, shape index: {}]  }
   0x1   :  { %v2273_v0 = vld [vmem:[%s3275_s1 + $0x38] sm:$0xff]  ;;  %v2272_v1 = vld [vmem:[%s3275_s1 + $0x30] sm:$0xff]  ;;  %v2271_v2 = vld [vmem:[%s3275_s1 + $0x28] sm:$0xff] }
   0x2   :  { %2424 = vmatpush.bf16.msra.mxu1 %v2273_v0  ;;  %2425 = vmatpush.bf16.msra.mxu2 %v2273_v0  ;;  %v2270_v3 = vld [vmem:[%s3275_s1 + $0x20] sm:$0xff]  ;;  %v2269_v4 = vld [vmem:[%s3275_s1 + $0x18] sm:$0xff]  ;;  %v2268_v5 = vld [vmem:[%s3275_s1 + $0x10] sm:$0xff] }
   0x3   :  { %2426 = vmatpush.bf16.msra.mxu3 %v2273_v0  ;;  %1045 = vmatpush.bf16.msra.mxu0 %v2273_v0  ;;  %v2267_v6 = vld [vmem:[%s3275_s1 + $0x8] sm:$0xff]  ;;  %v2266_v7 = vld [vmem:[%s3275_s1] sm:$0xff]  ;;  %v1692_v8 = vld [vmem:[%s3277_s0 + $0x90] sm:$0xf] }
   0x4   :  { %v2216_v9 = vld [vmem:[%s3277_s0 + $0xb0] sm:$0xf0]  ;;  %v1764_v10 = vld [vmem:[%s3277_s0 + $0x120] sm:$0xf]  ;;  %v2234_v11 = vld [vmem:[%s3277_s0 + $0x140] sm:$0xf0] }
   0x5   :  { %v1836_v12 = vld [vmem:[%s3277_s0 + $0x1b0] sm:$0xf]  ;;  %v2252_v13 = vld [vmem:[%s3277_s0 + $0x1d0] sm:$0xf0]  ;;  %v1620_v14 = vld [vmem:[%s3277_s0] sm:$0xf]  ;;  %v1693_v18 = vor.u32 %v2216_v9, %v1692_v8  ;;  %v1765_v19 = vor.u32 %v2234_v11, %v1764_v10 }
   0x6   :  { %2427 = vmatpush.bf16.msra.mxu1 %v2272_v1  ;;  %2428 = vmatpush.bf16.msra.mxu2 %v2272_v1  ;;  %v2198_v15 = vld [vmem:[%s3277_s0 + $0x20] sm:$0xf0]  ;;  %v2289_v16 = vld [vmem:[%s3275_s1 + $0xb8] sm:$0xff]  ;;  %v1837_v20 = vor.u32 %v2252_v13, %v1836_v12  ;;  %v2288_v24 = vld [vmem:[%s3275_s1 + $0xb0] sm:$0xff] }
   0x7   :  { %2429 = vmatpush.bf16.msra.mxu3 %v2272_v1  ;;  %1046 = vmatpush.bf16.msra.mxu0 %v2272_v1  ;;  %v2281_v17 = vld [vmem:[%s3275_s1 + $0x78] sm:$0xff]  ;;  %v1621_v21 = vor.u32 %v2198_v15, %v1620_v14  ;;  %v2280_v25 = vld [vmem:[%s3275_s1 + $0x70] sm:$0xff]  ;;  %v2287_v28 = vld [vmem:[%s3275_s1 + $0xa8] sm:$0xff] }
   0x8   :  { %v2297_v22 = vld [vmem:[%s3275_s1 + $0xf8] sm:$0xff]  ;;  %v2296_v26 = vld [vmem:[%s3275_s1 + $0xf0] sm:$0xff]  ;;  %v2279_v29 = vld [vmem:[%s3275_s1 + $0x68] sm:$0xff] }
   0x9   :  { %v2305_v23 = vld [vmem:[%s3275_s1 + $0x138] sm:$0xff]  ;;  %v2304_v27 = vld [vmem:[%s3275_s1 + $0x130] sm:$0xff]  ;;  %v2295_v30 = vld [vmem:[%s3275_s1 + $0xe8] sm:$0xff] }
   0xa   :  { %2430 = vmatpush.bf16.msra.mxu1 %v2271_v2  ;;  %2431 = vmatpush.bf16.msra.mxu2 %v2271_v2  ;;  %v2303_v31 = vld [vmem:[%s3275_s1 + $0x128] sm:$0xff]  ;;  %v2286_v32 = vld [vmem:[%s3275_s1 + $0xa0] sm:$0xff]  ;;  %v1728_v36 = vld [vmem:[%s3277_s0 + $0xd8] sm:$0xf] }
   0xb   :  { %2432 = vmatpush.bf16.msra.mxu3 %v2271_v2  ;;  %1047 = vmatpush.bf16.msra.mxu0 %v2271_v2  ;;  %v2278_v33 = vld [vmem:[%s3275_s1 + $0x60] sm:$0xff]  ;;  %v2225_v37 = vld [vmem:[%s3277_s0 + $0xf8] sm:$0xf0]  ;;  %v1800_v38 = vld [vmem:[%s3277_s0 + $0x168] sm:$0xf] }
   0xc   :  { %v2294_v34 = vld [vmem:[%s3275_s1 + $0xe0] sm:$0xff]  ;;  %v2243_v39 = vld [vmem:[%s3277_s0 + $0x188] sm:$0xf0]  ;;  %v1872_v40 = vld [vmem:[%s3277_s0 + $0x1f8] sm:$0xf]  ;;  %v1729_v46 = vor.u32 %v2225_v37, %v1728_v36 }
   0xd   :  { %v2302_v35 = vld [vmem:[%s3275_s1 + $0x120] sm:$0xff]  ;;  %v2261_v41 = vld [vmem:[%s3277_s0 + $0x218] sm:$0xf0]  ;;  %v1656_v42 = vld [vmem:[%s3277_s0 + $0x48] sm:$0xf]  ;;  %v1801_v47 = vor.u32 %v2243_v39, %v1800_v38 }
   0xe   :  { %2433 = vmatpush.bf16.msra.mxu1 %v2270_v3  ;;  %2434 = vmatpush.bf16.msra.mxu2 %v2270_v3  ;;  %v2207_v43 = vld [vmem:[%s3277_s0 + $0x68] sm:$0xf0]  ;;  %v2285_v44 = vld [vmem:[%s3275_s1 + $0x98] sm:$0xff]  ;;  %v1873_v48 = vor.u32 %v2261_v41, %v1872_v40  ;;  %v2284_v52 = vld [vmem:[%s3275_s1 + $0x90] sm:$0xff] }
   0xf   :  { %2435 = vmatpush.bf16.msra.mxu3 %v2270_v3  ;;  %1048 = vmatpush.bf16.msra.mxu0 %v2270_v3  ;;  %v2277_v45 = vld [vmem:[%s3275_s1 + $0x58] sm:$0xff]  ;;  %v1657_v49 = vor.u32 %v2207_v43, %v1656_v42  ;;  %v2276_v53 = vld [vmem:[%s3275_s1 + $0x50] sm:$0xff]  ;;  %v2283_v56 = vld [vmem:[%s3275_s1 + $0x88] sm:$0xff] }
  0x10   :  { %v2293_v50 = vld [vmem:[%s3275_s1 + $0xd8] sm:$0xff]  ;;  %v2292_v54 = vld [vmem:[%s3275_s1 + $0xd0] sm:$0xff]  ;;  %v2275_v57 = vld [vmem:[%s3275_s1 + $0x48] sm:$0xff] }
  0x11   :  { %v2301_v51 = vld [vmem:[%s3275_s1 + $0x118] sm:$0xff]  ;;  %v2300_v55 = vld [vmem:[%s3275_s1 + $0x110] sm:$0xff]  ;;  %v2291_v58 = vld [vmem:[%s3275_s1 + $0xc8] sm:$0xff] }
  0x12   :  { %2436 = vmatpush.bf16.msra.mxu1 %v2269_v4  ;;  %2437 = vmatpush.bf16.msra.mxu2 %v2269_v4  ;;  %v2299_v59 = vld [vmem:[%s3275_s1 + $0x108] sm:$0xff]  ;;  %v2282_v60 = vld [vmem:[%s3275_s1 + $0x80] sm:$0xff]  ;;  %v2321_v2 = vld [vmem:[%s3275_s1 + $0x1b8] sm:$0xff] }
  0x13   :  { %2438 = vmatpush.bf16.msra.mxu3 %v2269_v4  ;;  %1049 = vmatpush.bf16.msra.mxu0 %v2269_v4  ;;  %v2274_v61 = vld [vmem:[%s3275_s1 + $0x40] sm:$0xff]  ;;  %v1622_v1 = vld [vmem:[%s3277_s0 + $0x24] sm:$0xf0]  ;;  %v2313_v3 = vld [vmem:[%s3275_s1 + $0x178] sm:$0xff] }
  0x14   :  { %v2194_v62 = vld [vmem:[%s3277_s0 + $0x4] sm:$0xf]  ;;  %v1628_v4 = vld [vmem:[%s3277_s0 + $0x8] sm:$0xf]  ;;  %v1636_v8 = vld [vmem:[%s3277_s0 + $0x10] sm:$0xf] }
  0x15   :  { %v2290_v63 = vld [vmem:[%s3275_s1 + $0xc0] sm:$0xff]  ;;  %v2200_v9 = vld [vmem:[%s3277_s0 + $0x30] sm:$0xf0]  ;;  %v2329_v10 = vld [vmem:[%s3275_s1 + $0x1f8] sm:$0xff]  ;;  %v1625_v12 = vor.u32 %v2194_v62, %v1622_v1 }
  0x16   :  { %2439 = vmatpush.bf16.msra.mxu1 %v2268_v5  ;;  %2440 = vmatpush.bf16.msra.mxu2 %v2268_v5  ;;  %v2298_v0 = vld [vmem:[%s3275_s1 + $0x100] sm:$0xff]  ;;  %v2337_v11 = vld [vmem:[%s3275_s1 + $0x238] sm:$0xff]  ;;  %v1637_v15 = vor.u32 %v2200_v9, %v1636_v8  ;;  %v2212_v40 = vld [vmem:[%s3277_s0 + $0x94] sm:$0xf] }
  0x17   :  { %2441 = vmatpush.bf16.msra.mxu3 %v2268_v5  ;;  %1050 = vmatpush.bf16.msra.mxu0 %v2268_v5  ;;  %v2199_v5 = vld [vmem:[%s3277_s0 + $0x28] sm:$0xf0]  ;;  %v2318_v36 = vld [vmem:[%s3275_s1 + $0x1a0] sm:$0xff]  ;;  %v1694_v41 = vld [vmem:[%s3277_s0 + $0xb4] sm:$0xf0] }
  0x18   :  { %v1629_v13 = vor.u32 %v2199_v5, %v1628_v4  ;;  %v2326_v37 = vld [vmem:[%s3275_s1 + $0x1e0] sm:$0xff]  ;;  %v1700_v42 = vld [vmem:[%s3277_s0 + $0x98] sm:$0xf]  ;;  %v2217_v43 = vld [vmem:[%s3277_s0 + $0xb8] sm:$0xf0] }
  0x19   :  { %v2310_v38 = vld [vmem:[%s3275_s1 + $0x160] sm:$0xff]  ;;  %v1744_v62 = vld [vmem:[%s3277_s0 + $0xe8] sm:$0xf]  ;;  %v2316_v4 = vld [vmem:[%s3275_s1 + $0x190] sm:$0xff] }
  0x1a   :  { %2442 = vmatpush.bf16.msra.mxu1 %v2267_v6  ;;  %2443 = vmatpush.bf16.msra.mxu2 %v2267_v6  ;;  %v2334_v39 = vld [vmem:[%s3275_s1 + $0x220] sm:$0xff]  ;;  %v2324_v5 = vld [vmem:[%s3275_s1 + $0x1d0] sm:$0xff]  ;;  %v1766_v9 = vld [vmem:[%s3277_s0 + $0x144] sm:$0xf0] }
  0x1b   :  { %2444 = vmatpush.bf16.msra.mxu3 %v2267_v6  ;;  %1051 = vmatpush.bf16.msra.mxu0 %v2267_v6  ;;  %v2195_v6 = vld [vmem:[%s3277_s0 + $0xc] sm:$0xf]  ;;  %v2230_v8 = vld [vmem:[%s3277_s0 + $0x124] sm:$0xf] }
  0x1e   :  { %2445 = vmatpush.bf16.msra.mxu1 %v2266_v7  ;;  %2446 = vmatpush.bf16.msra.mxu2 %v2266_v7 }
  0x1f   :  { %2447 = vmatpush.bf16.msra.mxu3 %v2266_v7  ;;  %1052 = vmatpush.bf16.msra.mxu0 %v2266_v7  ;;  %v1630_v7 = vld [vmem:[%s3277_s0 + $0x2c] sm:$0xf0] }
  0x20   :  { %v1633_v14 = vor.u32 %v2195_v6, %v1630_v7  ;;  %v2308_v6 = vld [vmem:[%s3275_s1 + $0x150] sm:$0xff] }
  0x21   :  { %1063 = vmatmul.bf16.vlgmr.msra.gmra.mxu1 %v1693_v18  ;;  %1073 = vmatmul.bf16.vlgmr.msra.gmra.mxu2 %v1765_v19  ;;  %v2328_v18 = vld [vmem:[%s3275_s1 + $0x1f0] sm:$0xff] }
  0x22   :  { %1143 = vmatpush.bf16.msrb.mxu2 %v2289_v16  ;;  %1094 = vmatpush.bf16.msrb.mxu1 %v2281_v17  ;;  %v2320_v16 = vld [vmem:[%s3275_s1 + $0x1b0] sm:$0xff] }
  0x23   :  { %1083 = vmatmul.bf16.vlgmr.msra.gmra.mxu3 %v1837_v20  ;;  %1053 = vmatmul.bf16.vlgmr.msra.gmra.mxu0 %v1621_v21  ;;  %v2312_v17 = vld [vmem:[%s3275_s1 + $0x170] sm:$0xff]  ;;  %v2319_v20 = vld [vmem:[%s3275_s1 + $0x1a8] sm:$0xff] }
  0x24   :  { %1192 = vmatpush.bf16.msrb.mxu3 %v2297_v22  ;;  %1241 = vmatpush.bf16.msrb.mxu0 %v2305_v23  ;;  %v2336_v19 = vld [vmem:[%s3275_s1 + $0x230] sm:$0xff]  ;;  %v2311_v21 = vld [vmem:[%s3275_s1 + $0x168] sm:$0xff] }
  0x25   :  { %v2327_v22 = vld [vmem:[%s3275_s1 + $0x1e8] sm:$0xff]  ;;  %v2332_v7 = vld [vmem:[%s3275_s1 + $0x210] sm:$0xff] }
  0x26   :  { %1144 = vmatpush.bf16.msrb.mxu2 %v2288_v24  ;;  %1095 = vmatpush.bf16.msrb.mxu1 %v2280_v25  ;;  %v2335_v23 = vld [vmem:[%s3275_s1 + $0x228] sm:$0xff]  ;;  %v1658_v25 = vld [vmem:[%s3277_s0 + $0x6c] sm:$0xf0] }
  0x27   :  { %v2203_v24 = vld [vmem:[%s3277_s0 + $0x4c] sm:$0xf] }
  0x28   :  { %1193 = vmatpush.bf16.msrb.mxu3 %v2296_v26  ;;  %1242 = vmatpush.bf16.msrb.mxu0 %v2304_v27  ;;  %v1664_v26 = vld [vmem:[%s3277_s0 + $0x50] sm:$0xf]  ;;  %v2208_v27 = vld [vmem:[%s3277_s0 + $0x70] sm:$0xf0] }
  0x2a   :  { %1145 = vmatpush.bf16.msrb.mxu2 %v2287_v28  ;;  %1096 = vmatpush.bf16.msrb.mxu1 %v2279_v29  ;;  %v2204_v28 = vld [vmem:[%s3277_s0 + $0x54] sm:$0xf]  ;;  %v1666_v29 = vld [vmem:[%s3277_s0 + $0x74] sm:$0xf0] }
  0x2c   :  { %1194 = vmatpush.bf16.msrb.mxu3 %v2295_v30  ;;  %1243 = vmatpush.bf16.msrb.mxu0 %v2303_v31  ;;  %v1672_v30 = vld [vmem:[%s3277_s0 + $0x58] sm:$0xf]  ;;  %v2209_v31 = vld [vmem:[%s3277_s0 + $0x78] sm:$0xf0] }
  0x2e   :  { %1146 = vmatpush.bf16.msrb.mxu2 %v2286_v32  ;;  %1097 = vmatpush.bf16.msrb.mxu1 %v2278_v33  ;;  %v1661_v32 = vor.u32 %v2203_v24, %v1658_v25  ;;  %v1665_v33 = vor.u32 %v2208_v27, %v1664_v26  ;;  %v2239_v24 = vld [vmem:[%s3277_s0 + $0x16c] sm:$0xf]  ;;  %v1802_v25 = vld [vmem:[%s3277_s0 + $0x18c] sm:$0xf0]  ;;  %v2244_v27 = vld [vmem:[%s3277_s0 + $0x190] sm:$0xf0] }
  0x2f   :  { %v1808_v26 = vld [vmem:[%s3277_s0 + $0x170] sm:$0xf] }
  0x30   :  { %1195 = vmatpush.bf16.msrb.mxu3 %v2294_v34  ;;  %1244 = vmatpush.bf16.msrb.mxu0 %v2302_v35  ;;  %v1669_v34 = vor.u32 %v2204_v28, %v1666_v29  ;;  %v1673_v35 = vor.u32 %v2209_v31, %v1672_v30  ;;  %v2240_v28 = vld [vmem:[%s3277_s0 + $0x174] sm:$0xf]  ;;  %v1810_v29 = vld [vmem:[%s3277_s0 + $0x194] sm:$0xf0]  ;;  %v2245_v31 = vld [vmem:[%s3277_s0 + $0x198] sm:$0xf0] }
  0x31   :  { %1068 = vmatmul.bf16.gmra.mxu1 %v1729_v46  ;;  %1078 = vmatmul.bf16.gmra.mxu2 %v1801_v47  ;;  %v1708_v46 = vld [vmem:[%s3277_s0 + $0xa0] sm:$0xf]  ;;  %v2218_v47 = vld [vmem:[%s3277_s0 + $0xc0] sm:$0xf0]  ;;  %v1816_v30 = vld [vmem:[%s3277_s0 + $0x178] sm:$0xf] }
  0x32   :  { %1147 = vmatpush.bf16.msrb.mxu2 %v2285_v44  ;;  %1098 = vmatpush.bf16.msrb.mxu1 %v2277_v45  ;;  %v2213_v44 = vld [vmem:[%s3277_s0 + $0x9c] sm:$0xf]  ;;  %v1702_v45 = vld [vmem:[%s3277_s0 + $0xbc] sm:$0xf0] }
  0x33   :  { %1088 = vmatmul.bf16.gmra.mxu3 %v1873_v48  ;;  %1058 = vmatmul.bf16.gmra.mxu0 %v1657_v49  ;;  %v1697_v48 = vor.u32 %v2212_v40, %v1694_v41  ;;  %v1701_v49 = vor.u32 %v2217_v43, %v1700_v42  ;;  %v2248_v40 = vld [vmem:[%s3277_s0 + $0x1b4] sm:$0xf]  ;;  %v1838_v41 = vld [vmem:[%s3277_s0 + $0x1d4] sm:$0xf0]  ;;  %v2253_v43 = vld [vmem:[%s3277_s0 + $0x1d8] sm:$0xf0] }
  0x34   :  { %1196 = vmatpush.bf16.msrb.mxu3 %v2293_v50  ;;  %1245 = vmatpush.bf16.msrb.mxu0 %v2301_v51  ;;  %v1705_v50 = vor.u32 %v2213_v44, %v1702_v45  ;;  %v1709_v51 = vor.u32 %v2218_v47, %v1708_v46  ;;  %v1844_v42 = vld [vmem:[%s3277_s0 + $0x1b8] sm:$0xf]  ;;  %v2249_v44 = vld [vmem:[%s3277_s0 + $0x1bc] sm:$0xf]  ;;  %v1846_v45 = vld [vmem:[%s3277_s0 + $0x1dc] sm:$0xf0] }
  0x35   :  { %v1852_v46 = vld [vmem:[%s3277_s0 + $0x1c0] sm:$0xf]  ;;  %v2254_v47 = vld [vmem:[%s3277_s0 + $0x1e0] sm:$0xf0] }
  0x36   :  { %1148 = vmatpush.bf16.msrb.mxu2 %v2284_v52  ;;  %1099 = vmatpush.bf16.msrb.mxu1 %v2276_v53  ;;  %v2317_v52 = vld [vmem:[%s3275_s1 + $0x198] sm:$0xff] }
  0x37   :  { %v2325_v53 = vld [vmem:[%s3275_s1 + $0x1d8] sm:$0xff] }
  0x38   :  { %1197 = vmatpush.bf16.msrb.mxu3 %v2292_v54  ;;  %1246 = vmatpush.bf16.msrb.mxu0 %v2300_v55  ;;  %v2309_v54 = vld [vmem:[%s3275_s1 + $0x158] sm:$0xff] }
  0x39   :  { %v2333_v55 = vld [vmem:[%s3275_s1 + $0x218] sm:$0xff] }
  0x3a   :  { %1149 = vmatpush.bf16.msrb.mxu2 %v2283_v56  ;;  %1100 = vmatpush.bf16.msrb.mxu1 %v2275_v57  ;;  %v2221_v56 = vld [vmem:[%s3277_s0 + $0xdc] sm:$0xf]  ;;  %v1730_v57 = vld [vmem:[%s3277_s0 + $0xfc] sm:$0xf0] }
  0x3c   :  { %1198 = vmatpush.bf16.msrb.mxu3 %v2291_v58  ;;  %1247 = vmatpush.bf16.msrb.mxu0 %v2299_v59  ;;  %v1736_v58 = vld [vmem:[%s3277_s0 + $0xe0] sm:$0xf]  ;;  %v2226_v59 = vld [vmem:[%s3277_s0 + $0x100] sm:$0xf0] }
  0x3d   :  { %v1737_v1 = vor.u32 %v2226_v59, %v1736_v58 }
  0x3e   :  { %1150 = vmatpush.bf16.msrb.mxu2 %v2282_v60  ;;  %1101 = vmatpush.bf16.msrb.mxu1 %v2274_v61  ;;  %v2222_v60 = vld [vmem:[%s3277_s0 + $0xe4] sm:$0xf]  ;;  %v1738_v61 = vld [vmem:[%s3277_s0 + $0x104] sm:$0xf0] }
  0x40   :  { %1199 = vmatpush.bf16.msrb.mxu3 %v2290_v63  ;;  %1248 = vmatpush.bf16.msrb.mxu0 %v2298_v0  ;;  %v2227_v63 = vld [vmem:[%s3277_s0 + $0x108] sm:$0xf0]  ;;  %v1733_v0 = vor.u32 %v2221_v56, %v1730_v57 }
  0x41   :  { %1102 = vmatmul.bf16.vlgmr.msrb.gmra.mxu1 %v1625_v12  ;;  %1151 = vmatmul.bf16.vlgmr.msrb.gmra.mxu2 %v1629_v13  ;;  %v2231_v12 = vld [vmem:[%s3277_s0 + $0x12c] sm:$0xf]  ;;  %v1774_v13 = vld [vmem:[%s3277_s0 + $0x14c] sm:$0xf0] }
  0x42   :  { %1339 = vmatpush.bf16.msra.mxu2 %v2321_v2  ;;  %1290 = vmatpush.bf16.msra.mxu1 %v2313_v3  ;;  %v1741_v2 = vor.u32 %v2222_v60, %v1738_v61  ;;  %v1745_v3 = vor.u32 %v2227_v63, %v1744_v62  ;;  %v2257_v61 = vld [vmem:[%s3277_s0 + $0x1fc] sm:$0xf]  ;;  %v1874_v62 = vld [vmem:[%s3277_s0 + $0x21c] sm:$0xf0] }
  0x43   :  { %1200 = vmatmul.bf16.vlgmr.msrb.gmra.mxu3 %v1633_v14  ;;  %1249 = vmatmul.bf16.vlgmr.msrb.gmra.mxu0 %v1637_v15  ;;  %v1780_v14 = vld [vmem:[%s3277_s0 + $0x130] sm:$0xf]  ;;  %v2236_v15 = vld [vmem:[%s3277_s0 + $0x150] sm:$0xf0]  ;;  %v1880_v63 = vld [vmem:[%s3277_s0 + $0x200] sm:$0xf] }
  0x44   :  { %1388 = vmatpush.bf16.msra.mxu3 %v2329_v10  ;;  %1437 = vmatpush.bf16.msra.mxu0 %v2337_v11  ;;  %v1772_v10 = vld [vmem:[%s3277_s0 + $0x128] sm:$0xf]  ;;  %v2235_v11 = vld [vmem:[%s3277_s0 + $0x148] sm:$0xf0] }
  0x46   :  { %1340 = vmatpush.bf16.msra.mxu2 %v2320_v16  ;;  %1291 = vmatpush.bf16.msra.mxu1 %v2312_v17  ;;  %v1769_v16 = vor.u32 %v2230_v8, %v1766_v9  ;;  %v1773_v17 = vor.u32 %v2235_v11, %v1772_v10  ;;  %v1877_v8 = vor.u32 %v2257_v61, %v1874_v62  ;;  %v1688_v61 = vld [vmem:[%s3277_s0 + $0x68] sm:$0xf]  ;;  %v2211_v62 = vld [vmem:[%s3277_s0 + $0x88] sm:$0xf0] }
  0x48   :  { %1389 = vmatpush.bf16.msra.mxu3 %v2328_v18  ;;  %1438 = vmatpush.bf16.msra.mxu0 %v2336_v19  ;;  %v1777_v18 = vor.u32 %v2231_v12, %v1774_v13  ;;  %v1781_v19 = vor.u32 %v2236_v15, %v1780_v14 }
  0x4a   :  { %1341 = vmatpush.bf16.msra.mxu2 %v2319_v20  ;;  %1292 = vmatpush.bf16.msra.mxu1 %v2311_v21  ;;  %v2315_v20 = vld [vmem:[%s3275_s1 + $0x188] sm:$0xff] }
  0x4b   :  { %v2323_v21 = vld [vmem:[%s3275_s1 + $0x1c8] sm:$0xff] }
  0x4c   :  { %1390 = vmatpush.bf16.msra.mxu3 %v2327_v22  ;;  %1439 = vmatpush.bf16.msra.mxu0 %v2335_v23  ;;  %v2307_v22 = vld [vmem:[%s3275_s1 + $0x148] sm:$0xff] }
  0x4d   :  { %v2331_v23 = vld [vmem:[%s3275_s1 + $0x208] sm:$0xff] }
  0x4e   :  { %1342 = vmatpush.bf16.msra.mxu2 %v2318_v36  ;;  %1293 = vmatpush.bf16.msra.mxu1 %v2310_v38  ;;  %v2314_v36 = vld [vmem:[%s3275_s1 + $0x180] sm:$0xff] }
  0x4f   :  { %v2306_v38 = vld [vmem:[%s3275_s1 + $0x140] sm:$0xff] }
  0x50   :  { %1391 = vmatpush.bf16.msra.mxu3 %v2326_v37  ;;  %1440 = vmatpush.bf16.msra.mxu0 %v2334_v39  ;;  %v2322_v37 = vld [vmem:[%s3275_s1 + $0x1c0] sm:$0xff] }
  0x51   :  { %1107 = vmatmul.bf16.gmra.mxu1 %v1661_v32  ;;  %1156 = vmatmul.bf16.gmra.mxu2 %v1665_v33  ;;  %v1805_v32 = vor.u32 %v2239_v24, %v1802_v25  ;;  %v1809_v33 = vor.u32 %v2244_v27, %v1808_v26  ;;  %v2330_v39 = vld [vmem:[%s3275_s1 + $0x200] sm:$0xff]  ;;  %v2201_v24 = vld [vmem:[%s3277_s0 + $0x38] sm:$0xf0] }
  0x52   :  { %1343 = vmatpush.bf16.msra.mxu2 %v2317_v52  ;;  %1294 = vmatpush.bf16.msra.mxu1 %v2309_v54  ;;  %v1853_v52 = vor.u32 %v2254_v47, %v1852_v46  ;;  %v2911_v54 = vld [vmem:[%s3276_s2] ss:$0 sm:$0xff]  ;;  %v2197_v25 = vld [vmem:[%s3277_s0 + $0x1c] sm:$0xf] }
  0x53   :  { %1205 = vmatmul.bf16.gmra.mxu3 %v1669_v34  ;;  %1254 = vmatmul.bf16.gmra.mxu0 %v1673_v35  ;;  %v1813_v34 = vor.u32 %v2240_v28, %v1810_v29  ;;  %v1817_v35 = vor.u32 %v2245_v31, %v1816_v30  ;;  %v1646_v26 = vld [vmem:[%s3277_s0 + $0x3c] sm:$0xf0]  ;;  %v2202_v28 = vld [vmem:[%s3277_s0 + $0x40] sm:$0xf0] }
  0x54   :  { %1392 = vmatpush.bf16.msra.mxu3 %v2325_v53  ;;  %1441 = vmatpush.bf16.msra.mxu0 %v2333_v55  ;;  %v1652_v27 = vld [vmem:[%s3277_s0 + $0x20] sm:$0xf] }
  0x56   :  { %1344 = vmatpush.bf16.msra.mxu2 %v2316_v4  ;;  %1295 = vmatpush.bf16.msra.mxu1 %v2308_v6  ;;  %v2263_v4 = vld [vmem:[%s3277_s0 + $0x228] sm:$0xf0] }
  0x58   :  { %1393 = vmatpush.bf16.msra.mxu3 %v2324_v5  ;;  %1442 = vmatpush.bf16.msra.mxu0 %v2332_v7 }
  0x5a   :  { %1345 = vmatpush.bf16.msra.mxu2 %v2315_v20  ;;  %1296 = vmatpush.bf16.msra.mxu1 %v2307_v22  ;;  %v1638_v22 = vld [vmem:[%s3277_s0 + $0x34] sm:$0xf0] }
  0x5c   :  { %1394 = vmatpush.bf16.msra.mxu3 %v2323_v21  ;;  %1443 = vmatpush.bf16.msra.mxu0 %v2331_v23  ;;  %v2196_v21 = vld [vmem:[%s3277_s0 + $0x14] sm:$0xf]  ;;  %v1644_v23 = vld [vmem:[%s3277_s0 + $0x18] sm:$0xf] }
  0x5e   :  { %1346 = vmatpush.bf16.msra.mxu2 %v2314_v36  ;;  %1297 = vmatpush.bf16.msra.mxu1 %v2306_v38  ;;  %v1653_v38 = vor.u32 %v2202_v28, %v1652_v27  ;;  %v2214_v27 = vld [vmem:[%s3277_s0 + $0xa4] sm:$0xf]  ;;  %v1710_v28 = vld [vmem:[%s3277_s0 + $0xc4] sm:$0xf0] }
  0x60   :  { %1395 = vmatpush.bf16.msra.mxu3 %v2322_v37  ;;  %1444 = vmatpush.bf16.msra.mxu0 %v2330_v39  ;;  %v1649_v37 = vor.u32 %v2197_v25, %v1646_v26 }
  0x61   :  { %1112 = vmatmul.bf16.gmra.mxu1 %v1697_v48  ;;  %1161 = vmatmul.bf16.gmra.mxu2 %v1701_v49  ;;  %v1841_v48 = vor.u32 %v2248_v40, %v1838_v41  ;;  %v1845_v49 = vor.u32 %v2253_v43, %v1844_v42 }
  0x63   :  { %1210 = vmatmul.bf16.gmra.mxu3 %v1705_v50  ;;  %1259 = vmatmul.bf16.gmra.mxu0 %v1709_v51  ;;  %v1849_v51 = vor.u32 %v2249_v44, %v1846_v45 }
  0x71   :  { %1117 = vmatmul.bf16.gmra.mxu1 %v1733_v0  ;;  %1166 = vmatmul.bf16.gmra.mxu2 %v1737_v1  ;;  %v2262_v0 = vld [vmem:[%s3277_s0 + $0x220] sm:$0xf0] }
  0x72   :  { %v2258_v1 = vld [vmem:[%s3277_s0 + $0x204] sm:$0xf]  ;;  %v1881_v9 = vor.u32 %v2262_v0, %v1880_v63 }
  0x73   :  { %1215 = vmatmul.bf16.gmra.mxu3 %v1741_v2  ;;  %1264 = vmatmul.bf16.gmra.mxu0 %v1745_v3  ;;  %v1882_v2 = vld [vmem:[%s3277_s0 + $0x224] sm:$0xf0] }
  0x74   :  { %v1888_v3 = vld [vmem:[%s3277_s0 + $0x208] sm:$0xf]  ;;  %v1885_v12 = vor.u32 %v2258_v1, %v1882_v2 }
  0x75   :  { %v1889_v13 = vor.u32 %v2263_v4, %v1888_v3 }
  0x81   :  { %1122 = vmatmul.bf16.gmra.mxu1 %v1769_v16  ;;  %1171 = vmatmul.bf16.gmra.mxu2 %v1773_v17 }
  0x83   :  { %1220 = vmatmul.bf16.gmra.mxu3 %v1777_v18  ;;  %1269 = vmatmul.bf16.gmra.mxu0 %v1781_v19 }
  0x91   :  { %1127 = vmatmul.bf16.gmra.mxu1 %v1805_v32  ;;  %1176 = vmatmul.bf16.gmra.mxu2 %v1809_v33  ;;  %v1641_v33 = vor.u32 %v2196_v21, %v1638_v22 }
  0x93   :  { %1225 = vmatmul.bf16.gmra.mxu3 %v1813_v34  ;;  %1274 = vmatmul.bf16.gmra.mxu0 %v1817_v35  ;;  %v1645_v34 = vor.u32 %v2201_v24, %v1644_v23 }
  0x9e   :  { %v2906_v50 = vpop.f32.mrf.mxu1 }
  0xa0   :  { %v1054_v53 = vpop.f32.mrf.mxu0 }
  0xa1   :  { %1132 = vmatmul.bf16.gmra.mxu1 %v1841_v48  ;;  %1181 = vmatmul.bf16.gmra.mxu2 %v1845_v49  ;;  %v1055_v30 = vadd.f32 %v2911_v54, %v1054_v53  ;;  %v2205_v49 = vld [vmem:[%s3277_s0 + $0x5c] sm:$0xf]  ;;  %v1680_v53 = vld [vmem:[%s3277_s0 + $0x60] sm:$0xf] }
  0xa3   :  { %1230 = vmatmul.bf16.gmra.mxu3 %v1849_v51  ;;  %1279 = vmatmul.bf16.gmra.mxu0 %v1853_v52  ;;  %v1674_v51 = vld [vmem:[%s3277_s0 + $0x7c] sm:$0xf0] }
  0xa4   :  { %v1074_v55 = vpop.f32.mrf.mxu2  ;;  %v1677_v3 = vor.u32 %v2205_v49, %v1674_v51 }
  0xa5   :  { %v2914_v56 = vadd.f32 %v2911_v54, %v1074_v55  ;;  %v2210_v55 = vld [vmem:[%s3277_s0 + $0x80] sm:$0xf0] }
  0xa6   :  { %v1084_v57 = vpop.f32.mrf.mxu3  ;;  %v2919_v59 = vpop.f32.mrf.mxu1  ;;  %v1681_v4 = vor.u32 %v2210_v55, %v1680_v53 }
  0xa7   :  { %v2917_v58 = vadd.f32 %v2911_v54, %v1084_v57  ;;  %v2206_v57 = vld [vmem:[%s3277_s0 + $0x64] sm:$0xf] }
  0xa8   :  { %v1056_v60 = vpop.f32.mrf.mxu0 }
  0xa9   :  { %v1057_v42 = vadd.f32 %v2911_v54, %v1056_v60  ;;  %v1682_v60 = vld [vmem:[%s3277_s0 + $0x84] sm:$0xf0] }
  0xac   :  { %v1076_v5 = vpop.f32.mrf.mxu2 }
  0xad   :  { %v2946_v6 = vadd.f32 %v2911_v54, %v1076_v5 }
  0xae   :  { %v1086_v7 = vpop.f32.mrf.mxu3  ;;  %v2951_v11 = vpop.f32.mrf.mxu1 }
  0xaf   :  { %v2949_v10 = vadd.f32 %v2911_v54, %v1086_v7  ;;  %v1685_v7 = vor.u32 %v2206_v57, %v1682_v60 }
  0xb0   :  { %v1059_v14 = vpop.f32.mrf.mxu0 }
  0xb1   :  { %1137 = vmatmul.bf16.gmra.mxu1 %v1877_v8  ;;  %1186 = vmatmul.bf16.gmra.mxu2 %v1881_v9  ;;  %v1060_v0 = vadd.f32 %v2911_v54, %v1059_v14  ;;  %v1689_v8 = vor.u32 %v2211_v62, %v1688_v61 }
  0xb3   :  { %1235 = vmatmul.bf16.gmra.mxu3 %v1885_v12  ;;  %1284 = vmatmul.bf16.gmra.mxu0 %v1889_v13 }
  0xb4   :  { %v1079_v15 = vpop.f32.mrf.mxu2 }
  0xb5   :  { %v2954_v16 = vadd.f32 %v2911_v54, %v1079_v15 }
  0xb6   :  { %v1089_v17 = vpop.f32.mrf.mxu3  ;;  %v2959_v19 = vpop.f32.mrf.mxu1 }
  0xb7   :  { %v2957_v18 = vadd.f32 %v2911_v54, %v1089_v17 }
  0xb8   :  { %v1061_v20 = vpop.f32.mrf.mxu0 }
  0xb9   :  { %v1062_v21 = vadd.f32 %v2911_v54, %v1061_v20  ;;  %v1716_v20 = vld [vmem:[%s3277_s0 + $0xa8] sm:$0xf] }
  0xbc   :  { %v1081_v29 = vpop.f32.mrf.mxu2 }
  0xbd   :  { %v2987_v31 = vadd.f32 %v2911_v54, %v1081_v29 }
  0xbe   :  { %v1091_v32 = vpop.f32.mrf.mxu3  ;;  %v1103_v36 = vpop.f32.mrf.mxu1 }
  0xbf   :  { %v2990_v35 = vadd.f32 %v2911_v54, %v1091_v32  ;;  %v1104_v39 = vadd.f32 %v1103_v36, %v1055_v30  ;;  %v2219_v30 = vld [vmem:[%s3277_s0 + $0xc8] sm:$0xf0]  ;;  %v2220_v36 = vld [vmem:[%s3277_s0 + $0xd0] sm:$0xf0] }
  0xc0   :  { %v1250_v40 = vpop.f32.mrf.mxu0  ;;  %v2215_v32 = vld [vmem:[%s3277_s0 + $0xac] sm:$0xf] }
  0xc1   :  { %1298 = vmatmul.bf16.vlgmr.msra.gmra.mxu1 %v1641_v33  ;;  %1347 = vmatmul.bf16.vlgmr.msra.gmra.mxu2 %v1645_v34  ;;  %v1718_v33 = vld [vmem:[%s3277_s0 + $0xcc] sm:$0xf0] }
  0xc2   :  { %v1724_v34 = vld [vmem:[%s3277_s0 + $0xb0] sm:$0xf] }
  0xc3   :  { %1396 = vmatmul.bf16.vlgmr.msra.gmra.mxu3 %v1649_v37  ;;  %1445 = vmatmul.bf16.vlgmr.msra.gmra.mxu0 %v1653_v38  ;;  %v1065_v38 = vadd.f32 %v2911_v54, %v2906_v50  ;;  %v1067_v50 = vadd.f32 %v2911_v54, %v2919_v59  ;;  %v1752_v59 = vld [vmem:[%s3277_s0 + $0xf0] sm:$0xf] }
  0xc4   :  { %v1152_v41 = vpop.f32.mrf.mxu2 }
  0xc5   :  { %v1153_v43 = vadd.f32 %v1152_v41, %v1104_v39  ;;  %v1713_v41 = vor.u32 %v2214_v27, %v1710_v28 }
  0xc6   :  { %v1201_v44 = vpop.f32.mrf.mxu3  ;;  %v1105_v45 = vpop.f32.mrf.mxu1 }
  0xc7   :  { %v1202_v46 = vadd.f32 %v1201_v44, %v1153_v43  ;;  %v1106_v47 = vadd.f32 %v1105_v45, %v1057_v42  ;;  %v1717_v42 = vor.u32 %v2219_v30, %v1716_v20  ;;  %v1721_v44 = vor.u32 %v2215_v32, %v1718_v33 }
  0xc8   :  { %v1252_v48 = vpop.f32.mrf.mxu0  ;;  %v1725_v45 = vor.u32 %v2220_v36, %v1724_v34 }
  0xc9   :  { %v2999_v52 = vadd.f32 %v1250_v40, %v1202_v46 }
  0xcc   :  { %v1154_v63 = vpop.f32.mrf.mxu2 }
  0xcd   :  { %v1155_v1 = vadd.f32 %v1154_v63, %v1106_v47  ;;  %v2223_v63 = vld [vmem:[%s3277_s0 + $0xec] sm:$0xf] }
  0xce   :  { %v1203_v2 = vpop.f32.mrf.mxu3  ;;  %v1108_v5 = vpop.f32.mrf.mxu1 }
  0xcf   :  { %v1204_v9 = vadd.f32 %v1203_v2, %v1155_v1  ;;  %v1109_v12 = vadd.f32 %v1108_v5, %v1060_v0  ;;  %v1746_v0 = vld [vmem:[%s3277_s0 + $0x10c] sm:$0xf0]  ;;  %v2228_v2 = vld [vmem:[%s3277_s0 + $0x110] sm:$0xf0]  ;;  %v1760_v5 = vld [vmem:[%s3277_s0 + $0xf8] sm:$0xf] }
  0xd0   :  { %v1255_v13 = vpop.f32.mrf.mxu0 }
  0xd1   :  { %1303 = vmatmul.bf16.gmra.mxu1 %v1677_v3  ;;  %1352 = vmatmul.bf16.gmra.mxu2 %v1681_v4  ;;  %v3020_v15 = vadd.f32 %v1252_v48, %v1204_v9  ;;  %v2224_v3 = vld [vmem:[%s3277_s0 + $0xf4] sm:$0xf]  ;;  %v1754_v4 = vld [vmem:[%s3277_s0 + $0x114] sm:$0xf0]  ;;  %v1070_v9 = vadd.f32 %v2911_v54, %v2951_v11  ;;  %v1072_v11 = vadd.f32 %v2911_v54, %v2959_v19  ;;  %v2237_v19 = vld [vmem:[%s3277_s0 + $0x158] sm:$0xf0] }
  0xd2   :  { %v1788_v54 = vld [vmem:[%s3277_s0 + $0x138] sm:$0xf] }
  0xd3   :  { %1401 = vmatmul.bf16.gmra.mxu3 %v1685_v7  ;;  %1450 = vmatmul.bf16.gmra.mxu0 %v1689_v8  ;;  %v2229_v7 = vld [vmem:[%s3277_s0 + $0x118] sm:$0xf0] }
  0xd4   :  { %v1157_v17 = vpop.f32.mrf.mxu2 }
  0xd5   :  { %v1158_v14 = vadd.f32 %v1157_v17, %v1109_v12  ;;  %v1749_v17 = vor.u32 %v2223_v63, %v1746_v0 }
  0xd6   :  { %v1206_v22 = vpop.f32.mrf.mxu3  ;;  %v1110_v23 = vpop.f32.mrf.mxu1 }
  0xd7   :  { %v1207_v24 = vadd.f32 %v1206_v22, %v1158_v14  ;;  %v1111_v25 = vadd.f32 %v1110_v23, %v1062_v21  ;;  %v1753_v21 = vor.u32 %v2228_v2, %v1752_v59  ;;  %v1757_v22 = vor.u32 %v2224_v3, %v1754_v4 }
  0xd8   :  { %v1257_v26 = vpop.f32.mrf.mxu0  ;;  %v1761_v23 = vor.u32 %v2229_v7, %v1760_v5  ;;  %v2241_v5 = vld [vmem:[%s3277_s0 + $0x17c] sm:$0xf] }
  0xd9   :  { %v3029_v29 = vadd.f32 %v1255_v13, %v1207_v24 }
  0xdc   :  { %v1159_v37 = vpop.f32.mrf.mxu2 }
  0xdd   :  { %v1160_v39 = vadd.f32 %v1159_v37, %v1111_v25  ;;  %v2232_v37 = vld [vmem:[%s3277_s0 + $0x134] sm:$0xf] }
  0xde   :  { %v1208_v40 = vpop.f32.mrf.mxu3  ;;  %v1113_v43 = vpop.f32.mrf.mxu1 }
  0xdf   :  { %v1209_v46 = vadd.f32 %v1208_v40, %v1160_v39  ;;  %v1114_v47 = vadd.f32 %v1113_v43, %v1065_v38  ;;  %v1782_v38 = vld [vmem:[%s3277_s0 + $0x154] sm:$0xf0]  ;;  %v2233_v40 = vld [vmem:[%s3277_s0 + $0x13c] sm:$0xf]  ;;  %v2238_v43 = vld [vmem:[%s3277_s0 + $0x160] sm:$0xf0] }
  0xe0   :  { %v1260_v48 = vpop.f32.mrf.mxu0 }
  0xe1   :  { %1308 = vmatmul.bf16.gmra.mxu1 %v1713_v41  ;;  %1357 = vmatmul.bf16.gmra.mxu2 %v1717_v42  ;;  %v3051_v49 = vadd.f32 %v1257_v26, %v1209_v46  ;;  %v1790_v41 = vld [vmem:[%s3277_s0 + $0x15c] sm:$0xf0] }
  0xe2   :  { %v1796_v42 = vld [vmem:[%s3277_s0 + $0x140] sm:$0xf] }
  0xe3   :  { %1406 = vmatmul.bf16.gmra.mxu3 %v1721_v44  ;;  %1455 = vmatmul.bf16.gmra.mxu0 %v1725_v45 }
  0xe4   :  { %v1162_v51 = vpop.f32.mrf.mxu2 }
  0xe5   :  { %v1163_v53 = vadd.f32 %v1162_v51, %v1114_v47  ;;  %v1785_v47 = vor.u32 %v2232_v37, %v1782_v38 }
  0xe6   :  { %v1211_v55 = vpop.f32.mrf.mxu3  ;;  %v1115_v57 = vpop.f32.mrf.mxu1 }
  0xe7   :  { %v1212_v60 = vadd.f32 %v1211_v55, %v1163_v53  ;;  %v1116_v61 = vadd.f32 %v1115_v57, %v1067_v50  ;;  %v1793_v50 = vor.u32 %v2233_v40, %v1790_v41  ;;  %v1797_v53 = vor.u32 %v2238_v43, %v1796_v42  ;;  %v2250_v40 = vld [vmem:[%s3277_s0 + $0x1c4] sm:$0xf]  ;;  %v1860_v42 = vld [vmem:[%s3277_s0 + $0x1c8] sm:$0xf]  ;;  %v2255_v43 = vld [vmem:[%s3277_s0 + $0x1e8] sm:$0xf0] }
  0xe8   :  { %v1262_v62 = vpop.f32.mrf.mxu0 }
  0xe9   :  { %v3061_v1 = vadd.f32 %v1260_v48, %v1212_v60  ;;  %v1789_v48 = vor.u32 %v2237_v19, %v1788_v54 }
  0xec   :  { %v1164_v8 = vpop.f32.mrf.mxu2 }
  0xed   :  { %v1165_v12 = vadd.f32 %v1164_v8, %v1116_v61  ;;  %v1824_v8 = vld [vmem:[%s3277_s0 + $0x180] sm:$0xf] }
  0xee   :  { %v1213_v13 = vpop.f32.mrf.mxu3  ;;  %v1118_v14 = vpop.f32.mrf.mxu1 }
  0xef   :  { %v1214_v24 = vadd.f32 %v1213_v13, %v1165_v12  ;;  %v1119_v25 = vadd.f32 %v1118_v14, %v1070_v9  ;;  %v2246_v9 = vld [vmem:[%s3277_s0 + $0x1a0] sm:$0xf0]  ;;  %v1826_v12 = vld [vmem:[%s3277_s0 + $0x1a4] sm:$0xf0] }
  0xf0   :  { %v1265_v26 = vpop.f32.mrf.mxu0  ;;  %v1832_v13 = vld [vmem:[%s3277_s0 + $0x188] sm:$0xf] }
  0xf1   :  { %1313 = vmatmul.bf16.gmra.mxu1 %v1749_v17  ;;  %1362 = vmatmul.bf16.gmra.mxu2 %v1753_v21  ;;  %v3083_v27 = vadd.f32 %v1262_v62, %v1214_v24  ;;  %v2247_v17 = vld [vmem:[%s3277_s0 + $0x1a8] sm:$0xf0]  ;;  %v1825_v24 = vor.u32 %v2246_v9, %v1824_v8 }
  0xf3   :  { %1411 = vmatmul.bf16.gmra.mxu3 %v1757_v22  ;;  %1460 = vmatmul.bf16.gmra.mxu0 %v1761_v23 }
  0xf4   :  { %v1167_v28 = vpop.f32.mrf.mxu2 }
  0xf5   :  { %v1168_v20 = vadd.f32 %v1167_v28, %v1119_v25  ;;  %v1833_v28 = vor.u32 %v2247_v17, %v1832_v13  ;;  %v1896_v13 = vld [vmem:[%s3277_s0 + $0x210] sm:$0xf]  ;;  %v2264_v17 = vld [vmem:[%s3277_s0 + $0x230] sm:$0xf0] }
  0xf6   :  { %v1216_v30 = vpop.f32.mrf.mxu3  ;;  %v1120_v32 = vpop.f32.mrf.mxu1 }
  0xf7   :  { %v1217_v33 = vadd.f32 %v1216_v30, %v1168_v20  ;;  %v1121_v34 = vadd.f32 %v1120_v32, %v1072_v11 }
  0xf8   :  { %v1267_v36 = vpop.f32.mrf.mxu0 }
  0xf9   :  { %v3093_v39 = vadd.f32 %v1265_v26, %v1217_v33 }
  0xfc   :  { %v1169_v44 = vpop.f32.mrf.mxu2 }
  0xfd   :  { %v1170_v45 = vadd.f32 %v1169_v44, %v1121_v34  ;;  %v1862_v44 = vld [vmem:[%s3277_s0 + $0x1ec] sm:$0xf0] }
  0xfe   :  { %v1218_v46 = vpop.f32.mrf.mxu3  ;;  %v1123_v51 = vpop.f32.mrf.mxu1 }
  0xff   :  { %v1219_v55 = vadd.f32 %v1218_v46, %v1170_v45  ;;  %v1124_v57 = vadd.f32 %v1123_v51, %v2914_v56  ;;  %v1818_v56 = vld [vmem:[%s3277_s0 + $0x19c] sm:$0xf0]  ;;  %v1868_v45 = vld [vmem:[%s3277_s0 + $0x1d0] sm:$0xf]  ;;  %v2256_v46 = vld [vmem:[%s3277_s0 + $0x1f0] sm:$0xf0] }
 0x100   :  { %v1270_v60 = vpop.f32.mrf.mxu0  ;;  %v1821_v23 = vor.u32 %v2241_v5, %v1818_v56 }
 0x101   :  { %1318 = vmatmul.bf16.gmra.mxu1 %v1785_v47  ;;  %1367 = vmatmul.bf16.gmra.mxu2 %v1789_v48  ;;  %v3114_v61 = vadd.f32 %v1267_v36, %v1219_v55 }
 0x103   :  { %1416 = vmatmul.bf16.gmra.mxu3 %v1793_v50  ;;  %1465 = vmatmul.bf16.gmra.mxu0 %v1797_v53  ;;  %v1861_v53 = vor.u32 %v2255_v43, %v1860_v42 }
 0x104   :  { %v1172_v62 = vpop.f32.mrf.mxu2 }
 0x105   :  { %v1173_v63 = vadd.f32 %v1172_v62, %v1124_v57 }
 0x106   :  { %v1221_v0 = vpop.f32.mrf.mxu3  ;;  %v1125_v59 = vpop.f32.mrf.mxu1 }
 0x107   :  { %v1222_v2 = vadd.f32 %v1221_v0, %v1173_v63  ;;  %v1126_v3 = vadd.f32 %v1125_v59, %v2946_v6  ;;  %v2242_v6 = vld [vmem:[%s3277_s0 + $0x184] sm:$0xf] }
 0x108   :  { %v1272_v4 = vpop.f32.mrf.mxu0  ;;  %v1829_v26 = vor.u32 %v2242_v6, %v1826_v12  ;;  %v2259_v6 = vld [vmem:[%s3277_s0 + $0x20c] sm:$0xf] }
 0x109   :  { %v3123_v7 = vadd.f32 %v1270_v60, %v1222_v2  ;;  %v1869_v60 = vor.u32 %v2256_v46, %v1868_v45 }
 0x10c   :  { %v1174_v21 = vpop.f32.mrf.mxu2 }
 0x10d   :  { %v1175_v14 = vadd.f32 %v1174_v21, %v1126_v3  ;;  %v1898_v21 = vld [vmem:[%s3277_s0 + $0x234] sm:$0xf0] }
 0x10e   :  { %v1223_v22 = vpop.f32.mrf.mxu3  ;;  %v1128_v25 = vpop.f32.mrf.mxu1 }
 0x10f   :  { %v1224_v11 = vadd.f32 %v1223_v22, %v1175_v14  ;;  %v1129_v20 = vadd.f32 %v1128_v25, %v2954_v16  ;;  %v1854_v16 = vld [vmem:[%s3277_s0 + $0x1e4] sm:$0xf0]  ;;  %v1904_v14 = vld [vmem:[%s3277_s0 + $0x218] sm:$0xf]  ;;  %v2265_v22 = vld [vmem:[%s3277_s0 + $0x238] sm:$0xf0] }
 0x110   :  { %v1275_v30 = vpop.f32.mrf.mxu0  ;;  %v1857_v50 = vor.u32 %v2250_v40, %v1854_v16 }
 0x111   :  { %1323 = vmatmul.bf16.gmra.mxu1 %v1821_v23  ;;  %1372 = vmatmul.bf16.gmra.mxu2 %v1825_v24  ;;  %v3144_v32 = vadd.f32 %v1272_v4, %v1224_v11 }
 0x113   :  { %1421 = vmatmul.bf16.gmra.mxu3 %v1829_v26  ;;  %1470 = vmatmul.bf16.gmra.mxu0 %v1833_v28  ;;  %v1897_v28 = vor.u32 %v2264_v17, %v1896_v13 }
 0x114   :  { %v1177_v33 = vpop.f32.mrf.mxu2 }
 0x115   :  { %v1178_v34 = vadd.f32 %v1177_v33, %v1129_v20 }
 0x116   :  { %v1226_v36 = vpop.f32.mrf.mxu3  ;;  %v1130_v37 = vpop.f32.mrf.mxu1 }
 0x117   :  { %v1227_v38 = vadd.f32 %v1226_v36, %v1178_v34  ;;  %v1131_v54 = vadd.f32 %v1130_v37, %v2987_v31  ;;  %v2251_v31 = vld [vmem:[%s3277_s0 + $0x1cc] sm:$0xf] }
 0x118   :  { %v1277_v19 = vpop.f32.mrf.mxu0  ;;  %v1865_v57 = vor.u32 %v2251_v31, %v1862_v44 }
 0x119   :  { %v3153_v41 = vadd.f32 %v1275_v30, %v1227_v38  ;;  %v1905_v30 = vor.u32 %v2265_v22, %v1904_v14 }
 0x11c   :  { %v1179_v47 = vpop.f32.mrf.mxu2 }
 0x11d   :  { %v1180_v48 = vadd.f32 %v1179_v47, %v1131_v54 }
 0x11e   :  { %v1228_v51 = vpop.f32.mrf.mxu3  ;;  %v1133_v55 = vpop.f32.mrf.mxu1 }
 0x11f   :  { %v1229_v62 = vadd.f32 %v1228_v51, %v1180_v48  ;;  %v1134_v63 = vadd.f32 %v1133_v55, %v2917_v58  ;;  %v1890_v58 = vld [vmem:[%s3277_s0 + $0x22c] sm:$0xf0] }
 0x120   :  { %v1280_v0 = vpop.f32.mrf.mxu0  ;;  %v1893_v26 = vor.u32 %v2259_v6, %v1890_v58 }
 0x121   :  { %1328 = vmatmul.bf16.gmra.mxu1 %v1857_v50  ;;  %1377 = vmatmul.bf16.gmra.mxu2 %v1861_v53  ;;  %v3174_v59 = vadd.f32 %v1277_v19, %v1229_v62 }
 0x123   :  { %1426 = vmatmul.bf16.gmra.mxu3 %v1865_v57  ;;  %1475 = vmatmul.bf16.gmra.mxu0 %v1869_v60 }
 0x124   :  { %v1182_v2 = vpop.f32.mrf.mxu2 }
 0x125   :  { %v1183_v3 = vadd.f32 %v1182_v2, %v1134_v63 }
 0x126   :  { %v1231_v4 = vpop.f32.mrf.mxu3  ;;  %v1135_v5 = vpop.f32.mrf.mxu1 }
 0x127   :  { %v1232_v56 = vadd.f32 %v1231_v4, %v1183_v3  ;;  %v1136_v8 = vadd.f32 %v1135_v5, %v2949_v10  ;;  %v2260_v10 = vld [vmem:[%s3277_s0 + $0x214] sm:$0xf] }
 0x128   :  { %v1282_v9 = vpop.f32.mrf.mxu0  ;;  %v1901_v20 = vor.u32 %v2260_v10, %v1898_v21 }
 0x129   :  { %v3183_v12 = vadd.f32 %v1280_v0, %v1232_v56 }
 0x12c   :  { %v1184_v23 = vpop.f32.mrf.mxu2 }
 0x12d   :  { %v1185_v24 = vadd.f32 %v1184_v23, %v1136_v8  ;;  %v2339_v8 = vld [vmem:[%s3278_s3] sm:$0xff]  }
 0x12e   :  { %v1233_v25 = vpop.f32.mrf.mxu3  ;;  %v1138_v11 = vpop.f32.mrf.mxu1  ;;  %v2340_v58 = vunpack.c.l.bf16 %v2339_v8  ;;  %v2341_v13 = vunpack.c.h.bf16 %v2339_v8 }
 0x12f   :  { %v1234_v33 = vadd.f32 %v1233_v25, %v1185_v24  ;;  %v1139_v34 = vadd.f32 %v1138_v11, %v2957_v18 }
 0x130   :  { %v1285_v36 = vpop.f32.mrf.mxu0 }
 0x131   :  { %1333 = vmatmul.bf16.gmra.mxu1 %v1893_v26  ;;  %1382 = vmatmul.bf16.gmra.mxu2 %v1897_v28  ;;  %v3204_v37 = vadd.f32 %v1282_v9, %v1234_v33 }
 0x133   :  { %1431 = vmatmul.bf16.gmra.mxu3 %v1901_v20  ;;  %1480 = vmatmul.bf16.gmra.mxu0 %v1905_v30 }
 0x134   :  { %v1187_v38 = vpop.f32.mrf.mxu2 }
 0x135   :  { %v1188_v54 = vadd.f32 %v1187_v38, %v1139_v34 }
 0x136   :  { %v1236_v19 = vpop.f32.mrf.mxu3  ;;  %v1140_v40 = vpop.f32.mrf.mxu1 }
 0x137   :  { %v1237_v16 = vadd.f32 %v1236_v19, %v1188_v54  ;;  %v1141_v42 = vadd.f32 %v1140_v40, %v2990_v35  ;;  %v2410_v19 = vld [vmem:[%s3278_s3 + $0x8] sm:$0xff]  }
 0x138   :  { %v1287_v43 = vpop.f32.mrf.mxu0 }
 0x139   :  { %v3207_v31 = vadd.f32 %v1285_v36, %v1237_v16 }
 0x13c   :  { %v1189_v44 = vpop.f32.mrf.mxu2 }
 0x13d   :  { %v1190_v45 = vadd.f32 %v1189_v44, %v1141_v42  ;;  %v2345_v44 = vunpack.c.h.bf16 %v2410_v19 }
 0x13e   :  { %v1238_v18 = vpop.f32.mrf.mxu3  ;;  %v1299_v46 = vpop.f32.mrf.mxu1 }
 0x13f   :  { %v1239_v47 = vadd.f32 %v1238_v18, %v1190_v45  ;;  %v1300_v50 = vadd.f32 %v1299_v46, %v2999_v52 }
 0x140   :  { %v1446_v48 = vpop.f32.mrf.mxu0 }
 0x141   :  { %v3209_v51 = vadd.f32 %v1287_v43, %v1239_v47  ;;  %v2344_v43 = vunpack.c.l.bf16 %v2410_v19 }
 0x144   :  { %v1348_v53 = vpop.f32.mrf.mxu2 }
 0x145   :  { %v1349_v55 = vadd.f32 %v1348_v53, %v1300_v50 }
 0x146   :  { %v1397_v57 = vpop.f32.mrf.mxu3  ;;  %v1301_v60 = vpop.f32.mrf.mxu1 }
 0x147   :  { %v1398_v62 = vadd.f32 %v1397_v57, %v1349_v55  ;;  %v1302_v0 = vadd.f32 %v1301_v60, %v3020_v15 }
 0x148   :  { %v1448_v63 = vpop.f32.mrf.mxu0 }
 0x149   :  { %v1447_v35 = vadd.f32 %v1446_v48, %v1398_v62 }
 0x14b   :  { %v1502_v56 = vmul.f32 0.01, %v1447_v35  ;;  %vm1486_vm0 = vcmp.ge.f32.partialorder %v1447_v35, 0.0 }
 0x14c   :  { %v1350_v2 = vpop.f32.mrf.mxu2 }
 0x14d   :  { %v1351_v3 = vadd.f32 %v1350_v2, %v1302_v0  ;;  %v1518_v17 = vsel %vm1486_vm0, %v1447_v35, %v1502_v56  ;;  %v2411_v56 = vld [vmem:[%s3278_s3 + $0x10] sm:$0xff]  }
 0x14e   :  { %v1399_v4 = vpop.f32.mrf.mxu3  ;;  %v1304_v5 = vpop.f32.mrf.mxu1  ;;  %v1566_v24 = vadd.f32 %v2340_v58, %v1518_v17  ;;  %v2349_v58 = vunpack.c.h.bf16 %v2411_v56 }
 0x14f   :  { %v1400_v9 = vadd.f32 %v1399_v4, %v1351_v3  ;;  %v1305_v15 = vadd.f32 %v1304_v5, %v3029_v29 }
 0x150   :  { %v1451_v52 = vpop.f32.mrf.mxu0 }
 0x151   :  { %v1449_v6 = vadd.f32 %v1448_v63, %v1400_v9 }
 0x153   :  { %vm1487_vm1 = vcmp.ge.f32.partialorder %v1449_v6, 0.0  ;;  %v1503_v10 = vmul.f32 0.01, %v1449_v6 }
 0x154   :  { %v1353_v21 = vpop.f32.mrf.mxu2 }
 0x155   :  { %v1519_v14 = vsel %vm1487_vm1, %v1449_v6, %v1503_v10  ;;  %v1354_v22 = vadd.f32 %v1353_v21, %v1305_v15  ;;  %v2348_v6 = vunpack.c.l.bf16 %v2411_v56 }
 0x156   :  { %v1402_v23 = vpop.f32.mrf.mxu3  ;;  %v1567_v25 = vadd.f32 %v2341_v13, %v1519_v14  ;;  %v1306_v26 = vpop.f32.mrf.mxu1 }
 0x157   :  { %v1403_v28 = vadd.f32 %v1402_v23, %v1354_v22  ;;  %v1307_v33 = vadd.f32 %v1306_v26, %v3051_v49 }
 0x158   :  { %v1453_v11 = vpop.f32.mrf.mxu0  ;;  %v2373_v20 = vpack.c.bf16 %v1567_v25, %v1566_v24 }
 0x159   :  { %v1452_v30 = vadd.f32 %v1451_v52, %v1403_v28 }
 0x15a   :  { %2374 = vst [vmem:[%s3279_s4] sm:$0xff] %v2373_v20  }
 0x15b   :  { %v1504_v54 = vmul.f32 0.01, %v1452_v30  ;;  %vm1488_vm2 = vcmp.ge.f32.partialorder %v1452_v30, 0.0 }
 0x15c   :  { %v1355_v34 = vpop.f32.mrf.mxu2 }
 0x15d   :  { %v1356_v36 = vadd.f32 %v1355_v34, %v1307_v33  ;;  %v1520_v45 = vsel %vm1488_vm2, %v1452_v30, %v1504_v54 }
 0x15e   :  { %v1404_v29 = vpop.f32.mrf.mxu3  ;;  %v1309_v38 = vpop.f32.mrf.mxu1  ;;  %v1568_v53 = vadd.f32 %v2344_v43, %v1520_v45 }
 0x15f   :  { %v1405_v40 = vadd.f32 %v1404_v29, %v1356_v36  ;;  %v1310_v49 = vadd.f32 %v1309_v38, %v3061_v1  ;;  %v2412_v29 = vld [vmem:[%s3278_s3 + $0x18] sm:$0xff]  }
 0x160   :  { %v1456_v16 = vpop.f32.mrf.mxu0 }
 0x161   :  { %v1454_v42 = vadd.f32 %v1453_v11, %v1405_v40  ;;  %v2352_v40 = vunpack.c.l.bf16 %v2412_v29 }
 0x163   :  { %vm1489_vm3 = vcmp.ge.f32.partialorder %v1454_v42, 0.0  ;;  %v1505_v18 = vmul.f32 0.01, %v1454_v42 }
 0x164   :  { %v1358_v46 = vpop.f32.mrf.mxu2 }
 0x165   :  { %v1521_v47 = vsel %vm1489_vm3, %v1454_v42, %v1505_v18  ;;  %v1359_v48 = vadd.f32 %v1358_v46, %v1310_v49 }
 0x166   :  { %v1407_v50 = vpop.f32.mrf.mxu3  ;;  %v1569_v55 = vadd.f32 %v2345_v44, %v1521_v47  ;;  %v1311_v57 = vpop.f32.mrf.mxu1 }
 0x167   :  { %v1408_v60 = vadd.f32 %v1407_v50, %v1359_v48  ;;  %v1312_v0 = vadd.f32 %v1311_v57, %v3083_v27 }
 0x168   :  { %v1458_v62 = vpop.f32.mrf.mxu0  ;;  %v2378_v63 = vpack.c.bf16 %v1569_v55, %v1568_v53 }
 0x169   :  { %v1457_v35 = vadd.f32 %v1456_v16, %v1408_v60  ;;  %v2353_v16 = vunpack.c.h.bf16 %v2412_v29 }
 0x16a   :  { %2417 = vst [vmem:[%s3279_s4 + $0x8] sm:$0xff] %v2378_v63  }
 0x16b   :  { %v1506_v5 = vmul.f32 0.01, %v1457_v35  ;;  %vm1490_vm4 = vcmp.ge.f32.partialorder %v1457_v35, 0.0 }
 0x16c   :  { %v1360_v2 = vpop.f32.mrf.mxu2 }
 0x16d   :  { %v1361_v3 = vadd.f32 %v1360_v2, %v1312_v0  ;;  %v1522_v13 = vsel %vm1490_vm4, %v1457_v35, %v1506_v5  ;;  %v2413_v2 = vld [vmem:[%s3278_s3 + $0x20] sm:$0xff]  }
 0x16e   :  { %v1409_v1 = vpop.f32.mrf.mxu3  ;;  %v1314_v4 = vpop.f32.mrf.mxu1  ;;  %v1570_v22 = vadd.f32 %v2348_v6, %v1522_v13  ;;  %v2356_v5 = vunpack.c.l.bf16 %v2413_v2  ;;  %v2357_v56 = vunpack.c.h.bf16 %v2413_v2 }
 0x16f   :  { %v1410_v8 = vadd.f32 %v1409_v1, %v1361_v3  ;;  %v1315_v27 = vadd.f32 %v1314_v4, %v3093_v39 }
 0x170   :  { %v1461_v9 = vpop.f32.mrf.mxu0 }
 0x171   :  { %v1459_v52 = vadd.f32 %v1458_v62, %v1410_v8 }
 0x173   :  { %vm1491_vm5 = vcmp.ge.f32.partialorder %v1459_v52, 0.0  ;;  %v1507_v17 = vmul.f32 0.01, %v1459_v52 }
 0x174   :  { %v1363_v10 = vpop.f32.mrf.mxu2 }
 0x175   :  { %v1523_v15 = vsel %vm1491_vm5, %v1459_v52, %v1507_v17  ;;  %v1364_v21 = vadd.f32 %v1363_v10, %v1315_v27 }
 0x176   :  { %v1412_v14 = vpop.f32.mrf.mxu3  ;;  %v1571_v23 = vadd.f32 %v2349_v58, %v1523_v15  ;;  %v1316_v24 = vpop.f32.mrf.mxu1 }
 0x177   :  { %v1413_v25 = vadd.f32 %v1412_v14, %v1364_v21  ;;  %v1317_v20 = vadd.f32 %v1316_v24, %v3114_v61 }
 0x178   :  { %v1463_v26 = vpop.f32.mrf.mxu0  ;;  %v2383_v28 = vpack.c.bf16 %v1571_v23, %v1570_v22 }
 0x179   :  { %v1462_v11 = vadd.f32 %v1461_v9, %v1413_v25 }
 0x17a   :  { %2418 = vst [vmem:[%s3279_s4 + $0x10] sm:$0xff] %v2383_v28  }
 0x17b   :  { %v1508_v36 = vmul.f32 0.01, %v1462_v11  ;;  %vm1492_vm6 = vcmp.ge.f32.partialorder %v1462_v11, 0.0 }
 0x17c   :  { %v1365_v30 = vpop.f32.mrf.mxu2 }
 0x17d   :  { %v1366_v33 = vadd.f32 %v1365_v30, %v1317_v20  ;;  %v1524_v42 = vsel %vm1492_vm6, %v1462_v11, %v1508_v36  ;;  %v2414_v11 = vld [vmem:[%s3278_s3 + $0x28] sm:$0xff]  }
 0x17e   :  { %v1414_v39 = vpop.f32.mrf.mxu3  ;;  %v1319_v34 = vpop.f32.mrf.mxu1  ;;  %v1572_v46 = vadd.f32 %v2352_v40, %v1524_v42 }
 0x17f   :  { %v1415_v38 = vadd.f32 %v1414_v39, %v1366_v33  ;;  %v1320_v61 = vadd.f32 %v1319_v34, %v3123_v7  ;;  %v2360_v33 = vunpack.c.l.bf16 %v2414_v11  ;;  %v2361_v39 = vunpack.c.h.bf16 %v2414_v11 }
 0x180   :  { %v1466_v54 = vpop.f32.mrf.mxu0 }
 0x181   :  { %v1464_v19 = vadd.f32 %v1463_v26, %v1415_v38 }
 0x183   :  { %vm1493_vm7 = vcmp.ge.f32.partialorder %v1464_v19, 0.0  ;;  %v1509_v43 = vmul.f32 0.01, %v1464_v19 }
 0x184   :  { %v1368_v44 = vpop.f32.mrf.mxu2 }
 0x185   :  { %v1525_v45 = vsel %vm1493_vm7, %v1464_v19, %v1509_v43  ;;  %v1369_v18 = vadd.f32 %v1368_v44, %v1320_v61 }
 0x186   :  { %v1417_v49 = vpop.f32.mrf.mxu3  ;;  %v1573_v47 = vadd.f32 %v2353_v16, %v1525_v45  ;;  %v1321_v48 = vpop.f32.mrf.mxu1 }
 0x187   :  { %v1418_v50 = vadd.f32 %v1417_v49, %v1369_v18  ;;  %v1322_v60 = vadd.f32 %v1321_v48, %v3144_v32 }
 0x188   :  { %v1468_v53 = vpop.f32.mrf.mxu0  ;;  %v2388_v55 = vpack.c.bf16 %v1573_v47, %v1572_v46 }
 0x189   :  { %v1467_v57 = vadd.f32 %v1466_v54, %v1418_v50 }
 0x18a   :  { %2419 = vst [vmem:[%s3279_s4 + $0x18] sm:$0xff] %v2388_v55  }
 0x18b   :  { %v1510_v0 = vmul.f32 0.01, %v1467_v57  ;;  %vm1494_vm8 = vcmp.ge.f32.partialorder %v1467_v57, 0.0 }
 0x18c   :  { %v1370_v62 = vpop.f32.mrf.mxu2 }
 0x18d   :  { %v1371_v63 = vadd.f32 %v1370_v62, %v1322_v60  ;;  %v1526_v8 = vsel %vm1494_vm8, %v1467_v57, %v1510_v0 }
 0x18e   :  { %v1419_v7 = vpop.f32.mrf.mxu3  ;;  %v1324_v35 = vpop.f32.mrf.mxu1  ;;  %v1574_v17 = vadd.f32 %v2356_v5, %v1526_v8 }
 0x18f   :  { %v1420_v3 = vadd.f32 %v1419_v7, %v1371_v63  ;;  %v1325_v32 = vadd.f32 %v1324_v35, %v3153_v41 }
 0x190   :  { %v1471_v1 = vpop.f32.mrf.mxu0 }
 0x191   :  { %v1469_v4 = vadd.f32 %v1468_v53, %v1420_v3  ;;  %v2415_v53 = vld [vmem:[%s3278_s3 + $0x30] sm:$0xff]  }
 0x192   :  { %v2364_v60 = vunpack.c.l.bf16 %v2415_v53  ;;  %v2365_v62 = vunpack.c.h.bf16 %v2415_v53 }
 0x193   :  { %vm1495_vm9 = vcmp.ge.f32.partialorder %v1469_v4, 0.0  ;;  %v1511_v9 = vmul.f32 0.01, %v1469_v4 }
 0x194   :  { %v1373_v52 = vpop.f32.mrf.mxu2 }
 0x195   :  { %v1527_v6 = vsel %vm1495_vm9, %v1469_v4, %v1511_v9  ;;  %v1374_v58 = vadd.f32 %v1373_v52, %v1325_v32 }
 0x196   :  { %v1422_v13 = vpop.f32.mrf.mxu3  ;;  %v1575_v27 = vadd.f32 %v2357_v56, %v1527_v6  ;;  %v1326_v10 = vpop.f32.mrf.mxu1 }
 0x197   :  { %v1423_v15 = vadd.f32 %v1422_v13, %v1374_v58  ;;  %v1327_v23 = vadd.f32 %v1326_v10, %v3174_v59 }
 0x198   :  { %v2393_v21 = vpack.c.bf16 %v1575_v27, %v1574_v17  ;;  %v1473_v14 = vpop.f32.mrf.mxu0  ;;  %v2416_v17 = vld [vmem:[%s3278_s3 + $0x38] sm:$0xff]  }
 0x199   :  { %v1472_v22 = vadd.f32 %v1471_v1, %v1423_v15 }
 0x19a   :  { %2420 = vst [vmem:[%s3279_s4 + $0x20] sm:$0xff] %v2393_v21   ;;  %v2368_v21 = vunpack.c.l.bf16 %v2416_v17 }
 0x19b   :  { %v1512_v28 = vmul.f32 0.01, %v1472_v22  ;;  %vm1496_vm10 = vcmp.ge.f32.partialorder %v1472_v22, 0.0 }
 0x19c   :  { %v1375_v24 = vpop.f32.mrf.mxu2 }
 0x19d   :  { %v1376_v25 = vadd.f32 %v1375_v24, %v1327_v23  ;;  %v1528_v36 = vsel %vm1496_vm10, %v1472_v22, %v1512_v28 }
 0x19e   :  { %v1424_v41 = vpop.f32.mrf.mxu3  ;;  %v1329_v26 = vpop.f32.mrf.mxu1  ;;  %v1576_v16 = vadd.f32 %v2360_v33, %v1528_v36 }
 0x19f   :  { %v1425_v20 = vadd.f32 %v1424_v41, %v1376_v25  ;;  %v1330_v59 = vadd.f32 %v1329_v26, %v3183_v12 }
 0x1a0   :  { %v1476_v34 = vpop.f32.mrf.mxu0 }
 0x1a1   :  { %v1474_v30 = vadd.f32 %v1473_v14, %v1425_v20  ;;  %v2369_v14 = vunpack.c.h.bf16 %v2416_v17 }
 0x1a3   :  { %vm1497_vm11 = vcmp.ge.f32.partialorder %v1474_v30, 0.0  ;;  %v1513_v29 = vmul.f32 0.01, %v1474_v30 }
 0x1a4   :  { %v1378_v38 = vpop.f32.mrf.mxu2 }
 0x1a5   :  { %v1529_v54 = vsel %vm1497_vm11, %v1474_v30, %v1513_v29  ;;  %v1379_v19 = vadd.f32 %v1378_v38, %v1330_v59 }
 0x1a6   :  { %v1427_v40 = vpop.f32.mrf.mxu3  ;;  %v1577_v42 = vadd.f32 %v2361_v39, %v1529_v54  ;;  %v1331_v43 = vpop.f32.mrf.mxu1 }
 0x1a7   :  { %v1428_v61 = vadd.f32 %v1427_v40, %v1379_v19  ;;  %v1332_v18 = vadd.f32 %v1331_v43, %v3204_v37 }
 0x1a8   :  { %v2398_v44 = vpack.c.bf16 %v1577_v42, %v1576_v16  ;;  %v1478_v49 = vpop.f32.mrf.mxu0 }
 0x1a9   :  { %v1477_v45 = vadd.f32 %v1476_v34, %v1428_v61 }
 0x1aa   :  { %2421 = vst [vmem:[%s3279_s4 + $0x28] sm:$0xff] %v2398_v44  }
 0x1ab   :  { %v1514_v50 = vmul.f32 0.01, %v1477_v45  ;;  %vm1498_vm12 = vcmp.ge.f32.partialorder %v1477_v45, 0.0 }
 0x1ac   :  { %v1380_v46 = vpop.f32.mrf.mxu2 }
 0x1ad   :  { %v1381_v47 = vadd.f32 %v1380_v46, %v1332_v18  ;;  %v1530_v63 = vsel %vm1498_vm12, %v1477_v45, %v1514_v50 }
 0x1ae   :  { %v1429_v12 = vpop.f32.mrf.mxu3  ;;  %v1334_v48 = vpop.f32.mrf.mxu1  ;;  %v1578_v1 = vadd.f32 %v2364_v60, %v1530_v63 }
 0x1af   :  { %v1430_v55 = vadd.f32 %v1429_v12, %v1381_v47  ;;  %v1335_v37 = vadd.f32 %v1334_v48, %v3207_v31 }
 0x1b0   :  { %v1481_v5 = vpop.f32.mrf.mxu0 }
 0x1b1   :  { %v1479_v57 = vadd.f32 %v1478_v49, %v1430_v55 }
 0x1b3   :  { %vm1499_vm13 = vcmp.ge.f32.partialorder %v1479_v57, 0.0  ;;  %v1515_v7 = vmul.f32 0.01, %v1479_v57 }
 0x1b4   :  { %v1383_v35 = vpop.f32.mrf.mxu2 }
 0x1b5   :  { %v1531_v0 = vsel %vm1499_vm13, %v1479_v57, %v1515_v7  ;;  %v1384_v2 = vadd.f32 %v1383_v35, %v1335_v37 }
 0x1b6   :  { %v1432_v3 = vpop.f32.mrf.mxu3  ;;  %v1579_v4 = vadd.f32 %v2365_v62, %v1531_v0  ;;  %v1336_v9 = vpop.f32.mrf.mxu1 }
 0x1b7   :  { %v1433_v56 = vadd.f32 %v1432_v3, %v1384_v2  ;;  %v1337_v52 = vadd.f32 %v1336_v9, %v3209_v51 }
 0x1b8   :  { %v2403_v8 = vpack.c.bf16 %v1579_v4, %v1578_v1  ;;  %v1483_v10 = vpop.f32.mrf.mxu0 }
 0x1b9   :  { %v1482_v32 = vadd.f32 %v1481_v5, %v1433_v56 }
 0x1ba   :  { %2422 = vst [vmem:[%s3279_s4 + $0x30] sm:$0xff] %v2403_v8  }
 0x1bb   :  { %v1516_v13 = vmul.f32 0.01, %v1482_v32  ;;  %vm1500_vm14 = vcmp.ge.f32.partialorder %v1482_v32, 0.0 }
 0x1bc   :  { %v1385_v6 = vpop.f32.mrf.mxu2 }
 0x1bd   :  { %v1386_v58 = vadd.f32 %v1385_v6, %v1337_v52  ;;  %v1532_v22 = vsel %vm1500_vm14, %v1482_v32, %v1516_v13 }
 0x1be   :  { %v1434_v31 = vpop.f32.mrf.mxu3  ;;  %v1580_v25 = vadd.f32 %v2368_v21, %v1532_v22 }
 0x1bf   :  { %v1435_v27 = vadd.f32 %v1434_v31, %v1386_v58 }
 0x1c1   :  { %v1484_v15 = vadd.f32 %v1483_v10, %v1435_v27 }
 0x1c3   :  { %vm1501_vm15 = vcmp.ge.f32.partialorder %v1484_v15, 0.0  ;;  %v1517_v23 = vmul.f32 0.01, %v1484_v15 }
 0x1c5   :  { %v1533_v24 = vsel %vm1501_vm15, %v1484_v15, %v1517_v23 }
 0x1c6   :  { %v1581_v51 = vadd.f32 %v2369_v14, %v1533_v24 }
 0x1c8   :  { %v2408_v41 = vpack.c.bf16 %v1581_v51, %v1580_v25 }
 0x1ca   :  { %2423 = vst [vmem:[%s3279_s4 + $0x38] sm:$0xff] %v2408_v41  }

// kernel: encoder_fwd_nchw.21
= control target key start
LH: loop header
LB: loop body
LE: loop exit
PB: predicated region body
PF: predicated region fallthrough
CT: control target
= control target key end

     0   :  { %s258_s1 = inlined_call_operand.vmem [shape: bf16[128,128], index: 1, kind: input, shape index: {}]   ;;  %s259_s2 = inlined_call_operand.vmem [shape: f32[1,128], index: 2, kind: input, shape index: {}]   ;;  %s260_s0 = inlined_call_operand.vmem [shape: bf16[32,128], index: 0, kind: input, shape index: {}]   ;;  %s261_s3 = inlined_call_operand.vmem [shape: bf16[32,128], index: 3, kind: output, shape index: {}]  }
   0x1   :  { %v178_v0 = vld [vmem:[%s258_s1 + $0x38] sm:$0xff]  ;;  %v177_v1 = vld [vmem:[%s258_s1 + $0x30] sm:$0xff]  ;;  %v176_v2 = vld [vmem:[%s258_s1 + $0x28] sm:$0xff] }
   0x2   :  { %98 = vmatpush.bf16.msra.mxu0 %v178_v0  ;;  %190 = vmatpush.bf16.msra.mxu1 %v178_v0  ;;  %v175_v3 = vld [vmem:[%s258_s1 + $0x20] sm:$0xff]  ;;  %v174_v4 = vld [vmem:[%s258_s1 + $0x18] sm:$0xff]  ;;  %v173_v5 = vld [vmem:[%s258_s1 + $0x10] sm:$0xff] }
   0x3   :  { %v172_v6 = vld [vmem:[%s258_s1 + $0x8] sm:$0xff]  ;;  %v171_v7 = vld [vmem:[%s258_s1] sm:$0xff] }
   0x4   :  { %v169_v8 = vld [vmem:[%s260_s0] sm:$0xff]  ;;  %v170_v9 = vld [vmem:[%s260_s0 + $0x8] sm:$0xff] }
   0x5   :  { %v198_v12 = vld [vmem:[%s259_s2] ss:$0 sm:$0xff] }
   0x6   :  { %99 = vmatpush.bf16.msra.mxu0 %v177_v1  ;;  %191 = vmatpush.bf16.msra.mxu1 %v177_v1 }
   0xa   :  { %100 = vmatpush.bf16.msra.mxu0 %v176_v2  ;;  %192 = vmatpush.bf16.msra.mxu1 %v176_v2 }
   0xe   :  { %101 = vmatpush.bf16.msra.mxu0 %v175_v3  ;;  %193 = vmatpush.bf16.msra.mxu1 %v175_v3 }
  0x12   :  { %102 = vmatpush.bf16.msra.mxu0 %v174_v4  ;;  %194 = vmatpush.bf16.msra.mxu1 %v174_v4 }
  0x16   :  { %103 = vmatpush.bf16.msra.mxu0 %v173_v5  ;;  %195 = vmatpush.bf16.msra.mxu1 %v173_v5 }
  0x1a   :  { %104 = vmatpush.bf16.msra.mxu0 %v172_v6  ;;  %196 = vmatpush.bf16.msra.mxu1 %v172_v6 }
  0x1e   :  { %105 = vmatpush.bf16.msra.mxu0 %v171_v7  ;;  %197 = vmatpush.bf16.msra.mxu1 %v171_v7 }
  0x21   :  { %106 = vmatmul.bf16.vlgmr.msra.gmra.mxu0 %v169_v8  ;;  %111 = vmatmul.bf16.vlgmr.msra.gmra.mxu1 %v170_v9 }
  0x9e   :  { %v107_v10 = vpop.f32.mrf.mxu0  ;;  %v112_v11 = vpop.f32.mrf.mxu1 }
  0x9f   :  { %v108_v15 = vadd.f32 %v198_v12, %v107_v10  ;;  %v113_v16 = vadd.f32 %v198_v12, %v112_v11 }
  0xa6   :  { %v109_v13 = vpop.f32.mrf.mxu0  ;;  %v114_v14 = vpop.f32.mrf.mxu1 }
  0xa7   :  { %v110_v17 = vadd.f32 %v198_v12, %v109_v13  ;;  %v115_v18 = vadd.f32 %v198_v12, %v114_v14 }
  0xa9   :  { %v182_v19 = vpack.c.bf16 %v110_v17, %v108_v15  ;;  %v187_v20 = vpack.c.bf16 %v115_v18, %v113_v16 }
  0xab   :  { %183 = vst [vmem:[%s261_s3] sm:$0xff] %v182_v19  }
  0xac   :  { %189 = vst [vmem:[%s261_s3 + $0x8] sm:$0xff] %v187_v20  }

// kernel: encoder_fwd_nchw.26
= control target key start
LH: loop header
LB: loop body
LE: loop exit
PB: predicated region body
PF: predicated region fallthrough
CT: control target
= control target key end

     0   :  { %s196_s1 = inlined_call_operand.vmem [shape: bf16[128,128], index: 1, kind: input, shape index: {}]   ;;  %s197_s2 = inlined_call_operand.vmem [shape: f32[1,128], index: 2, kind: input, shape index: {}]   ;;  %s198_s0 = inlined_call_operand.vmem [shape: bf16[8,128], index: 0, kind: input, shape index: {}]   ;;  %s199_s3 = inlined_call_operand.vmem [shape: bf16[8,128], index: 3, kind: output, shape index: {}]  }
   0x1   :  { %v141_v0 = vld [vmem:[%s196_s1 + $0x38] sm:$0xff]  ;;  %v140_v1 = vld [vmem:[%s196_s1 + $0x30] sm:$0xff]  ;;  %v139_v2 = vld [vmem:[%s196_s1 + $0x28] sm:$0xff] }
   0x2   :  { %83 = vmatpush.bf16.msra.mxu0 %v141_v0  ;;  %v138_v3 = vld [vmem:[%s196_s1 + $0x20] sm:$0xff]  ;;  %v137_v4 = vld [vmem:[%s196_s1 + $0x18] sm:$0xff]  ;;  %v136_v5 = vld [vmem:[%s196_s1 + $0x10] sm:$0xff] }
   0x3   :  { %v135_v6 = vld [vmem:[%s196_s1 + $0x8] sm:$0xff]  ;;  %v134_v7 = vld [vmem:[%s196_s1] sm:$0xff] }
   0x4   :  { %v14_v8 = vld [vmem:[%s198_s0] sm:$0xf] }
   0x5   :  { %v142_v9 = vld [vmem:[%s197_s2] ss:$0 sm:$0xff] }
   0x6   :  { %84 = vmatpush.bf16.msra.mxu0 %v140_v1 }
   0xa   :  { %85 = vmatpush.bf16.msra.mxu0 %v139_v2 }
   0xe   :  { %86 = vmatpush.bf16.msra.mxu0 %v138_v3 }
  0x12   :  { %87 = vmatpush.bf16.msra.mxu0 %v137_v4 }
  0x16   :  { %88 = vmatpush.bf16.msra.mxu0 %v136_v5 }
  0x1a   :  { %89 = vmatpush.bf16.msra.mxu0 %v135_v6 }
  0x1e   :  { %90 = vmatpush.bf16.msra.mxu0 %v134_v7 }
  0x21   :  { %91 = vmatmul.bf16.vlgmr.msra.gmra.mxu0 %v14_v8 }
  0x9e   :  { %v92_v10 = vpop.f32.mrf.mxu0 }
  0x9f   :  { %v93_v11 = vadd.f32 %v142_v9, %v92_v10 }
  0xa1   :  { %v96_v12 = vpack.c.bf16 %v93_v11, %v93_v11 }
  0xa3   :  { %97 = vst [vmem:[%s199_s3] sm:$0xf] %v96_v12 }
  0xa6   :  { %v94_v13 = vpop.f32.mrf.mxu0 }

// kernel: encoder_fwd_nchw.22
= control target key start
LH: loop header
LB: loop body
LE: loop exit
PB: predicated region body
PF: predicated region fallthrough
CT: control target
= control target key end

     0   :  { %s1724_s1 = inlined_call_operand.vmem [shape: bf16[1152,128], index: 1, kind: input, shape index: {}]   ;;  %s1725_s0 = inlined_call_operand.vmem [shape: bf16[32,1152], index: 0, kind: input, shape index: {}]   ;;  %s1726_s2 = inlined_call_operand.vmem [shape: f32[1,128], index: 2, kind: input, shape index: {}]   ;;  %s1727_s3 = inlined_call_operand.vmem [shape: bf16[32,128], index: 3, kind: output, shape index: {}]  }
   0x1   :  { %v1286_v0 = vld [vmem:[%s1724_s1 + $0x38] sm:$0xff]  ;;  %v1285_v4 = vld [vmem:[%s1724_s1 + $0x30] sm:$0xff]  ;;  %v1284_v8 = vld [vmem:[%s1724_s1 + $0x28] sm:$0xff] }
   0x2   :  { %v1294_v1 = vld [vmem:[%s1724_s1 + $0x78] sm:$0xff]  ;;  %706 = vmatpush.bf16.msra.mxu0 %v1286_v0  ;;  %v1293_v5 = vld [vmem:[%s1724_s1 + $0x70] sm:$0xff]  ;;  %v1292_v9 = vld [vmem:[%s1724_s1 + $0x68] sm:$0xff] }
   0x3   :  { %v1302_v2 = vld [vmem:[%s1724_s1 + $0xb8] sm:$0xff]  ;;  %725 = vmatpush.bf16.msra.mxu1 %v1294_v1  ;;  %v1301_v6 = vld [vmem:[%s1724_s1 + $0xb0] sm:$0xff]  ;;  %v1300_v10 = vld [vmem:[%s1724_s1 + $0xa8] sm:$0xff] }
   0x4   :  { %v1310_v3 = vld [vmem:[%s1724_s1 + $0xf8] sm:$0xff]  ;;  %744 = vmatpush.bf16.msra.mxu2 %v1302_v2  ;;  %v1309_v7 = vld [vmem:[%s1724_s1 + $0xf0] sm:$0xff]  ;;  %v1308_v11 = vld [vmem:[%s1724_s1 + $0xe8] sm:$0xff] }
   0x5   :  { %763 = vmatpush.bf16.msra.mxu3 %v1310_v3  ;;  %v1283_v12 = vld [vmem:[%s1724_s1 + $0x20] sm:$0xff]  ;;  %v1282_v16 = vld [vmem:[%s1724_s1 + $0x18] sm:$0xff]  ;;  %v1281_v20 = vld [vmem:[%s1724_s1 + $0x10] sm:$0xff] }
   0x6   :  { %707 = vmatpush.bf16.msra.mxu0 %v1285_v4  ;;  %v1291_v13 = vld [vmem:[%s1724_s1 + $0x60] sm:$0xff]  ;;  %v1290_v17 = vld [vmem:[%s1724_s1 + $0x58] sm:$0xff]  ;;  %v1289_v21 = vld [vmem:[%s1724_s1 + $0x50] sm:$0xff] }
   0x7   :  { %726 = vmatpush.bf16.msra.mxu1 %v1293_v5  ;;  %v1299_v14 = vld [vmem:[%s1724_s1 + $0xa0] sm:$0xff]  ;;  %v1298_v18 = vld [vmem:[%s1724_s1 + $0x98] sm:$0xff]  ;;  %v1297_v22 = vld [vmem:[%s1724_s1 + $0x90] sm:$0xff] }
   0x8   :  { %745 = vmatpush.bf16.msra.mxu2 %v1301_v6  ;;  %v1307_v15 = vld [vmem:[%s1724_s1 + $0xe0] sm:$0xff]  ;;  %v1306_v19 = vld [vmem:[%s1724_s1 + $0xd8] sm:$0xff]  ;;  %v1305_v23 = vld [vmem:[%s1724_s1 + $0xd0] sm:$0xff] }
   0x9   :  { %764 = vmatpush.bf16.msra.mxu3 %v1309_v7  ;;  %v1280_v24 = vld [vmem:[%s1724_s1 + $0x8] sm:$0xff]  ;;  %v1279_v28 = vld [vmem:[%s1724_s1] sm:$0xff]  ;;  %v913_v39 = vld [vmem:[%s1725_s0 + $0x2c] sm:$0xf0] }
   0xa   :  { %708 = vmatpush.bf16.msra.mxu0 %v1284_v8  ;;  %v1288_v25 = vld [vmem:[%s1724_s1 + $0x48] sm:$0xff]  ;;  %v1287_v29 = vld [vmem:[%s1724_s1 + $0x40] sm:$0xff]  ;;  %v1318_v40 = vld [vmem:[%s1724_s1 + $0x138] sm:$0xff] }
   0xb   :  { %727 = vmatpush.bf16.msra.mxu1 %v1292_v9  ;;  %v1296_v26 = vld [vmem:[%s1724_s1 + $0x88] sm:$0xff]  ;;  %v1295_v30 = vld [vmem:[%s1724_s1 + $0x80] sm:$0xff]  ;;  %v1326_v41 = vld [vmem:[%s1724_s1 + $0x178] sm:$0xff] }
   0xc   :  { %746 = vmatpush.bf16.msra.mxu2 %v1300_v10  ;;  %v1304_v27 = vld [vmem:[%s1724_s1 + $0xc8] sm:$0xff]  ;;  %v1303_v31 = vld [vmem:[%s1724_s1 + $0xc0] sm:$0xff]  ;;  %v1334_v46 = vld [vmem:[%s1724_s1 + $0x1b8] sm:$0xff] }
   0xd   :  { %765 = vmatpush.bf16.msra.mxu3 %v1308_v11  ;;  %v903_v32 = vld [vmem:[%s1725_s0] sm:$0xf]  ;;  %v1265_v33 = vld [vmem:[%s1725_s0 + $0x20] sm:$0xf0]  ;;  %v905_v35 = vld [vmem:[%s1725_s0 + $0x24] sm:$0xf0] }
   0xe   :  { %709 = vmatpush.bf16.msra.mxu0 %v1283_v12  ;;  %v1261_v34 = vld [vmem:[%s1725_s0 + $0x4] sm:$0xf]  ;;  %v911_v36 = vld [vmem:[%s1725_s0 + $0x8] sm:$0xf]  ;;  %v1266_v37 = vld [vmem:[%s1725_s0 + $0x28] sm:$0xf0]  ;;  %v904_v42 = vor.u32 %v1265_v33, %v903_v32 }
   0xf   :  { %728 = vmatpush.bf16.msra.mxu1 %v1291_v13  ;;  %v1262_v38 = vld [vmem:[%s1725_s0 + $0xc] sm:$0xf]  ;;  %v908_v43 = vor.u32 %v1261_v34, %v905_v35  ;;  %v912_v44 = vor.u32 %v1266_v37, %v911_v36  ;;  %v1342_v47 = vld [vmem:[%s1724_s1 + $0x1f8] sm:$0xff]  ;;  %v1317_v48 = vld [vmem:[%s1724_s1 + $0x130] sm:$0xff] }
  0x10   :  { %747 = vmatpush.bf16.msra.mxu2 %v1299_v14  ;;  %v916_v45 = vor.u32 %v1262_v38, %v913_v39  ;;  %v1325_v49 = vld [vmem:[%s1724_s1 + $0x170] sm:$0xff]  ;;  %v1316_v52 = vld [vmem:[%s1724_s1 + $0x128] sm:$0xff]  ;;  %v1315_v56 = vld [vmem:[%s1724_s1 + $0x120] sm:$0xff] }
  0x11   :  { %766 = vmatpush.bf16.msra.mxu3 %v1307_v15  ;;  %v1333_v50 = vld [vmem:[%s1724_s1 + $0x1b0] sm:$0xff]  ;;  %v1324_v53 = vld [vmem:[%s1724_s1 + $0x168] sm:$0xff]  ;;  %v1323_v57 = vld [vmem:[%s1724_s1 + $0x160] sm:$0xff] }
  0x12   :  { %710 = vmatpush.bf16.msra.mxu0 %v1282_v16  ;;  %v1341_v51 = vld [vmem:[%s1724_s1 + $0x1f0] sm:$0xff]  ;;  %v1332_v54 = vld [vmem:[%s1724_s1 + $0x1a8] sm:$0xff]  ;;  %v1331_v58 = vld [vmem:[%s1724_s1 + $0x1a0] sm:$0xff] }
  0x13   :  { %729 = vmatpush.bf16.msra.mxu1 %v1290_v17  ;;  %v1340_v55 = vld [vmem:[%s1724_s1 + $0x1e8] sm:$0xff]  ;;  %v1339_v59 = vld [vmem:[%s1724_s1 + $0x1e0] sm:$0xff]  ;;  %v941_v63 = vld [vmem:[%s1725_s0 + $0x6c] sm:$0xf0] }
  0x14   :  { %748 = vmatpush.bf16.msra.mxu2 %v1298_v18  ;;  %v939_v60 = vld [vmem:[%s1725_s0 + $0x48] sm:$0xf]  ;;  %v1274_v61 = vld [vmem:[%s1725_s0 + $0x68] sm:$0xf0]  ;;  %v947_v0 = vld [vmem:[%s1725_s0 + $0x50] sm:$0xf] }
  0x15   :  { %767 = vmatpush.bf16.msra.mxu3 %v1306_v19  ;;  %v1270_v62 = vld [vmem:[%s1725_s0 + $0x4c] sm:$0xf]  ;;  %v1275_v1 = vld [vmem:[%s1725_s0 + $0x70] sm:$0xf0]  ;;  %v949_v3 = vld [vmem:[%s1725_s0 + $0x74] sm:$0xf0]  ;;  %v940_v6 = vor.u32 %v1274_v61, %v939_v60 }
  0x16   :  { %711 = vmatpush.bf16.msra.mxu0 %v1281_v20  ;;  %v1271_v2 = vld [vmem:[%s1725_s0 + $0x54] sm:$0xf]  ;;  %v1314_v4 = vld [vmem:[%s1724_s1 + $0x118] sm:$0xff]  ;;  %v944_v7 = vor.u32 %v1270_v62, %v941_v63  ;;  %v948_v8 = vor.u32 %v1275_v1, %v947_v0  ;;  %v1312_v16 = vld [vmem:[%s1724_s1 + $0x108] sm:$0xff] }
  0x17   :  { %730 = vmatpush.bf16.msra.mxu1 %v1289_v21  ;;  %v1322_v5 = vld [vmem:[%s1724_s1 + $0x158] sm:$0xff]  ;;  %v952_v9 = vor.u32 %v1271_v2, %v949_v3  ;;  %v1313_v12 = vld [vmem:[%s1724_s1 + $0x110] sm:$0xff]  ;;  %v1320_v17 = vld [vmem:[%s1724_s1 + $0x148] sm:$0xff] }
  0x18   :  { %749 = vmatpush.bf16.msra.mxu2 %v1297_v22  ;;  %v1330_v10 = vld [vmem:[%s1724_s1 + $0x198] sm:$0xff]  ;;  %v1321_v13 = vld [vmem:[%s1724_s1 + $0x150] sm:$0xff]  ;;  %v1328_v18 = vld [vmem:[%s1724_s1 + $0x188] sm:$0xff] }
  0x19   :  { %768 = vmatpush.bf16.msra.mxu3 %v1305_v23  ;;  %v1338_v11 = vld [vmem:[%s1724_s1 + $0x1d8] sm:$0xff]  ;;  %v1329_v14 = vld [vmem:[%s1724_s1 + $0x190] sm:$0xff]  ;;  %v1336_v19 = vld [vmem:[%s1724_s1 + $0x1c8] sm:$0xff] }
  0x1a   :  { %712 = vmatpush.bf16.msra.mxu0 %v1280_v24  ;;  %v1337_v15 = vld [vmem:[%s1724_s1 + $0x1d0] sm:$0xff]  ;;  %v1311_v20 = vld [vmem:[%s1724_s1 + $0x100] sm:$0xff]  ;;  %v1348_v38 = vld [vmem:[%s1724_s1 + $0x228] sm:$0xff] }
  0x1b   :  { %731 = vmatpush.bf16.msra.mxu1 %v1288_v25  ;;  %v1319_v21 = vld [vmem:[%s1724_s1 + $0x140] sm:$0xff]  ;;  %v919_v24 = vld [vmem:[%s1725_s0 + $0x10] sm:$0xf]  ;;  %v1267_v25 = vld [vmem:[%s1725_s0 + $0x30] sm:$0xf0] }
  0x1c   :  { %750 = vmatpush.bf16.msra.mxu2 %v1296_v26  ;;  %v1327_v22 = vld [vmem:[%s1724_s1 + $0x180] sm:$0xff]  ;;  %v1350_v26 = vld [vmem:[%s1724_s1 + $0x238] sm:$0xff]  ;;  %v920_v33 = vor.u32 %v1267_v25, %v919_v24  ;;  %v1349_v37 = vld [vmem:[%s1724_s1 + $0x230] sm:$0xff] }
  0x1d   :  { %769 = vmatpush.bf16.msra.mxu3 %v1304_v27  ;;  %v1335_v23 = vld [vmem:[%s1724_s1 + $0x1c0] sm:$0xff]  ;;  %v1263_v27 = vld [vmem:[%s1725_s0 + $0x14] sm:$0xf] }
  0x1e   :  { %713 = vmatpush.bf16.msra.mxu0 %v1279_v28  ;;  %v921_v28 = vld [vmem:[%s1725_s0 + $0x34] sm:$0xf0]  ;;  %v929_v32 = vld [vmem:[%s1725_s0 + $0x3c] sm:$0xf0] }
  0x1f   :  { %732 = vmatpush.bf16.msra.mxu1 %v1287_v29  ;;  %v927_v29 = vld [vmem:[%s1725_s0 + $0x18] sm:$0xf]  ;;  %v924_v34 = vor.u32 %v1263_v27, %v921_v28  ;;  %v1347_v39 = vld [vmem:[%s1724_s1 + $0x220] sm:$0xff] }
  0x20   :  { %751 = vmatpush.bf16.msra.mxu2 %v1295_v30  ;;  %v1268_v30 = vld [vmem:[%s1725_s0 + $0x38] sm:$0xf0] }
  0x21   :  { %770 = vmatpush.bf16.msra.mxu3 %v1303_v31  ;;  %714 = vmatmul.bf16.vlgmr.msra.gmra.mxu0 %v904_v42  ;;  %v1264_v31 = vld [vmem:[%s1725_s0 + $0x1c] sm:$0xf]  ;;  %v928_v35 = vor.u32 %v1268_v30, %v927_v29 }
  0x22   :  { %782 = vmatpush.bf16.msrb.mxu0 %v1318_v40  ;;  %733 = vmatmul.bf16.vlgmr.msra.gmra.mxu1 %v908_v43  ;;  %v932_v36 = vor.u32 %v1264_v31, %v929_v32  ;;  %v955_v40 = vld [vmem:[%s1725_s0 + $0x58] sm:$0xf]  ;;  %v1272_v42 = vld [vmem:[%s1725_s0 + $0x5c] sm:$0xf]  ;;  %v957_v43 = vld [vmem:[%s1725_s0 + $0x7c] sm:$0xf0] }
  0x23   :  { %801 = vmatpush.bf16.msrb.mxu1 %v1326_v41  ;;  %752 = vmatmul.bf16.vlgmr.msra.gmra.mxu2 %v912_v44  ;;  %v1276_v41 = vld [vmem:[%s1725_s0 + $0x78] sm:$0xf0]  ;;  %v963_v44 = vld [vmem:[%s1725_s0 + $0x60] sm:$0xf] }
  0x24   :  { %771 = vmatmul.bf16.vlgmr.msra.gmra.mxu3 %v916_v45  ;;  %820 = vmatpush.bf16.msrb.mxu2 %v1334_v46  ;;  %v1277_v45 = vld [vmem:[%s1725_s0 + $0x80] sm:$0xf0] }
  0x25   :  { %839 = vmatpush.bf16.msrb.mxu3 %v1342_v47  ;;  %v1273_v46 = vld [vmem:[%s1725_s0 + $0x64] sm:$0xf]  ;;  %v965_v47 = vld [vmem:[%s1725_s0 + $0x84] sm:$0xf0] }
  0x26   :  { %783 = vmatpush.bf16.msrb.mxu0 %v1317_v48  ;;  %v1346_v48 = vld [vmem:[%s1724_s1 + $0x218] sm:$0xff] }
  0x27   :  { %802 = vmatpush.bf16.msrb.mxu1 %v1325_v49  ;;  %v956_v49 = vor.u32 %v1276_v41, %v955_v40 }
  0x28   :  { %821 = vmatpush.bf16.msrb.mxu2 %v1333_v50  ;;  %v960_v50 = vor.u32 %v1272_v42, %v957_v43 }
  0x29   :  { %840 = vmatpush.bf16.msrb.mxu3 %v1341_v51  ;;  %v964_v51 = vor.u32 %v1277_v45, %v963_v44 }
  0x2a   :  { %784 = vmatpush.bf16.msrb.mxu0 %v1316_v52  ;;  %v968_v52 = vor.u32 %v1273_v46, %v965_v47 }
  0x2b   :  { %803 = vmatpush.bf16.msrb.mxu1 %v1324_v53  ;;  %v1345_v53 = vld [vmem:[%s1724_s1 + $0x210] sm:$0xff] }
  0x2c   :  { %822 = vmatpush.bf16.msrb.mxu2 %v1332_v54  ;;  %v1344_v54 = vld [vmem:[%s1724_s1 + $0x208] sm:$0xff] }
  0x2d   :  { %841 = vmatpush.bf16.msrb.mxu3 %v1340_v55  ;;  %v1343_v55 = vld [vmem:[%s1724_s1 + $0x200] sm:$0xff] }
  0x2e   :  { %785 = vmatpush.bf16.msrb.mxu0 %v1315_v56  ;;  %v935_v56 = vld [vmem:[%s1725_s0 + $0x20] sm:$0xf] }
  0x2f   :  { %804 = vmatpush.bf16.msrb.mxu1 %v1323_v57  ;;  %v1269_v57 = vld [vmem:[%s1725_s0 + $0x40] sm:$0xf0] }
  0x30   :  { %823 = vmatpush.bf16.msrb.mxu2 %v1331_v58  ;;  %v971_v58 = vld [vmem:[%s1725_s0 + $0x68] sm:$0xf]  ;;  %v936_v60 = vor.u32 %v1269_v57, %v935_v56 }
  0x31   :  { %842 = vmatpush.bf16.msrb.mxu3 %v1339_v59  ;;  %719 = vmatmul.bf16.gmra.mxu0 %v940_v6  ;;  %v1278_v59 = vld [vmem:[%s1725_s0 + $0x88] sm:$0xf0] }
  0x32   :  { %786 = vmatpush.bf16.msrb.mxu0 %v1314_v4  ;;  %738 = vmatmul.bf16.gmra.mxu1 %v944_v7  ;;  %v972_v61 = vor.u32 %v1278_v59, %v971_v58 }
  0x33   :  { %805 = vmatpush.bf16.msrb.mxu1 %v1322_v5  ;;  %757 = vmatmul.bf16.gmra.mxu2 %v948_v8 }
  0x34   :  { %776 = vmatmul.bf16.gmra.mxu3 %v952_v9  ;;  %824 = vmatpush.bf16.msrb.mxu2 %v1330_v10 }
  0x35   :  { %843 = vmatpush.bf16.msrb.mxu3 %v1338_v11 }
  0x36   :  { %787 = vmatpush.bf16.msrb.mxu0 %v1313_v12 }
  0x37   :  { %806 = vmatpush.bf16.msrb.mxu1 %v1321_v13 }
  0x38   :  { %825 = vmatpush.bf16.msrb.mxu2 %v1329_v14 }
  0x39   :  { %844 = vmatpush.bf16.msrb.mxu3 %v1337_v15 }
  0x3a   :  { %788 = vmatpush.bf16.msrb.mxu0 %v1312_v16 }
  0x3b   :  { %807 = vmatpush.bf16.msrb.mxu1 %v1320_v17 }
  0x3c   :  { %826 = vmatpush.bf16.msrb.mxu2 %v1328_v18 }
  0x3d   :  { %845 = vmatpush.bf16.msrb.mxu3 %v1336_v19 }
  0x3e   :  { %789 = vmatpush.bf16.msrb.mxu0 %v1311_v20  ;;  %v1370_v20 = vld [vmem:[%s1726_s2] ss:$0 sm:$0xff] }
  0x3f   :  { %808 = vmatpush.bf16.msrb.mxu1 %v1319_v21 }
  0x40   :  { %827 = vmatpush.bf16.msrb.mxu2 %v1327_v22 }
  0x41   :  { %846 = vmatpush.bf16.msrb.mxu3 %v1335_v23  ;;  %790 = vmatmul.bf16.vlgmr.msrb.gmra.mxu0 %v920_v33 }
  0x42   :  { %858 = vmatpush.bf16.msra.mxu0 %v1350_v26  ;;  %809 = vmatmul.bf16.vlgmr.msrb.gmra.mxu1 %v924_v34 }
  0x43   :  { %1362 = vmatpush.bf16.msra.mxu1 %v1350_v26  ;;  %828 = vmatmul.bf16.vlgmr.msrb.gmra.mxu2 %v928_v35 }
  0x44   :  { %847 = vmatmul.bf16.vlgmr.msrb.gmra.mxu3 %v932_v36 }
  0x46   :  { %859 = vmatpush.bf16.msra.mxu0 %v1349_v37 }
  0x47   :  { %1363 = vmatpush.bf16.msra.mxu1 %v1349_v37 }
  0x4a   :  { %860 = vmatpush.bf16.msra.mxu0 %v1348_v38 }
  0x4b   :  { %1364 = vmatpush.bf16.msra.mxu1 %v1348_v38 }
  0x4e   :  { %861 = vmatpush.bf16.msra.mxu0 %v1347_v39 }
  0x4f   :  { %1365 = vmatpush.bf16.msra.mxu1 %v1347_v39 }
  0x51   :  { %795 = vmatmul.bf16.gmra.mxu0 %v956_v49 }
  0x52   :  { %862 = vmatpush.bf16.msra.mxu0 %v1346_v48  ;;  %814 = vmatmul.bf16.gmra.mxu1 %v960_v50 }
  0x53   :  { %1366 = vmatpush.bf16.msra.mxu1 %v1346_v48  ;;  %833 = vmatmul.bf16.gmra.mxu2 %v964_v51 }
  0x54   :  { %852 = vmatmul.bf16.gmra.mxu3 %v968_v52 }
  0x56   :  { %863 = vmatpush.bf16.msra.mxu0 %v1345_v53 }
  0x57   :  { %1367 = vmatpush.bf16.msra.mxu1 %v1345_v53 }
  0x5a   :  { %864 = vmatpush.bf16.msra.mxu0 %v1344_v54 }
  0x5b   :  { %1368 = vmatpush.bf16.msra.mxu1 %v1344_v54 }
  0x5e   :  { %865 = vmatpush.bf16.msra.mxu0 %v1343_v55 }
  0x5f   :  { %1369 = vmatpush.bf16.msra.mxu1 %v1343_v55 }
  0x61   :  { %866 = vmatmul.bf16.vlgmr.msra.gmra.mxu0 %v936_v60 }
  0x62   :  { %871 = vmatmul.bf16.vlgmr.msra.gmra.mxu1 %v972_v61 }
  0x9e   :  { %v715_v62 = vpop.f32.mrf.mxu0 }
  0x9f   :  { %v734_v63 = vpop.f32.mrf.mxu1  ;;  %v716_v21 = vadd.f32 %v1370_v20, %v715_v62 }
  0xa1   :  { %v735_v26 = vadd.f32 %v734_v63, %v716_v21 }
  0xa6   :  { %v753_v0 = vpop.f32.mrf.mxu2  ;;  %v717_v2 = vpop.f32.mrf.mxu0 }
  0xa7   :  { %v772_v1 = vpop.f32.mrf.mxu3  ;;  %v736_v3 = vpop.f32.mrf.mxu1  ;;  %v718_v27 = vadd.f32 %v1370_v20, %v717_v2  ;;  %v754_v31 = vadd.f32 %v753_v0, %v735_v26 }
  0xa9   :  { %v737_v33 = vadd.f32 %v736_v3, %v718_v27  ;;  %v773_v35 = vadd.f32 %v772_v1, %v754_v31 }
  0xae   :  { %v755_v4 = vpop.f32.mrf.mxu2  ;;  %v720_v6 = vpop.f32.mrf.mxu0 }
  0xaf   :  { %v774_v5 = vpop.f32.mrf.mxu3  ;;  %v739_v7 = vpop.f32.mrf.mxu1  ;;  %v721_v22 = vadd.f32 %v1370_v20, %v720_v6  ;;  %v756_v36 = vadd.f32 %v755_v4, %v737_v33 }
  0xb1   :  { %v740_v28 = vadd.f32 %v739_v7, %v721_v22  ;;  %v775_v44 = vadd.f32 %v774_v5, %v756_v36 }
  0xb6   :  { %v758_v8 = vpop.f32.mrf.mxu2  ;;  %v722_v10 = vpop.f32.mrf.mxu0 }
  0xb7   :  { %v777_v9 = vpop.f32.mrf.mxu3  ;;  %v741_v11 = vpop.f32.mrf.mxu1  ;;  %v723_v29 = vadd.f32 %v1370_v20, %v722_v10  ;;  %v759_v32 = vadd.f32 %v758_v8, %v740_v28 }
  0xb9   :  { %v742_v34 = vadd.f32 %v741_v11, %v723_v29  ;;  %v778_v37 = vadd.f32 %v777_v9, %v759_v32 }
  0xbe   :  { %v760_v12 = vpop.f32.mrf.mxu2  ;;  %v791_v14 = vpop.f32.mrf.mxu0 }
  0xbf   :  { %v779_v13 = vpop.f32.mrf.mxu3  ;;  %v810_v15 = vpop.f32.mrf.mxu1  ;;  %v761_v38 = vadd.f32 %v760_v12, %v742_v34  ;;  %v792_v42 = vadd.f32 %v791_v14, %v773_v35 }
  0xc1   :  { %v780_v45 = vadd.f32 %v779_v13, %v761_v38  ;;  %v811_v47 = vadd.f32 %v810_v15, %v792_v42 }
  0xc6   :  { %v829_v16 = vpop.f32.mrf.mxu2  ;;  %v793_v18 = vpop.f32.mrf.mxu0 }
  0xc7   :  { %v848_v17 = vpop.f32.mrf.mxu3  ;;  %v812_v19 = vpop.f32.mrf.mxu1  ;;  %v794_v48 = vadd.f32 %v793_v18, %v775_v44  ;;  %v830_v51 = vadd.f32 %v829_v16, %v811_v47 }
  0xc9   :  { %v813_v56 = vadd.f32 %v812_v19, %v794_v48  ;;  %v849_v58 = vadd.f32 %v848_v17, %v830_v51 }
  0xce   :  { %v831_v23 = vpop.f32.mrf.mxu2  ;;  %v796_v24 = vpop.f32.mrf.mxu0 }
  0xcf   :  { %v815_v25 = vpop.f32.mrf.mxu1  ;;  %v850_v30 = vpop.f32.mrf.mxu3  ;;  %v797_v43 = vadd.f32 %v796_v24, %v778_v37  ;;  %v832_v59 = vadd.f32 %v831_v23, %v813_v56 }
  0xd1   :  { %v816_v49 = vadd.f32 %v815_v25, %v797_v43  ;;  %v851_v1 = vadd.f32 %v850_v30, %v832_v59 }
  0xd6   :  { %v834_v39 = vpop.f32.mrf.mxu2  ;;  %v798_v40 = vpop.f32.mrf.mxu0 }
  0xd7   :  { %v817_v41 = vpop.f32.mrf.mxu1  ;;  %v853_v46 = vpop.f32.mrf.mxu3  ;;  %v799_v50 = vadd.f32 %v798_v40, %v780_v45  ;;  %v835_v52 = vadd.f32 %v834_v39, %v816_v49 }
  0xd9   :  { %v818_v57 = vadd.f32 %v817_v41, %v799_v50  ;;  %v854_v60 = vadd.f32 %v853_v46, %v835_v52 }
  0xde   :  { %v836_v53 = vpop.f32.mrf.mxu2  ;;  %v867_v54 = vpop.f32.mrf.mxu0 }
  0xdf   :  { %v872_v55 = vpop.f32.mrf.mxu1  ;;  %v837_v61 = vadd.f32 %v836_v53, %v818_v57  ;;  %v868_v62 = vadd.f32 %v867_v54, %v849_v58  ;;  %v855_v0 = vpop.f32.mrf.mxu3 }
  0xe0   :  { %v873_v63 = vadd.f32 %v872_v55, %v854_v60 }
  0xe1   :  { %v856_v2 = vadd.f32 %v855_v0, %v837_v61  ;;  %v881_v5 = vmul.f32 0.01, %v868_v62  ;;  %vm877_vm0 = vcmp.ge.f32.partialorder %v868_v62, 0.0 }
  0xe2   :  { %v883_v6 = vmul.f32 0.01, %v873_v63  ;;  %vm879_vm1 = vcmp.ge.f32.partialorder %v873_v63, 0.0 }
  0xe3   :  { %v885_v11 = vsel %vm877_vm0, %v868_v62, %v881_v5 }
  0xe4   :  { %v887_v12 = vsel %vm879_vm1, %v873_v63, %v883_v6 }
  0xe6   :  { %v869_v3 = vpop.f32.mrf.mxu0 }
  0xe7   :  { %v874_v4 = vpop.f32.mrf.mxu1  ;;  %v870_v7 = vadd.f32 %v869_v3, %v851_v1 }
  0xe8   :  { %v875_v8 = vadd.f32 %v874_v4, %v856_v2 }
  0xe9   :  { %vm878_vm2 = vcmp.ge.f32.partialorder %v870_v7, 0.0  ;;  %v882_v9 = vmul.f32 0.01, %v870_v7 }
  0xea   :  { %vm880_vm3 = vcmp.ge.f32.partialorder %v875_v8, 0.0  ;;  %v884_v10 = vmul.f32 0.01, %v875_v8 }
  0xeb   :  { %v886_v13 = vsel %vm878_vm2, %v870_v7, %v882_v9 }
  0xec   :  { %v888_v14 = vsel %vm880_vm3, %v875_v8, %v884_v10  ;;  %v1354_v15 = vpack.c.bf16 %v886_v13, %v885_v11 }
  0xed   :  { %v1359_v16 = vpack.c.bf16 %v888_v14, %v887_v12 }
  0xee   :  { %1355 = vst [vmem:[%s1727_s3] sm:$0xff] %v1354_v15  }
  0xef   :  { %1361 = vst [vmem:[%s1727_s3 + $0x8] sm:$0xff] %v1359_v16  }

// kernel: encoder_fwd_nchw.23
= control target key start
LH: loop header
LB: loop body
LE: loop exit
PB: predicated region body
PF: predicated region fallthrough
CT: control target
= control target key end

     0   :  { %s1759_s1 = inlined_call_operand.vmem [shape: bf16[1152,128], index: 1, kind: input, shape index: {}]   ;;  %s1760_s0 = inlined_call_operand.vmem [shape: bf16[32,1152], index: 0, kind: input, shape index: {}]   ;;  %s1761_s2 = inlined_call_operand.vmem [shape: f32[1,128], index: 2, kind: input, shape index: {}]   ;;  %s1762_s3 = inlined_call_operand.vmem [shape: bf16[32,128], index: 3, kind: input, shape index: {}]   ;;  %s1763_s4 = inlined_call_operand.vmem [shape: bf16[32,128], index: 4, kind: output, shape index: {}]  }
   0x1   :  { %v1301_v0 = vld [vmem:[%s1759_s1 + $0x38] sm:$0xff]  ;;  %v1300_v4 = vld [vmem:[%s1759_s1 + $0x30] sm:$0xff]  ;;  %v1299_v8 = vld [vmem:[%s1759_s1 + $0x28] sm:$0xff] }
   0x2   :  { %v1309_v1 = vld [vmem:[%s1759_s1 + $0x78] sm:$0xff]  ;;  %709 = vmatpush.bf16.msra.mxu0 %v1301_v0  ;;  %v1308_v5 = vld [vmem:[%s1759_s1 + $0x70] sm:$0xff]  ;;  %v1307_v9 = vld [vmem:[%s1759_s1 + $0x68] sm:$0xff] }
   0x3   :  { %v1317_v2 = vld [vmem:[%s1759_s1 + $0xb8] sm:$0xff]  ;;  %728 = vmatpush.bf16.msra.mxu1 %v1309_v1  ;;  %v1316_v6 = vld [vmem:[%s1759_s1 + $0xb0] sm:$0xff]  ;;  %v1315_v10 = vld [vmem:[%s1759_s1 + $0xa8] sm:$0xff] }
   0x4   :  { %v1325_v3 = vld [vmem:[%s1759_s1 + $0xf8] sm:$0xff]  ;;  %747 = vmatpush.bf16.msra.mxu2 %v1317_v2  ;;  %v1324_v7 = vld [vmem:[%s1759_s1 + $0xf0] sm:$0xff]  ;;  %v1323_v11 = vld [vmem:[%s1759_s1 + $0xe8] sm:$0xff] }
   0x5   :  { %766 = vmatpush.bf16.msra.mxu3 %v1325_v3  ;;  %v1298_v12 = vld [vmem:[%s1759_s1 + $0x20] sm:$0xff]  ;;  %v1297_v16 = vld [vmem:[%s1759_s1 + $0x18] sm:$0xff]  ;;  %v1296_v20 = vld [vmem:[%s1759_s1 + $0x10] sm:$0xff] }
   0x6   :  { %710 = vmatpush.bf16.msra.mxu0 %v1300_v4  ;;  %v1306_v13 = vld [vmem:[%s1759_s1 + $0x60] sm:$0xff]  ;;  %v1305_v17 = vld [vmem:[%s1759_s1 + $0x58] sm:$0xff]  ;;  %v1304_v21 = vld [vmem:[%s1759_s1 + $0x50] sm:$0xff] }
   0x7   :  { %729 = vmatpush.bf16.msra.mxu1 %v1308_v5  ;;  %v1314_v14 = vld [vmem:[%s1759_s1 + $0xa0] sm:$0xff]  ;;  %v1313_v18 = vld [vmem:[%s1759_s1 + $0x98] sm:$0xff]  ;;  %v1312_v22 = vld [vmem:[%s1759_s1 + $0x90] sm:$0xff] }
   0x8   :  { %748 = vmatpush.bf16.msra.mxu2 %v1316_v6  ;;  %v1322_v15 = vld [vmem:[%s1759_s1 + $0xe0] sm:$0xff]  ;;  %v1321_v19 = vld [vmem:[%s1759_s1 + $0xd8] sm:$0xff]  ;;  %v1320_v23 = vld [vmem:[%s1759_s1 + $0xd0] sm:$0xff] }
   0x9   :  { %767 = vmatpush.bf16.msra.mxu3 %v1324_v7  ;;  %v1295_v24 = vld [vmem:[%s1759_s1 + $0x8] sm:$0xff]  ;;  %v1294_v28 = vld [vmem:[%s1759_s1] sm:$0xff]  ;;  %v928_v39 = vld [vmem:[%s1760_s0 + $0x2c] sm:$0xf0] }
   0xa   :  { %711 = vmatpush.bf16.msra.mxu0 %v1299_v8  ;;  %v1303_v25 = vld [vmem:[%s1759_s1 + $0x48] sm:$0xff]  ;;  %v1302_v29 = vld [vmem:[%s1759_s1 + $0x40] sm:$0xff]  ;;  %v1333_v40 = vld [vmem:[%s1759_s1 + $0x138] sm:$0xff] }
   0xb   :  { %730 = vmatpush.bf16.msra.mxu1 %v1307_v9  ;;  %v1311_v26 = vld [vmem:[%s1759_s1 + $0x88] sm:$0xff]  ;;  %v1310_v30 = vld [vmem:[%s1759_s1 + $0x80] sm:$0xff]  ;;  %v1341_v41 = vld [vmem:[%s1759_s1 + $0x178] sm:$0xff] }
   0xc   :  { %749 = vmatpush.bf16.msra.mxu2 %v1315_v10  ;;  %v1319_v27 = vld [vmem:[%s1759_s1 + $0xc8] sm:$0xff]  ;;  %v1318_v31 = vld [vmem:[%s1759_s1 + $0xc0] sm:$0xff]  ;;  %v1349_v46 = vld [vmem:[%s1759_s1 + $0x1b8] sm:$0xff] }
   0xd   :  { %768 = vmatpush.bf16.msra.mxu3 %v1323_v11  ;;  %v918_v32 = vld [vmem:[%s1760_s0] sm:$0xf]  ;;  %v1280_v33 = vld [vmem:[%s1760_s0 + $0x20] sm:$0xf0]  ;;  %v920_v35 = vld [vmem:[%s1760_s0 + $0x24] sm:$0xf0] }
   0xe   :  { %712 = vmatpush.bf16.msra.mxu0 %v1298_v12  ;;  %v1276_v34 = vld [vmem:[%s1760_s0 + $0x4] sm:$0xf]  ;;  %v926_v36 = vld [vmem:[%s1760_s0 + $0x8] sm:$0xf]  ;;  %v1281_v37 = vld [vmem:[%s1760_s0 + $0x28] sm:$0xf0]  ;;  %v919_v42 = vor.u32 %v1280_v33, %v918_v32 }
   0xf   :  { %731 = vmatpush.bf16.msra.mxu1 %v1306_v13  ;;  %v1277_v38 = vld [vmem:[%s1760_s0 + $0xc] sm:$0xf]  ;;  %v923_v43 = vor.u32 %v1276_v34, %v920_v35  ;;  %v927_v44 = vor.u32 %v1281_v37, %v926_v36  ;;  %v1357_v47 = vld [vmem:[%s1759_s1 + $0x1f8] sm:$0xff]  ;;  %v1332_v48 = vld [vmem:[%s1759_s1 + $0x130] sm:$0xff] }
  0x10   :  { %750 = vmatpush.bf16.msra.mxu2 %v1314_v14  ;;  %v931_v45 = vor.u32 %v1277_v38, %v928_v39  ;;  %v1340_v49 = vld [vmem:[%s1759_s1 + $0x170] sm:$0xff]  ;;  %v1331_v52 = vld [vmem:[%s1759_s1 + $0x128] sm:$0xff]  ;;  %v1330_v56 = vld [vmem:[%s1759_s1 + $0x120] sm:$0xff] }
  0x11   :  { %769 = vmatpush.bf16.msra.mxu3 %v1322_v15  ;;  %v1348_v50 = vld [vmem:[%s1759_s1 + $0x1b0] sm:$0xff]  ;;  %v1339_v53 = vld [vmem:[%s1759_s1 + $0x168] sm:$0xff]  ;;  %v1338_v57 = vld [vmem:[%s1759_s1 + $0x160] sm:$0xff] }
  0x12   :  { %713 = vmatpush.bf16.msra.mxu0 %v1297_v16  ;;  %v1356_v51 = vld [vmem:[%s1759_s1 + $0x1f0] sm:$0xff]  ;;  %v1347_v54 = vld [vmem:[%s1759_s1 + $0x1a8] sm:$0xff]  ;;  %v1346_v58 = vld [vmem:[%s1759_s1 + $0x1a0] sm:$0xff] }
  0x13   :  { %732 = vmatpush.bf16.msra.mxu1 %v1305_v17  ;;  %v1355_v55 = vld [vmem:[%s1759_s1 + $0x1e8] sm:$0xff]  ;;  %v1354_v59 = vld [vmem:[%s1759_s1 + $0x1e0] sm:$0xff]  ;;  %v956_v63 = vld [vmem:[%s1760_s0 + $0x6c] sm:$0xf0] }
  0x14   :  { %751 = vmatpush.bf16.msra.mxu2 %v1313_v18  ;;  %v954_v60 = vld [vmem:[%s1760_s0 + $0x48] sm:$0xf]  ;;  %v1289_v61 = vld [vmem:[%s1760_s0 + $0x68] sm:$0xf0]  ;;  %v962_v0 = vld [vmem:[%s1760_s0 + $0x50] sm:$0xf] }
  0x15   :  { %770 = vmatpush.bf16.msra.mxu3 %v1321_v19  ;;  %v1285_v62 = vld [vmem:[%s1760_s0 + $0x4c] sm:$0xf]  ;;  %v1290_v1 = vld [vmem:[%s1760_s0 + $0x70] sm:$0xf0]  ;;  %v964_v3 = vld [vmem:[%s1760_s0 + $0x74] sm:$0xf0]  ;;  %v955_v6 = vor.u32 %v1289_v61, %v954_v60 }
  0x16   :  { %714 = vmatpush.bf16.msra.mxu0 %v1296_v20  ;;  %v1286_v2 = vld [vmem:[%s1760_s0 + $0x54] sm:$0xf]  ;;  %v1329_v4 = vld [vmem:[%s1759_s1 + $0x118] sm:$0xff]  ;;  %v959_v7 = vor.u32 %v1285_v62, %v956_v63  ;;  %v963_v8 = vor.u32 %v1290_v1, %v962_v0  ;;  %v1327_v16 = vld [vmem:[%s1759_s1 + $0x108] sm:$0xff] }
  0x17   :  { %733 = vmatpush.bf16.msra.mxu1 %v1304_v21  ;;  %v1337_v5 = vld [vmem:[%s1759_s1 + $0x158] sm:$0xff]  ;;  %v967_v9 = vor.u32 %v1286_v2, %v964_v3  ;;  %v1328_v12 = vld [vmem:[%s1759_s1 + $0x110] sm:$0xff]  ;;  %v1335_v17 = vld [vmem:[%s1759_s1 + $0x148] sm:$0xff] }
  0x18   :  { %752 = vmatpush.bf16.msra.mxu2 %v1312_v22  ;;  %v1345_v10 = vld [vmem:[%s1759_s1 + $0x198] sm:$0xff]  ;;  %v1336_v13 = vld [vmem:[%s1759_s1 + $0x150] sm:$0xff]  ;;  %v1343_v18 = vld [vmem:[%s1759_s1 + $0x188] sm:$0xff] }
  0x19   :  { %771 = vmatpush.bf16.msra.mxu3 %v1320_v23  ;;  %v1353_v11 = vld [vmem:[%s1759_s1 + $0x1d8] sm:$0xff]  ;;  %v1344_v14 = vld [vmem:[%s1759_s1 + $0x190] sm:$0xff]  ;;  %v1351_v19 = vld [vmem:[%s1759_s1 + $0x1c8] sm:$0xff] }
  0x1a   :  { %715 = vmatpush.bf16.msra.mxu0 %v1295_v24  ;;  %v1352_v15 = vld [vmem:[%s1759_s1 + $0x1d0] sm:$0xff]  ;;  %v1326_v20 = vld [vmem:[%s1759_s1 + $0x100] sm:$0xff]  ;;  %v1363_v38 = vld [vmem:[%s1759_s1 + $0x228] sm:$0xff] }
  0x1b   :  { %734 = vmatpush.bf16.msra.mxu1 %v1303_v25  ;;  %v1334_v21 = vld [vmem:[%s1759_s1 + $0x140] sm:$0xff]  ;;  %v934_v24 = vld [vmem:[%s1760_s0 + $0x10] sm:$0xf]  ;;  %v1282_v25 = vld [vmem:[%s1760_s0 + $0x30] sm:$0xf0] }
  0x1c   :  { %753 = vmatpush.bf16.msra.mxu2 %v1311_v26  ;;  %v1342_v22 = vld [vmem:[%s1759_s1 + $0x180] sm:$0xff]  ;;  %v1365_v26 = vld [vmem:[%s1759_s1 + $0x238] sm:$0xff]  ;;  %v935_v33 = vor.u32 %v1282_v25, %v934_v24  ;;  %v1364_v37 = vld [vmem:[%s1759_s1 + $0x230] sm:$0xff] }
  0x1d   :  { %772 = vmatpush.bf16.msra.mxu3 %v1319_v27  ;;  %v1350_v23 = vld [vmem:[%s1759_s1 + $0x1c0] sm:$0xff]  ;;  %v1278_v27 = vld [vmem:[%s1760_s0 + $0x14] sm:$0xf] }
  0x1e   :  { %716 = vmatpush.bf16.msra.mxu0 %v1294_v28  ;;  %v936_v28 = vld [vmem:[%s1760_s0 + $0x34] sm:$0xf0]  ;;  %v944_v32 = vld [vmem:[%s1760_s0 + $0x3c] sm:$0xf0] }
  0x1f   :  { %735 = vmatpush.bf16.msra.mxu1 %v1302_v29  ;;  %v942_v29 = vld [vmem:[%s1760_s0 + $0x18] sm:$0xf]  ;;  %v939_v34 = vor.u32 %v1278_v27, %v936_v28  ;;  %v1362_v39 = vld [vmem:[%s1759_s1 + $0x220] sm:$0xff] }
  0x20   :  { %754 = vmatpush.bf16.msra.mxu2 %v1310_v30  ;;  %v1283_v30 = vld [vmem:[%s1760_s0 + $0x38] sm:$0xf0] }
  0x21   :  { %773 = vmatpush.bf16.msra.mxu3 %v1318_v31  ;;  %717 = vmatmul.bf16.vlgmr.msra.gmra.mxu0 %v919_v42  ;;  %v1279_v31 = vld [vmem:[%s1760_s0 + $0x1c] sm:$0xf]  ;;  %v943_v35 = vor.u32 %v1283_v30, %v942_v29 }
  0x22   :  { %785 = vmatpush.bf16.msrb.mxu0 %v1333_v40  ;;  %736 = vmatmul.bf16.vlgmr.msra.gmra.mxu1 %v923_v43  ;;  %v947_v36 = vor.u32 %v1279_v31, %v944_v32  ;;  %v970_v40 = vld [vmem:[%s1760_s0 + $0x58] sm:$0xf]  ;;  %v1287_v42 = vld [vmem:[%s1760_s0 + $0x5c] sm:$0xf]  ;;  %v972_v43 = vld [vmem:[%s1760_s0 + $0x7c] sm:$0xf0] }
  0x23   :  { %804 = vmatpush.bf16.msrb.mxu1 %v1341_v41  ;;  %755 = vmatmul.bf16.vlgmr.msra.gmra.mxu2 %v927_v44  ;;  %v1291_v41 = vld [vmem:[%s1760_s0 + $0x78] sm:$0xf0]  ;;  %v978_v44 = vld [vmem:[%s1760_s0 + $0x60] sm:$0xf] }
  0x24   :  { %774 = vmatmul.bf16.vlgmr.msra.gmra.mxu3 %v931_v45  ;;  %823 = vmatpush.bf16.msrb.mxu2 %v1349_v46  ;;  %v1292_v45 = vld [vmem:[%s1760_s0 + $0x80] sm:$0xf0] }
  0x25   :  { %842 = vmatpush.bf16.msrb.mxu3 %v1357_v47  ;;  %v1288_v46 = vld [vmem:[%s1760_s0 + $0x64] sm:$0xf]  ;;  %v980_v47 = vld [vmem:[%s1760_s0 + $0x84] sm:$0xf0] }
  0x26   :  { %786 = vmatpush.bf16.msrb.mxu0 %v1332_v48  ;;  %v1361_v48 = vld [vmem:[%s1759_s1 + $0x218] sm:$0xff] }
  0x27   :  { %805 = vmatpush.bf16.msrb.mxu1 %v1340_v49  ;;  %v971_v49 = vor.u32 %v1291_v41, %v970_v40 }
  0x28   :  { %824 = vmatpush.bf16.msrb.mxu2 %v1348_v50  ;;  %v975_v50 = vor.u32 %v1287_v42, %v972_v43 }
  0x29   :  { %843 = vmatpush.bf16.msrb.mxu3 %v1356_v51  ;;  %v979_v51 = vor.u32 %v1292_v45, %v978_v44 }
  0x2a   :  { %787 = vmatpush.bf16.msrb.mxu0 %v1331_v52  ;;  %v983_v52 = vor.u32 %v1288_v46, %v980_v47 }
  0x2b   :  { %806 = vmatpush.bf16.msrb.mxu1 %v1339_v53  ;;  %v1360_v53 = vld [vmem:[%s1759_s1 + $0x210] sm:$0xff] }
  0x2c   :  { %825 = vmatpush.bf16.msrb.mxu2 %v1347_v54  ;;  %v1359_v54 = vld [vmem:[%s1759_s1 + $0x208] sm:$0xff] }
  0x2d   :  { %844 = vmatpush.bf16.msrb.mxu3 %v1355_v55  ;;  %v1358_v55 = vld [vmem:[%s1759_s1 + $0x200] sm:$0xff] }
  0x2e   :  { %788 = vmatpush.bf16.msrb.mxu0 %v1330_v56  ;;  %v950_v56 = vld [vmem:[%s1760_s0 + $0x20] sm:$0xf] }
  0x2f   :  { %807 = vmatpush.bf16.msrb.mxu1 %v1338_v57  ;;  %v1284_v57 = vld [vmem:[%s1760_s0 + $0x40] sm:$0xf0] }
  0x30   :  { %826 = vmatpush.bf16.msrb.mxu2 %v1346_v58  ;;  %v986_v58 = vld [vmem:[%s1760_s0 + $0x68] sm:$0xf]  ;;  %v951_v60 = vor.u32 %v1284_v57, %v950_v56 }
  0x31   :  { %845 = vmatpush.bf16.msrb.mxu3 %v1354_v59  ;;  %722 = vmatmul.bf16.gmra.mxu0 %v955_v6  ;;  %v1293_v59 = vld [vmem:[%s1760_s0 + $0x88] sm:$0xf0] }
  0x32   :  { %789 = vmatpush.bf16.msrb.mxu0 %v1329_v4  ;;  %741 = vmatmul.bf16.gmra.mxu1 %v959_v7  ;;  %v987_v61 = vor.u32 %v1293_v59, %v986_v58 }
  0x33   :  { %808 = vmatpush.bf16.msrb.mxu1 %v1337_v5  ;;  %760 = vmatmul.bf16.gmra.mxu2 %v963_v8 }
  0x34   :  { %779 = vmatmul.bf16.gmra.mxu3 %v967_v9  ;;  %827 = vmatpush.bf16.msrb.mxu2 %v1345_v10 }
  0x35   :  { %846 = vmatpush.bf16.msrb.mxu3 %v1353_v11 }
  0x36   :  { %790 = vmatpush.bf16.msrb.mxu0 %v1328_v12 }
  0x37   :  { %809 = vmatpush.bf16.msrb.mxu1 %v1336_v13 }
  0x38   :  { %828 = vmatpush.bf16.msrb.mxu2 %v1344_v14 }
  0x39   :  { %847 = vmatpush.bf16.msrb.mxu3 %v1352_v15 }
  0x3a   :  { %791 = vmatpush.bf16.msrb.mxu0 %v1327_v16  ;;  %v1394_v16 = vld [vmem:[%s1761_s2] ss:$0 sm:$0xff] }
  0x3b   :  { %810 = vmatpush.bf16.msrb.mxu1 %v1335_v17 }
  0x3c   :  { %829 = vmatpush.bf16.msrb.mxu2 %v1343_v18 }
  0x3d   :  { %848 = vmatpush.bf16.msrb.mxu3 %v1351_v19 }
  0x3e   :  { %792 = vmatpush.bf16.msrb.mxu0 %v1326_v20 }
  0x3f   :  { %811 = vmatpush.bf16.msrb.mxu1 %v1334_v21 }
  0x40   :  { %830 = vmatpush.bf16.msrb.mxu2 %v1342_v22 }
  0x41   :  { %849 = vmatpush.bf16.msrb.mxu3 %v1350_v23  ;;  %793 = vmatmul.bf16.vlgmr.msrb.gmra.mxu0 %v935_v33 }
  0x42   :  { %861 = vmatpush.bf16.msra.mxu0 %v1365_v26  ;;  %812 = vmatmul.bf16.vlgmr.msrb.gmra.mxu1 %v939_v34 }
  0x43   :  { %1386 = vmatpush.bf16.msra.mxu1 %v1365_v26  ;;  %831 = vmatmul.bf16.vlgmr.msrb.gmra.mxu2 %v943_v35 }
  0x44   :  { %850 = vmatmul.bf16.vlgmr.msrb.gmra.mxu3 %v947_v36 }
  0x46   :  { %862 = vmatpush.bf16.msra.mxu0 %v1364_v37 }
  0x47   :  { %1387 = vmatpush.bf16.msra.mxu1 %v1364_v37 }
  0x4a   :  { %863 = vmatpush.bf16.msra.mxu0 %v1363_v38 }
  0x4b   :  { %1388 = vmatpush.bf16.msra.mxu1 %v1363_v38 }
  0x4e   :  { %864 = vmatpush.bf16.msra.mxu0 %v1362_v39 }
  0x4f   :  { %1389 = vmatpush.bf16.msra.mxu1 %v1362_v39 }
  0x51   :  { %798 = vmatmul.bf16.gmra.mxu0 %v971_v49 }
  0x52   :  { %865 = vmatpush.bf16.msra.mxu0 %v1361_v48  ;;  %817 = vmatmul.bf16.gmra.mxu1 %v975_v50 }
  0x53   :  { %1390 = vmatpush.bf16.msra.mxu1 %v1361_v48  ;;  %836 = vmatmul.bf16.gmra.mxu2 %v979_v51 }
  0x54   :  { %855 = vmatmul.bf16.gmra.mxu3 %v983_v52 }
  0x56   :  { %866 = vmatpush.bf16.msra.mxu0 %v1360_v53 }
  0x57   :  { %1391 = vmatpush.bf16.msra.mxu1 %v1360_v53 }
  0x5a   :  { %867 = vmatpush.bf16.msra.mxu0 %v1359_v54 }
  0x5b   :  { %1392 = vmatpush.bf16.msra.mxu1 %v1359_v54 }
  0x5e   :  { %868 = vmatpush.bf16.msra.mxu0 %v1358_v55 }
  0x5f   :  { %1393 = vmatpush.bf16.msra.mxu1 %v1358_v55 }
  0x61   :  { %869 = vmatmul.bf16.vlgmr.msra.gmra.mxu0 %v951_v60 }
  0x62   :  { %874 = vmatmul.bf16.vlgmr.msra.gmra.mxu1 %v987_v61 }
  0x9e   :  { %v718_v62 = vpop.f32.mrf.mxu0 }
  0x9f   :  { %v737_v63 = vpop.f32.mrf.mxu1  ;;  %v719_v21 = vadd.f32 %v1394_v16, %v718_v62 }
  0xa1   :  { %v738_v23 = vadd.f32 %v737_v63, %v719_v21 }
  0xa6   :  { %v756_v0 = vpop.f32.mrf.mxu2  ;;  %v720_v2 = vpop.f32.mrf.mxu0 }
  0xa7   :  { %v775_v1 = vpop.f32.mrf.mxu3  ;;  %v739_v3 = vpop.f32.mrf.mxu1  ;;  %v757_v26 = vadd.f32 %v756_v0, %v738_v23  ;;  %v721_v30 = vadd.f32 %v1394_v16, %v720_v2  ;;  %v1367_v2 = vld [vmem:[%s1762_s3] sm:$0xff]  }
  0xa9   :  { %v776_v33 = vadd.f32 %v775_v1, %v757_v26  ;;  %v740_v35 = vadd.f32 %v739_v3, %v721_v30 }
  0xae   :  { %v758_v4 = vpop.f32.mrf.mxu2  ;;  %v723_v6 = vpop.f32.mrf.mxu0 }
  0xaf   :  { %v777_v5 = vpop.f32.mrf.mxu3  ;;  %v742_v7 = vpop.f32.mrf.mxu1  ;;  %v724_v22 = vadd.f32 %v1394_v16, %v723_v6  ;;  %v759_v39 = vadd.f32 %v758_v4, %v740_v35  ;;  %v1384_v4 = vld [vmem:[%s1762_s3 + $0x8] sm:$0xff]  }
  0xb1   :  { %v743_v24 = vadd.f32 %v742_v7, %v724_v22  ;;  %v778_v46 = vadd.f32 %v777_v5, %v759_v39 }
  0xb6   :  { %v761_v8 = vpop.f32.mrf.mxu2  ;;  %v725_v10 = vpop.f32.mrf.mxu0 }
  0xb7   :  { %v780_v9 = vpop.f32.mrf.mxu3  ;;  %v744_v11 = vpop.f32.mrf.mxu1  ;;  %v762_v27 = vadd.f32 %v761_v8, %v743_v24  ;;  %v726_v31 = vadd.f32 %v1394_v16, %v725_v10  ;;  %v1372_v10 = vunpack.c.l.bf16 %v1384_v4  ;;  %v1373_v16 = vunpack.c.h.bf16 %v1384_v4 }
  0xb9   :  { %v781_v34 = vadd.f32 %v780_v9, %v762_v27  ;;  %v745_v36 = vadd.f32 %v744_v11, %v726_v31  ;;  %v1368_v9 = vunpack.c.l.bf16 %v1367_v2 }
  0xbe   :  { %v763_v12 = vpop.f32.mrf.mxu2  ;;  %v794_v14 = vpop.f32.mrf.mxu0 }
  0xbf   :  { %v782_v13 = vpop.f32.mrf.mxu3  ;;  %v813_v15 = vpop.f32.mrf.mxu1  ;;  %v795_v37 = vadd.f32 %v794_v14, %v776_v33  ;;  %v764_v40 = vadd.f32 %v763_v12, %v745_v36 }
  0xc1   :  { %v814_v44 = vadd.f32 %v813_v15, %v795_v37  ;;  %v783_v47 = vadd.f32 %v782_v13, %v764_v40  ;;  %v1369_v15 = vunpack.c.h.bf16 %v1367_v2 }
  0xc6   :  { %v832_v17 = vpop.f32.mrf.mxu2  ;;  %v796_v19 = vpop.f32.mrf.mxu0 }
  0xc7   :  { %v851_v18 = vpop.f32.mrf.mxu3  ;;  %v815_v20 = vpop.f32.mrf.mxu1  ;;  %v833_v48 = vadd.f32 %v832_v17, %v814_v44  ;;  %v797_v51 = vadd.f32 %v796_v19, %v778_v46 }
  0xc9   :  { %v852_v54 = vadd.f32 %v851_v18, %v833_v48  ;;  %v816_v58 = vadd.f32 %v815_v20, %v797_v51 }
  0xce   :  { %v834_v25 = vpop.f32.mrf.mxu2  ;;  %v799_v28 = vpop.f32.mrf.mxu0 }
  0xcf   :  { %v818_v29 = vpop.f32.mrf.mxu1  ;;  %v853_v32 = vpop.f32.mrf.mxu3  ;;  %v800_v38 = vadd.f32 %v799_v28, %v781_v34  ;;  %v835_v62 = vadd.f32 %v834_v25, %v816_v58 }
  0xd1   :  { %v819_v45 = vadd.f32 %v818_v29, %v800_v38  ;;  %v854_v5 = vadd.f32 %v853_v32, %v835_v62 }
  0xd6   :  { %v837_v41 = vpop.f32.mrf.mxu2  ;;  %v801_v42 = vpop.f32.mrf.mxu0 }
  0xd7   :  { %v820_v43 = vpop.f32.mrf.mxu1  ;;  %v838_v49 = vadd.f32 %v837_v41, %v819_v45  ;;  %v856_v50 = vpop.f32.mrf.mxu3  ;;  %v802_v52 = vadd.f32 %v801_v42, %v783_v47 }
  0xd9   :  { %v857_v55 = vadd.f32 %v856_v50, %v838_v49  ;;  %v821_v59 = vadd.f32 %v820_v43, %v802_v52 }
  0xde   :  { %v839_v53 = vpop.f32.mrf.mxu2  ;;  %v870_v56 = vpop.f32.mrf.mxu0 }
  0xdf   :  { %v875_v57 = vpop.f32.mrf.mxu1  ;;  %v871_v60 = vadd.f32 %v870_v56, %v852_v54  ;;  %v840_v63 = vadd.f32 %v839_v53, %v821_v59  ;;  %v858_v0 = vpop.f32.mrf.mxu3 }
  0xe0   :  { %v876_v61 = vadd.f32 %v875_v57, %v857_v55 }
  0xe1   :  { %v884_v1 = vmul.f32 0.1, %v871_v60  ;;  %v859_v6 = vadd.f32 %v858_v0, %v840_v63  ;;  %vm880_vm0 = vcmp.ge.f32.partialorder %v871_v60, 0.0 }
  0xe2   :  { %v886_v3 = vmul.f32 0.1, %v876_v61  ;;  %vm882_vm1 = vcmp.ge.f32.partialorder %v876_v61, 0.0 }
  0xe3   :  { %v888_v13 = vsel %vm880_vm0, %v871_v60, %v884_v1 }
  0xe4   :  { %v890_v14 = vsel %vm882_vm1, %v876_v61, %v886_v3  ;;  %v900_v21 = vadd.f32 %v1368_v9, %v888_v13 }
  0xe5   :  { %v902_v22 = vadd.f32 %v1372_v10, %v890_v14 }
  0xe6   :  { %v872_v7 = vpop.f32.mrf.mxu0 }
  0xe7   :  { %v877_v8 = vpop.f32.mrf.mxu1  ;;  %v873_v11 = vadd.f32 %v872_v7, %v854_v5 }
  0xe8   :  { %v878_v12 = vadd.f32 %v877_v8, %v859_v6 }
  0xe9   :  { %vm881_vm2 = vcmp.ge.f32.partialorder %v873_v11, 0.0  ;;  %v885_v17 = vmul.f32 0.1, %v873_v11 }
  0xea   :  { %vm883_vm3 = vcmp.ge.f32.partialorder %v878_v12, 0.0  ;;  %v887_v18 = vmul.f32 0.1, %v878_v12 }
  0xeb   :  { %v889_v19 = vsel %vm881_vm2, %v873_v11, %v885_v17 }
  0xec   :  { %v891_v20 = vsel %vm883_vm3, %v878_v12, %v887_v18  ;;  %v901_v23 = vadd.f32 %v1369_v15, %v889_v19 }
  0xed   :  { %v903_v24 = vadd.f32 %v1373_v16, %v891_v20 }
  0xee   :  { %v1377_v25 = vpack.c.bf16 %v901_v23, %v900_v21 }
  0xef   :  { %v1382_v26 = vpack.c.bf16 %v903_v24, %v902_v22 }
  0xf0   :  { %1378 = vst [vmem:[%s1763_s4] sm:$0xff] %v1377_v25  }
  0xf1   :  { %1385 = vst [vmem:[%s1763_s4 + $0x8] sm:$0xff] %v1382_v26  }

// kernel: encoder_fwd_nchw.25
= control target key start
LH: loop header
LB: loop body
LE: loop exit
PB: predicated region body
PF: predicated region fallthrough
CT: control target
= control target key end

     0   :  { %s1759_s1 = inlined_call_operand.vmem [shape: bf16[1152,128], index: 1, kind: input, shape index: {}]   ;;  %s1760_s0 = inlined_call_operand.vmem [shape: bf16[32,1152], index: 0, kind: input, shape index: {}]   ;;  %s1761_s2 = inlined_call_operand.vmem [shape: f32[1,128], index: 2, kind: input, shape index: {}]   ;;  %s1762_s3 = inlined_call_operand.vmem [shape: bf16[32,128], index: 3, kind: input, shape index: {}]   ;;  %s1763_s4 = inlined_call_operand.vmem [shape: bf16[32,128], index: 4, kind: output, shape index: {}]  }
   0x1   :  { %v1301_v0 = vld [vmem:[%s1759_s1 + $0x38] sm:$0xff]  ;;  %v1300_v4 = vld [vmem:[%s1759_s1 + $0x30] sm:$0xff]  ;;  %v1299_v8 = vld [vmem:[%s1759_s1 + $0x28] sm:$0xff] }
   0x2   :  { %v1309_v1 = vld [vmem:[%s1759_s1 + $0x78] sm:$0xff]  ;;  %709 = vmatpush.bf16.msra.mxu0 %v1301_v0  ;;  %v1308_v5 = vld [vmem:[%s1759_s1 + $0x70] sm:$0xff]  ;;  %v1307_v9 = vld [vmem:[%s1759_s1 + $0x68] sm:$0xff] }
   0x3   :  { %v1317_v2 = vld [vmem:[%s1759_s1 + $0xb8] sm:$0xff]  ;;  %728 = vmatpush.bf16.msra.mxu1 %v1309_v1  ;;  %v1316_v6 = vld [vmem:[%s1759_s1 + $0xb0] sm:$0xff]  ;;  %v1315_v10 = vld [vmem:[%s1759_s1 + $0xa8] sm:$0xff] }
   0x4   :  { %v1325_v3 = vld [vmem:[%s1759_s1 + $0xf8] sm:$0xff]  ;;  %747 = vmatpush.bf16.msra.mxu2 %v1317_v2  ;;  %v1324_v7 = vld [vmem:[%s1759_s1 + $0xf0] sm:$0xff]  ;;  %v1323_v11 = vld [vmem:[%s1759_s1 + $0xe8] sm:$0xff] }
   0x5   :  { %766 = vmatpush.bf16.msra.mxu3 %v1325_v3  ;;  %v1298_v12 = vld [vmem:[%s1759_s1 + $0x20] sm:$0xff]  ;;  %v1297_v16 = vld [vmem:[%s1759_s1 + $0x18] sm:$0xff]  ;;  %v1296_v20 = vld [vmem:[%s1759_s1 + $0x10] sm:$0xff] }
   0x6   :  { %710 = vmatpush.bf16.msra.mxu0 %v1300_v4  ;;  %v1306_v13 = vld [vmem:[%s1759_s1 + $0x60] sm:$0xff]  ;;  %v1305_v17 = vld [vmem:[%s1759_s1 + $0x58] sm:$0xff]  ;;  %v1304_v21 = vld [vmem:[%s1759_s1 + $0x50] sm:$0xff] }
   0x7   :  { %729 = vmatpush.bf16.msra.mxu1 %v1308_v5  ;;  %v1314_v14 = vld [vmem:[%s1759_s1 + $0xa0] sm:$0xff]  ;;  %v1313_v18 = vld [vmem:[%s1759_s1 + $0x98] sm:$0xff]  ;;  %v1312_v22 = vld [vmem:[%s1759_s1 + $0x90] sm:$0xff] }
   0x8   :  { %748 = vmatpush.bf16.msra.mxu2 %v1316_v6  ;;  %v1322_v15 = vld [vmem:[%s1759_s1 + $0xe0] sm:$0xff]  ;;  %v1321_v19 = vld [vmem:[%s1759_s1 + $0xd8] sm:$0xff]  ;;  %v1320_v23 = vld [vmem:[%s1759_s1 + $0xd0] sm:$0xff] }
   0x9   :  { %767 = vmatpush.bf16.msra.mxu3 %v1324_v7  ;;  %v1295_v24 = vld [vmem:[%s1759_s1 + $0x8] sm:$0xff]  ;;  %v1294_v28 = vld [vmem:[%s1759_s1] sm:$0xff]  ;;  %v928_v39 = vld [vmem:[%s1760_s0 + $0x2c] sm:$0xf0] }
   0xa   :  { %711 = vmatpush.bf16.msra.mxu0 %v1299_v8  ;;  %v1303_v25 = vld [vmem:[%s1759_s1 + $0x48] sm:$0xff]  ;;  %v1302_v29 = vld [vmem:[%s1759_s1 + $0x40] sm:$0xff]  ;;  %v1333_v40 = vld [vmem:[%s1759_s1 + $0x138] sm:$0xff] }
   0xb   :  { %730 = vmatpush.bf16.msra.mxu1 %v1307_v9  ;;  %v1311_v26 = vld [vmem:[%s1759_s1 + $0x88] sm:$0xff]  ;;  %v1310_v30 = vld [vmem:[%s1759_s1 + $0x80] sm:$0xff]  ;;  %v1341_v41 = vld [vmem:[%s1759_s1 + $0x178] sm:$0xff] }
   0xc   :  { %749 = vmatpush.bf16.msra.mxu2 %v1315_v10  ;;  %v1319_v27 = vld [vmem:[%s1759_s1 + $0xc8] sm:$0xff]  ;;  %v1318_v31 = vld [vmem:[%s1759_s1 + $0xc0] sm:$0xff]  ;;  %v1349_v46 = vld [vmem:[%s1759_s1 + $0x1b8] sm:$0xff] }
   0xd   :  { %768 = vmatpush.bf16.msra.mxu3 %v1323_v11  ;;  %v918_v32 = vld [vmem:[%s1760_s0] sm:$0xf]  ;;  %v1280_v33 = vld [vmem:[%s1760_s0 + $0x20] sm:$0xf0]  ;;  %v920_v35 = vld [vmem:[%s1760_s0 + $0x24] sm:$0xf0] }
   0xe   :  { %712 = vmatpush.bf16.msra.mxu0 %v1298_v12  ;;  %v1276_v34 = vld [vmem:[%s1760_s0 + $0x4] sm:$0xf]  ;;  %v926_v36 = vld [vmem:[%s1760_s0 + $0x8] sm:$0xf]  ;;  %v1281_v37 = vld [vmem:[%s1760_s0 + $0x28] sm:$0xf0]  ;;  %v919_v42 = vor.u32 %v1280_v33, %v918_v32 }
   0xf   :  { %731 = vmatpush.bf16.msra.mxu1 %v1306_v13  ;;  %v1277_v38 = vld [vmem:[%s1760_s0 + $0xc] sm:$0xf]  ;;  %v923_v43 = vor.u32 %v1276_v34, %v920_v35  ;;  %v927_v44 = vor.u32 %v1281_v37, %v926_v36  ;;  %v1357_v47 = vld [vmem:[%s1759_s1 + $0x1f8] sm:$0xff]  ;;  %v1332_v48 = vld [vmem:[%s1759_s1 + $0x130] sm:$0xff] }
  0x10   :  { %750 = vmatpush.bf16.msra.mxu2 %v1314_v14  ;;  %v931_v45 = vor.u32 %v1277_v38, %v928_v39  ;;  %v1340_v49 = vld [vmem:[%s1759_s1 + $0x170] sm:$0xff]  ;;  %v1331_v52 = vld [vmem:[%s1759_s1 + $0x128] sm:$0xff]  ;;  %v1330_v56 = vld [vmem:[%s1759_s1 + $0x120] sm:$0xff] }
  0x11   :  { %769 = vmatpush.bf16.msra.mxu3 %v1322_v15  ;;  %v1348_v50 = vld [vmem:[%s1759_s1 + $0x1b0] sm:$0xff]  ;;  %v1339_v53 = vld [vmem:[%s1759_s1 + $0x168] sm:$0xff]  ;;  %v1338_v57 = vld [vmem:[%s1759_s1 + $0x160] sm:$0xff] }
  0x12   :  { %713 = vmatpush.bf16.msra.mxu0 %v1297_v16  ;;  %v1356_v51 = vld [vmem:[%s1759_s1 + $0x1f0] sm:$0xff]  ;;  %v1347_v54 = vld [vmem:[%s1759_s1 + $0x1a8] sm:$0xff]  ;;  %v1346_v58 = vld [vmem:[%s1759_s1 + $0x1a0] sm:$0xff] }
  0x13   :  { %732 = vmatpush.bf16.msra.mxu1 %v1305_v17  ;;  %v1355_v55 = vld [vmem:[%s1759_s1 + $0x1e8] sm:$0xff]  ;;  %v1354_v59 = vld [vmem:[%s1759_s1 + $0x1e0] sm:$0xff]  ;;  %v956_v63 = vld [vmem:[%s1760_s0 + $0x6c] sm:$0xf0] }
  0x14   :  { %751 = vmatpush.bf16.msra.mxu2 %v1313_v18  ;;  %v954_v60 = vld [vmem:[%s1760_s0 + $0x48] sm:$0xf]  ;;  %v1289_v61 = vld [vmem:[%s1760_s0 + $0x68] sm:$0xf0]  ;;  %v962_v0 = vld [vmem:[%s1760_s0 + $0x50] sm:$0xf] }
  0x15   :  { %770 = vmatpush.bf16.msra.mxu3 %v1321_v19  ;;  %v1285_v62 = vld [vmem:[%s1760_s0 + $0x4c] sm:$0xf]  ;;  %v1290_v1 = vld [vmem:[%s1760_s0 + $0x70] sm:$0xf0]  ;;  %v964_v3 = vld [vmem:[%s1760_s0 + $0x74] sm:$0xf0]  ;;  %v955_v6 = vor.u32 %v1289_v61, %v954_v60 }
  0x16   :  { %714 = vmatpush.bf16.msra.mxu0 %v1296_v20  ;;  %v1286_v2 = vld [vmem:[%s1760_s0 + $0x54] sm:$0xf]  ;;  %v1329_v4 = vld [vmem:[%s1759_s1 + $0x118] sm:$0xff]  ;;  %v959_v7 = vor.u32 %v1285_v62, %v956_v63  ;;  %v963_v8 = vor.u32 %v1290_v1, %v962_v0  ;;  %v1327_v16 = vld [vmem:[%s1759_s1 + $0x108] sm:$0xff] }
  0x17   :  { %733 = vmatpush.bf16.msra.mxu1 %v1304_v21  ;;  %v1337_v5 = vld [vmem:[%s1759_s1 + $0x158] sm:$0xff]  ;;  %v967_v9 = vor.u32 %v1286_v2, %v964_v3  ;;  %v1328_v12 = vld [vmem:[%s1759_s1 + $0x110] sm:$0xff]  ;;  %v1335_v17 = vld [vmem:[%s1759_s1 + $0x148] sm:$0xff] }
  0x18   :  { %752 = vmatpush.bf16.msra.mxu2 %v1312_v22  ;;  %v1345_v10 = vld [vmem:[%s1759_s1 + $0x198] sm:$0xff]  ;;  %v1336_v13 = vld [vmem:[%s1759_s1 + $0x150] sm:$0xff]  ;;  %v1343_v18 = vld [vmem:[%s1759_s1 + $0x188] sm:$0xff] }
  0x19   :  { %771 = vmatpush.bf16.msra.mxu3 %v1320_v23  ;;  %v1353_v11 = vld [vmem:[%s1759_s1 + $0x1d8] sm:$0xff]  ;;  %v1344_v14 = vld [vmem:[%s1759_s1 + $0x190] sm:$0xff]  ;;  %v1351_v19 = vld [vmem:[%s1759_s1 + $0x1c8] sm:$0xff] }
  0x1a   :  { %715 = vmatpush.bf16.msra.mxu0 %v1295_v24  ;;  %v1352_v15 = vld [vmem:[%s1759_s1 + $0x1d0] sm:$0xff]  ;;  %v1326_v20 = vld [vmem:[%s1759_s1 + $0x100] sm:$0xff]  ;;  %v1363_v38 = vld [vmem:[%s1759_s1 + $0x228] sm:$0xff] }
  0x1b   :  { %734 = vmatpush.bf16.msra.mxu1 %v1303_v25  ;;  %v1334_v21 = vld [vmem:[%s1759_s1 + $0x140] sm:$0xff]  ;;  %v934_v24 = vld [vmem:[%s1760_s0 + $0x10] sm:$0xf]  ;;  %v1282_v25 = vld [vmem:[%s1760_s0 + $0x30] sm:$0xf0] }
  0x1c   :  { %753 = vmatpush.bf16.msra.mxu2 %v1311_v26  ;;  %v1342_v22 = vld [vmem:[%s1759_s1 + $0x180] sm:$0xff]  ;;  %v1365_v26 = vld [vmem:[%s1759_s1 + $0x238] sm:$0xff]  ;;  %v935_v33 = vor.u32 %v1282_v25, %v934_v24  ;;  %v1364_v37 = vld [vmem:[%s1759_s1 + $0x230] sm:$0xff] }
  0x1d   :  { %772 = vmatpush.bf16.msra.mxu3 %v1319_v27  ;;  %v1350_v23 = vld [vmem:[%s1759_s1 + $0x1c0] sm:$0xff]  ;;  %v1278_v27 = vld [vmem:[%s1760_s0 + $0x14] sm:$0xf] }
  0x1e   :  { %716 = vmatpush.bf16.msra.mxu0 %v1294_v28  ;;  %v936_v28 = vld [vmem:[%s1760_s0 + $0x34] sm:$0xf0]  ;;  %v944_v32 = vld [vmem:[%s1760_s0 + $0x3c] sm:$0xf0] }
  0x1f   :  { %735 = vmatpush.bf16.msra.mxu1 %v1302_v29  ;;  %v942_v29 = vld [vmem:[%s1760_s0 + $0x18] sm:$0xf]  ;;  %v939_v34 = vor.u32 %v1278_v27, %v936_v28  ;;  %v1362_v39 = vld [vmem:[%s1759_s1 + $0x220] sm:$0xff] }
  0x20   :  { %754 = vmatpush.bf16.msra.mxu2 %v1310_v30  ;;  %v1283_v30 = vld [vmem:[%s1760_s0 + $0x38] sm:$0xf0] }
  0x21   :  { %773 = vmatpush.bf16.msra.mxu3 %v1318_v31  ;;  %717 = vmatmul.bf16.vlgmr.msra.gmra.mxu0 %v919_v42  ;;  %v1279_v31 = vld [vmem:[%s1760_s0 + $0x1c] sm:$0xf]  ;;  %v943_v35 = vor.u32 %v1283_v30, %v942_v29 }
  0x22   :  { %785 = vmatpush.bf16.msrb.mxu0 %v1333_v40  ;;  %736 = vmatmul.bf16.vlgmr.msra.gmra.mxu1 %v923_v43  ;;  %v947_v36 = vor.u32 %v1279_v31, %v944_v32  ;;  %v970_v40 = vld [vmem:[%s1760_s0 + $0x58] sm:$0xf]  ;;  %v1287_v42 = vld [vmem:[%s1760_s0 + $0x5c] sm:$0xf]  ;;  %v972_v43 = vld [vmem:[%s1760_s0 + $0x7c] sm:$0xf0] }
  0x23   :  { %804 = vmatpush.bf16.msrb.mxu1 %v1341_v41  ;;  %755 = vmatmul.bf16.vlgmr.msra.gmra.mxu2 %v927_v44  ;;  %v1291_v41 = vld [vmem:[%s1760_s0 + $0x78] sm:$0xf0]  ;;  %v978_v44 = vld [vmem:[%s1760_s0 + $0x60] sm:$0xf] }
  0x24   :  { %774 = vmatmul.bf16.vlgmr.msra.gmra.mxu3 %v931_v45  ;;  %823 = vmatpush.bf16.msrb.mxu2 %v1349_v46  ;;  %v1292_v45 = vld [vmem:[%s1760_s0 + $0x80] sm:$0xf0] }
  0x25   :  { %842 = vmatpush.bf16.msrb.mxu3 %v1357_v47  ;;  %v1288_v46 = vld [vmem:[%s1760_s0 + $0x64] sm:$0xf]  ;;  %v980_v47 = vld [vmem:[%s1760_s0 + $0x84] sm:$0xf0] }
  0x26   :  { %786 = vmatpush.bf16.msrb.mxu0 %v1332_v48  ;;  %v1361_v48 = vld [vmem:[%s1759_s1 + $0x218] sm:$0xff] }
  0x27   :  { %805 = vmatpush.bf16.msrb.mxu1 %v1340_v49  ;;  %v971_v49 = vor.u32 %v1291_v41, %v970_v40 }
  0x28   :  { %824 = vmatpush.bf16.msrb.mxu2 %v1348_v50  ;;  %v975_v50 = vor.u32 %v1287_v42, %v972_v43 }
  0x29   :  { %843 = vmatpush.bf16.msrb.mxu3 %v1356_v51  ;;  %v979_v51 = vor.u32 %v1292_v45, %v978_v44 }
  0x2a   :  { %787 = vmatpush.bf16.msrb.mxu0 %v1331_v52  ;;  %v983_v52 = vor.u32 %v1288_v46, %v980_v47 }
  0x2b   :  { %806 = vmatpush.bf16.msrb.mxu1 %v1339_v53  ;;  %v1360_v53 = vld [vmem:[%s1759_s1 + $0x210] sm:$0xff] }
  0x2c   :  { %825 = vmatpush.bf16.msrb.mxu2 %v1347_v54  ;;  %v1359_v54 = vld [vmem:[%s1759_s1 + $0x208] sm:$0xff] }
  0x2d   :  { %844 = vmatpush.bf16.msrb.mxu3 %v1355_v55  ;;  %v1358_v55 = vld [vmem:[%s1759_s1 + $0x200] sm:$0xff] }
  0x2e   :  { %788 = vmatpush.bf16.msrb.mxu0 %v1330_v56  ;;  %v950_v56 = vld [vmem:[%s1760_s0 + $0x20] sm:$0xf] }
  0x2f   :  { %807 = vmatpush.bf16.msrb.mxu1 %v1338_v57  ;;  %v1284_v57 = vld [vmem:[%s1760_s0 + $0x40] sm:$0xf0] }
  0x30   :  { %826 = vmatpush.bf16.msrb.mxu2 %v1346_v58  ;;  %v986_v58 = vld [vmem:[%s1760_s0 + $0x68] sm:$0xf]  ;;  %v951_v60 = vor.u32 %v1284_v57, %v950_v56 }
  0x31   :  { %845 = vmatpush.bf16.msrb.mxu3 %v1354_v59  ;;  %722 = vmatmul.bf16.gmra.mxu0 %v955_v6  ;;  %v1293_v59 = vld [vmem:[%s1760_s0 + $0x88] sm:$0xf0] }
  0x32   :  { %789 = vmatpush.bf16.msrb.mxu0 %v1329_v4  ;;  %741 = vmatmul.bf16.gmra.mxu1 %v959_v7  ;;  %v987_v61 = vor.u32 %v1293_v59, %v986_v58 }
  0x33   :  { %808 = vmatpush.bf16.msrb.mxu1 %v1337_v5  ;;  %760 = vmatmul.bf16.gmra.mxu2 %v963_v8 }
  0x34   :  { %779 = vmatmul.bf16.gmra.mxu3 %v967_v9  ;;  %827 = vmatpush.bf16.msrb.mxu2 %v1345_v10 }
  0x35   :  { %846 = vmatpush.bf16.msrb.mxu3 %v1353_v11 }
  0x36   :  { %790 = vmatpush.bf16.msrb.mxu0 %v1328_v12 }
  0x37   :  { %809 = vmatpush.bf16.msrb.mxu1 %v1336_v13 }
  0x38   :  { %828 = vmatpush.bf16.msrb.mxu2 %v1344_v14 }
  0x39   :  { %847 = vmatpush.bf16.msrb.mxu3 %v1352_v15 }
  0x3a   :  { %791 = vmatpush.bf16.msrb.mxu0 %v1327_v16  ;;  %v1394_v16 = vld [vmem:[%s1761_s2] ss:$0 sm:$0xff] }
  0x3b   :  { %810 = vmatpush.bf16.msrb.mxu1 %v1335_v17 }
  0x3c   :  { %829 = vmatpush.bf16.msrb.mxu2 %v1343_v18 }
  0x3d   :  { %848 = vmatpush.bf16.msrb.mxu3 %v1351_v19 }
  0x3e   :  { %792 = vmatpush.bf16.msrb.mxu0 %v1326_v20 }
  0x3f   :  { %811 = vmatpush.bf16.msrb.mxu1 %v1334_v21 }
  0x40   :  { %830 = vmatpush.bf16.msrb.mxu2 %v1342_v22 }
  0x41   :  { %849 = vmatpush.bf16.msrb.mxu3 %v1350_v23  ;;  %793 = vmatmul.bf16.vlgmr.msrb.gmra.mxu0 %v935_v33 }
  0x42   :  { %861 = vmatpush.bf16.msra.mxu0 %v1365_v26  ;;  %812 = vmatmul.bf16.vlgmr.msrb.gmra.mxu1 %v939_v34 }
  0x43   :  { %1386 = vmatpush.bf16.msra.mxu1 %v1365_v26  ;;  %831 = vmatmul.bf16.vlgmr.msrb.gmra.mxu2 %v943_v35 }
  0x44   :  { %850 = vmatmul.bf16.vlgmr.msrb.gmra.mxu3 %v947_v36 }
  0x46   :  { %862 = vmatpush.bf16.msra.mxu0 %v1364_v37 }
  0x47   :  { %1387 = vmatpush.bf16.msra.mxu1 %v1364_v37 }
  0x4a   :  { %863 = vmatpush.bf16.msra.mxu0 %v1363_v38 }
  0x4b   :  { %1388 = vmatpush.bf16.msra.mxu1 %v1363_v38 }
  0x4e   :  { %864 = vmatpush.bf16.msra.mxu0 %v1362_v39 }
  0x4f   :  { %1389 = vmatpush.bf16.msra.mxu1 %v1362_v39 }
  0x51   :  { %798 = vmatmul.bf16.gmra.mxu0 %v971_v49 }
  0x52   :  { %865 = vmatpush.bf16.msra.mxu0 %v1361_v48  ;;  %817 = vmatmul.bf16.gmra.mxu1 %v975_v50 }
  0x53   :  { %1390 = vmatpush.bf16.msra.mxu1 %v1361_v48  ;;  %836 = vmatmul.bf16.gmra.mxu2 %v979_v51 }
  0x54   :  { %855 = vmatmul.bf16.gmra.mxu3 %v983_v52 }
  0x56   :  { %866 = vmatpush.bf16.msra.mxu0 %v1360_v53 }
  0x57   :  { %1391 = vmatpush.bf16.msra.mxu1 %v1360_v53 }
  0x5a   :  { %867 = vmatpush.bf16.msra.mxu0 %v1359_v54 }
  0x5b   :  { %1392 = vmatpush.bf16.msra.mxu1 %v1359_v54 }
  0x5e   :  { %868 = vmatpush.bf16.msra.mxu0 %v1358_v55 }
  0x5f   :  { %1393 = vmatpush.bf16.msra.mxu1 %v1358_v55 }
  0x61   :  { %869 = vmatmul.bf16.vlgmr.msra.gmra.mxu0 %v951_v60 }
  0x62   :  { %874 = vmatmul.bf16.vlgmr.msra.gmra.mxu1 %v987_v61 }
  0x9e   :  { %v718_v62 = vpop.f32.mrf.mxu0 }
  0x9f   :  { %v737_v63 = vpop.f32.mrf.mxu1  ;;  %v719_v21 = vadd.f32 %v1394_v16, %v718_v62 }
  0xa1   :  { %v738_v23 = vadd.f32 %v737_v63, %v719_v21 }
  0xa6   :  { %v756_v0 = vpop.f32.mrf.mxu2  ;;  %v720_v2 = vpop.f32.mrf.mxu0 }
  0xa7   :  { %v775_v1 = vpop.f32.mrf.mxu3  ;;  %v739_v3 = vpop.f32.mrf.mxu1  ;;  %v757_v26 = vadd.f32 %v756_v0, %v738_v23  ;;  %v721_v30 = vadd.f32 %v1394_v16, %v720_v2  ;;  %v1367_v2 = vld [vmem:[%s1762_s3] sm:$0xff]  }
  0xa9   :  { %v776_v33 = vadd.f32 %v775_v1, %v757_v26  ;;  %v740_v35 = vadd.f32 %v739_v3, %v721_v30 }
  0xae   :  { %v758_v4 = vpop.f32.mrf.mxu2  ;;  %v723_v6 = vpop.f32.mrf.mxu0 }
  0xaf   :  { %v777_v5 = vpop.f32.mrf.mxu3  ;;  %v742_v7 = vpop.f32.mrf.mxu1  ;;  %v724_v22 = vadd.f32 %v1394_v16, %v723_v6  ;;  %v759_v39 = vadd.f32 %v758_v4, %v740_v35  ;;  %v1384_v4 = vld [vmem:[%s1762_s3 + $0x8] sm:$0xff]  }
  0xb1   :  { %v743_v24 = vadd.f32 %v742_v7, %v724_v22  ;;  %v778_v46 = vadd.f32 %v777_v5, %v759_v39 }
  0xb6   :  { %v761_v8 = vpop.f32.mrf.mxu2  ;;  %v725_v10 = vpop.f32.mrf.mxu0 }
  0xb7   :  { %v780_v9 = vpop.f32.mrf.mxu3  ;;  %v744_v11 = vpop.f32.mrf.mxu1  ;;  %v762_v27 = vadd.f32 %v761_v8, %v743_v24  ;;  %v726_v31 = vadd.f32 %v1394_v16, %v725_v10  ;;  %v1372_v10 = vunpack.c.l.bf16 %v1384_v4  ;;  %v1373_v16 = vunpack.c.h.bf16 %v1384_v4 }
  0xb9   :  { %v781_v34 = vadd.f32 %v780_v9, %v762_v27  ;;  %v745_v36 = vadd.f32 %v744_v11, %v726_v31  ;;  %v1368_v9 = vunpack.c.l.bf16 %v1367_v2 }
  0xbe   :  { %v763_v12 = vpop.f32.mrf.mxu2  ;;  %v794_v14 = vpop.f32.mrf.mxu0 }
  0xbf   :  { %v782_v13 = vpop.f32.mrf.mxu3  ;;  %v813_v15 = vpop.f32.mrf.mxu1  ;;  %v795_v37 = vadd.f32 %v794_v14, %v776_v33  ;;  %v764_v40 = vadd.f32 %v763_v12, %v745_v36 }
  0xc1   :  { %v814_v44 = vadd.f32 %v813_v15, %v795_v37  ;;  %v783_v47 = vadd.f32 %v782_v13, %v764_v40  ;;  %v1369_v15 = vunpack.c.h.bf16 %v1367_v2 }
  0xc6   :  { %v832_v17 = vpop.f32.mrf.mxu2  ;;  %v796_v19 = vpop.f32.mrf.mxu0 }
  0xc7   :  { %v851_v18 = vpop.f32.mrf.mxu3  ;;  %v815_v20 = vpop.f32.mrf.mxu1  ;;  %v833_v48 = vadd.f32 %v832_v17, %v814_v44  ;;  %v797_v51 = vadd.f32 %v796_v19, %v778_v46 }
  0xc9   :  { %v852_v54 = vadd.f32 %v851_v18, %v833_v48  ;;  %v816_v58 = vadd.f32 %v815_v20, %v797_v51 }
  0xce   :  { %v834_v25 = vpop.f32.mrf.mxu2  ;;  %v799_v28 = vpop.f32.mrf.mxu0 }
  0xcf   :  { %v818_v29 = vpop.f32.mrf.mxu1  ;;  %v853_v32 = vpop.f32.mrf.mxu3  ;;  %v800_v38 = vadd.f32 %v799_v28, %v781_v34  ;;  %v835_v62 = vadd.f32 %v834_v25, %v816_v58 }
  0xd1   :  { %v819_v45 = vadd.f32 %v818_v29, %v800_v38  ;;  %v854_v5 = vadd.f32 %v853_v32, %v835_v62 }
  0xd6   :  { %v837_v41 = vpop.f32.mrf.mxu2  ;;  %v801_v42 = vpop.f32.mrf.mxu0 }
  0xd7   :  { %v820_v43 = vpop.f32.mrf.mxu1  ;;  %v838_v49 = vadd.f32 %v837_v41, %v819_v45  ;;  %v856_v50 = vpop.f32.mrf.mxu3  ;;  %v802_v52 = vadd.f32 %v801_v42, %v783_v47 }
  0xd9   :  { %v857_v55 = vadd.f32 %v856_v50, %v838_v49  ;;  %v821_v59 = vadd.f32 %v820_v43, %v802_v52 }
  0xde   :  { %v839_v53 = vpop.f32.mrf.mxu2  ;;  %v870_v56 = vpop.f32.mrf.mxu0 }
  0xdf   :  { %v875_v57 = vpop.f32.mrf.mxu1  ;;  %v871_v60 = vadd.f32 %v870_v56, %v852_v54  ;;  %v840_v63 = vadd.f32 %v839_v53, %v821_v59  ;;  %v858_v0 = vpop.f32.mrf.mxu3 }
  0xe0   :  { %v876_v61 = vadd.f32 %v875_v57, %v857_v55 }
  0xe1   :  { %v884_v1 = vmul.f32 0.01, %v871_v60  ;;  %v859_v6 = vadd.f32 %v858_v0, %v840_v63  ;;  %vm880_vm0 = vcmp.ge.f32.partialorder %v871_v60, 0.0 }
  0xe2   :  { %v886_v3 = vmul.f32 0.01, %v876_v61  ;;  %vm882_vm1 = vcmp.ge.f32.partialorder %v876_v61, 0.0 }
  0xe3   :  { %v888_v13 = vsel %vm880_vm0, %v871_v60, %v884_v1 }
  0xe4   :  { %v890_v14 = vsel %vm882_vm1, %v876_v61, %v886_v3  ;;  %v900_v21 = vadd.f32 %v1368_v9, %v888_v13 }
  0xe5   :  { %v902_v22 = vadd.f32 %v1372_v10, %v890_v14 }
  0xe6   :  { %v872_v7 = vpop.f32.mrf.mxu0 }
  0xe7   :  { %v877_v8 = vpop.f32.mrf.mxu1  ;;  %v873_v11 = vadd.f32 %v872_v7, %v854_v5 }
  0xe8   :  { %v878_v12 = vadd.f32 %v877_v8, %v859_v6 }
  0xe9   :  { %vm881_vm2 = vcmp.ge.f32.partialorder %v873_v11, 0.0  ;;  %v885_v17 = vmul.f32 0.01, %v873_v11 }
  0xea   :  { %vm883_vm3 = vcmp.ge.f32.partialorder %v878_v12, 0.0  ;;  %v887_v18 = vmul.f32 0.01, %v878_v12 }
  0xeb   :  { %v889_v19 = vsel %vm881_vm2, %v873_v11, %v885_v17 }
  0xec   :  { %v891_v20 = vsel %vm883_vm3, %v878_v12, %v887_v18  ;;  %v901_v23 = vadd.f32 %v1369_v15, %v889_v19 }
  0xed   :  { %v903_v24 = vadd.f32 %v1373_v16, %v891_v20 }
  0xee   :  { %v1377_v25 = vpack.c.bf16 %v901_v23, %v900_v21 }
  0xef   :  { %v1382_v26 = vpack.c.bf16 %v903_v24, %v902_v22 }
  0xf0   :  { %1378 = vst [vmem:[%s1763_s4] sm:$0xff] %v1377_v25  }
  0xf1   :  { %1385 = vst [vmem:[%s1763_s4 + $0x8] sm:$0xff] %v1382_v26  }

// kernel: encoder_fwd_nchw.27
= control target key start
LH: loop header
LB: loop body
LE: loop exit
PB: predicated region body
PF: predicated region fallthrough
CT: control target
= control target key end

     0   :  { %s1375_s1 = inlined_call_operand.vmem [shape: bf16[1152,128], index: 1, kind: input, shape index: {}]   ;;  %s1376_s2 = inlined_call_operand.vmem [shape: f32[1,128], index: 2, kind: input, shape index: {}]   ;;  %s1377_s0 = inlined_call_operand.vmem [shape: bf16[8,1152], index: 0, kind: input, shape index: {}]   ;;  %s1378_s3 = inlined_call_operand.vmem [shape: bf16[8,128], index: 3, kind: output, shape index: {}]  }
   0x1   :  { %v1052_v0 = vld [vmem:[%s1375_s1 + $0x38] sm:$0xff]  ;;  %v1051_v4 = vld [vmem:[%s1375_s1 + $0x30] sm:$0xff]  ;;  %v1050_v8 = vld [vmem:[%s1375_s1 + $0x28] sm:$0xff] }
   0x2   :  { %v1068_v1 = vld [vmem:[%s1375_s1 + $0xb8] sm:$0xff]  ;;  %631 = vmatpush.bf16.msra.mxu0 %v1052_v0  ;;  %v1067_v5 = vld [vmem:[%s1375_s1 + $0xb0] sm:$0xff]  ;;  %v1066_v9 = vld [vmem:[%s1375_s1 + $0xa8] sm:$0xff] }
   0x3   :  { %v1076_v2 = vld [vmem:[%s1375_s1 + $0xf8] sm:$0xff]  ;;  %657 = vmatpush.bf16.msra.mxu2 %v1068_v1  ;;  %v1075_v6 = vld [vmem:[%s1375_s1 + $0xf0] sm:$0xff]  ;;  %v1074_v10 = vld [vmem:[%s1375_s1 + $0xe8] sm:$0xff] }
   0x4   :  { %v1060_v3 = vld [vmem:[%s1375_s1 + $0x78] sm:$0xff]  ;;  %670 = vmatpush.bf16.msra.mxu3 %v1076_v2  ;;  %v1059_v7 = vld [vmem:[%s1375_s1 + $0x70] sm:$0xff]  ;;  %v1058_v11 = vld [vmem:[%s1375_s1 + $0x68] sm:$0xff] }
   0x5   :  { %644 = vmatpush.bf16.msra.mxu1 %v1060_v3  ;;  %v1049_v12 = vld [vmem:[%s1375_s1 + $0x20] sm:$0xff]  ;;  %v1048_v16 = vld [vmem:[%s1375_s1 + $0x18] sm:$0xff]  ;;  %v1047_v20 = vld [vmem:[%s1375_s1 + $0x10] sm:$0xff] }
   0x6   :  { %632 = vmatpush.bf16.msra.mxu0 %v1051_v4  ;;  %v1065_v13 = vld [vmem:[%s1375_s1 + $0xa0] sm:$0xff]  ;;  %v1064_v17 = vld [vmem:[%s1375_s1 + $0x98] sm:$0xff]  ;;  %v1063_v21 = vld [vmem:[%s1375_s1 + $0x90] sm:$0xff] }
   0x7   :  { %658 = vmatpush.bf16.msra.mxu2 %v1067_v5  ;;  %v1073_v14 = vld [vmem:[%s1375_s1 + $0xe0] sm:$0xff]  ;;  %v1072_v18 = vld [vmem:[%s1375_s1 + $0xd8] sm:$0xff]  ;;  %v1071_v22 = vld [vmem:[%s1375_s1 + $0xd0] sm:$0xff] }
   0x8   :  { %671 = vmatpush.bf16.msra.mxu3 %v1075_v6  ;;  %v1057_v15 = vld [vmem:[%s1375_s1 + $0x60] sm:$0xff]  ;;  %v1056_v19 = vld [vmem:[%s1375_s1 + $0x58] sm:$0xff]  ;;  %v1055_v23 = vld [vmem:[%s1375_s1 + $0x50] sm:$0xff] }
   0x9   :  { %645 = vmatpush.bf16.msra.mxu1 %v1059_v7  ;;  %v1046_v24 = vld [vmem:[%s1375_s1 + $0x8] sm:$0xff]  ;;  %v14_v29 = vld [vmem:[%s1377_s0] sm:$0xff]  ;;  %v1084_v34 = vld [vmem:[%s1375_s1 + $0x138] sm:$0xff] }
   0xa   :  { %633 = vmatpush.bf16.msra.mxu0 %v1050_v8  ;;  %v1062_v25 = vld [vmem:[%s1375_s1 + $0x88] sm:$0xff]  ;;  %v1045_v30 = vld [vmem:[%s1375_s1] sm:$0xff]  ;;  %v172_v33 = vunpack.c.l.b16 %v14_v29  ;;  %v1100_v35 = vld [vmem:[%s1375_s1 + $0x1b8] sm:$0xff]  ;;  %v173_v39 = vunpack.c.h.b16 %v14_v29 }
   0xb   :  { %659 = vmatpush.bf16.msra.mxu2 %v1066_v9  ;;  %v1070_v26 = vld [vmem:[%s1375_s1 + $0xc8] sm:$0xff]  ;;  %v1061_v31 = vld [vmem:[%s1375_s1 + $0x80] sm:$0xff]  ;;  %v1108_v40 = vld [vmem:[%s1375_s1 + $0x1f8] sm:$0xff] }
   0xc   :  { %672 = vmatpush.bf16.msra.mxu3 %v1074_v10  ;;  %v1054_v27 = vld [vmem:[%s1375_s1 + $0x48] sm:$0xff]  ;;  %v1069_v36 = vld [vmem:[%s1375_s1 + $0xc0] sm:$0xff]  ;;  %v1092_v41 = vld [vmem:[%s1375_s1 + $0x178] sm:$0xff]  ;;  %v181_v43 = vpack.c.b16 %v172_v33, %v172_v33  ;;  %v182_v47 = vpack.c.b16 %v173_v39, %v173_v39 }
   0xd   :  { %646 = vmatpush.bf16.msra.mxu1 %v1058_v11  ;;  %v15_v28 = vld [vmem:[%s1377_s0 + $0x8] sm:$0xff]  ;;  %v1053_v37 = vld [vmem:[%s1375_s1 + $0x40] sm:$0xff]  ;;  %v1083_v44 = vld [vmem:[%s1375_s1 + $0x130] sm:$0xff] }
   0xe   :  { %634 = vmatpush.bf16.msra.mxu0 %v1049_v12  ;;  %v174_v32 = vunpack.c.l.b16 %v15_v28  ;;  %v175_v38 = vunpack.c.h.b16 %v15_v28  ;;  %v1099_v45 = vld [vmem:[%s1375_s1 + $0x1b0] sm:$0xff]  ;;  %v1082_v50 = vld [vmem:[%s1375_s1 + $0x128] sm:$0xff]  ;;  %v1081_v54 = vld [vmem:[%s1375_s1 + $0x120] sm:$0xff] }
   0xf   :  { %660 = vmatpush.bf16.msra.mxu2 %v1065_v13  ;;  %v1107_v48 = vld [vmem:[%s1375_s1 + $0x1f0] sm:$0xff]  ;;  %v1098_v51 = vld [vmem:[%s1375_s1 + $0x1a8] sm:$0xff]  ;;  %v1097_v55 = vld [vmem:[%s1375_s1 + $0x1a0] sm:$0xff] }
  0x10   :  { %673 = vmatpush.bf16.msra.mxu3 %v1073_v14  ;;  %v183_v42 = vpack.c.b16 %v174_v32, %v174_v32  ;;  %v184_v46 = vpack.c.b16 %v175_v38, %v175_v38  ;;  %v1091_v49 = vld [vmem:[%s1375_s1 + $0x170] sm:$0xff]  ;;  %v1106_v52 = vld [vmem:[%s1375_s1 + $0x1e8] sm:$0xff]  ;;  %v1105_v56 = vld [vmem:[%s1375_s1 + $0x1e0] sm:$0xff] }
  0x11   :  { %647 = vmatpush.bf16.msra.mxu1 %v1057_v15  ;;  %v1090_v53 = vld [vmem:[%s1375_s1 + $0x168] sm:$0xff]  ;;  %v1089_v57 = vld [vmem:[%s1375_s1 + $0x160] sm:$0xff]  ;;  %v1080_v58 = vld [vmem:[%s1375_s1 + $0x118] sm:$0xff] }
  0x12   :  { %635 = vmatpush.bf16.msra.mxu0 %v1048_v16  ;;  %v1096_v59 = vld [vmem:[%s1375_s1 + $0x198] sm:$0xff]  ;;  %v1079_v62 = vld [vmem:[%s1375_s1 + $0x110] sm:$0xff]  ;;  %v1078_v2 = vld [vmem:[%s1375_s1 + $0x108] sm:$0xff] }
  0x13   :  { %661 = vmatpush.bf16.msra.mxu2 %v1064_v17  ;;  %v1104_v60 = vld [vmem:[%s1375_s1 + $0x1d8] sm:$0xff]  ;;  %v1095_v63 = vld [vmem:[%s1375_s1 + $0x190] sm:$0xff]  ;;  %v1094_v3 = vld [vmem:[%s1375_s1 + $0x188] sm:$0xff] }
  0x14   :  { %674 = vmatpush.bf16.msra.mxu3 %v1072_v18  ;;  %v1088_v61 = vld [vmem:[%s1375_s1 + $0x158] sm:$0xff]  ;;  %v1103_v0 = vld [vmem:[%s1375_s1 + $0x1d0] sm:$0xff]  ;;  %v1102_v6 = vld [vmem:[%s1375_s1 + $0x1c8] sm:$0xff] }
  0x15   :  { %648 = vmatpush.bf16.msra.mxu1 %v1056_v19  ;;  %v1087_v1 = vld [vmem:[%s1375_s1 + $0x150] sm:$0xff]  ;;  %v17_v4 = vld [vmem:[%s1377_s0 + $0x18] sm:$0xff]  ;;  %v1086_v7 = vld [vmem:[%s1375_s1 + $0x148] sm:$0xff] }
  0x16   :  { %636 = vmatpush.bf16.msra.mxu0 %v1047_v20  ;;  %v16_v5 = vld [vmem:[%s1377_s0 + $0x10] sm:$0xff]  ;;  %v178_v8 = vunpack.c.l.b16 %v17_v4  ;;  %v1077_v10 = vld [vmem:[%s1375_s1 + $0x100] sm:$0xff]  ;;  %v1116_v12 = vld [vmem:[%s1375_s1 + $0x238] sm:$0xff]  ;;  %v179_v13 = vunpack.c.h.b16 %v17_v4 }
  0x17   :  { %662 = vmatpush.bf16.msra.mxu2 %v1063_v21  ;;  %v176_v9 = vunpack.c.l.b16 %v16_v5  ;;  %v1093_v11 = vld [vmem:[%s1375_s1 + $0x180] sm:$0xff]  ;;  %v177_v16 = vunpack.c.h.b16 %v16_v5  ;;  %v1115_v19 = vld [vmem:[%s1375_s1 + $0x230] sm:$0xff] }
  0x18   :  { %675 = vmatpush.bf16.msra.mxu3 %v1071_v22  ;;  %v1101_v14 = vld [vmem:[%s1375_s1 + $0x1c0] sm:$0xff]  ;;  %v187_v17 = vpack.c.b16 %v178_v8, %v178_v8  ;;  %v188_v20 = vpack.c.b16 %v179_v13, %v179_v13  ;;  %v1114_v22 = vld [vmem:[%s1375_s1 + $0x228] sm:$0xff] }
  0x19   :  { %649 = vmatpush.bf16.msra.mxu1 %v1055_v23  ;;  %v1085_v15 = vld [vmem:[%s1375_s1 + $0x140] sm:$0xff]  ;;  %v185_v18 = vpack.c.b16 %v176_v9, %v176_v9  ;;  %v186_v21 = vpack.c.b16 %v177_v16, %v177_v16 }
  0x1a   :  { %637 = vmatpush.bf16.msra.mxu0 %v1046_v24  ;;  %v1113_v23 = vld [vmem:[%s1375_s1 + $0x220] sm:$0xff]  ;;  %v1112_v24 = vld [vmem:[%s1375_s1 + $0x218] sm:$0xff] }
  0x1b   :  { %663 = vmatpush.bf16.msra.mxu2 %v1062_v25  ;;  %v1111_v25 = vld [vmem:[%s1375_s1 + $0x210] sm:$0xff]  ;;  %v1109_v29 = vld [vmem:[%s1375_s1 + $0x200] sm:$0xff] }
  0x1c   :  { %676 = vmatpush.bf16.msra.mxu3 %v1070_v26  ;;  %v1110_v26 = vld [vmem:[%s1375_s1 + $0x208] sm:$0xff]  ;;  %v1117_v39 = vld [vmem:[%s1376_s2] ss:$0 sm:$0xff] }
  0x1d   :  { %650 = vmatpush.bf16.msra.mxu1 %v1054_v27  ;;  %v18_v27 = vld [vmem:[%s1377_s0 + $0x20] sm:$0xf] }
  0x1e   :  { %638 = vmatpush.bf16.msra.mxu0 %v1045_v30  ;;  %v180_v28 = vunpack.c.l.b16 %v18_v27 }
  0x1f   :  { %664 = vmatpush.bf16.msra.mxu2 %v1061_v31 }
  0x20   :  { %677 = vmatpush.bf16.msra.mxu3 %v1069_v36  ;;  %v189_v30 = vpack.c.b16 %v180_v28, %v180_v28 }
  0x21   :  { %651 = vmatpush.bf16.msra.mxu1 %v1053_v37  ;;  %639 = vmatmul.bf16.vlgmr.msra.gmra.mxu0 %v181_v43 }
  0x22   :  { %683 = vmatpush.bf16.msrb.mxu0 %v1084_v34  ;;  %665 = vmatmul.bf16.vlgmr.msra.gmra.mxu2 %v183_v42 }
  0x23   :  { %709 = vmatpush.bf16.msrb.mxu2 %v1100_v35  ;;  %678 = vmatmul.bf16.vlgmr.msra.gmra.mxu3 %v184_v46 }
  0x24   :  { %722 = vmatpush.bf16.msrb.mxu3 %v1108_v40  ;;  %652 = vmatmul.bf16.vlgmr.msra.gmra.mxu1 %v182_v47 }
  0x25   :  { %696 = vmatpush.bf16.msrb.mxu1 %v1092_v41 }
  0x26   :  { %684 = vmatpush.bf16.msrb.mxu0 %v1083_v44 }
  0x27   :  { %710 = vmatpush.bf16.msrb.mxu2 %v1099_v45 }
  0x28   :  { %723 = vmatpush.bf16.msrb.mxu3 %v1107_v48 }
  0x29   :  { %697 = vmatpush.bf16.msrb.mxu1 %v1091_v49 }
  0x2a   :  { %685 = vmatpush.bf16.msrb.mxu0 %v1082_v50 }
  0x2b   :  { %711 = vmatpush.bf16.msrb.mxu2 %v1098_v51 }
  0x2c   :  { %724 = vmatpush.bf16.msrb.mxu3 %v1106_v52 }
  0x2d   :  { %698 = vmatpush.bf16.msrb.mxu1 %v1090_v53 }
  0x2e   :  { %686 = vmatpush.bf16.msrb.mxu0 %v1081_v54 }
  0x2f   :  { %712 = vmatpush.bf16.msrb.mxu2 %v1097_v55 }
  0x30   :  { %725 = vmatpush.bf16.msrb.mxu3 %v1105_v56 }
  0x31   :  { %699 = vmatpush.bf16.msrb.mxu1 %v1089_v57 }
  0x32   :  { %687 = vmatpush.bf16.msrb.mxu0 %v1080_v58 }
  0x33   :  { %713 = vmatpush.bf16.msrb.mxu2 %v1096_v59 }
  0x34   :  { %726 = vmatpush.bf16.msrb.mxu3 %v1104_v60 }
  0x35   :  { %700 = vmatpush.bf16.msrb.mxu1 %v1088_v61 }
  0x36   :  { %688 = vmatpush.bf16.msrb.mxu0 %v1079_v62 }
  0x37   :  { %714 = vmatpush.bf16.msrb.mxu2 %v1095_v63 }
  0x38   :  { %727 = vmatpush.bf16.msrb.mxu3 %v1103_v0 }
  0x39   :  { %701 = vmatpush.bf16.msrb.mxu1 %v1087_v1 }
  0x3a   :  { %689 = vmatpush.bf16.msrb.mxu0 %v1078_v2 }
  0x3b   :  { %715 = vmatpush.bf16.msrb.mxu2 %v1094_v3 }
  0x3c   :  { %728 = vmatpush.bf16.msrb.mxu3 %v1102_v6 }
  0x3d   :  { %702 = vmatpush.bf16.msrb.mxu1 %v1086_v7 }
  0x3e   :  { %690 = vmatpush.bf16.msrb.mxu0 %v1077_v10 }
  0x3f   :  { %716 = vmatpush.bf16.msrb.mxu2 %v1093_v11 }
  0x40   :  { %729 = vmatpush.bf16.msrb.mxu3 %v1101_v14 }
  0x41   :  { %703 = vmatpush.bf16.msrb.mxu1 %v1085_v15  ;;  %691 = vmatmul.bf16.vlgmr.msrb.gmra.mxu0 %v185_v18 }
  0x42   :  { %735 = vmatpush.bf16.msra.mxu0 %v1116_v12  ;;  %717 = vmatmul.bf16.vlgmr.msrb.gmra.mxu2 %v187_v17 }
  0x43   :  { %730 = vmatmul.bf16.vlgmr.msrb.gmra.mxu3 %v188_v20 }
  0x44   :  { %704 = vmatmul.bf16.vlgmr.msrb.gmra.mxu1 %v186_v21 }
  0x46   :  { %736 = vmatpush.bf16.msra.mxu0 %v1115_v19 }
  0x4a   :  { %737 = vmatpush.bf16.msra.mxu0 %v1114_v22 }
  0x4e   :  { %738 = vmatpush.bf16.msra.mxu0 %v1113_v23 }
  0x52   :  { %739 = vmatpush.bf16.msra.mxu0 %v1112_v24 }
  0x56   :  { %740 = vmatpush.bf16.msra.mxu0 %v1111_v25 }
  0x5a   :  { %741 = vmatpush.bf16.msra.mxu0 %v1110_v26 }
  0x5e   :  { %742 = vmatpush.bf16.msra.mxu0 %v1109_v29 }
  0x61   :  { %743 = vmatmul.bf16.vlgmr.msra.gmra.mxu0 %v189_v30 }
  0x9e   :  { %v640_v31 = vpop.f32.mrf.mxu0 }
  0x9f   :  { %v641_v40 = vadd.f32 %v1117_v39, %v640_v31 }
  0xa1   :  { %v653_v32 = vpop.f32.mrf.mxu1 }
  0xa2   :  { %v654_v43 = vadd.f32 %v653_v32, %v641_v40 }
  0xa5   :  { %v666_v33 = vpop.f32.mrf.mxu2 }
  0xa6   :  { %v679_v34 = vpop.f32.mrf.mxu3  ;;  %v642_v35 = vpop.f32.mrf.mxu0  ;;  %v667_v45 = vadd.f32 %v666_v33, %v654_v43 }
  0xa8   :  { %v680_v49 = vadd.f32 %v679_v34, %v667_v45 }
  0xa9   :  { %v655_v36 = vpop.f32.mrf.mxu1 }
  0xad   :  { %v668_v37 = vpop.f32.mrf.mxu2 }
  0xae   :  { %v681_v38 = vpop.f32.mrf.mxu3 }
  0xbe   :  { %v692_v41 = vpop.f32.mrf.mxu0 }
  0xbf   :  { %v693_v51 = vadd.f32 %v692_v41, %v680_v49 }
  0xc1   :  { %v705_v42 = vpop.f32.mrf.mxu1 }
  0xc2   :  { %v706_v53 = vadd.f32 %v705_v42, %v693_v51 }
  0xc5   :  { %v718_v44 = vpop.f32.mrf.mxu2 }
  0xc6   :  { %v731_v46 = vpop.f32.mrf.mxu3  ;;  %v694_v47 = vpop.f32.mrf.mxu0  ;;  %v719_v54 = vadd.f32 %v718_v44, %v706_v53 }
  0xc8   :  { %v732_v55 = vadd.f32 %v731_v46, %v719_v54 }
  0xc9   :  { %v707_v48 = vpop.f32.mrf.mxu1 }
  0xcd   :  { %v720_v50 = vpop.f32.mrf.mxu2 }
  0xce   :  { %v733_v52 = vpop.f32.mrf.mxu3 }
  0xde   :  { %v744_v56 = vpop.f32.mrf.mxu0 }
  0xdf   :  { %v745_v57 = vadd.f32 %v744_v56, %v732_v55 }
  0xe1   :  { %vm748_vm0 = vcmp.ge.f32.partialorder %v745_v57, 0.0  ;;  %v749_v58 = vmul.f32 0.01, %v745_v57 }
  0xe3   :  { %v750_v59 = vsel %vm748_vm0, %v745_v57, %v749_v58 }
  0xe4   :  { %v751_v60 = vpack.c.bf16 %v750_v59, %v750_v59 }
  0xe6   :  { %752 = vst [vmem:[%s1378_s3] sm:$0xf] %v751_v60  ;;  %v746_v61 = vpop.f32.mrf.mxu0 }

// kernel: encoder_fwd_nchw.28
= control target key start
LH: loop header
LB: loop body
LE: loop exit
PB: predicated region body
PF: predicated region fallthrough
CT: control target
= control target key end

     0   :  { %s1389_s1 = inlined_call_operand.vmem [shape: bf16[1152,128], index: 1, kind: input, shape index: {}]   ;;  %s1390_s2 = inlined_call_operand.vmem [shape: f32[1,128], index: 2, kind: input, shape index: {}]   ;;  %s1391_s0 = inlined_call_operand.vmem [shape: bf16[8,1152], index: 0, kind: input, shape index: {}]   ;;  %s1392_s3 = inlined_call_operand.vmem [shape: bf16[8,128], index: 3, kind: input, shape index: {}]   ;;  %s1393_s4 = inlined_call_operand.vmem [shape: bf16[8,128], index: 4, kind: output, shape index: {}]  }
   0x1   :  { %v1058_v0 = vld [vmem:[%s1389_s1 + $0x38] sm:$0xff]  ;;  %v1057_v4 = vld [vmem:[%s1389_s1 + $0x30] sm:$0xff]  ;;  %v1056_v8 = vld [vmem:[%s1389_s1 + $0x28] sm:$0xff] }
   0x2   :  { %v1074_v1 = vld [vmem:[%s1389_s1 + $0xb8] sm:$0xff]  ;;  %634 = vmatpush.bf16.msra.mxu0 %v1058_v0  ;;  %v1073_v5 = vld [vmem:[%s1389_s1 + $0xb0] sm:$0xff]  ;;  %v1072_v9 = vld [vmem:[%s1389_s1 + $0xa8] sm:$0xff] }
   0x3   :  { %v1082_v2 = vld [vmem:[%s1389_s1 + $0xf8] sm:$0xff]  ;;  %660 = vmatpush.bf16.msra.mxu2 %v1074_v1  ;;  %v1081_v6 = vld [vmem:[%s1389_s1 + $0xf0] sm:$0xff]  ;;  %v1080_v10 = vld [vmem:[%s1389_s1 + $0xe8] sm:$0xff] }
   0x4   :  { %v1066_v3 = vld [vmem:[%s1389_s1 + $0x78] sm:$0xff]  ;;  %673 = vmatpush.bf16.msra.mxu3 %v1082_v2  ;;  %v1065_v7 = vld [vmem:[%s1389_s1 + $0x70] sm:$0xff]  ;;  %v1064_v11 = vld [vmem:[%s1389_s1 + $0x68] sm:$0xff] }
   0x5   :  { %647 = vmatpush.bf16.msra.mxu1 %v1066_v3  ;;  %v1055_v12 = vld [vmem:[%s1389_s1 + $0x20] sm:$0xff]  ;;  %v1054_v16 = vld [vmem:[%s1389_s1 + $0x18] sm:$0xff]  ;;  %v1053_v20 = vld [vmem:[%s1389_s1 + $0x10] sm:$0xff] }
   0x6   :  { %635 = vmatpush.bf16.msra.mxu0 %v1057_v4  ;;  %v1071_v13 = vld [vmem:[%s1389_s1 + $0xa0] sm:$0xff]  ;;  %v1070_v17 = vld [vmem:[%s1389_s1 + $0x98] sm:$0xff]  ;;  %v1069_v21 = vld [vmem:[%s1389_s1 + $0x90] sm:$0xff] }
   0x7   :  { %661 = vmatpush.bf16.msra.mxu2 %v1073_v5  ;;  %v1079_v14 = vld [vmem:[%s1389_s1 + $0xe0] sm:$0xff]  ;;  %v1078_v18 = vld [vmem:[%s1389_s1 + $0xd8] sm:$0xff]  ;;  %v1077_v22 = vld [vmem:[%s1389_s1 + $0xd0] sm:$0xff] }
   0x8   :  { %674 = vmatpush.bf16.msra.mxu3 %v1081_v6  ;;  %v1063_v15 = vld [vmem:[%s1389_s1 + $0x60] sm:$0xff]  ;;  %v1062_v19 = vld [vmem:[%s1389_s1 + $0x58] sm:$0xff]  ;;  %v1061_v23 = vld [vmem:[%s1389_s1 + $0x50] sm:$0xff] }
   0x9   :  { %648 = vmatpush.bf16.msra.mxu1 %v1065_v7  ;;  %v1052_v24 = vld [vmem:[%s1389_s1 + $0x8] sm:$0xff]  ;;  %v17_v29 = vld [vmem:[%s1391_s0] sm:$0xff]  ;;  %v1090_v34 = vld [vmem:[%s1389_s1 + $0x138] sm:$0xff] }
   0xa   :  { %636 = vmatpush.bf16.msra.mxu0 %v1056_v8  ;;  %v1068_v25 = vld [vmem:[%s1389_s1 + $0x88] sm:$0xff]  ;;  %v1051_v30 = vld [vmem:[%s1389_s1] sm:$0xff]  ;;  %v175_v33 = vunpack.c.l.b16 %v17_v29  ;;  %v1106_v35 = vld [vmem:[%s1389_s1 + $0x1b8] sm:$0xff]  ;;  %v176_v39 = vunpack.c.h.b16 %v17_v29 }
   0xb   :  { %662 = vmatpush.bf16.msra.mxu2 %v1072_v9  ;;  %v1076_v26 = vld [vmem:[%s1389_s1 + $0xc8] sm:$0xff]  ;;  %v1067_v31 = vld [vmem:[%s1389_s1 + $0x80] sm:$0xff]  ;;  %v1114_v40 = vld [vmem:[%s1389_s1 + $0x1f8] sm:$0xff] }
   0xc   :  { %675 = vmatpush.bf16.msra.mxu3 %v1080_v10  ;;  %v1060_v27 = vld [vmem:[%s1389_s1 + $0x48] sm:$0xff]  ;;  %v1075_v36 = vld [vmem:[%s1389_s1 + $0xc0] sm:$0xff]  ;;  %v1098_v41 = vld [vmem:[%s1389_s1 + $0x178] sm:$0xff]  ;;  %v184_v43 = vpack.c.b16 %v175_v33, %v175_v33  ;;  %v185_v47 = vpack.c.b16 %v176_v39, %v176_v39 }
   0xd   :  { %649 = vmatpush.bf16.msra.mxu1 %v1064_v11  ;;  %v18_v28 = vld [vmem:[%s1391_s0 + $0x8] sm:$0xff]  ;;  %v1059_v37 = vld [vmem:[%s1389_s1 + $0x40] sm:$0xff]  ;;  %v1089_v44 = vld [vmem:[%s1389_s1 + $0x130] sm:$0xff] }
   0xe   :  { %637 = vmatpush.bf16.msra.mxu0 %v1055_v12  ;;  %v177_v32 = vunpack.c.l.b16 %v18_v28  ;;  %v178_v38 = vunpack.c.h.b16 %v18_v28  ;;  %v1105_v45 = vld [vmem:[%s1389_s1 + $0x1b0] sm:$0xff]  ;;  %v1088_v50 = vld [vmem:[%s1389_s1 + $0x128] sm:$0xff]  ;;  %v1087_v54 = vld [vmem:[%s1389_s1 + $0x120] sm:$0xff] }
   0xf   :  { %663 = vmatpush.bf16.msra.mxu2 %v1071_v13  ;;  %v1113_v48 = vld [vmem:[%s1389_s1 + $0x1f0] sm:$0xff]  ;;  %v1104_v51 = vld [vmem:[%s1389_s1 + $0x1a8] sm:$0xff]  ;;  %v1103_v55 = vld [vmem:[%s1389_s1 + $0x1a0] sm:$0xff] }
  0x10   :  { %676 = vmatpush.bf16.msra.mxu3 %v1079_v14  ;;  %v186_v42 = vpack.c.b16 %v177_v32, %v177_v32  ;;  %v187_v46 = vpack.c.b16 %v178_v38, %v178_v38  ;;  %v1097_v49 = vld [vmem:[%s1389_s1 + $0x170] sm:$0xff]  ;;  %v1112_v52 = vld [vmem:[%s1389_s1 + $0x1e8] sm:$0xff]  ;;  %v1111_v56 = vld [vmem:[%s1389_s1 + $0x1e0] sm:$0xff] }
  0x11   :  { %650 = vmatpush.bf16.msra.mxu1 %v1063_v15  ;;  %v1096_v53 = vld [vmem:[%s1389_s1 + $0x168] sm:$0xff]  ;;  %v1095_v57 = vld [vmem:[%s1389_s1 + $0x160] sm:$0xff]  ;;  %v1086_v58 = vld [vmem:[%s1389_s1 + $0x118] sm:$0xff] }
  0x12   :  { %638 = vmatpush.bf16.msra.mxu0 %v1054_v16  ;;  %v1102_v59 = vld [vmem:[%s1389_s1 + $0x198] sm:$0xff]  ;;  %v1085_v62 = vld [vmem:[%s1389_s1 + $0x110] sm:$0xff]  ;;  %v1084_v2 = vld [vmem:[%s1389_s1 + $0x108] sm:$0xff] }
  0x13   :  { %664 = vmatpush.bf16.msra.mxu2 %v1070_v17  ;;  %v1110_v60 = vld [vmem:[%s1389_s1 + $0x1d8] sm:$0xff]  ;;  %v1101_v63 = vld [vmem:[%s1389_s1 + $0x190] sm:$0xff]  ;;  %v1100_v3 = vld [vmem:[%s1389_s1 + $0x188] sm:$0xff] }
  0x14   :  { %677 = vmatpush.bf16.msra.mxu3 %v1078_v18  ;;  %v1094_v61 = vld [vmem:[%s1389_s1 + $0x158] sm:$0xff]  ;;  %v1109_v0 = vld [vmem:[%s1389_s1 + $0x1d0] sm:$0xff]  ;;  %v1108_v6 = vld [vmem:[%s1389_s1 + $0x1c8] sm:$0xff] }
  0x15   :  { %651 = vmatpush.bf16.msra.mxu1 %v1062_v19  ;;  %v1093_v1 = vld [vmem:[%s1389_s1 + $0x150] sm:$0xff]  ;;  %v20_v4 = vld [vmem:[%s1391_s0 + $0x18] sm:$0xff]  ;;  %v1092_v7 = vld [vmem:[%s1389_s1 + $0x148] sm:$0xff] }
  0x16   :  { %639 = vmatpush.bf16.msra.mxu0 %v1053_v20  ;;  %v19_v5 = vld [vmem:[%s1391_s0 + $0x10] sm:$0xff]  ;;  %v181_v8 = vunpack.c.l.b16 %v20_v4  ;;  %v1083_v10 = vld [vmem:[%s1389_s1 + $0x100] sm:$0xff]  ;;  %v1122_v12 = vld [vmem:[%s1389_s1 + $0x238] sm:$0xff]  ;;  %v182_v13 = vunpack.c.h.b16 %v20_v4 }
  0x17   :  { %665 = vmatpush.bf16.msra.mxu2 %v1069_v21  ;;  %v179_v9 = vunpack.c.l.b16 %v19_v5  ;;  %v1099_v11 = vld [vmem:[%s1389_s1 + $0x180] sm:$0xff]  ;;  %v180_v16 = vunpack.c.h.b16 %v19_v5  ;;  %v1121_v19 = vld [vmem:[%s1389_s1 + $0x230] sm:$0xff] }
  0x18   :  { %678 = vmatpush.bf16.msra.mxu3 %v1077_v22  ;;  %v1107_v14 = vld [vmem:[%s1389_s1 + $0x1c0] sm:$0xff]  ;;  %v190_v17 = vpack.c.b16 %v181_v8, %v181_v8  ;;  %v191_v20 = vpack.c.b16 %v182_v13, %v182_v13  ;;  %v1120_v22 = vld [vmem:[%s1389_s1 + $0x228] sm:$0xff] }
  0x19   :  { %652 = vmatpush.bf16.msra.mxu1 %v1061_v23  ;;  %v1091_v15 = vld [vmem:[%s1389_s1 + $0x140] sm:$0xff]  ;;  %v188_v18 = vpack.c.b16 %v179_v9, %v179_v9  ;;  %v189_v21 = vpack.c.b16 %v180_v16, %v180_v16 }
  0x1a   :  { %640 = vmatpush.bf16.msra.mxu0 %v1052_v24  ;;  %v1119_v23 = vld [vmem:[%s1389_s1 + $0x220] sm:$0xff]  ;;  %v1118_v24 = vld [vmem:[%s1389_s1 + $0x218] sm:$0xff] }
  0x1b   :  { %666 = vmatpush.bf16.msra.mxu2 %v1068_v25  ;;  %v1117_v25 = vld [vmem:[%s1389_s1 + $0x210] sm:$0xff]  ;;  %v1115_v29 = vld [vmem:[%s1389_s1 + $0x200] sm:$0xff] }
  0x1c   :  { %679 = vmatpush.bf16.msra.mxu3 %v1076_v26  ;;  %v1116_v26 = vld [vmem:[%s1389_s1 + $0x208] sm:$0xff]  ;;  %v1123_v39 = vld [vmem:[%s1390_s2] ss:$0 sm:$0xff] }
  0x1d   :  { %653 = vmatpush.bf16.msra.mxu1 %v1060_v27  ;;  %v21_v27 = vld [vmem:[%s1391_s0 + $0x20] sm:$0xf] }
  0x1e   :  { %641 = vmatpush.bf16.msra.mxu0 %v1051_v30  ;;  %v183_v28 = vunpack.c.l.b16 %v21_v27 }
  0x1f   :  { %667 = vmatpush.bf16.msra.mxu2 %v1067_v31 }
  0x20   :  { %680 = vmatpush.bf16.msra.mxu3 %v1075_v36  ;;  %v192_v30 = vpack.c.b16 %v183_v28, %v183_v28 }
  0x21   :  { %654 = vmatpush.bf16.msra.mxu1 %v1059_v37  ;;  %642 = vmatmul.bf16.vlgmr.msra.gmra.mxu0 %v184_v43 }
  0x22   :  { %686 = vmatpush.bf16.msrb.mxu0 %v1090_v34  ;;  %668 = vmatmul.bf16.vlgmr.msra.gmra.mxu2 %v186_v42 }
  0x23   :  { %712 = vmatpush.bf16.msrb.mxu2 %v1106_v35  ;;  %681 = vmatmul.bf16.vlgmr.msra.gmra.mxu3 %v187_v46 }
  0x24   :  { %725 = vmatpush.bf16.msrb.mxu3 %v1114_v40  ;;  %655 = vmatmul.bf16.vlgmr.msra.gmra.mxu1 %v185_v47 }
  0x25   :  { %699 = vmatpush.bf16.msrb.mxu1 %v1098_v41 }
  0x26   :  { %687 = vmatpush.bf16.msrb.mxu0 %v1089_v44 }
  0x27   :  { %713 = vmatpush.bf16.msrb.mxu2 %v1105_v45 }
  0x28   :  { %726 = vmatpush.bf16.msrb.mxu3 %v1113_v48 }
  0x29   :  { %700 = vmatpush.bf16.msrb.mxu1 %v1097_v49 }
  0x2a   :  { %688 = vmatpush.bf16.msrb.mxu0 %v1088_v50 }
  0x2b   :  { %714 = vmatpush.bf16.msrb.mxu2 %v1104_v51 }
  0x2c   :  { %727 = vmatpush.bf16.msrb.mxu3 %v1112_v52 }
  0x2d   :  { %701 = vmatpush.bf16.msrb.mxu1 %v1096_v53 }
  0x2e   :  { %689 = vmatpush.bf16.msrb.mxu0 %v1087_v54 }
  0x2f   :  { %715 = vmatpush.bf16.msrb.mxu2 %v1103_v55 }
  0x30   :  { %728 = vmatpush.bf16.msrb.mxu3 %v1111_v56  ;;  %v754_v56 = vld [vmem:[%s1392_s3] sm:$0xf] }
  0x31   :  { %702 = vmatpush.bf16.msrb.mxu1 %v1095_v57 }
  0x32   :  { %690 = vmatpush.bf16.msrb.mxu0 %v1086_v58 }
  0x33   :  { %716 = vmatpush.bf16.msrb.mxu2 %v1102_v59  ;;  %v755_v59 = vunpack.c.l.bf16 %v754_v56 }
  0x34   :  { %729 = vmatpush.bf16.msrb.mxu3 %v1110_v60 }
  0x35   :  { %703 = vmatpush.bf16.msrb.mxu1 %v1094_v61 }
  0x36   :  { %691 = vmatpush.bf16.msrb.mxu0 %v1085_v62 }
  0x37   :  { %717 = vmatpush.bf16.msrb.mxu2 %v1101_v63 }
  0x38   :  { %730 = vmatpush.bf16.msrb.mxu3 %v1109_v0 }
  0x39   :  { %704 = vmatpush.bf16.msrb.mxu1 %v1093_v1 }
  0x3a   :  { %692 = vmatpush.bf16.msrb.mxu0 %v1084_v2 }
  0x3b   :  { %718 = vmatpush.bf16.msrb.mxu2 %v1100_v3 }
  0x3c   :  { %731 = vmatpush.bf16.msrb.mxu3 %v1108_v6 }
  0x3d   :  { %705 = vmatpush.bf16.msrb.mxu1 %v1092_v7 }
  0x3e   :  { %693 = vmatpush.bf16.msrb.mxu0 %v1083_v10 }
  0x3f   :  { %719 = vmatpush.bf16.msrb.mxu2 %v1099_v11 }
  0x40   :  { %732 = vmatpush.bf16.msrb.mxu3 %v1107_v14 }
  0x41   :  { %706 = vmatpush.bf16.msrb.mxu1 %v1091_v15  ;;  %694 = vmatmul.bf16.vlgmr.msrb.gmra.mxu0 %v188_v18 }
  0x42   :  { %738 = vmatpush.bf16.msra.mxu0 %v1122_v12  ;;  %720 = vmatmul.bf16.vlgmr.msrb.gmra.mxu2 %v190_v17 }
  0x43   :  { %733 = vmatmul.bf16.vlgmr.msrb.gmra.mxu3 %v191_v20 }
  0x44   :  { %707 = vmatmul.bf16.vlgmr.msrb.gmra.mxu1 %v189_v21 }
  0x46   :  { %739 = vmatpush.bf16.msra.mxu0 %v1121_v19 }
  0x4a   :  { %740 = vmatpush.bf16.msra.mxu0 %v1120_v22 }
  0x4e   :  { %741 = vmatpush.bf16.msra.mxu0 %v1119_v23 }
  0x52   :  { %742 = vmatpush.bf16.msra.mxu0 %v1118_v24 }
  0x56   :  { %743 = vmatpush.bf16.msra.mxu0 %v1117_v25 }
  0x5a   :  { %744 = vmatpush.bf16.msra.mxu0 %v1116_v26 }
  0x5e   :  { %745 = vmatpush.bf16.msra.mxu0 %v1115_v29 }
  0x61   :  { %746 = vmatmul.bf16.vlgmr.msra.gmra.mxu0 %v192_v30 }
  0x9e   :  { %v643_v31 = vpop.f32.mrf.mxu0 }
  0x9f   :  { %v644_v40 = vadd.f32 %v1123_v39, %v643_v31 }
  0xa1   :  { %v656_v32 = vpop.f32.mrf.mxu1 }
  0xa2   :  { %v657_v43 = vadd.f32 %v656_v32, %v644_v40 }
  0xa5   :  { %v669_v33 = vpop.f32.mrf.mxu2 }
  0xa6   :  { %v682_v34 = vpop.f32.mrf.mxu3  ;;  %v645_v35 = vpop.f32.mrf.mxu0  ;;  %v670_v45 = vadd.f32 %v669_v33, %v657_v43 }
  0xa8   :  { %v683_v49 = vadd.f32 %v682_v34, %v670_v45 }
  0xa9   :  { %v658_v36 = vpop.f32.mrf.mxu1 }
  0xad   :  { %v671_v37 = vpop.f32.mrf.mxu2 }
  0xae   :  { %v684_v38 = vpop.f32.mrf.mxu3 }
  0xbe   :  { %v695_v41 = vpop.f32.mrf.mxu0 }
  0xbf   :  { %v696_v51 = vadd.f32 %v695_v41, %v683_v49 }
  0xc1   :  { %v708_v42 = vpop.f32.mrf.mxu1 }
  0xc2   :  { %v709_v53 = vadd.f32 %v708_v42, %v696_v51 }
  0xc5   :  { %v721_v44 = vpop.f32.mrf.mxu2 }
  0xc6   :  { %v734_v46 = vpop.f32.mrf.mxu3  ;;  %v697_v47 = vpop.f32.mrf.mxu0  ;;  %v722_v54 = vadd.f32 %v721_v44, %v709_v53 }
  0xc8   :  { %v735_v55 = vadd.f32 %v734_v46, %v722_v54 }
  0xc9   :  { %v710_v48 = vpop.f32.mrf.mxu1 }
  0xcd   :  { %v723_v50 = vpop.f32.mrf.mxu2 }
  0xce   :  { %v736_v52 = vpop.f32.mrf.mxu3 }
  0xde   :  { %v747_v57 = vpop.f32.mrf.mxu0 }
  0xdf   :  { %v748_v58 = vadd.f32 %v747_v57, %v735_v55 }
  0xe1   :  { %vm751_vm0 = vcmp.ge.f32.partialorder %v748_v58, 0.0  ;;  %v752_v60 = vmul.f32 0.1, %v748_v58 }
  0xe3   :  { %v753_v61 = vsel %vm751_vm0, %v748_v58, %v752_v60 }
  0xe4   :  { %v756_v62 = vadd.f32 %v755_v59, %v753_v61 }
  0xe6   :  { %v757_v63 = vpack.c.bf16 %v756_v62, %v756_v62  ;;  %v749_v0 = vpop.f32.mrf.mxu0 }
  0xe8   :  { %758 = vst [vmem:[%s1393_s4] sm:$0xf] %v757_v63 }

// kernel: encoder_fwd_nchw.30
= control target key start
LH: loop header
LB: loop body
LE: loop exit
PB: predicated region body
PF: predicated region fallthrough
CT: control target
= control target key end

     0   :  { %s1389_s1 = inlined_call_operand.vmem [shape: bf16[1152,128], index: 1, kind: input, shape index: {}]   ;;  %s1390_s2 = inlined_call_operand.vmem [shape: f32[1,128], index: 2, kind: input, shape index: {}]   ;;  %s1391_s0 = inlined_call_operand.vmem [shape: bf16[8,1152], index: 0, kind: input, shape index: {}]   ;;  %s1392_s3 = inlined_call_operand.vmem [shape: bf16[8,128], index: 3, kind: input, shape index: {}]   ;;  %s1393_s4 = inlined_call_operand.vmem [shape: bf16[8,128], index: 4, kind: output, shape index: {}]  }
   0x1   :  { %v1058_v0 = vld [vmem:[%s1389_s1 + $0x38] sm:$0xff]  ;;  %v1057_v4 = vld [vmem:[%s1389_s1 + $0x30] sm:$0xff]  ;;  %v1056_v8 = vld [vmem:[%s1389_s1 + $0x28] sm:$0xff] }
   0x2   :  { %v1074_v1 = vld [vmem:[%s1389_s1 + $0xb8] sm:$0xff]  ;;  %634 = vmatpush.bf16.msra.mxu0 %v1058_v0  ;;  %v1073_v5 = vld [vmem:[%s1389_s1 + $0xb0] sm:$0xff]  ;;  %v1072_v9 = vld [vmem:[%s1389_s1 + $0xa8] sm:$0xff] }
   0x3   :  { %v1082_v2 = vld [vmem:[%s1389_s1 + $0xf8] sm:$0xff]  ;;  %660 = vmatpush.bf16.msra.mxu2 %v1074_v1  ;;  %v1081_v6 = vld [vmem:[%s1389_s1 + $0xf0] sm:$0xff]  ;;  %v1080_v10 = vld [vmem:[%s1389_s1 + $0xe8] sm:$0xff] }
   0x4   :  { %v1066_v3 = vld [vmem:[%s1389_s1 + $0x78] sm:$0xff]  ;;  %673 = vmatpush.bf16.msra.mxu3 %v1082_v2  ;;  %v1065_v7 = vld [vmem:[%s1389_s1 + $0x70] sm:$0xff]  ;;  %v1064_v11 = vld [vmem:[%s1389_s1 + $0x68] sm:$0xff] }
   0x5   :  { %647 = vmatpush.bf16.msra.mxu1 %v1066_v3  ;;  %v1055_v12 = vld [vmem:[%s1389_s1 + $0x20] sm:$0xff]  ;;  %v1054_v16 = vld [vmem:[%s1389_s1 + $0x18] sm:$0xff]  ;;  %v1053_v20 = vld [vmem:[%s1389_s1 + $0x10] sm:$0xff] }
   0x6   :  { %635 = vmatpush.bf16.msra.mxu0 %v1057_v4  ;;  %v1071_v13 = vld [vmem:[%s1389_s1 + $0xa0] sm:$0xff]  ;;  %v1070_v17 = vld [vmem:[%s1389_s1 + $0x98] sm:$0xff]  ;;  %v1069_v21 = vld [vmem:[%s1389_s1 + $0x90] sm:$0xff] }
   0x7   :  { %661 = vmatpush.bf16.msra.mxu2 %v1073_v5  ;;  %v1079_v14 = vld [vmem:[%s1389_s1 + $0xe0] sm:$0xff]  ;;  %v1078_v18 = vld [vmem:[%s1389_s1 + $0xd8] sm:$0xff]  ;;  %v1077_v22 = vld [vmem:[%s1389_s1 + $0xd0] sm:$0xff] }
   0x8   :  { %674 = vmatpush.bf16.msra.mxu3 %v1081_v6  ;;  %v1063_v15 = vld [vmem:[%s1389_s1 + $0x60] sm:$0xff]  ;;  %v1062_v19 = vld [vmem:[%s1389_s1 + $0x58] sm:$0xff]  ;;  %v1061_v23 = vld [vmem:[%s1389_s1 + $0x50] sm:$0xff] }
   0x9   :  { %648 = vmatpush.bf16.msra.mxu1 %v1065_v7  ;;  %v1052_v24 = vld [vmem:[%s1389_s1 + $0x8] sm:$0xff]  ;;  %v17_v29 = vld [vmem:[%s1391_s0] sm:$0xff]  ;;  %v1090_v34 = vld [vmem:[%s1389_s1 + $0x138] sm:$0xff] }
   0xa   :  { %636 = vmatpush.bf16.msra.mxu0 %v1056_v8  ;;  %v1068_v25 = vld [vmem:[%s1389_s1 + $0x88] sm:$0xff]  ;;  %v1051_v30 = vld [vmem:[%s1389_s1] sm:$0xff]  ;;  %v175_v33 = vunpack.c.l.b16 %v17_v29  ;;  %v1106_v35 = vld [vmem:[%s1389_s1 + $0x1b8] sm:$0xff]  ;;  %v176_v39 = vunpack.c.h.b16 %v17_v29 }
   0xb   :  { %662 = vmatpush.bf16.msra.mxu2 %v1072_v9  ;;  %v1076_v26 = vld [vmem:[%s1389_s1 + $0xc8] sm:$0xff]  ;;  %v1067_v31 = vld [vmem:[%s1389_s1 + $0x80] sm:$0xff]  ;;  %v1114_v40 = vld [vmem:[%s1389_s1 + $0x1f8] sm:$0xff] }
   0xc   :  { %675 = vmatpush.bf16.msra.mxu3 %v1080_v10  ;;  %v1060_v27 = vld [vmem:[%s1389_s1 + $0x48] sm:$0xff]  ;;  %v1075_v36 = vld [vmem:[%s1389_s1 + $0xc0] sm:$0xff]  ;;  %v1098_v41 = vld [vmem:[%s1389_s1 + $0x178] sm:$0xff]  ;;  %v184_v43 = vpack.c.b16 %v175_v33, %v175_v33  ;;  %v185_v47 = vpack.c.b16 %v176_v39, %v176_v39 }
   0xd   :  { %649 = vmatpush.bf16.msra.mxu1 %v1064_v11  ;;  %v18_v28 = vld [vmem:[%s1391_s0 + $0x8] sm:$0xff]  ;;  %v1059_v37 = vld [vmem:[%s1389_s1 + $0x40] sm:$0xff]  ;;  %v1089_v44 = vld [vmem:[%s1389_s1 + $0x130] sm:$0xff] }
   0xe   :  { %637 = vmatpush.bf16.msra.mxu0 %v1055_v12  ;;  %v177_v32 = vunpack.c.l.b16 %v18_v28  ;;  %v178_v38 = vunpack.c.h.b16 %v18_v28  ;;  %v1105_v45 = vld [vmem:[%s1389_s1 + $0x1b0] sm:$0xff]  ;;  %v1088_v50 = vld [vmem:[%s1389_s1 + $0x128] sm:$0xff]  ;;  %v1087_v54 = vld [vmem:[%s1389_s1 + $0x120] sm:$0xff] }
   0xf   :  { %663 = vmatpush.bf16.msra.mxu2 %v1071_v13  ;;  %v1113_v48 = vld [vmem:[%s1389_s1 + $0x1f0] sm:$0xff]  ;;  %v1104_v51 = vld [vmem:[%s1389_s1 + $0x1a8] sm:$0xff]  ;;  %v1103_v55 = vld [vmem:[%s1389_s1 + $0x1a0] sm:$0xff] }
  0x10   :  { %676 = vmatpush.bf16.msra.mxu3 %v1079_v14  ;;  %v186_v42 = vpack.c.b16 %v177_v32, %v177_v32  ;;  %v187_v46 = vpack.c.b16 %v178_v38, %v178_v38  ;;  %v1097_v49 = vld [vmem:[%s1389_s1 + $0x170] sm:$0xff]  ;;  %v1112_v52 = vld [vmem:[%s1389_s1 + $0x1e8] sm:$0xff]  ;;  %v1111_v56 = vld [vmem:[%s1389_s1 + $0x1e0] sm:$0xff] }
  0x11   :  { %650 = vmatpush.bf16.msra.mxu1 %v1063_v15  ;;  %v1096_v53 = vld [vmem:[%s1389_s1 + $0x168] sm:$0xff]  ;;  %v1095_v57 = vld [vmem:[%s1389_s1 + $0x160] sm:$0xff]  ;;  %v1086_v58 = vld [vmem:[%s1389_s1 + $0x118] sm:$0xff] }
  0x12   :  { %638 = vmatpush.bf16.msra.mxu0 %v1054_v16  ;;  %v1102_v59 = vld [vmem:[%s1389_s1 + $0x198] sm:$0xff]  ;;  %v1085_v62 = vld [vmem:[%s1389_s1 + $0x110] sm:$0xff]  ;;  %v1084_v2 = vld [vmem:[%s1389_s1 + $0x108] sm:$0xff] }
  0x13   :  { %664 = vmatpush.bf16.msra.mxu2 %v1070_v17  ;;  %v1110_v60 = vld [vmem:[%s1389_s1 + $0x1d8] sm:$0xff]  ;;  %v1101_v63 = vld [vmem:[%s1389_s1 + $0x190] sm:$0xff]  ;;  %v1100_v3 = vld [vmem:[%s1389_s1 + $0x188] sm:$0xff] }
  0x14   :  { %677 = vmatpush.bf16.msra.mxu3 %v1078_v18  ;;  %v1094_v61 = vld [vmem:[%s1389_s1 + $0x158] sm:$0xff]  ;;  %v1109_v0 = vld [vmem:[%s1389_s1 + $0x1d0] sm:$0xff]  ;;  %v1108_v6 = vld [vmem:[%s1389_s1 + $0x1c8] sm:$0xff] }
  0x15   :  { %651 = vmatpush.bf16.msra.mxu1 %v1062_v19  ;;  %v1093_v1 = vld [vmem:[%s1389_s1 + $0x150] sm:$0xff]  ;;  %v20_v4 = vld [vmem:[%s1391_s0 + $0x18] sm:$0xff]  ;;  %v1092_v7 = vld [vmem:[%s1389_s1 + $0x148] sm:$0xff] }
  0x16   :  { %639 = vmatpush.bf16.msra.mxu0 %v1053_v20  ;;  %v19_v5 = vld [vmem:[%s1391_s0 + $0x10] sm:$0xff]  ;;  %v181_v8 = vunpack.c.l.b16 %v20_v4  ;;  %v1083_v10 = vld [vmem:[%s1389_s1 + $0x100] sm:$0xff]  ;;  %v1122_v12 = vld [vmem:[%s1389_s1 + $0x238] sm:$0xff]  ;;  %v182_v13 = vunpack.c.h.b16 %v20_v4 }
  0x17   :  { %665 = vmatpush.bf16.msra.mxu2 %v1069_v21  ;;  %v179_v9 = vunpack.c.l.b16 %v19_v5  ;;  %v1099_v11 = vld [vmem:[%s1389_s1 + $0x180] sm:$0xff]  ;;  %v180_v16 = vunpack.c.h.b16 %v19_v5  ;;  %v1121_v19 = vld [vmem:[%s1389_s1 + $0x230] sm:$0xff] }
  0x18   :  { %678 = vmatpush.bf16.msra.mxu3 %v1077_v22  ;;  %v1107_v14 = vld [vmem:[%s1389_s1 + $0x1c0] sm:$0xff]  ;;  %v190_v17 = vpack.c.b16 %v181_v8, %v181_v8  ;;  %v191_v20 = vpack.c.b16 %v182_v13, %v182_v13  ;;  %v1120_v22 = vld [vmem:[%s1389_s1 + $0x228] sm:$0xff] }
  0x19   :  { %652 = vmatpush.bf16.msra.mxu1 %v1061_v23  ;;  %v1091_v15 = vld [vmem:[%s1389_s1 + $0x140] sm:$0xff]  ;;  %v188_v18 = vpack.c.b16 %v179_v9, %v179_v9  ;;  %v189_v21 = vpack.c.b16 %v180_v16, %v180_v16 }
  0x1a   :  { %640 = vmatpush.bf16.msra.mxu0 %v1052_v24  ;;  %v1119_v23 = vld [vmem:[%s1389_s1 + $0x220] sm:$0xff]  ;;  %v1118_v24 = vld [vmem:[%s1389_s1 + $0x218] sm:$0xff] }
  0x1b   :  { %666 = vmatpush.bf16.msra.mxu2 %v1068_v25  ;;  %v1117_v25 = vld [vmem:[%s1389_s1 + $0x210] sm:$0xff]  ;;  %v1115_v29 = vld [vmem:[%s1389_s1 + $0x200] sm:$0xff] }
  0x1c   :  { %679 = vmatpush.bf16.msra.mxu3 %v1076_v26  ;;  %v1116_v26 = vld [vmem:[%s1389_s1 + $0x208] sm:$0xff]  ;;  %v1123_v39 = vld [vmem:[%s1390_s2] ss:$0 sm:$0xff] }
  0x1d   :  { %653 = vmatpush.bf16.msra.mxu1 %v1060_v27  ;;  %v21_v27 = vld [vmem:[%s1391_s0 + $0x20] sm:$0xf] }
  0x1e   :  { %641 = vmatpush.bf16.msra.mxu0 %v1051_v30  ;;  %v183_v28 = vunpack.c.l.b16 %v21_v27 }
  0x1f   :  { %667 = vmatpush.bf16.msra.mxu2 %v1067_v31 }
  0x20   :  { %680 = vmatpush.bf16.msra.mxu3 %v1075_v36  ;;  %v192_v30 = vpack.c.b16 %v183_v28, %v183_v28 }
  0x21   :  { %654 = vmatpush.bf16.msra.mxu1 %v1059_v37  ;;  %642 = vmatmul.bf16.vlgmr.msra.gmra.mxu0 %v184_v43 }
  0x22   :  { %686 = vmatpush.bf16.msrb.mxu0 %v1090_v34  ;;  %668 = vmatmul.bf16.vlgmr.msra.gmra.mxu2 %v186_v42 }
  0x23   :  { %712 = vmatpush.bf16.msrb.mxu2 %v1106_v35  ;;  %681 = vmatmul.bf16.vlgmr.msra.gmra.mxu3 %v187_v46 }
  0x24   :  { %725 = vmatpush.bf16.msrb.mxu3 %v1114_v40  ;;  %655 = vmatmul.bf16.vlgmr.msra.gmra.mxu1 %v185_v47 }
  0x25   :  { %699 = vmatpush.bf16.msrb.mxu1 %v1098_v41 }
  0x26   :  { %687 = vmatpush.bf16.msrb.mxu0 %v1089_v44 }
  0x27   :  { %713 = vmatpush.bf16.msrb.mxu2 %v1105_v45 }
  0x28   :  { %726 = vmatpush.bf16.msrb.mxu3 %v1113_v48 }
  0x29   :  { %700 = vmatpush.bf16.msrb.mxu1 %v1097_v49 }
  0x2a   :  { %688 = vmatpush.bf16.msrb.mxu0 %v1088_v50 }
  0x2b   :  { %714 = vmatpush.bf16.msrb.mxu2 %v1104_v51 }
  0x2c   :  { %727 = vmatpush.bf16.msrb.mxu3 %v1112_v52 }
  0x2d   :  { %701 = vmatpush.bf16.msrb.mxu1 %v1096_v53 }
  0x2e   :  { %689 = vmatpush.bf16.msrb.mxu0 %v1087_v54 }
  0x2f   :  { %715 = vmatpush.bf16.msrb.mxu2 %v1103_v55 }
  0x30   :  { %728 = vmatpush.bf16.msrb.mxu3 %v1111_v56  ;;  %v754_v56 = vld [vmem:[%s1392_s3] sm:$0xf] }
  0x31   :  { %702 = vmatpush.bf16.msrb.mxu1 %v1095_v57 }
  0x32   :  { %690 = vmatpush.bf16.msrb.mxu0 %v1086_v58 }
  0x33   :  { %716 = vmatpush.bf16.msrb.mxu2 %v1102_v59  ;;  %v755_v59 = vunpack.c.l.bf16 %v754_v56 }
  0x34   :  { %729 = vmatpush.bf16.msrb.mxu3 %v1110_v60 }
  0x35   :  { %703 = vmatpush.bf16.msrb.mxu1 %v1094_v61 }
  0x36   :  { %691 = vmatpush.bf16.msrb.mxu0 %v1085_v62 }
  0x37   :  { %717 = vmatpush.bf16.msrb.mxu2 %v1101_v63 }
  0x38   :  { %730 = vmatpush.bf16.msrb.mxu3 %v1109_v0 }
  0x39   :  { %704 = vmatpush.bf16.msrb.mxu1 %v1093_v1 }
  0x3a   :  { %692 = vmatpush.bf16.msrb.mxu0 %v1084_v2 }
  0x3b   :  { %718 = vmatpush.bf16.msrb.mxu2 %v1100_v3 }
  0x3c   :  { %731 = vmatpush.bf16.msrb.mxu3 %v1108_v6 }
  0x3d   :  { %705 = vmatpush.bf16.msrb.mxu1 %v1092_v7 }
  0x3e   :  { %693 = vmatpush.bf16.msrb.mxu0 %v1083_v10 }
  0x3f   :  { %719 = vmatpush.bf16.msrb.mxu2 %v1099_v11 }
  0x40   :  { %732 = vmatpush.bf16.msrb.mxu3 %v1107_v14 }
  0x41   :  { %706 = vmatpush.bf16.msrb.mxu1 %v1091_v15  ;;  %694 = vmatmul.bf16.vlgmr.msrb.gmra.mxu0 %v188_v18 }
  0x42   :  { %738 = vmatpush.bf16.msra.mxu0 %v1122_v12  ;;  %720 = vmatmul.bf16.vlgmr.msrb.gmra.mxu2 %v190_v17 }
  0x43   :  { %733 = vmatmul.bf16.vlgmr.msrb.gmra.mxu3 %v191_v20 }
  0x44   :  { %707 = vmatmul.bf16.vlgmr.msrb.gmra.mxu1 %v189_v21 }
  0x46   :  { %739 = vmatpush.bf16.msra.mxu0 %v1121_v19 }
  0x4a   :  { %740 = vmatpush.bf16.msra.mxu0 %v1120_v22 }
  0x4e   :  { %741 = vmatpush.bf16.msra.mxu0 %v1119_v23 }
  0x52   :  { %742 = vmatpush.bf16.msra.mxu0 %v1118_v24 }
  0x56   :  { %743 = vmatpush.bf16.msra.mxu0 %v1117_v25 }
  0x5a   :  { %744 = vmatpush.bf16.msra.mxu0 %v1116_v26 }
  0x5e   :  { %745 = vmatpush.bf16.msra.mxu0 %v1115_v29 }
  0x61   :  { %746 = vmatmul.bf16.vlgmr.msra.gmra.mxu0 %v192_v30 }
  0x9e   :  { %v643_v31 = vpop.f32.mrf.mxu0 }
  0x9f   :  { %v644_v40 = vadd.f32 %v1123_v39, %v643_v31 }
  0xa1   :  { %v656_v32 = vpop.f32.mrf.mxu1 }
  0xa2   :  { %v657_v43 = vadd.f32 %v656_v32, %v644_v40 }
  0xa5   :  { %v669_v33 = vpop.f32.mrf.mxu2 }
  0xa6   :  { %v682_v34 = vpop.f32.mrf.mxu3  ;;  %v645_v35 = vpop.f32.mrf.mxu0  ;;  %v670_v45 = vadd.f32 %v669_v33, %v657_v43 }
  0xa8   :  { %v683_v49 = vadd.f32 %v682_v34, %v670_v45 }
  0xa9   :  { %v658_v36 = vpop.f32.mrf.mxu1 }
  0xad   :  { %v671_v37 = vpop.f32.mrf.mxu2 }
  0xae   :  { %v684_v38 = vpop.f32.mrf.mxu3 }
  0xbe   :  { %v695_v41 = vpop.f32.mrf.mxu0 }
  0xbf   :  { %v696_v51 = vadd.f32 %v695_v41, %v683_v49 }
  0xc1   :  { %v708_v42 = vpop.f32.mrf.mxu1 }
  0xc2   :  { %v709_v53 = vadd.f32 %v708_v42, %v696_v51 }
  0xc5   :  { %v721_v44 = vpop.f32.mrf.mxu2 }
  0xc6   :  { %v734_v46 = vpop.f32.mrf.mxu3  ;;  %v697_v47 = vpop.f32.mrf.mxu0  ;;  %v722_v54 = vadd.f32 %v721_v44, %v709_v53 }
  0xc8   :  { %v735_v55 = vadd.f32 %v734_v46, %v722_v54 }
  0xc9   :  { %v710_v48 = vpop.f32.mrf.mxu1 }
  0xcd   :  { %v723_v50 = vpop.f32.mrf.mxu2 }
  0xce   :  { %v736_v52 = vpop.f32.mrf.mxu3 }
  0xde   :  { %v747_v57 = vpop.f32.mrf.mxu0 }
  0xdf   :  { %v748_v58 = vadd.f32 %v747_v57, %v735_v55 }
  0xe1   :  { %vm751_vm0 = vcmp.ge.f32.partialorder %v748_v58, 0.0  ;;  %v752_v60 = vmul.f32 0.01, %v748_v58 }
  0xe3   :  { %v753_v61 = vsel %vm751_vm0, %v748_v58, %v752_v60 }
  0xe4   :  { %v756_v62 = vadd.f32 %v755_v59, %v753_v61 }
  0xe6   :  { %v757_v63 = vpack.c.bf16 %v756_v62, %v756_v62  ;;  %v749_v0 = vpop.f32.mrf.mxu0 }
  0xe8   :  { %758 = vst [vmem:[%s1393_s4] sm:$0xf] %v757_v63 }

// kernel: encoder_fwd_nchw.31
= control target key start
LH: loop header
LB: loop body
LE: loop exit
PB: predicated region body
PF: predicated region fallthrough
CT: control target
= control target key end

     0   :  { %s1372_s1 = inlined_call_operand.vmem [shape: bf16[1152,128], index: 1, kind: input, shape index: {}]   ;;  %s1373_s2 = inlined_call_operand.vmem [shape: f32[1,128], index: 2, kind: input, shape index: {}]   ;;  %s1374_s0 = inlined_call_operand.vmem [shape: bf16[8,1152], index: 0, kind: input, shape index: {}]   ;;  %s1375_s3 = inlined_call_operand.vmem [shape: bf16[8,128], index: 3, kind: output, shape index: {}]  }
   0x1   :  { %v1049_v0 = vld [vmem:[%s1372_s1 + $0x38] sm:$0xff]  ;;  %v1048_v4 = vld [vmem:[%s1372_s1 + $0x30] sm:$0xff]  ;;  %v1047_v8 = vld [vmem:[%s1372_s1 + $0x28] sm:$0xff] }
   0x2   :  { %v1065_v1 = vld [vmem:[%s1372_s1 + $0xb8] sm:$0xff]  ;;  %631 = vmatpush.bf16.msra.mxu0 %v1049_v0  ;;  %v1064_v5 = vld [vmem:[%s1372_s1 + $0xb0] sm:$0xff]  ;;  %v1063_v9 = vld [vmem:[%s1372_s1 + $0xa8] sm:$0xff] }
   0x3   :  { %v1073_v2 = vld [vmem:[%s1372_s1 + $0xf8] sm:$0xff]  ;;  %657 = vmatpush.bf16.msra.mxu2 %v1065_v1  ;;  %v1072_v6 = vld [vmem:[%s1372_s1 + $0xf0] sm:$0xff]  ;;  %v1071_v10 = vld [vmem:[%s1372_s1 + $0xe8] sm:$0xff] }
   0x4   :  { %v1057_v3 = vld [vmem:[%s1372_s1 + $0x78] sm:$0xff]  ;;  %670 = vmatpush.bf16.msra.mxu3 %v1073_v2  ;;  %v1056_v7 = vld [vmem:[%s1372_s1 + $0x70] sm:$0xff]  ;;  %v1055_v11 = vld [vmem:[%s1372_s1 + $0x68] sm:$0xff] }
   0x5   :  { %644 = vmatpush.bf16.msra.mxu1 %v1057_v3  ;;  %v1046_v12 = vld [vmem:[%s1372_s1 + $0x20] sm:$0xff]  ;;  %v1045_v16 = vld [vmem:[%s1372_s1 + $0x18] sm:$0xff]  ;;  %v1044_v20 = vld [vmem:[%s1372_s1 + $0x10] sm:$0xff] }
   0x6   :  { %632 = vmatpush.bf16.msra.mxu0 %v1048_v4  ;;  %v1062_v13 = vld [vmem:[%s1372_s1 + $0xa0] sm:$0xff]  ;;  %v1061_v17 = vld [vmem:[%s1372_s1 + $0x98] sm:$0xff]  ;;  %v1060_v21 = vld [vmem:[%s1372_s1 + $0x90] sm:$0xff] }
   0x7   :  { %658 = vmatpush.bf16.msra.mxu2 %v1064_v5  ;;  %v1070_v14 = vld [vmem:[%s1372_s1 + $0xe0] sm:$0xff]  ;;  %v1069_v18 = vld [vmem:[%s1372_s1 + $0xd8] sm:$0xff]  ;;  %v1068_v22 = vld [vmem:[%s1372_s1 + $0xd0] sm:$0xff] }
   0x8   :  { %671 = vmatpush.bf16.msra.mxu3 %v1072_v6  ;;  %v1054_v15 = vld [vmem:[%s1372_s1 + $0x60] sm:$0xff]  ;;  %v1053_v19 = vld [vmem:[%s1372_s1 + $0x58] sm:$0xff]  ;;  %v1052_v23 = vld [vmem:[%s1372_s1 + $0x50] sm:$0xff] }
   0x9   :  { %645 = vmatpush.bf16.msra.mxu1 %v1056_v7  ;;  %v1043_v24 = vld [vmem:[%s1372_s1 + $0x8] sm:$0xff]  ;;  %v14_v29 = vld [vmem:[%s1374_s0] sm:$0xff]  ;;  %v1081_v34 = vld [vmem:[%s1372_s1 + $0x138] sm:$0xff] }
   0xa   :  { %633 = vmatpush.bf16.msra.mxu0 %v1047_v8  ;;  %v1059_v25 = vld [vmem:[%s1372_s1 + $0x88] sm:$0xff]  ;;  %v1042_v30 = vld [vmem:[%s1372_s1] sm:$0xff]  ;;  %v172_v33 = vunpack.c.l.b16 %v14_v29  ;;  %v1097_v35 = vld [vmem:[%s1372_s1 + $0x1b8] sm:$0xff]  ;;  %v173_v39 = vunpack.c.h.b16 %v14_v29 }
   0xb   :  { %659 = vmatpush.bf16.msra.mxu2 %v1063_v9  ;;  %v1067_v26 = vld [vmem:[%s1372_s1 + $0xc8] sm:$0xff]  ;;  %v1058_v31 = vld [vmem:[%s1372_s1 + $0x80] sm:$0xff]  ;;  %v1105_v40 = vld [vmem:[%s1372_s1 + $0x1f8] sm:$0xff] }
   0xc   :  { %672 = vmatpush.bf16.msra.mxu3 %v1071_v10  ;;  %v1051_v27 = vld [vmem:[%s1372_s1 + $0x48] sm:$0xff]  ;;  %v1066_v36 = vld [vmem:[%s1372_s1 + $0xc0] sm:$0xff]  ;;  %v1089_v41 = vld [vmem:[%s1372_s1 + $0x178] sm:$0xff]  ;;  %v181_v43 = vpack.c.b16 %v172_v33, %v172_v33  ;;  %v182_v47 = vpack.c.b16 %v173_v39, %v173_v39 }
   0xd   :  { %646 = vmatpush.bf16.msra.mxu1 %v1055_v11  ;;  %v15_v28 = vld [vmem:[%s1374_s0 + $0x8] sm:$0xff]  ;;  %v1050_v37 = vld [vmem:[%s1372_s1 + $0x40] sm:$0xff]  ;;  %v1080_v44 = vld [vmem:[%s1372_s1 + $0x130] sm:$0xff] }
   0xe   :  { %634 = vmatpush.bf16.msra.mxu0 %v1046_v12  ;;  %v174_v32 = vunpack.c.l.b16 %v15_v28  ;;  %v175_v38 = vunpack.c.h.b16 %v15_v28  ;;  %v1096_v45 = vld [vmem:[%s1372_s1 + $0x1b0] sm:$0xff]  ;;  %v1079_v50 = vld [vmem:[%s1372_s1 + $0x128] sm:$0xff]  ;;  %v1078_v54 = vld [vmem:[%s1372_s1 + $0x120] sm:$0xff] }
   0xf   :  { %660 = vmatpush.bf16.msra.mxu2 %v1062_v13  ;;  %v1104_v48 = vld [vmem:[%s1372_s1 + $0x1f0] sm:$0xff]  ;;  %v1095_v51 = vld [vmem:[%s1372_s1 + $0x1a8] sm:$0xff]  ;;  %v1094_v55 = vld [vmem:[%s1372_s1 + $0x1a0] sm:$0xff] }
  0x10   :  { %673 = vmatpush.bf16.msra.mxu3 %v1070_v14  ;;  %v183_v42 = vpack.c.b16 %v174_v32, %v174_v32  ;;  %v184_v46 = vpack.c.b16 %v175_v38, %v175_v38  ;;  %v1088_v49 = vld [vmem:[%s1372_s1 + $0x170] sm:$0xff]  ;;  %v1103_v52 = vld [vmem:[%s1372_s1 + $0x1e8] sm:$0xff]  ;;  %v1102_v56 = vld [vmem:[%s1372_s1 + $0x1e0] sm:$0xff] }
  0x11   :  { %647 = vmatpush.bf16.msra.mxu1 %v1054_v15  ;;  %v1087_v53 = vld [vmem:[%s1372_s1 + $0x168] sm:$0xff]  ;;  %v1086_v57 = vld [vmem:[%s1372_s1 + $0x160] sm:$0xff]  ;;  %v1077_v58 = vld [vmem:[%s1372_s1 + $0x118] sm:$0xff] }
  0x12   :  { %635 = vmatpush.bf16.msra.mxu0 %v1045_v16  ;;  %v1093_v59 = vld [vmem:[%s1372_s1 + $0x198] sm:$0xff]  ;;  %v1076_v62 = vld [vmem:[%s1372_s1 + $0x110] sm:$0xff]  ;;  %v1075_v2 = vld [vmem:[%s1372_s1 + $0x108] sm:$0xff] }
  0x13   :  { %661 = vmatpush.bf16.msra.mxu2 %v1061_v17  ;;  %v1101_v60 = vld [vmem:[%s1372_s1 + $0x1d8] sm:$0xff]  ;;  %v1092_v63 = vld [vmem:[%s1372_s1 + $0x190] sm:$0xff]  ;;  %v1091_v3 = vld [vmem:[%s1372_s1 + $0x188] sm:$0xff] }
  0x14   :  { %674 = vmatpush.bf16.msra.mxu3 %v1069_v18  ;;  %v1085_v61 = vld [vmem:[%s1372_s1 + $0x158] sm:$0xff]  ;;  %v1100_v0 = vld [vmem:[%s1372_s1 + $0x1d0] sm:$0xff]  ;;  %v1099_v6 = vld [vmem:[%s1372_s1 + $0x1c8] sm:$0xff] }
  0x15   :  { %648 = vmatpush.bf16.msra.mxu1 %v1053_v19  ;;  %v1084_v1 = vld [vmem:[%s1372_s1 + $0x150] sm:$0xff]  ;;  %v17_v4 = vld [vmem:[%s1374_s0 + $0x18] sm:$0xff]  ;;  %v1083_v7 = vld [vmem:[%s1372_s1 + $0x148] sm:$0xff] }
  0x16   :  { %636 = vmatpush.bf16.msra.mxu0 %v1044_v20  ;;  %v16_v5 = vld [vmem:[%s1374_s0 + $0x10] sm:$0xff]  ;;  %v178_v8 = vunpack.c.l.b16 %v17_v4  ;;  %v1074_v10 = vld [vmem:[%s1372_s1 + $0x100] sm:$0xff]  ;;  %v1113_v12 = vld [vmem:[%s1372_s1 + $0x238] sm:$0xff]  ;;  %v179_v13 = vunpack.c.h.b16 %v17_v4 }
  0x17   :  { %662 = vmatpush.bf16.msra.mxu2 %v1060_v21  ;;  %v176_v9 = vunpack.c.l.b16 %v16_v5  ;;  %v1090_v11 = vld [vmem:[%s1372_s1 + $0x180] sm:$0xff]  ;;  %v177_v16 = vunpack.c.h.b16 %v16_v5  ;;  %v1112_v19 = vld [vmem:[%s1372_s1 + $0x230] sm:$0xff] }
  0x18   :  { %675 = vmatpush.bf16.msra.mxu3 %v1068_v22  ;;  %v1098_v14 = vld [vmem:[%s1372_s1 + $0x1c0] sm:$0xff]  ;;  %v187_v17 = vpack.c.b16 %v178_v8, %v178_v8  ;;  %v188_v20 = vpack.c.b16 %v179_v13, %v179_v13  ;;  %v1111_v22 = vld [vmem:[%s1372_s1 + $0x228] sm:$0xff] }
  0x19   :  { %649 = vmatpush.bf16.msra.mxu1 %v1052_v23  ;;  %v1082_v15 = vld [vmem:[%s1372_s1 + $0x140] sm:$0xff]  ;;  %v185_v18 = vpack.c.b16 %v176_v9, %v176_v9  ;;  %v186_v21 = vpack.c.b16 %v177_v16, %v177_v16 }
  0x1a   :  { %637 = vmatpush.bf16.msra.mxu0 %v1043_v24  ;;  %v1110_v23 = vld [vmem:[%s1372_s1 + $0x220] sm:$0xff]  ;;  %v1109_v24 = vld [vmem:[%s1372_s1 + $0x218] sm:$0xff] }
  0x1b   :  { %663 = vmatpush.bf16.msra.mxu2 %v1059_v25  ;;  %v1108_v25 = vld [vmem:[%s1372_s1 + $0x210] sm:$0xff]  ;;  %v1106_v29 = vld [vmem:[%s1372_s1 + $0x200] sm:$0xff] }
  0x1c   :  { %676 = vmatpush.bf16.msra.mxu3 %v1067_v26  ;;  %v1107_v26 = vld [vmem:[%s1372_s1 + $0x208] sm:$0xff]  ;;  %v1114_v39 = vld [vmem:[%s1373_s2] ss:$0 sm:$0xff] }
  0x1d   :  { %650 = vmatpush.bf16.msra.mxu1 %v1051_v27  ;;  %v18_v27 = vld [vmem:[%s1374_s0 + $0x20] sm:$0xf] }
  0x1e   :  { %638 = vmatpush.bf16.msra.mxu0 %v1042_v30  ;;  %v180_v28 = vunpack.c.l.b16 %v18_v27 }
  0x1f   :  { %664 = vmatpush.bf16.msra.mxu2 %v1058_v31 }
  0x20   :  { %677 = vmatpush.bf16.msra.mxu3 %v1066_v36  ;;  %v189_v30 = vpack.c.b16 %v180_v28, %v180_v28 }
  0x21   :  { %651 = vmatpush.bf16.msra.mxu1 %v1050_v37  ;;  %639 = vmatmul.bf16.vlgmr.msra.gmra.mxu0 %v181_v43 }
  0x22   :  { %683 = vmatpush.bf16.msrb.mxu0 %v1081_v34  ;;  %665 = vmatmul.bf16.vlgmr.msra.gmra.mxu2 %v183_v42 }
  0x23   :  { %709 = vmatpush.bf16.msrb.mxu2 %v1097_v35  ;;  %678 = vmatmul.bf16.vlgmr.msra.gmra.mxu3 %v184_v46 }
  0x24   :  { %722 = vmatpush.bf16.msrb.mxu3 %v1105_v40  ;;  %652 = vmatmul.bf16.vlgmr.msra.gmra.mxu1 %v182_v47 }
  0x25   :  { %696 = vmatpush.bf16.msrb.mxu1 %v1089_v41 }
  0x26   :  { %684 = vmatpush.bf16.msrb.mxu0 %v1080_v44 }
  0x27   :  { %710 = vmatpush.bf16.msrb.mxu2 %v1096_v45 }
  0x28   :  { %723 = vmatpush.bf16.msrb.mxu3 %v1104_v48 }
  0x29   :  { %697 = vmatpush.bf16.msrb.mxu1 %v1088_v49 }
  0x2a   :  { %685 = vmatpush.bf16.msrb.mxu0 %v1079_v50 }
  0x2b   :  { %711 = vmatpush.bf16.msrb.mxu2 %v1095_v51 }
  0x2c   :  { %724 = vmatpush.bf16.msrb.mxu3 %v1103_v52 }
  0x2d   :  { %698 = vmatpush.bf16.msrb.mxu1 %v1087_v53 }
  0x2e   :  { %686 = vmatpush.bf16.msrb.mxu0 %v1078_v54 }
  0x2f   :  { %712 = vmatpush.bf16.msrb.mxu2 %v1094_v55 }
  0x30   :  { %725 = vmatpush.bf16.msrb.mxu3 %v1102_v56 }
  0x31   :  { %699 = vmatpush.bf16.msrb.mxu1 %v1086_v57 }
  0x32   :  { %687 = vmatpush.bf16.msrb.mxu0 %v1077_v58 }
  0x33   :  { %713 = vmatpush.bf16.msrb.mxu2 %v1093_v59 }
  0x34   :  { %726 = vmatpush.bf16.msrb.mxu3 %v1101_v60 }
  0x35   :  { %700 = vmatpush.bf16.msrb.mxu1 %v1085_v61 }
  0x36   :  { %688 = vmatpush.bf16.msrb.mxu0 %v1076_v62 }
  0x37   :  { %714 = vmatpush.bf16.msrb.mxu2 %v1092_v63 }
  0x38   :  { %727 = vmatpush.bf16.msrb.mxu3 %v1100_v0 }
  0x39   :  { %701 = vmatpush.bf16.msrb.mxu1 %v1084_v1 }
  0x3a   :  { %689 = vmatpush.bf16.msrb.mxu0 %v1075_v2 }
  0x3b   :  { %715 = vmatpush.bf16.msrb.mxu2 %v1091_v3 }
  0x3c   :  { %728 = vmatpush.bf16.msrb.mxu3 %v1099_v6 }
  0x3d   :  { %702 = vmatpush.bf16.msrb.mxu1 %v1083_v7 }
  0x3e   :  { %690 = vmatpush.bf16.msrb.mxu0 %v1074_v10 }
  0x3f   :  { %716 = vmatpush.bf16.msrb.mxu2 %v1090_v11 }
  0x40   :  { %729 = vmatpush.bf16.msrb.mxu3 %v1098_v14 }
  0x41   :  { %703 = vmatpush.bf16.msrb.mxu1 %v1082_v15  ;;  %691 = vmatmul.bf16.vlgmr.msrb.gmra.mxu0 %v185_v18 }
  0x42   :  { %735 = vmatpush.bf16.msra.mxu0 %v1113_v12  ;;  %717 = vmatmul.bf16.vlgmr.msrb.gmra.mxu2 %v187_v17 }
  0x43   :  { %730 = vmatmul.bf16.vlgmr.msrb.gmra.mxu3 %v188_v20 }
  0x44   :  { %704 = vmatmul.bf16.vlgmr.msrb.gmra.mxu1 %v186_v21 }
  0x46   :  { %736 = vmatpush.bf16.msra.mxu0 %v1112_v19 }
  0x4a   :  { %737 = vmatpush.bf16.msra.mxu0 %v1111_v22 }
  0x4e   :  { %738 = vmatpush.bf16.msra.mxu0 %v1110_v23 }
  0x52   :  { %739 = vmatpush.bf16.msra.mxu0 %v1109_v24 }
  0x56   :  { %740 = vmatpush.bf16.msra.mxu0 %v1108_v25 }
  0x5a   :  { %741 = vmatpush.bf16.msra.mxu0 %v1107_v26 }
  0x5e   :  { %742 = vmatpush.bf16.msra.mxu0 %v1106_v29 }
  0x61   :  { %743 = vmatmul.bf16.vlgmr.msra.gmra.mxu0 %v189_v30 }
  0x9e   :  { %v640_v31 = vpop.f32.mrf.mxu0 }
  0x9f   :  { %v641_v40 = vadd.f32 %v1114_v39, %v640_v31 }
  0xa1   :  { %v653_v32 = vpop.f32.mrf.mxu1 }
  0xa2   :  { %v654_v43 = vadd.f32 %v653_v32, %v641_v40 }
  0xa5   :  { %v666_v33 = vpop.f32.mrf.mxu2 }
  0xa6   :  { %v679_v34 = vpop.f32.mrf.mxu3  ;;  %v642_v35 = vpop.f32.mrf.mxu0  ;;  %v667_v45 = vadd.f32 %v666_v33, %v654_v43 }
  0xa8   :  { %v680_v49 = vadd.f32 %v679_v34, %v667_v45 }
  0xa9   :  { %v655_v36 = vpop.f32.mrf.mxu1 }
  0xad   :  { %v668_v37 = vpop.f32.mrf.mxu2 }
  0xae   :  { %v681_v38 = vpop.f32.mrf.mxu3 }
  0xbe   :  { %v692_v41 = vpop.f32.mrf.mxu0 }
  0xbf   :  { %v693_v51 = vadd.f32 %v692_v41, %v680_v49 }
  0xc1   :  { %v705_v42 = vpop.f32.mrf.mxu1 }
  0xc2   :  { %v706_v53 = vadd.f32 %v705_v42, %v693_v51 }
  0xc5   :  { %v718_v44 = vpop.f32.mrf.mxu2 }
  0xc6   :  { %v731_v46 = vpop.f32.mrf.mxu3  ;;  %v694_v47 = vpop.f32.mrf.mxu0  ;;  %v719_v54 = vadd.f32 %v718_v44, %v706_v53 }
  0xc8   :  { %v732_v55 = vadd.f32 %v731_v46, %v719_v54 }
  0xc9   :  { %v707_v48 = vpop.f32.mrf.mxu1 }
  0xcd   :  { %v720_v50 = vpop.f32.mrf.mxu2 }
  0xce   :  { %v733_v52 = vpop.f32.mrf.mxu3 }
  0xde   :  { %v744_v56 = vpop.f32.mrf.mxu0 }
  0xdf   :  { %v745_v57 = vadd.f32 %v744_v56, %v732_v55 }
  0xe1   :  { %v748_v58 = vpack.c.bf16 %v745_v57, %v745_v57 }
  0xe3   :  { %749 = vst [vmem:[%s1375_s3] sm:$0xf] %v748_v58 }
  0xe6   :  { %v746_v59 = vpop.f32.mrf.mxu0 }

</bundles_post_ra>
